<compile_context>
chip_gen: v5e
topology: v5e:2x2
jax: 0.10.0
libtpu: 0.0.40
codegen_flags: <defaults>
</compile_context>

<pallas_src>
import functools

import jax
import jax.numpy as jnp
import numpy as np
from jax import lax
from jax.experimental import pallas as pl
from jax.experimental.pallas import tpu as pltpu

EPS = 1e-8        # GroupNorm eps (GlobLN)
K = 5             # depthwise kernel size used everywhere in this block
PAD = (K - 1) // 2


# ----------------------------------------------------------------------------
# In-kernel helpers
# ----------------------------------------------------------------------------
def _gln(y, gamma, beta):
    """GroupNorm(1, C) over the full (C, L) tile of one batch element.

    Single-pass: sum and sum-of-squares computed together, var = E[x^2]-mu^2.
    """
    inv_n = 1.0 / float(y.shape[0] * y.shape[1])
    mu = jnp.sum(y) * inv_n
    var = jnp.sum(y * y) * inv_n - mu * mu
    var = jnp.maximum(var, 0.0)
    return (y - mu) * lax.rsqrt(var + EPS) * gamma + beta


def _bdot(a_f32, b_bf16):
    """MXU matmul against a bf16 host constant; f32 accumulate."""
    return jnp.dot(a_f32.astype(jnp.bfloat16), b_bf16,
                   preferred_element_type=jnp.float32)


def _fill_halo(sc_ref, x):
    """Write x into a halo scratch, zeroing ONLY the halo columns.

    Left halo = PAD zeros; right tail (PAD, or PAD+1 on odd-length stride-2
    levels, or more when a longer scratch is reused) = zeros; interior = x.
    Avoids a full-width memset of the scratch on every fill.
    """
    c, w = sc_ref.shape
    l = x.shape[1]
    sc_ref[:, :PAD] = jnp.zeros((c, PAD), jnp.float32)
    tail = w - (PAD + l)
    if tail > 0:
        sc_ref[:, PAD + l:] = jnp.zeros((c, tail), jnp.float32)
    sc_ref[:, PAD:PAD + l] = x


def _dw_taps(sc_ref, w, l_out, *, sel=None, bias=None):
    """Depthwise conv1d (k=5, 'same' zero padding) from a pre-filled halo scratch.

    stride=1: sel is None, accumulate l_out columns directly.
    stride=2: accumulate at full rate and subsample with a host-built 0/1 bf16
    selection matrix (2*l_out, l_out) on the otherwise-idle MXU — the matrix is
    DMA'd once and stays VMEM-resident across the batch grid, instead of being
    rebuilt with iota/compare every step.
    """
    c = sc_ref.shape[0]
    width = l_out if sel is None else sel.shape[0]
    acc = jnp.zeros((c, width), jnp.float32)
    for k in range(K):                                  # static 5-tap loop
        acc = acc + sc_ref[:, k:k + width] * w[:, k:k + 1]
    if sel is not None:
        acc = jnp.dot(acc.astype(jnp.bfloat16), sel,
                      preferred_element_type=jnp.float32)
    if bias is not None:
        acc = acc + bias
    return acc


# ----------------------------------------------------------------------------
# Fused UConvBlock kernel: one batch element per grid step, everything in VMEM
# ----------------------------------------------------------------------------
def _uconv_kernel(x_ref,
                  pw_ref, pb_ref, pg_ref, pbt_ref, pa_ref,
                  sw_ref, sb_ref,
                  p0_ref, p1_ref, p2_ref,
                  s1_ref, s2_ref, s3_ref,
                  u0_ref, u1_ref, u2_ref,
                  f1w_ref, f1g_ref, f1b_ref, mdw_ref, mdb_ref,
                  f2w_ref, f2g_ref, f2b_ref,
                  law_ref, lag_ref, lab_ref,
                  ua_ref, ub_ref, uc_ref,
                  rw_ref, rb_ref,
                  out_ref,
                  sc0, sc1, sc2, sc3, scm,
                  *, lens):
    l0, l1, l2, l3 = lens
    x = x_ref[...].astype(jnp.float32)                               # (Co, T)

    # ---------------- proj_1x1: 1x1 conv (bias) + GlobLN + PReLU ------------
    h = jnp.dot(pw_ref[...], x, preferred_element_type=jnp.float32) + pb_ref[...]
    h = _gln(h, pg_ref[...], pbt_ref[...])
    h = jnp.where(h >= 0.0, h, pa_ref[...] * h)                      # PReLU

    # ---------------- spp_dw pyramid ----------------------------------------
    # TODO(synk): FCDyConv1d (dynamic-kernel conv) definition is not part of the
    # reference; approximated with a static depthwise conv of matching
    # kernel/stride/bias.
    _fill_halo(sc0, h)
    y0 = _dw_taps(sc0, sw_ref[0], l0, bias=sb_ref[0])
    _fill_halo(sc1, y0)
    y1 = _dw_taps(sc1, sw_ref[1], l1, sel=s1_ref[...], bias=sb_ref[1])
    _fill_halo(sc2, y1)
    y2 = _dw_taps(sc2, sw_ref[2], l2, sel=s2_ref[...], bias=sb_ref[2])
    _fill_halo(sc3, y2)
    y3 = _dw_taps(sc3, sw_ref[3], l3, sel=s3_ref[...], bias=sb_ref[3])

    # ------- multi-scale adaptive average pooling to l3 + sum (fused) -------
    g = (y3
         + _bdot(y0, p0_ref[...])
         + _bdot(y1, p1_ref[...])
         + _bdot(y2, p2_ref[...]))

    # ------- GlobalAttention: g + Mlp(g) (Dropout p=0 / DropPath 0 = id) ----
    m = _gln(jnp.dot(f1w_ref[...], g, preferred_element_type=jnp.float32),
             f1g_ref[...], f1b_ref[...])
    _fill_halo(scm, m)
    m = _dw_taps(scm, mdw_ref[...], l3, bias=mdb_ref[...])
    m = jnp.maximum(m, 0.0)
    m = _gln(jnp.dot(f2w_ref[...], m, preferred_element_type=jnp.float32),
             f2g_ref[...], f2b_ref[...])
    g = g + m

    # ------- fuse global context into the scales the decoder uses -----------
    # (nearest upsample == 0/1 bf16 matmul; the coarsest scale xf3 is dead
    # under the EMCAD placeholder, so it is not computed at all.)
    xf0 = _bdot(g, u0_ref[...]) + y0
    xf1 = _bdot(g, u1_ref[...]) + y1
    xf2 = _bdot(g, u2_ref[...]) + y2

    # ---------------- decoder: 3 chained LA stages --------------------------
    # TODO(synk): EMCADv1_6 definition is not part of the reference; modelled as
    # returning the fused pyramid coarse->fine, so after the torch `.reverse()`
    # the decode below consumes x_fused in its natural fine->coarse order
    # (this keeps all shapes consistent with the final `+ residual`).
    def la_stage(s, x_l, x_g, sc_l, sc_g, u_ref, l_l, l_g):
        # LA: depthwise(k=5, no bias) + GlobLN on local / global-act /
        # global-feat, sigmoid gate, nearest interp of the global branches to
        # the local length (x_g halo written once, shared by both branches).
        _fill_halo(sc_l, x_l)
        local_feat = _gln(_dw_taps(sc_l, law_ref[3 * s + 0], l_l),
                          lag_ref[3 * s + 0], lab_ref[3 * s + 0])
        _fill_halo(sc_g, x_g)
        g_act = _gln(_dw_taps(sc_g, law_ref[3 * s + 1], l_g),
                     lag_ref[3 * s + 1], lab_ref[3 * s + 1])
        g_feat = _gln(_dw_taps(sc_g, law_ref[3 * s + 2], l_g),
                      lag_ref[3 * s + 2], lab_ref[3 * s + 2])
        u = u_ref[...]
        sig = _bdot(jax.nn.sigmoid(g_act), u)
        gfi = _bdot(g_feat, u)
        return local_feat * sig + gfi

    # Scratch reuse: a fill of length L into a longer scratch only pays for the
    # few extra tail-zero columns (<= PAD+1).
    e = la_stage(2, xf2, xf1, sc3, sc2, ua_ref, l2, l1)   # i = depth-2
    e = la_stage(1, xf1, e,   sc2, sc3, ub_ref, l1, l2)   # i = 1
    e = la_stage(0, xf0, e,   sc0, sc2, uc_ref, l0, l1)   # i = 0

    # ---------------- res_conv + residual -----------------------------------
    out = jnp.dot(rw_ref[...], e, preferred_element_type=jnp.float32) + rb_ref[...]
    out_ref[...] = (out + x).astype(out_ref.dtype)


# ----------------------------------------------------------------------------
# Host-side constant matrices (bf16: 0/1 entries exact; adaptive-pool weights
# pick up ~1e-3 relative error, accepted for the MXU-rate / VMEM win)
# ----------------------------------------------------------------------------
def _nearest_interp_matrix(l_src, l_dst):
    """0/1 matrix M (l_src, l_dst): x @ M == F.interpolate(x, l_dst, 'nearest')."""
    idx = (np.arange(l_dst) * l_src) // l_dst
    m = np.zeros((l_src, l_dst), np.float32)
    m[idx, np.arange(l_dst)] = 1.0
    return jnp.asarray(m, jnp.bfloat16)


def _adaptive_pool_matrix(l_in, l_out):
    """Matrix M (l_in, l_out): x @ M == F.adaptive_avg_pool1d(x, l_out)."""
    m = np.zeros((l_in, l_out), np.float32)
    for o in range(l_out):
        s = (o * l_in) // l_out
        e = -((-(o + 1) * l_in) // l_out)      # ceil
        m[s:e, o] = 1.0 / (e - s)
    return jnp.asarray(m, jnp.bfloat16)


def _stride2_sel_matrix(l_out):
    """0/1 matrix M (2*l_out, l_out): acc @ M picks the even (stride-2) columns."""
    m = np.zeros((2 * l_out, l_out), np.float32)
    m[2 * np.arange(l_out), np.arange(l_out)] = 1.0
    return jnp.asarray(m, jnp.bfloat16)


# ----------------------------------------------------------------------------
# Forward wrapper (one pallas_call for the whole UConvBlock)
# ----------------------------------------------------------------------------
def uconv_block_forward(params, x):
    p = params
    b, co, t = x.shape
    c = p["proj_w"].shape[0]
    depth = 4                                   # kernel is specialised for depth 4

    lens = [t]
    for _ in range(depth - 1):
        lens.append((lens[-1] + 1) // 2)        # stride-2 'same' conv output length
    l0, l1, l2, l3 = lens

    pool_m = [_adaptive_pool_matrix(lens[k], l3) for k in range(depth - 1)]
    sel_m = [_stride2_sel_matrix(lens[k]) for k in range(1, depth)]
    up_m = [_nearest_interp_matrix(l3, lens[k]) for k in range(depth - 1)]
    ua = _nearest_interp_matrix(l1, l2)         # LA stage i=2: x_g(l1) -> l2
    ub = _nearest_interp_matrix(l2, l1)         # LA stage i=1: x_g(l2) -> l1
    uc = _nearest_interp_matrix(l1, l0)         # LA stage i=0: x_g(l1) -> l0

    def full(shape):
        return pl.BlockSpec(shape, lambda i: (0,) * len(shape))

    def per_batch(ch, ln):
        return pl.BlockSpec((None, ch, ln), lambda i: (i, 0, 0))

    out = pl.pallas_call(
        functools.partial(_uconv_kernel, lens=tuple(lens)),
        grid=(b,),
        in_specs=[
            per_batch(co, t),                                           # x (also residual)
            full((c, co)), full((c, 1)), full((c, 1)), full((c, 1)), full((1, 1)),
            full((depth, c, K)), full((depth, c, 1)),
            full((l0, l3)), full((l1, l3)), full((l2, l3)),             # adaptive pool
            full((2 * l1, l1)), full((2 * l2, l2)), full((2 * l3, l3)), # stride-2 select
            full((l3, l0)), full((l3, l1)), full((l3, l2)),             # nearest upsample
            full((2 * c, c)), full((2 * c, 1)), full((2 * c, 1)),
            full((2 * c, K)), full((2 * c, 1)),
            full((c, 2 * c)), full((c, 1)), full((c, 1)),
            full((3 * (depth - 1), c, K)),
            full((3 * (depth - 1), c, 1)),
            full((3 * (depth - 1), c, 1)),
            full((l1, l2)), full((l2, l1)), full((l1, l0)),
            full((co, c)), full((co, 1)),
        ],
        out_specs=per_batch(co, t),
        out_shape=jax.ShapeDtypeStruct((b, co, t), jnp.float32),
        scratch_shapes=[
            pltpu.VMEM((c, l0 + 2 * PAD), jnp.float32),        # level 0 halo / LA local l0
            pltpu.VMEM((c, 2 * l1 + 2 * PAD), jnp.float32),    # level 1 halo (stride 2)
            pltpu.VMEM((c, 2 * l2 + 2 * PAD), jnp.float32),    # level 2 halo / LA l1
            pltpu.VMEM((c, 2 * l3 + 2 * PAD), jnp.float32),    # level 3 halo / LA l2
            pltpu.VMEM((2 * c, l3 + 2 * PAD), jnp.float32),    # Mlp depthwise halo
        ],
        compiler_params=pltpu.CompilerParams(
            dimension_semantics=("parallel",),
            vmem_limit_bytes=32 * 1024 * 1024),
    )(x,
      p["proj_w"], p["proj_b"], p["proj_g"], p["proj_beta"], p["proj_prelu"],
      p["spp_w"], p["spp_b"],
      pool_m[0], pool_m[1], pool_m[2],
      sel_m[0], sel_m[1], sel_m[2],
      up_m[0], up_m[1], up_m[2],
      p["mlp_fc1_w"], p["mlp_fc1_g"], p["mlp_fc1_b"],
      p["mlp_dw_w"], p["mlp_dw_b"],
      p["mlp_fc2_w"], p["mlp_fc2_g"], p["mlp_fc2_b"],
      p["la_w"], p["la_g"], p["la_b"],
      ua, ub, uc,
      p["res_w"], p["res_b"])
    return out


# ----------------------------------------------------------------------------
# Deterministic parameter initialization (synthetic, shapes from __init__)
# ----------------------------------------------------------------------------
def init_params(out_channels, in_channels, seed=0):
    key = jax.random.PRNGKey(seed)
    depth = 4

    def nrm(shape, scale=0.1):
        nonlocal key
        key, sub = jax.random.split(key)
        return scale * jax.random.normal(sub, shape, jnp.float32)

    c, co, hid = in_channels, out_channels, in_channels * 2
    return {
        # proj_1x1 = ConvNormAct(out_channels -> in_channels, k=1)
        "proj_w": nrm((c, co)),
        "proj_b": nrm((c, 1), 0.01),
        "proj_g": jnp.ones((c, 1), jnp.float32),
        "proj_beta": jnp.zeros((c, 1), jnp.float32),
        "proj_prelu": jnp.full((1, 1), 0.25, jnp.float32),
        # spp_dw: 4 depthwise convs (k=5, bias) -- FCDyConv1d placeholder weights
        "spp_w": nrm((depth, c, K)),
        "spp_b": nrm((depth, c, 1), 0.01),
        # GlobalAttention Mlp: ConvNorm(c->2c, no bias) / dw(5, bias) / ConvNorm(2c->c)
        "mlp_fc1_w": nrm((hid, c)),
        "mlp_fc1_g": jnp.ones((hid, 1), jnp.float32),
        "mlp_fc1_b": jnp.zeros((hid, 1), jnp.float32),
        "mlp_dw_w": nrm((hid, K)),
        "mlp_dw_b": nrm((hid, 1), 0.01),
        "mlp_fc2_w": nrm((c, hid)),
        "mlp_fc2_g": jnp.ones((c, 1), jnp.float32),
        "mlp_fc2_b": jnp.zeros((c, 1), jnp.float32),
        # LA stages flattened to [(stage, branch), C, K]; branch = local/g_act/g_feat
        "la_w": nrm(((depth - 1) * 3, c, K)),
        "la_g": jnp.ones(((depth - 1) * 3, c, 1), jnp.float32),
        "la_b": jnp.zeros(((depth - 1) * 3, c, 1), jnp.float32),
        # res_conv: Conv1d(in_channels -> out_channels, 1, bias)
        "res_w": nrm((co, c)),
        "res_b": nrm((co, 1), 0.01),
    }


# ----------------------------------------------------------------------------
if __name__ == "__main__":
    B, out_channels, in_channels, feat_len = 2, 16, 32, 16
    params = init_params(out_channels, in_channels, seed=0)
    x = jax.random.normal(jax.random.PRNGKey(0),
                          (B, out_channels, feat_len), jnp.float32)

    y = uconv_block_forward(params, x)
    y = jax.block_until_ready(y)

    assert y.shape == (B, out_channels, feat_len), y.shape
    assert bool(jnp.all(jnp.isfinite(y)))
    print("KERNEL_OK")
</pallas_src>

<mosaic_0001>
module attributes {stable_mosaic.version = 11 : i64} {
  func.func @_uconv_kernel(%arg0: i32, %arg1: memref<1x16x16xf32, #tpu.memory_space<vmem>>, %arg2: memref<32x16xf32, #tpu.memory_space<vmem>>, %arg3: memref<32x1xf32, #tpu.memory_space<vmem>>, %arg4: memref<32x1xf32, #tpu.memory_space<vmem>>, %arg5: memref<32x1xf32, #tpu.memory_space<vmem>>, %arg6: memref<1x1xf32, #tpu.memory_space<vmem>>, %arg7: memref<4x32x5xf32, #tpu.memory_space<vmem>>, %arg8: memref<4x32x1xf32, #tpu.memory_space<vmem>>, %arg9: memref<16x2xbf16, #tpu.memory_space<vmem>>, %arg10: memref<8x2xbf16, #tpu.memory_space<vmem>>, %arg11: memref<4x2xbf16, #tpu.memory_space<vmem>>, %arg12: memref<16x8xbf16, #tpu.memory_space<vmem>>, %arg13: memref<8x4xbf16, #tpu.memory_space<vmem>>, %arg14: memref<4x2xbf16, #tpu.memory_space<vmem>>, %arg15: memref<2x16xbf16, #tpu.memory_space<vmem>>, %arg16: memref<2x8xbf16, #tpu.memory_space<vmem>>, %arg17: memref<2x4xbf16, #tpu.memory_space<vmem>>, %arg18: memref<64x32xf32, #tpu.memory_space<vmem>>, %arg19: memref<64x1xf32, #tpu.memory_space<vmem>>, %arg20: memref<64x1xf32, #tpu.memory_space<vmem>>, %arg21: memref<64x5xf32, #tpu.memory_space<vmem>>, %arg22: memref<64x1xf32, #tpu.memory_space<vmem>>, %arg23: memref<32x64xf32, #tpu.memory_space<vmem>>, %arg24: memref<32x1xf32, #tpu.memory_space<vmem>>, %arg25: memref<32x1xf32, #tpu.memory_space<vmem>>, %arg26: memref<9x32x5xf32, #tpu.memory_space<vmem>>, %arg27: memref<9x32x1xf32, #tpu.memory_space<vmem>>, %arg28: memref<9x32x1xf32, #tpu.memory_space<vmem>>, %arg29: memref<8x4xbf16, #tpu.memory_space<vmem>>, %arg30: memref<4x8xbf16, #tpu.memory_space<vmem>>, %arg31: memref<8x16xbf16, #tpu.memory_space<vmem>>, %arg32: memref<16x32xf32, #tpu.memory_space<vmem>>, %arg33: memref<16x1xf32, #tpu.memory_space<vmem>>, %arg34: memref<1x16x16xf32, #tpu.memory_space<vmem>>, %arg35: memref<32x20xf32, #tpu.memory_space<vmem>>, %arg36: memref<32x20xf32, #tpu.memory_space<vmem>>, %arg37: memref<32x12xf32, #tpu.memory_space<vmem>>, %arg38: memref<32x8xf32, #tpu.memory_space<vmem>>, %arg39: memref<64x6xf32, #tpu.memory_space<vmem>>) attributes {dimension_semantics = [#tpu.dimension_semantics<parallel>], iteration_bounds = array<i64: 2>, scalar_prefetch = 0 : i64, scratch_operands = 5 : i64, tpu.core_type = #tpu.core_type<tc>, window_params = [{transform_indices = @transform_0, window_bounds = array<i64: 1, 16, 16>}, {pipeline_mode = #tpu.pipeline_mode<synchronous>, transform_indices = @transform_1, window_bounds = array<i64: 32, 16>}, {pipeline_mode = #tpu.pipeline_mode<synchronous>, transform_indices = @transform_2, window_bounds = array<i64: 32, 1>}, {pipeline_mode = #tpu.pipeline_mode<synchronous>, transform_indices = @transform_3, window_bounds = array<i64: 32, 1>}, {pipeline_mode = #tpu.pipeline_mode<synchronous>, transform_indices = @transform_4, window_bounds = array<i64: 32, 1>}, {pipeline_mode = #tpu.pipeline_mode<synchronous>, transform_indices = @transform_5, window_bounds = array<i64: 1, 1>}, {pipeline_mode = #tpu.pipeline_mode<synchronous>, transform_indices = @transform_6, window_bounds = array<i64: 4, 32, 5>}, {pipeline_mode = #tpu.pipeline_mode<synchronous>, transform_indices = @transform_7, window_bounds = array<i64: 4, 32, 1>}, {pipeline_mode = #tpu.pipeline_mode<synchronous>, transform_indices = @transform_8, window_bounds = array<i64: 16, 2>}, {pipeline_mode = #tpu.pipeline_mode<synchronous>, transform_indices = @transform_9, window_bounds = array<i64: 8, 2>}, {pipeline_mode = #tpu.pipeline_mode<synchronous>, transform_indices = @transform_10, window_bounds = array<i64: 4, 2>}, {pipeline_mode = #tpu.pipeline_mode<synchronous>, transform_indices = @transform_11, window_bounds = array<i64: 16, 8>}, {pipeline_mode = #tpu.pipeline_mode<synchronous>, transform_indices = @transform_12, window_bounds = array<i64: 8, 4>}, {pipeline_mode = #tpu.pipeline_mode<synchronous>, transform_indices = @transform_13, window_bounds = array<i64: 4, 2>}, {pipeline_mode = #tpu.pipeline_mode<synchronous>, transform_indices = @transform_14, window_bounds = array<i64: 2, 16>}, {pipeline_mode = #tpu.pipeline_mode<synchronous>, transform_indices = @transform_15, window_bounds = array<i64: 2, 8>}, {pipeline_mode = #tpu.pipeline_mode<synchronous>, transform_indices = @transform_16, window_bounds = array<i64: 2, 4>}, {pipeline_mode = #tpu.pipeline_mode<synchronous>, transform_indices = @transform_17, window_bounds = array<i64: 64, 32>}, {pipeline_mode = #tpu.pipeline_mode<synchronous>, transform_indices = @transform_18, window_bounds = array<i64: 64, 1>}, {pipeline_mode = #tpu.pipeline_mode<synchronous>, transform_indices = @transform_19, window_bounds = array<i64: 64, 1>}, {pipeline_mode = #tpu.pipeline_mode<synchronous>, transform_indices = @transform_20, window_bounds = array<i64: 64, 5>}, {pipeline_mode = #tpu.pipeline_mode<synchronous>, transform_indices = @transform_21, window_bounds = array<i64: 64, 1>}, {pipeline_mode = #tpu.pipeline_mode<synchronous>, transform_indices = @transform_22, window_bounds = array<i64: 32, 64>}, {pipeline_mode = #tpu.pipeline_mode<synchronous>, transform_indices = @transform_23, window_bounds = array<i64: 32, 1>}, {pipeline_mode = #tpu.pipeline_mode<synchronous>, transform_indices = @transform_24, window_bounds = array<i64: 32, 1>}, {pipeline_mode = #tpu.pipeline_mode<synchronous>, transform_indices = @transform_25, window_bounds = array<i64: 9, 32, 5>}, {pipeline_mode = #tpu.pipeline_mode<synchronous>, transform_indices = @transform_26, window_bounds = array<i64: 9, 32, 1>}, {pipeline_mode = #tpu.pipeline_mode<synchronous>, transform_indices = @transform_27, window_bounds = array<i64: 9, 32, 1>}, {pipeline_mode = #tpu.pipeline_mode<synchronous>, transform_indices = @transform_28, window_bounds = array<i64: 8, 4>}, {pipeline_mode = #tpu.pipeline_mode<synchronous>, transform_indices = @transform_29, window_bounds = array<i64: 4, 8>}, {pipeline_mode = #tpu.pipeline_mode<synchronous>, transform_indices = @transform_30, window_bounds = array<i64: 8, 16>}, {pipeline_mode = #tpu.pipeline_mode<synchronous>, transform_indices = @transform_31, window_bounds = array<i64: 16, 32>}, {pipeline_mode = #tpu.pipeline_mode<synchronous>, transform_indices = @transform_32, window_bounds = array<i64: 16, 1>}, {transform_indices = @transform_33, window_bounds = array<i64: 1, 16, 16>}]} {
    %c0 = arith.constant 0 : index
    %c0_0 = arith.constant 0 : index
    %c0_1 = arith.constant 0 : index
    %0 = vector.load %arg1[%c0, %c0_0, %c0_1] : memref<1x16x16xf32, #tpu.memory_space<vmem>>, vector<1x16x16xf32>
    %1 = vector.shape_cast %0 : vector<1x16x16xf32> to vector<16x16xf32>
    %c0_2 = arith.constant 0 : index
    %c0_3 = arith.constant 0 : index
    %2 = vector.load %arg2[%c0_2, %c0_3] : memref<32x16xf32, #tpu.memory_space<vmem>>, vector<32x16xf32>
    %cst = arith.constant dense<0.000000e+00> : vector<32x16xf32>
    %3 = tpu.matmul %2, %1, %cst {dimension_numbers = #tpu.dot_dimension_numbers<[1], [0], [0], [1], [0, 0, 1, 1], [], []>} : vector<32x16xf32>, vector<16x16xf32>, vector<32x16xf32> -> vector<32x16xf32>
    %c0_4 = arith.constant 0 : index
    %c0_5 = arith.constant 0 : index
    %4 = vector.load %arg3[%c0_4, %c0_5] : memref<32x1xf32, #tpu.memory_space<vmem>>, vector<32x1xf32>
    %5 = vector.broadcast %4 : vector<32x1xf32> to vector<32x16xf32>
    %6 = arith.addf %3, %5 : vector<32x16xf32>
    %c0_6 = arith.constant 0 : index
    %c0_7 = arith.constant 0 : index
    %7 = vector.load %arg4[%c0_6, %c0_7] : memref<32x1xf32, #tpu.memory_space<vmem>>, vector<32x1xf32>
    %c0_8 = arith.constant 0 : index
    %c0_9 = arith.constant 0 : index
    %8 = vector.load %arg5[%c0_8, %c0_9] : memref<32x1xf32, #tpu.memory_space<vmem>>, vector<32x1xf32>
    %9 = vector.shape_cast %6 : vector<32x16xf32> to vector<1x32x16xf32>
    %cst_10 = arith.constant dense<0.000000e+00> : vector<1xf32>
    %10 = vector.multi_reduction <add>, %9, %cst_10 [1, 2] : vector<1x32x16xf32> to vector<1xf32>
    %11 = vector.shape_cast %10 : vector<1xf32> to vector<1x1x1xf32>
    %12 = vector.extract %11[0, 0, 0] : f32 from vector<1x1x1xf32>
    %cst_11 = arith.constant 0.001953125 : f32
    %13 = arith.mulf %12, %cst_11 : f32
    %14 = arith.mulf %6, %6 : vector<32x16xf32>
    %15 = vector.shape_cast %14 : vector<32x16xf32> to vector<1x32x16xf32>
    %cst_12 = arith.constant dense<0.000000e+00> : vector<1xf32>
    %16 = vector.multi_reduction <add>, %15, %cst_12 [1, 2] : vector<1x32x16xf32> to vector<1xf32>
    %17 = vector.shape_cast %16 : vector<1xf32> to vector<1x1x1xf32>
    %18 = vector.extract %17[0, 0, 0] : f32 from vector<1x1x1xf32>
    %cst_13 = arith.constant 0.001953125 : f32
    %19 = arith.mulf %18, %cst_13 : f32
    %20 = arith.mulf %13, %13 : f32
    %21 = arith.subf %19, %20 : f32
    %cst_14 = arith.constant 0.000000e+00 : f32
    %22 = arith.maximumf %21, %cst_14 : f32
    %23 = vector.broadcast %13 : f32 to vector<32x16xf32>
    %24 = arith.subf %6, %23 : vector<32x16xf32>
    %cst_15 = arith.constant 9.99999993E-9 : f32
    %25 = arith.addf %22, %cst_15 : f32
    %26 = math.rsqrt %25 : f32
    %27 = vector.broadcast %26 : f32 to vector<32x16xf32>
    %28 = arith.mulf %24, %27 : vector<32x16xf32>
    %29 = vector.broadcast %7 : vector<32x1xf32> to vector<32x16xf32>
    %30 = arith.mulf %28, %29 : vector<32x16xf32>
    %31 = vector.broadcast %8 : vector<32x1xf32> to vector<32x16xf32>
    %32 = arith.addf %30, %31 : vector<32x16xf32>
    %cst_16 = arith.constant 0.000000e+00 : f32
    %33 = vector.broadcast %cst_16 : f32 to vector<32x16xf32>
    %34 = arith.cmpf oge, %32, %33 : vector<32x16xf32>
    %c0_17 = arith.constant 0 : index
    %c0_18 = arith.constant 0 : index
    %35 = vector.load %arg6[%c0_17, %c0_18] : memref<1x1xf32, #tpu.memory_space<vmem>>, vector<1x1xf32>
    %36 = vector.broadcast %35 : vector<1x1xf32> to vector<32x16xf32>
    %37 = arith.mulf %36, %32 : vector<32x16xf32>
    %38 = arith.select %34, %32, %37 : vector<32x16xi1>, vector<32x16xf32>
    %cst_19 = arith.constant 0.000000e+00 : f32
    %39 = vector.broadcast %cst_19 : f32 to vector<32x2xf32>
    %c0_20 = arith.constant 0 : index
    %c0_21 = arith.constant 0 : index
    %40 = vector.load %arg35[%c0_20, %c0_21] : memref<32x20xf32, #tpu.memory_space<vmem>>, vector<32x2xf32>
    tpu.vector_store %arg35[%c0_20, %c0_21], %39 {strides = array<i32>} : memref<32x20xf32, #tpu.memory_space<vmem>>, vector<32x2xf32>,
    %cst_22 = arith.constant 0.000000e+00 : f32
    %41 = vector.broadcast %cst_22 : f32 to vector<32x2xf32>
    %c0_23 = arith.constant 0 : index
    %c18 = arith.constant 18 : index
    %42 = vector.load %arg35[%c0_23, %c18] : memref<32x20xf32, #tpu.memory_space<vmem>>, vector<32x2xf32>
    tpu.vector_store %arg35[%c0_23, %c18], %41 {strides = array<i32>} : memref<32x20xf32, #tpu.memory_space<vmem>>, vector<32x2xf32>,
    %c0_24 = arith.constant 0 : index
    %c2 = arith.constant 2 : index
    %43 = vector.load %arg35[%c0_24, %c2] : memref<32x20xf32, #tpu.memory_space<vmem>>, vector<32x16xf32>
    tpu.vector_store %arg35[%c0_24, %c2], %38 {strides = array<i32>} : memref<32x20xf32, #tpu.memory_space<vmem>>, vector<32x16xf32>,
    %c0_25 = arith.constant 0 : index
    %c0_26 = arith.constant 0 : index
    %c0_27 = arith.constant 0 : index
    %44 = vector.load %arg7[%c0_25, %c0_26, %c0_27] : memref<4x32x5xf32, #tpu.memory_space<vmem>>, vector<1x32x5xf32>
    %45 = vector.shape_cast %44 : vector<1x32x5xf32> to vector<32x5xf32>
    %c0_28 = arith.constant 0 : index
    %c0_29 = arith.constant 0 : index
    %c0_30 = arith.constant 0 : index
    %46 = vector.load %arg8[%c0_28, %c0_29, %c0_30] : memref<4x32x1xf32, #tpu.memory_space<vmem>>, vector<1x32x1xf32>
    %47 = vector.shape_cast %46 : vector<1x32x1xf32> to vector<32x1xf32>
    %cst_31 = arith.constant 0.000000e+00 : f32
    %48 = vector.broadcast %cst_31 : f32 to vector<32x16xf32>
    %c0_32 = arith.constant 0 : index
    %c0_33 = arith.constant 0 : index
    %49 = vector.load %arg35[%c0_32, %c0_33] : memref<32x20xf32, #tpu.memory_space<vmem>>, vector<32x16xf32>
    %50 = vector.extract_strided_slice %45 {offsets = [0, 0], sizes = [32, 1], strides = [1, 1]} : vector<32x5xf32> to vector<32x1xf32>
    %51 = vector.broadcast %50 : vector<32x1xf32> to vector<32x16xf32>
    %52 = arith.mulf %49, %51 : vector<32x16xf32>
    %53 = arith.addf %48, %52 : vector<32x16xf32>
    %c0_34 = arith.constant 0 : index
    %c1 = arith.constant 1 : index
    %54 = vector.load %arg35[%c0_34, %c1] : memref<32x20xf32, #tpu.memory_space<vmem>>, vector<32x16xf32>
    %55 = vector.extract_strided_slice %45 {offsets = [0, 1], sizes = [32, 1], strides = [1, 1]} : vector<32x5xf32> to vector<32x1xf32>
    %56 = vector.broadcast %55 : vector<32x1xf32> to vector<32x16xf32>
    %57 = arith.mulf %54, %56 : vector<32x16xf32>
    %58 = arith.addf %53, %57 : vector<32x16xf32>
    %c0_35 = arith.constant 0 : index
    %c2_36 = arith.constant 2 : index
    %59 = vector.load %arg35[%c0_35, %c2_36] : memref<32x20xf32, #tpu.memory_space<vmem>>, vector<32x16xf32>
    %60 = vector.extract_strided_slice %45 {offsets = [0, 2], sizes = [32, 1], strides = [1, 1]} : vector<32x5xf32> to vector<32x1xf32>
    %61 = vector.broadcast %60 : vector<32x1xf32> to vector<32x16xf32>
    %62 = arith.mulf %59, %61 : vector<32x16xf32>
    %63 = arith.addf %58, %62 : vector<32x16xf32>
    %c0_37 = arith.constant 0 : index
    %c3 = arith.constant 3 : index
    %64 = vector.load %arg35[%c0_37, %c3] : memref<32x20xf32, #tpu.memory_space<vmem>>, vector<32x16xf32>
    %65 = vector.extract_strided_slice %45 {offsets = [0, 3], sizes = [32, 1], strides = [1, 1]} : vector<32x5xf32> to vector<32x1xf32>
    %66 = vector.broadcast %65 : vector<32x1xf32> to vector<32x16xf32>
    %67 = arith.mulf %64, %66 : vector<32x16xf32>
    %68 = arith.addf %63, %67 : vector<32x16xf32>
    %c0_38 = arith.constant 0 : index
    %c4 = arith.constant 4 : index
    %69 = vector.load %arg35[%c0_38, %c4] : memref<32x20xf32, #tpu.memory_space<vmem>>, vector<32x16xf32>
    %70 = vector.extract_strided_slice %45 {offsets = [0, 4], sizes = [32, 1], strides = [1, 1]} : vector<32x5xf32> to vector<32x1xf32>
    %71 = vector.broadcast %70 : vector<32x1xf32> to vector<32x16xf32>
    %72 = arith.mulf %69, %71 : vector<32x16xf32>
    %73 = arith.addf %68, %72 : vector<32x16xf32>
    %74 = vector.broadcast %47 : vector<32x1xf32> to vector<32x16xf32>
    %75 = arith.addf %73, %74 : vector<32x16xf32>
    %cst_39 = arith.constant 0.000000e+00 : f32
    %76 = vector.broadcast %cst_39 : f32 to vector<32x2xf32>
    %c0_40 = arith.constant 0 : index
    %c0_41 = arith.constant 0 : index
    %77 = vector.load %arg36[%c0_40, %c0_41] : memref<32x20xf32, #tpu.memory_space<vmem>>, vector<32x2xf32>
    tpu.vector_store %arg36[%c0_40, %c0_41], %76 {strides = array<i32>} : memref<32x20xf32, #tpu.memory_space<vmem>>, vector<32x2xf32>,
    %cst_42 = arith.constant 0.000000e+00 : f32
    %78 = vector.broadcast %cst_42 : f32 to vector<32x2xf32>
    %c0_43 = arith.constant 0 : index
    %c18_44 = arith.constant 18 : index
    %79 = vector.load %arg36[%c0_43, %c18_44] : memref<32x20xf32, #tpu.memory_space<vmem>>, vector<32x2xf32>
    tpu.vector_store %arg36[%c0_43, %c18_44], %78 {strides = array<i32>} : memref<32x20xf32, #tpu.memory_space<vmem>>, vector<32x2xf32>,
    %c0_45 = arith.constant 0 : index
    %c2_46 = arith.constant 2 : index
    %80 = vector.load %arg36[%c0_45, %c2_46] : memref<32x20xf32, #tpu.memory_space<vmem>>, vector<32x16xf32>
    tpu.vector_store %arg36[%c0_45, %c2_46], %75 {strides = array<i32>} : memref<32x20xf32, #tpu.memory_space<vmem>>, vector<32x16xf32>,
    %c1_47 = arith.constant 1 : index
    %c0_48 = arith.constant 0 : index
    %c0_49 = arith.constant 0 : index
    %81 = vector.load %arg7[%c1_47, %c0_48, %c0_49] : memref<4x32x5xf32, #tpu.memory_space<vmem>>, vector<1x32x5xf32>
    %82 = vector.shape_cast %81 : vector<1x32x5xf32> to vector<32x5xf32>
    %c0_50 = arith.constant 0 : index
    %c0_51 = arith.constant 0 : index
    %83 = vector.load %arg12[%c0_50, %c0_51] : memref<16x8xbf16, #tpu.memory_space<vmem>>, vector<16x8xbf16>
    %c1_52 = arith.constant 1 : index
    %c0_53 = arith.constant 0 : index
    %c0_54 = arith.constant 0 : index
    %84 = vector.load %arg8[%c1_52, %c0_53, %c0_54] : memref<4x32x1xf32, #tpu.memory_space<vmem>>, vector<1x32x1xf32>
    %85 = vector.shape_cast %84 : vector<1x32x1xf32> to vector<32x1xf32>
    %cst_55 = arith.constant 0.000000e+00 : f32
    %86 = vector.broadcast %cst_55 : f32 to vector<32x16xf32>
    %c0_56 = arith.constant 0 : index
    %c0_57 = arith.constant 0 : index
    %87 = vector.load %arg36[%c0_56, %c0_57] : memref<32x20xf32, #tpu.memory_space<vmem>>, vector<32x16xf32>
    %88 = vector.extract_strided_slice %82 {offsets = [0, 0], sizes = [32, 1], strides = [1, 1]} : vector<32x5xf32> to vector<32x1xf32>
    %89 = vector.broadcast %88 : vector<32x1xf32> to vector<32x16xf32>
    %90 = arith.mulf %87, %89 : vector<32x16xf32>
    %91 = arith.addf %86, %90 : vector<32x16xf32>
    %c0_58 = arith.constant 0 : index
    %c1_59 = arith.constant 1 : index
    %92 = vector.load %arg36[%c0_58, %c1_59] : memref<32x20xf32, #tpu.memory_space<vmem>>, vector<32x16xf32>
    %93 = vector.extract_strided_slice %82 {offsets = [0, 1], sizes = [32, 1], strides = [1, 1]} : vector<32x5xf32> to vector<32x1xf32>
    %94 = vector.broadcast %93 : vector<32x1xf32> to vector<32x16xf32>
    %95 = arith.mulf %92, %94 : vector<32x16xf32>
    %96 = arith.addf %91, %95 : vector<32x16xf32>
    %c0_60 = arith.constant 0 : index
    %c2_61 = arith.constant 2 : index
    %97 = vector.load %arg36[%c0_60, %c2_61] : memref<32x20xf32, #tpu.memory_space<vmem>>, vector<32x16xf32>
    %98 = vector.extract_strided_slice %82 {offsets = [0, 2], sizes = [32, 1], strides = [1, 1]} : vector<32x5xf32> to vector<32x1xf32>
    %99 = vector.broadcast %98 : vector<32x1xf32> to vector<32x16xf32>
    %100 = arith.mulf %97, %99 : vector<32x16xf32>
    %101 = arith.addf %96, %100 : vector<32x16xf32>
    %c0_62 = arith.constant 0 : index
    %c3_63 = arith.constant 3 : index
    %102 = vector.load %arg36[%c0_62, %c3_63] : memref<32x20xf32, #tpu.memory_space<vmem>>, vector<32x16xf32>
    %103 = vector.extract_strided_slice %82 {offsets = [0, 3], sizes = [32, 1], strides = [1, 1]} : vector<32x5xf32> to vector<32x1xf32>
    %104 = vector.broadcast %103 : vector<32x1xf32> to vector<32x16xf32>
    %105 = arith.mulf %102, %104 : vector<32x16xf32>
    %106 = arith.addf %101, %105 : vector<32x16xf32>
    %c0_64 = arith.constant 0 : index
    %c4_65 = arith.constant 4 : index
    %107 = vector.load %arg36[%c0_64, %c4_65] : memref<32x20xf32, #tpu.memory_space<vmem>>, vector<32x16xf32>
    %108 = vector.extract_strided_slice %82 {offsets = [0, 4], sizes = [32, 1], strides = [1, 1]} : vector<32x5xf32> to vector<32x1xf32>
    %109 = vector.broadcast %108 : vector<32x1xf32> to vector<32x16xf32>
    %110 = arith.mulf %107, %109 : vector<32x16xf32>
    %111 = arith.addf %106, %110 : vector<32x16xf32>
    %112 = arith.truncf %111 : vector<32x16xf32> to vector<32x16xbf16>
    %cst_66 = arith.constant dense<0.000000e+00> : vector<32x8xf32>
    %113 = tpu.matmul %112, %83, %cst_66 {dimension_numbers = #tpu.dot_dimension_numbers<[1], [0], [0], [1], [0, 0, 1, 1], [], []>} : vector<32x16xbf16>, vector<16x8xbf16>, vector<32x8xf32> -> vector<32x8xf32>
    %114 = vector.broadcast %85 : vector<32x1xf32> to vector<32x8xf32>
    %115 = arith.addf %113, %114 : vector<32x8xf32>
    %cst_67 = arith.constant 0.000000e+00 : f32
    %116 = vector.broadcast %cst_67 : f32 to vector<32x2xf32>
    %c0_68 = arith.constant 0 : index
    %c0_69 = arith.constant 0 : index
    %117 = vector.load %arg37[%c0_68, %c0_69] : memref<32x12xf32, #tpu.memory_space<vmem>>, vector<32x2xf32>
    tpu.vector_store %arg37[%c0_68, %c0_69], %116 {strides = array<i32>} : memref<32x12xf32, #tpu.memory_space<vmem>>, vector<32x2xf32>,
    %cst_70 = arith.constant 0.000000e+00 : f32
    %118 = vector.broadcast %cst_70 : f32 to vector<32x2xf32>
    %c0_71 = arith.constant 0 : index
    %c10 = arith.constant 10 : index
    %119 = vector.load %arg37[%c0_71, %c10] : memref<32x12xf32, #tpu.memory_space<vmem>>, vector<32x2xf32>
    tpu.vector_store %arg37[%c0_71, %c10], %118 {strides = array<i32>} : memref<32x12xf32, #tpu.memory_space<vmem>>, vector<32x2xf32>,
    %c0_72 = arith.constant 0 : index
    %c2_73 = arith.constant 2 : index
    %120 = vector.load %arg37[%c0_72, %c2_73] : memref<32x12xf32, #tpu.memory_space<vmem>>, vector<32x8xf32>
    tpu.vector_store %arg37[%c0_72, %c2_73], %115 {strides = array<i32>} : memref<32x12xf32, #tpu.memory_space<vmem>>, vector<32x8xf32>,
    %c2_74 = arith.constant 2 : index
    %c0_75 = arith.constant 0 : index
    %c0_76 = arith.constant 0 : index
    %121 = vector.load %arg7[%c2_74, %c0_75, %c0_76] : memref<4x32x5xf32, #tpu.memory_space<vmem>>, vector<1x32x5xf32>
    %122 = vector.shape_cast %121 : vector<1x32x5xf32> to vector<32x5xf32>
    %c0_77 = arith.constant 0 : index
    %c0_78 = arith.constant 0 : index
    %123 = vector.load %arg13[%c0_77, %c0_78] : memref<8x4xbf16, #tpu.memory_space<vmem>>, vector<8x4xbf16>
    %c2_79 = arith.constant 2 : index
    %c0_80 = arith.constant 0 : index
    %c0_81 = arith.constant 0 : index
    %124 = vector.load %arg8[%c2_79, %c0_80, %c0_81] : memref<4x32x1xf32, #tpu.memory_space<vmem>>, vector<1x32x1xf32>
    %125 = vector.shape_cast %124 : vector<1x32x1xf32> to vector<32x1xf32>
    %cst_82 = arith.constant 0.000000e+00 : f32
    %126 = vector.broadcast %cst_82 : f32 to vector<32x8xf32>
    %c0_83 = arith.constant 0 : index
    %c0_84 = arith.constant 0 : index
    %127 = vector.load %arg37[%c0_83, %c0_84] : memref<32x12xf32, #tpu.memory_space<vmem>>, vector<32x8xf32>
    %128 = vector.extract_strided_slice %122 {offsets = [0, 0], sizes = [32, 1], strides = [1, 1]} : vector<32x5xf32> to vector<32x1xf32>
    %129 = vector.broadcast %128 : vector<32x1xf32> to vector<32x8xf32>
    %130 = arith.mulf %127, %129 : vector<32x8xf32>
    %131 = arith.addf %126, %130 : vector<32x8xf32>
    %c0_85 = arith.constant 0 : index
    %c1_86 = arith.constant 1 : index
    %132 = vector.load %arg37[%c0_85, %c1_86] : memref<32x12xf32, #tpu.memory_space<vmem>>, vector<32x8xf32>
    %133 = vector.extract_strided_slice %122 {offsets = [0, 1], sizes = [32, 1], strides = [1, 1]} : vector<32x5xf32> to vector<32x1xf32>
    %134 = vector.broadcast %133 : vector<32x1xf32> to vector<32x8xf32>
    %135 = arith.mulf %132, %134 : vector<32x8xf32>
    %136 = arith.addf %131, %135 : vector<32x8xf32>
    %c0_87 = arith.constant 0 : index
    %c2_88 = arith.constant 2 : index
    %137 = vector.load %arg37[%c0_87, %c2_88] : memref<32x12xf32, #tpu.memory_space<vmem>>, vector<32x8xf32>
    %138 = vector.extract_strided_slice %122 {offsets = [0, 2], sizes = [32, 1], strides = [1, 1]} : vector<32x5xf32> to vector<32x1xf32>
    %139 = vector.broadcast %138 : vector<32x1xf32> to vector<32x8xf32>
    %140 = arith.mulf %137, %139 : vector<32x8xf32>
    %141 = arith.addf %136, %140 : vector<32x8xf32>
    %c0_89 = arith.constant 0 : index
    %c3_90 = arith.constant 3 : index
    %142 = vector.load %arg37[%c0_89, %c3_90] : memref<32x12xf32, #tpu.memory_space<vmem>>, vector<32x8xf32>
    %143 = vector.extract_strided_slice %122 {offsets = [0, 3], sizes = [32, 1], strides = [1, 1]} : vector<32x5xf32> to vector<32x1xf32>
    %144 = vector.broadcast %143 : vector<32x1xf32> to vector<32x8xf32>
    %145 = arith.mulf %142, %144 : vector<32x8xf32>
    %146 = arith.addf %141, %145 : vector<32x8xf32>
    %c0_91 = arith.constant 0 : index
    %c4_92 = arith.constant 4 : index
    %147 = vector.load %arg37[%c0_91, %c4_92] : memref<32x12xf32, #tpu.memory_space<vmem>>, vector<32x8xf32>
    %148 = vector.extract_strided_slice %122 {offsets = [0, 4], sizes = [32, 1], strides = [1, 1]} : vector<32x5xf32> to vector<32x1xf32>
    %149 = vector.broadcast %148 : vector<32x1xf32> to vector<32x8xf32>
    %150 = arith.mulf %147, %149 : vector<32x8xf32>
    %151 = arith.addf %146, %150 : vector<32x8xf32>
    %152 = arith.truncf %151 : vector<32x8xf32> to vector<32x8xbf16>
    %cst_93 = arith.constant dense<0.000000e+00> : vector<32x4xf32>
    %153 = tpu.matmul %152, %123, %cst_93 {dimension_numbers = #tpu.dot_dimension_numbers<[1], [0], [0], [1], [0, 0, 1, 1], [], []>} : vector<32x8xbf16>, vector<8x4xbf16>, vector<32x4xf32> -> vector<32x4xf32>
    %154 = vector.broadcast %125 : vector<32x1xf32> to vector<32x4xf32>
    %155 = arith.addf %153, %154 : vector<32x4xf32>
    %cst_94 = arith.constant 0.000000e+00 : f32
    %156 = vector.broadcast %cst_94 : f32 to vector<32x2xf32>
    %c0_95 = arith.constant 0 : index
    %c0_96 = arith.constant 0 : index
    %157 = vector.load %arg38[%c0_95, %c0_96] : memref<32x8xf32, #tpu.memory_space<vmem>>, vector<32x2xf32>
    tpu.vector_store %arg38[%c0_95, %c0_96], %156 {strides = array<i32>} : memref<32x8xf32, #tpu.memory_space<vmem>>, vector<32x2xf32>,
    %cst_97 = arith.constant 0.000000e+00 : f32
    %158 = vector.broadcast %cst_97 : f32 to vector<32x2xf32>
    %c0_98 = arith.constant 0 : index
    %c6 = arith.constant 6 : index
    %159 = vector.load %arg38[%c0_98, %c6] : memref<32x8xf32, #tpu.memory_space<vmem>>, vector<32x2xf32>
    tpu.vector_store %arg38[%c0_98, %c6], %158 {strides = array<i32>} : memref<32x8xf32, #tpu.memory_space<vmem>>, vector<32x2xf32>,
    %c0_99 = arith.constant 0 : index
    %c2_100 = arith.constant 2 : index
    %160 = vector.load %arg38[%c0_99, %c2_100] : memref<32x8xf32, #tpu.memory_space<vmem>>, vector<32x4xf32>
    tpu.vector_store %arg38[%c0_99, %c2_100], %155 {strides = array<i32>} : memref<32x8xf32, #tpu.memory_space<vmem>>, vector<32x4xf32>,
    %c3_101 = arith.constant 3 : index
    %c0_102 = arith.constant 0 : index
    %c0_103 = arith.constant 0 : index
    %161 = vector.load %arg7[%c3_101, %c0_102, %c0_103] : memref<4x32x5xf32, #tpu.memory_space<vmem>>, vector<1x32x5xf32>
    %162 = vector.shape_cast %161 : vector<1x32x5xf32> to vector<32x5xf32>
    %c0_104 = arith.constant 0 : index
    %c0_105 = arith.constant 0 : index
    %163 = vector.load %arg14[%c0_104, %c0_105] : memref<4x2xbf16, #tpu.memory_space<vmem>>, vector<4x2xbf16>
    %c3_106 = arith.constant 3 : index
    %c0_107 = arith.constant 0 : index
    %c0_108 = arith.constant 0 : index
    %164 = vector.load %arg8[%c3_106, %c0_107, %c0_108] : memref<4x32x1xf32, #tpu.memory_space<vmem>>, vector<1x32x1xf32>
    %165 = vector.shape_cast %164 : vector<1x32x1xf32> to vector<32x1xf32>
    %cst_109 = arith.constant 0.000000e+00 : f32
    %166 = vector.broadcast %cst_109 : f32 to vector<32x4xf32>
    %c0_110 = arith.constant 0 : index
    %c0_111 = arith.constant 0 : index
    %167 = vector.load %arg38[%c0_110, %c0_111] : memref<32x8xf32, #tpu.memory_space<vmem>>, vector<32x4xf32>
    %168 = vector.extract_strided_slice %162 {offsets = [0, 0], sizes = [32, 1], strides = [1, 1]} : vector<32x5xf32> to vector<32x1xf32>
    %169 = vector.broadcast %168 : vector<32x1xf32> to vector<32x4xf32>
    %170 = arith.mulf %167, %169 : vector<32x4xf32>
    %171 = arith.addf %166, %170 : vector<32x4xf32>
    %c0_112 = arith.constant 0 : index
    %c1_113 = arith.constant 1 : index
    %172 = vector.load %arg38[%c0_112, %c1_113] : memref<32x8xf32, #tpu.memory_space<vmem>>, vector<32x4xf32>
    %173 = vector.extract_strided_slice %162 {offsets = [0, 1], sizes = [32, 1], strides = [1, 1]} : vector<32x5xf32> to vector<32x1xf32>
    %174 = vector.broadcast %173 : vector<32x1xf32> to vector<32x4xf32>
    %175 = arith.mulf %172, %174 : vector<32x4xf32>
    %176 = arith.addf %171, %175 : vector<32x4xf32>
    %c0_114 = arith.constant 0 : index
    %c2_115 = arith.constant 2 : index
    %177 = vector.load %arg38[%c0_114, %c2_115] : memref<32x8xf32, #tpu.memory_space<vmem>>, vector<32x4xf32>
    %178 = vector.extract_strided_slice %162 {offsets = [0, 2], sizes = [32, 1], strides = [1, 1]} : vector<32x5xf32> to vector<32x1xf32>
    %179 = vector.broadcast %178 : vector<32x1xf32> to vector<32x4xf32>
    %180 = arith.mulf %177, %179 : vector<32x4xf32>
    %181 = arith.addf %176, %180 : vector<32x4xf32>
    %c0_116 = arith.constant 0 : index
    %c3_117 = arith.constant 3 : index
    %182 = vector.load %arg38[%c0_116, %c3_117] : memref<32x8xf32, #tpu.memory_space<vmem>>, vector<32x4xf32>
    %183 = vector.extract_strided_slice %162 {offsets = [0, 3], sizes = [32, 1], strides = [1, 1]} : vector<32x5xf32> to vector<32x1xf32>
    %184 = vector.broadcast %183 : vector<32x1xf32> to vector<32x4xf32>
    %185 = arith.mulf %182, %184 : vector<32x4xf32>
    %186 = arith.addf %181, %185 : vector<32x4xf32>
    %c0_118 = arith.constant 0 : index
    %c4_119 = arith.constant 4 : index
    %187 = vector.load %arg38[%c0_118, %c4_119] : memref<32x8xf32, #tpu.memory_space<vmem>>, vector<32x4xf32>
    %188 = vector.extract_strided_slice %162 {offsets = [0, 4], sizes = [32, 1], strides = [1, 1]} : vector<32x5xf32> to vector<32x1xf32>
    %189 = vector.broadcast %188 : vector<32x1xf32> to vector<32x4xf32>
    %190 = arith.mulf %187, %189 : vector<32x4xf32>
    %191 = arith.addf %186, %190 : vector<32x4xf32>
    %192 = arith.truncf %191 : vector<32x4xf32> to vector<32x4xbf16>
    %cst_120 = arith.constant dense<0.000000e+00> : vector<32x2xf32>
    %193 = tpu.matmul %192, %163, %cst_120 {dimension_numbers = #tpu.dot_dimension_numbers<[1], [0], [0], [1], [0, 0, 1, 1], [], []>} : vector<32x4xbf16>, vector<4x2xbf16>, vector<32x2xf32> -> vector<32x2xf32>
    %194 = vector.broadcast %165 : vector<32x1xf32> to vector<32x2xf32>
    %195 = arith.addf %193, %194 : vector<32x2xf32>
    %c0_121 = arith.constant 0 : index
    %c0_122 = arith.constant 0 : index
    %196 = vector.load %arg9[%c0_121, %c0_122] : memref<16x2xbf16, #tpu.memory_space<vmem>>, vector<16x2xbf16>
    %197 = arith.truncf %75 : vector<32x16xf32> to vector<32x16xbf16>
    %cst_123 = arith.constant dense<0.000000e+00> : vector<32x2xf32>
    %198 = tpu.matmul %197, %196, %cst_123 {dimension_numbers = #tpu.dot_dimension_numbers<[1], [0], [0], [1], [0, 0, 1, 1], [], []>} : vector<32x16xbf16>, vector<16x2xbf16>, vector<32x2xf32> -> vector<32x2xf32>
    %199 = arith.addf %195, %198 : vector<32x2xf32>
    %c0_124 = arith.constant 0 : index
    %c0_125 = arith.constant 0 : index
    %200 = vector.load %arg10[%c0_124, %c0_125] : memref<8x2xbf16, #tpu.memory_space<vmem>>, vector<8x2xbf16>
    %201 = arith.truncf %115 : vector<32x8xf32> to vector<32x8xbf16>
    %cst_126 = arith.constant dense<0.000000e+00> : vector<32x2xf32>
    %202 = tpu.matmul %201, %200, %cst_126 {dimension_numbers = #tpu.dot_dimension_numbers<[1], [0], [0], [1], [0, 0, 1, 1], [], []>} : vector<32x8xbf16>, vector<8x2xbf16>, vector<32x2xf32> -> vector<32x2xf32>
    %203 = arith.addf %199, %202 : vector<32x2xf32>
    %c0_127 = arith.constant 0 : index
    %c0_128 = arith.constant 0 : index
    %204 = vector.load %arg11[%c0_127, %c0_128] : memref<4x2xbf16, #tpu.memory_space<vmem>>, vector<4x2xbf16>
    %205 = arith.truncf %155 : vector<32x4xf32> to vector<32x4xbf16>
    %cst_129 = arith.constant dense<0.000000e+00> : vector<32x2xf32>
    %206 = tpu.matmul %205, %204, %cst_129 {dimension_numbers = #tpu.dot_dimension_numbers<[1], [0], [0], [1], [0, 0, 1, 1], [], []>} : vector<32x4xbf16>, vector<4x2xbf16>, vector<32x2xf32> -> vector<32x2xf32>
    %207 = arith.addf %203, %206 : vector<32x2xf32>
    %c0_130 = arith.constant 0 : index
    %c0_131 = arith.constant 0 : index
    %208 = vector.load %arg18[%c0_130, %c0_131] : memref<64x32xf32, #tpu.memory_space<vmem>>, vector<64x32xf32>
    %cst_132 = arith.constant dense<0.000000e+00> : vector<64x2xf32>
    %209 = tpu.matmul %208, %207, %cst_132 {dimension_numbers = #tpu.dot_dimension_numbers<[1], [0], [0], [1], [0, 0, 1, 1], [], []>} : vector<64x32xf32>, vector<32x2xf32>, vector<64x2xf32> -> vector<64x2xf32>
    %c0_133 = arith.constant 0 : index
    %c0_134 = arith.constant 0 : index
    %210 = vector.load %arg19[%c0_133, %c0_134] : memref<64x1xf32, #tpu.memory_space<vmem>>, vector<64x1xf32>
    %c0_135 = arith.constant 0 : index
    %c0_136 = arith.constant 0 : index
    %211 = vector.load %arg20[%c0_135, %c0_136] : memref<64x1xf32, #tpu.memory_space<vmem>>, vector<64x1xf32>
    %212 = vector.shape_cast %209 : vector<64x2xf32> to vector<1x64x2xf32>
    %cst_137 = arith.constant dense<0.000000e+00> : vector<1xf32>
    %213 = vector.multi_reduction <add>, %212, %cst_137 [1, 2] : vector<1x64x2xf32> to vector<1xf32>
    %214 = vector.shape_cast %213 : vector<1xf32> to vector<1x1x1xf32>
    %215 = vector.extract %214[0, 0, 0] : f32 from vector<1x1x1xf32>
    %cst_138 = arith.constant 7.812500e-03 : f32
    %216 = arith.mulf %215, %cst_138 : f32
    %217 = arith.mulf %209, %209 : vector<64x2xf32>
    %218 = vector.shape_cast %217 : vector<64x2xf32> to vector<1x64x2xf32>
    %cst_139 = arith.constant dense<0.000000e+00> : vector<1xf32>
    %219 = vector.multi_reduction <add>, %218, %cst_139 [1, 2] : vector<1x64x2xf32> to vector<1xf32>
    %220 = vector.shape_cast %219 : vector<1xf32> to vector<1x1x1xf32>
    %221 = vector.extract %220[0, 0, 0] : f32 from vector<1x1x1xf32>
    %cst_140 = arith.constant 7.812500e-03 : f32
    %222 = arith.mulf %221, %cst_140 : f32
    %223 = arith.mulf %216, %216 : f32
    %224 = arith.subf %222, %223 : f32
    %cst_141 = arith.constant 0.000000e+00 : f32
    %225 = arith.maximumf %224, %cst_141 : f32
    %226 = vector.broadcast %216 : f32 to vector<64x2xf32>
    %227 = arith.subf %209, %226 : vector<64x2xf32>
    %cst_142 = arith.constant 9.99999993E-9 : f32
    %228 = arith.addf %225, %cst_142 : f32
    %229 = math.rsqrt %228 : f32
    %230 = vector.broadcast %229 : f32 to vector<64x2xf32>
    %231 = arith.mulf %227, %230 : vector<64x2xf32>
    %232 = vector.broadcast %210 : vector<64x1xf32> to vector<64x2xf32>
    %233 = arith.mulf %231, %232 : vector<64x2xf32>
    %234 = vector.broadcast %211 : vector<64x1xf32> to vector<64x2xf32>
    %235 = arith.addf %233, %234 : vector<64x2xf32>
    %cst_143 = arith.constant 0.000000e+00 : f32
    %236 = vector.broadcast %cst_143 : f32 to vector<64x2xf32>
    %c0_144 = arith.constant 0 : index
    %c0_145 = arith.constant 0 : index
    %237 = vector.load %arg39[%c0_144, %c0_145] : memref<64x6xf32, #tpu.memory_space<vmem>>, vector<64x2xf32>
    tpu.vector_store %arg39[%c0_144, %c0_145], %236 {strides = array<i32>} : memref<64x6xf32, #tpu.memory_space<vmem>>, vector<64x2xf32>,
    %cst_146 = arith.constant 0.000000e+00 : f32
    %238 = vector.broadcast %cst_146 : f32 to vector<64x2xf32>
    %c0_147 = arith.constant 0 : index
    %c4_148 = arith.constant 4 : index
    %239 = vector.load %arg39[%c0_147, %c4_148] : memref<64x6xf32, #tpu.memory_space<vmem>>, vector<64x2xf32>
    tpu.vector_store %arg39[%c0_147, %c4_148], %238 {strides = array<i32>} : memref<64x6xf32, #tpu.memory_space<vmem>>, vector<64x2xf32>,
    %c0_149 = arith.constant 0 : index
    %c2_150 = arith.constant 2 : index
    %240 = vector.load %arg39[%c0_149, %c2_150] : memref<64x6xf32, #tpu.memory_space<vmem>>, vector<64x2xf32>
    tpu.vector_store %arg39[%c0_149, %c2_150], %235 {strides = array<i32>} : memref<64x6xf32, #tpu.memory_space<vmem>>, vector<64x2xf32>,
    %c0_151 = arith.constant 0 : index
    %c0_152 = arith.constant 0 : index
    %241 = vector.load %arg21[%c0_151, %c0_152] : memref<64x5xf32, #tpu.memory_space<vmem>>, vector<64x5xf32>
    %c0_153 = arith.constant 0 : index
    %c0_154 = arith.constant 0 : index
    %242 = vector.load %arg22[%c0_153, %c0_154] : memref<64x1xf32, #tpu.memory_space<vmem>>, vector<64x1xf32>
    %cst_155 = arith.constant 0.000000e+00 : f32
    %243 = vector.broadcast %cst_155 : f32 to vector<64x2xf32>
    %c0_156 = arith.constant 0 : index
    %c0_157 = arith.constant 0 : index
    %244 = vector.load %arg39[%c0_156, %c0_157] : memref<64x6xf32, #tpu.memory_space<vmem>>, vector<64x2xf32>
    %245 = vector.extract_strided_slice %241 {offsets = [0, 0], sizes = [64, 1], strides = [1, 1]} : vector<64x5xf32> to vector<64x1xf32>
    %246 = vector.broadcast %245 : vector<64x1xf32> to vector<64x2xf32>
    %247 = arith.mulf %244, %246 : vector<64x2xf32>
    %248 = arith.addf %243, %247 : vector<64x2xf32>
    %c0_158 = arith.constant 0 : index
    %c1_159 = arith.constant 1 : index
    %249 = vector.load %arg39[%c0_158, %c1_159] : memref<64x6xf32, #tpu.memory_space<vmem>>, vector<64x2xf32>
    %250 = vector.extract_strided_slice %241 {offsets = [0, 1], sizes = [64, 1], strides = [1, 1]} : vector<64x5xf32> to vector<64x1xf32>
    %251 = vector.broadcast %250 : vector<64x1xf32> to vector<64x2xf32>
    %252 = arith.mulf %249, %251 : vector<64x2xf32>
    %253 = arith.addf %248, %252 : vector<64x2xf32>
    %c0_160 = arith.constant 0 : index
    %c2_161 = arith.constant 2 : index
    %254 = vector.load %arg39[%c0_160, %c2_161] : memref<64x6xf32, #tpu.memory_space<vmem>>, vector<64x2xf32>
    %255 = vector.extract_strided_slice %241 {offsets = [0, 2], sizes = [64, 1], strides = [1, 1]} : vector<64x5xf32> to vector<64x1xf32>
    %256 = vector.broadcast %255 : vector<64x1xf32> to vector<64x2xf32>
    %257 = arith.mulf %254, %256 : vector<64x2xf32>
    %258 = arith.addf %253, %257 : vector<64x2xf32>
    %c0_162 = arith.constant 0 : index
    %c3_163 = arith.constant 3 : index
    %259 = vector.load %arg39[%c0_162, %c3_163] : memref<64x6xf32, #tpu.memory_space<vmem>>, vector<64x2xf32>
    %260 = vector.extract_strided_slice %241 {offsets = [0, 3], sizes = [64, 1], strides = [1, 1]} : vector<64x5xf32> to vector<64x1xf32>
    %261 = vector.broadcast %260 : vector<64x1xf32> to vector<64x2xf32>
    %262 = arith.mulf %259, %261 : vector<64x2xf32>
    %263 = arith.addf %258, %262 : vector<64x2xf32>
    %c0_164 = arith.constant 0 : index
    %c4_165 = arith.constant 4 : index
    %264 = vector.load %arg39[%c0_164, %c4_165] : memref<64x6xf32, #tpu.memory_space<vmem>>, vector<64x2xf32>
    %265 = vector.extract_strided_slice %241 {offsets = [0, 4], sizes = [64, 1], strides = [1, 1]} : vector<64x5xf32> to vector<64x1xf32>
    %266 = vector.broadcast %265 : vector<64x1xf32> to vector<64x2xf32>
    %267 = arith.mulf %264, %266 : vector<64x2xf32>
    %268 = arith.addf %263, %267 : vector<64x2xf32>
    %269 = vector.broadcast %242 : vector<64x1xf32> to vector<64x2xf32>
    %270 = arith.addf %268, %269 : vector<64x2xf32>
    %cst_166 = arith.constant 0.000000e+00 : f32
    %271 = vector.broadcast %cst_166 : f32 to vector<64x2xf32>
    %272 = arith.maximumf %270, %271 : vector<64x2xf32>
    %c0_167 = arith.constant 0 : index
    %c0_168 = arith.constant 0 : index
    %273 = vector.load %arg23[%c0_167, %c0_168] : memref<32x64xf32, #tpu.memory_space<vmem>>, vector<32x64xf32>
    %cst_169 = arith.constant dense<0.000000e+00> : vector<32x2xf32>
    %274 = tpu.matmul %273, %272, %cst_169 {dimension_numbers = #tpu.dot_dimension_numbers<[1], [0], [0], [1], [0, 0, 1, 1], [], []>} : vector<32x64xf32>, vector<64x2xf32>, vector<32x2xf32> -> vector<32x2xf32>
    %c0_170 = arith.constant 0 : index
    %c0_171 = arith.constant 0 : index
    %275 = vector.load %arg24[%c0_170, %c0_171] : memref<32x1xf32, #tpu.memory_space<vmem>>, vector<32x1xf32>
    %c0_172 = arith.constant 0 : index
    %c0_173 = arith.constant 0 : index
    %276 = vector.load %arg25[%c0_172, %c0_173] : memref<32x1xf32, #tpu.memory_space<vmem>>, vector<32x1xf32>
    %277 = vector.shape_cast %274 : vector<32x2xf32> to vector<1x32x2xf32>
    %cst_174 = arith.constant dense<0.000000e+00> : vector<1xf32>
    %278 = vector.multi_reduction <add>, %277, %cst_174 [1, 2] : vector<1x32x2xf32> to vector<1xf32>
    %279 = vector.shape_cast %278 : vector<1xf32> to vector<1x1x1xf32>
    %280 = vector.extract %279[0, 0, 0] : f32 from vector<1x1x1xf32>
    %cst_175 = arith.constant 1.562500e-02 : f32
    %281 = arith.mulf %280, %cst_175 : f32
    %282 = arith.mulf %274, %274 : vector<32x2xf32>
    %283 = vector.shape_cast %282 : vector<32x2xf32> to vector<1x32x2xf32>
    %cst_176 = arith.constant dense<0.000000e+00> : vector<1xf32>
    %284 = vector.multi_reduction <add>, %283, %cst_176 [1, 2] : vector<1x32x2xf32> to vector<1xf32>
    %285 = vector.shape_cast %284 : vector<1xf32> to vector<1x1x1xf32>
    %286 = vector.extract %285[0, 0, 0] : f32 from vector<1x1x1xf32>
    %cst_177 = arith.constant 1.562500e-02 : f32
    %287 = arith.mulf %286, %cst_177 : f32
    %288 = arith.mulf %281, %281 : f32
    %289 = arith.subf %287, %288 : f32
    %cst_178 = arith.constant 0.000000e+00 : f32
    %290 = arith.maximumf %289, %cst_178 : f32
    %291 = vector.broadcast %281 : f32 to vector<32x2xf32>
    %292 = arith.subf %274, %291 : vector<32x2xf32>
    %cst_179 = arith.constant 9.99999993E-9 : f32
    %293 = arith.addf %290, %cst_179 : f32
    %294 = math.rsqrt %293 : f32
    %295 = vector.broadcast %294 : f32 to vector<32x2xf32>
    %296 = arith.mulf %292, %295 : vector<32x2xf32>
    %297 = vector.broadcast %275 : vector<32x1xf32> to vector<32x2xf32>
    %298 = arith.mulf %296, %297 : vector<32x2xf32>
    %299 = vector.broadcast %276 : vector<32x1xf32> to vector<32x2xf32>
    %300 = arith.addf %298, %299 : vector<32x2xf32>
    %301 = arith.addf %207, %300 : vector<32x2xf32>
    %c0_180 = arith.constant 0 : index
    %c0_181 = arith.constant 0 : index
    %302 = vector.load %arg15[%c0_180, %c0_181] : memref<2x16xbf16, #tpu.memory_space<vmem>>, vector<2x16xbf16>
    %303 = arith.truncf %301 : vector<32x2xf32> to vector<32x2xbf16>
    %cst_182 = arith.constant dense<0.000000e+00> : vector<32x16xf32>
    %304 = tpu.matmul %303, %302, %cst_182 {dimension_numbers = #tpu.dot_dimension_numbers<[1], [0], [0], [1], [0, 0, 1, 1], [], []>} : vector<32x2xbf16>, vector<2x16xbf16>, vector<32x16xf32> -> vector<32x16xf32>
    %305 = arith.addf %304, %75 : vector<32x16xf32>
    %c0_183 = arith.constant 0 : index
    %c0_184 = arith.constant 0 : index
    %306 = vector.load %arg16[%c0_183, %c0_184] : memref<2x8xbf16, #tpu.memory_space<vmem>>, vector<2x8xbf16>
    %307 = arith.truncf %301 : vector<32x2xf32> to vector<32x2xbf16>
    %cst_185 = arith.constant dense<0.000000e+00> : vector<32x8xf32>
    %308 = tpu.matmul %307, %306, %cst_185 {dimension_numbers = #tpu.dot_dimension_numbers<[1], [0], [0], [1], [0, 0, 1, 1], [], []>} : vector<32x2xbf16>, vector<2x8xbf16>, vector<32x8xf32> -> vector<32x8xf32>
    %309 = arith.addf %308, %115 : vector<32x8xf32>
    %c0_186 = arith.constant 0 : index
    %c0_187 = arith.constant 0 : index
    %310 = vector.load %arg17[%c0_186, %c0_187] : memref<2x4xbf16, #tpu.memory_space<vmem>>, vector<2x4xbf16>
    %311 = arith.truncf %301 : vector<32x2xf32> to vector<32x2xbf16>
    %cst_188 = arith.constant dense<0.000000e+00> : vector<32x4xf32>
    %312 = tpu.matmul %311, %310, %cst_188 {dimension_numbers = #tpu.dot_dimension_numbers<[1], [0], [0], [1], [0, 0, 1, 1], [], []>} : vector<32x2xbf16>, vector<2x4xbf16>, vector<32x4xf32> -> vector<32x4xf32>
    %313 = arith.addf %312, %155 : vector<32x4xf32>
    %cst_189 = arith.constant 0.000000e+00 : f32
    %314 = vector.broadcast %cst_189 : f32 to vector<32x2xf32>
    %c0_190 = arith.constant 0 : index
    %c0_191 = arith.constant 0 : index
    %315 = vector.load %arg38[%c0_190, %c0_191] : memref<32x8xf32, #tpu.memory_space<vmem>>, vector<32x2xf32>
    tpu.vector_store %arg38[%c0_190, %c0_191], %314 {strides = array<i32>} : memref<32x8xf32, #tpu.memory_space<vmem>>, vector<32x2xf32>,
    %cst_192 = arith.constant 0.000000e+00 : f32
    %316 = vector.broadcast %cst_192 : f32 to vector<32x2xf32>
    %c0_193 = arith.constant 0 : index
    %c6_194 = arith.constant 6 : index
    %317 = vector.load %arg38[%c0_193, %c6_194] : memref<32x8xf32, #tpu.memory_space<vmem>>, vector<32x2xf32>
    tpu.vector_store %arg38[%c0_193, %c6_194], %316 {strides = array<i32>} : memref<32x8xf32, #tpu.memory_space<vmem>>, vector<32x2xf32>,
    %c0_195 = arith.constant 0 : index
    %c2_196 = arith.constant 2 : index
    %318 = vector.load %arg38[%c0_195, %c2_196] : memref<32x8xf32, #tpu.memory_space<vmem>>, vector<32x4xf32>
    tpu.vector_store %arg38[%c0_195, %c2_196], %313 {strides = array<i32>} : memref<32x8xf32, #tpu.memory_space<vmem>>, vector<32x4xf32>,
    %c6_197 = arith.constant 6 : index
    %c0_198 = arith.constant 0 : index
    %c0_199 = arith.constant 0 : index
    %319 = vector.load %arg26[%c6_197, %c0_198, %c0_199] : memref<9x32x5xf32, #tpu.memory_space<vmem>>, vector<1x32x5xf32>
    %320 = vector.shape_cast %319 : vector<1x32x5xf32> to vector<32x5xf32>
    %cst_200 = arith.constant 0.000000e+00 : f32
    %321 = vector.broadcast %cst_200 : f32 to vector<32x4xf32>
    %c0_201 = arith.constant 0 : index
    %c0_202 = arith.constant 0 : index
    %322 = vector.load %arg38[%c0_201, %c0_202] : memref<32x8xf32, #tpu.memory_space<vmem>>, vector<32x4xf32>
    %323 = vector.extract_strided_slice %320 {offsets = [0, 0], sizes = [32, 1], strides = [1, 1]} : vector<32x5xf32> to vector<32x1xf32>
    %324 = vector.broadcast %323 : vector<32x1xf32> to vector<32x4xf32>
    %325 = arith.mulf %322, %324 : vector<32x4xf32>
    %326 = arith.addf %321, %325 : vector<32x4xf32>
    %c0_203 = arith.constant 0 : index
    %c1_204 = arith.constant 1 : index
    %327 = vector.load %arg38[%c0_203, %c1_204] : memref<32x8xf32, #tpu.memory_space<vmem>>, vector<32x4xf32>
    %328 = vector.extract_strided_slice %320 {offsets = [0, 1], sizes = [32, 1], strides = [1, 1]} : vector<32x5xf32> to vector<32x1xf32>
    %329 = vector.broadcast %328 : vector<32x1xf32> to vector<32x4xf32>
    %330 = arith.mulf %327, %329 : vector<32x4xf32>
    %331 = arith.addf %326, %330 : vector<32x4xf32>
    %c0_205 = arith.constant 0 : index
    %c2_206 = arith.constant 2 : index
    %332 = vector.load %arg38[%c0_205, %c2_206] : memref<32x8xf32, #tpu.memory_space<vmem>>, vector<32x4xf32>
    %333 = vector.extract_strided_slice %320 {offsets = [0, 2], sizes = [32, 1], strides = [1, 1]} : vector<32x5xf32> to vector<32x1xf32>
    %334 = vector.broadcast %333 : vector<32x1xf32> to vector<32x4xf32>
    %335 = arith.mulf %332, %334 : vector<32x4xf32>
    %336 = arith.addf %331, %335 : vector<32x4xf32>
    %c0_207 = arith.constant 0 : index
    %c3_208 = arith.constant 3 : index
    %337 = vector.load %arg38[%c0_207, %c3_208] : memref<32x8xf32, #tpu.memory_space<vmem>>, vector<32x4xf32>
    %338 = vector.extract_strided_slice %320 {offsets = [0, 3], sizes = [32, 1], strides = [1, 1]} : vector<32x5xf32> to vector<32x1xf32>
    %339 = vector.broadcast %338 : vector<32x1xf32> to vector<32x4xf32>
    %340 = arith.mulf %337, %339 : vector<32x4xf32>
    %341 = arith.addf %336, %340 : vector<32x4xf32>
    %c0_209 = arith.constant 0 : index
    %c4_210 = arith.constant 4 : index
    %342 = vector.load %arg38[%c0_209, %c4_210] : memref<32x8xf32, #tpu.memory_space<vmem>>, vector<32x4xf32>
    %343 = vector.extract_strided_slice %320 {offsets = [0, 4], sizes = [32, 1], strides = [1, 1]} : vector<32x5xf32> to vector<32x1xf32>
    %344 = vector.broadcast %343 : vector<32x1xf32> to vector<32x4xf32>
    %345 = arith.mulf %342, %344 : vector<32x4xf32>
    %346 = arith.addf %341, %345 : vector<32x4xf32>
    %c6_211 = arith.constant 6 : index
    %c0_212 = arith.constant 0 : index
    %c0_213 = arith.constant 0 : index
    %347 = vector.load %arg27[%c6_211, %c0_212, %c0_213] : memref<9x32x1xf32, #tpu.memory_space<vmem>>, vector<1x32x1xf32>
    %348 = vector.shape_cast %347 : vector<1x32x1xf32> to vector<32x1xf32>
    %c6_214 = arith.constant 6 : index
    %c0_215 = arith.constant 0 : index
    %c0_216 = arith.constant 0 : index
    %349 = vector.load %arg28[%c6_214, %c0_215, %c0_216] : memref<9x32x1xf32, #tpu.memory_space<vmem>>, vector<1x32x1xf32>
    %350 = vector.shape_cast %349 : vector<1x32x1xf32> to vector<32x1xf32>
    %351 = vector.shape_cast %346 : vector<32x4xf32> to vector<1x32x4xf32>
    %cst_217 = arith.constant dense<0.000000e+00> : vector<1xf32>
    %352 = vector.multi_reduction <add>, %351, %cst_217 [1, 2] : vector<1x32x4xf32> to vector<1xf32>
    %353 = vector.shape_cast %352 : vector<1xf32> to vector<1x1x1xf32>
    %354 = vector.extract %353[0, 0, 0] : f32 from vector<1x1x1xf32>
    %cst_218 = arith.constant 7.812500e-03 : f32
    %355 = arith.mulf %354, %cst_218 : f32
    %356 = arith.mulf %346, %346 : vector<32x4xf32>
    %357 = vector.shape_cast %356 : vector<32x4xf32> to vector<1x32x4xf32>
    %cst_219 = arith.constant dense<0.000000e+00> : vector<1xf32>
    %358 = vector.multi_reduction <add>, %357, %cst_219 [1, 2] : vector<1x32x4xf32> to vector<1xf32>
    %359 = vector.shape_cast %358 : vector<1xf32> to vector<1x1x1xf32>
    %360 = vector.extract %359[0, 0, 0] : f32 from vector<1x1x1xf32>
    %cst_220 = arith.constant 7.812500e-03 : f32
    %361 = arith.mulf %360, %cst_220 : f32
    %362 = arith.mulf %355, %355 : f32
    %363 = arith.subf %361, %362 : f32
    %cst_221 = arith.constant 0.000000e+00 : f32
    %364 = arith.maximumf %363, %cst_221 : f32
    %365 = vector.broadcast %355 : f32 to vector<32x4xf32>
    %366 = arith.subf %346, %365 : vector<32x4xf32>
    %cst_222 = arith.constant 9.99999993E-9 : f32
    %367 = arith.addf %364, %cst_222 : f32
    %368 = math.rsqrt %367 : f32
    %369 = vector.broadcast %368 : f32 to vector<32x4xf32>
    %370 = arith.mulf %366, %369 : vector<32x4xf32>
    %371 = vector.broadcast %348 : vector<32x1xf32> to vector<32x4xf32>
    %372 = arith.mulf %370, %371 : vector<32x4xf32>
    %373 = vector.broadcast %350 : vector<32x1xf32> to vector<32x4xf32>
    %374 = arith.addf %372, %373 : vector<32x4xf32>
    %cst_223 = arith.constant 0.000000e+00 : f32
    %375 = vector.broadcast %cst_223 : f32 to vector<32x2xf32>
    %c0_224 = arith.constant 0 : index
    %c0_225 = arith.constant 0 : index
    %376 = vector.load %arg37[%c0_224, %c0_225] : memref<32x12xf32, #tpu.memory_space<vmem>>, vector<32x2xf32>
    tpu.vector_store %arg37[%c0_224, %c0_225], %375 {strides = array<i32>} : memref<32x12xf32, #tpu.memory_space<vmem>>, vector<32x2xf32>,
    %cst_226 = arith.constant 0.000000e+00 : f32
    %377 = vector.broadcast %cst_226 : f32 to vector<32x2xf32>
    %c0_227 = arith.constant 0 : index
    %c10_228 = arith.constant 10 : index
    %378 = vector.load %arg37[%c0_227, %c10_228] : memref<32x12xf32, #tpu.memory_space<vmem>>, vector<32x2xf32>
    tpu.vector_store %arg37[%c0_227, %c10_228], %377 {strides = array<i32>} : memref<32x12xf32, #tpu.memory_space<vmem>>, vector<32x2xf32>,
    %c0_229 = arith.constant 0 : index
    %c2_230 = arith.constant 2 : index
    %379 = vector.load %arg37[%c0_229, %c2_230] : memref<32x12xf32, #tpu.memory_space<vmem>>, vector<32x8xf32>
    tpu.vector_store %arg37[%c0_229, %c2_230], %309 {strides = array<i32>} : memref<32x12xf32, #tpu.memory_space<vmem>>, vector<32x8xf32>,
    %c7 = arith.constant 7 : index
    %c0_231 = arith.constant 0 : index
    %c0_232 = arith.constant 0 : index
    %380 = vector.load %arg26[%c7, %c0_231, %c0_232] : memref<9x32x5xf32, #tpu.memory_space<vmem>>, vector<1x32x5xf32>
    %381 = vector.shape_cast %380 : vector<1x32x5xf32> to vector<32x5xf32>
    %cst_233 = arith.constant 0.000000e+00 : f32
    %382 = vector.broadcast %cst_233 : f32 to vector<32x8xf32>
    %c0_234 = arith.constant 0 : index
    %c0_235 = arith.constant 0 : index
    %383 = vector.load %arg37[%c0_234, %c0_235] : memref<32x12xf32, #tpu.memory_space<vmem>>, vector<32x8xf32>
    %384 = vector.extract_strided_slice %381 {offsets = [0, 0], sizes = [32, 1], strides = [1, 1]} : vector<32x5xf32> to vector<32x1xf32>
    %385 = vector.broadcast %384 : vector<32x1xf32> to vector<32x8xf32>
    %386 = arith.mulf %383, %385 : vector<32x8xf32>
    %387 = arith.addf %382, %386 : vector<32x8xf32>
    %c0_236 = arith.constant 0 : index
    %c1_237 = arith.constant 1 : index
    %388 = vector.load %arg37[%c0_236, %c1_237] : memref<32x12xf32, #tpu.memory_space<vmem>>, vector<32x8xf32>
    %389 = vector.extract_strided_slice %381 {offsets = [0, 1], sizes = [32, 1], strides = [1, 1]} : vector<32x5xf32> to vector<32x1xf32>
    %390 = vector.broadcast %389 : vector<32x1xf32> to vector<32x8xf32>
    %391 = arith.mulf %388, %390 : vector<32x8xf32>
    %392 = arith.addf %387, %391 : vector<32x8xf32>
    %c0_238 = arith.constant 0 : index
    %c2_239 = arith.constant 2 : index
    %393 = vector.load %arg37[%c0_238, %c2_239] : memref<32x12xf32, #tpu.memory_space<vmem>>, vector<32x8xf32>
    %394 = vector.extract_strided_slice %381 {offsets = [0, 2], sizes = [32, 1], strides = [1, 1]} : vector<32x5xf32> to vector<32x1xf32>
    %395 = vector.broadcast %394 : vector<32x1xf32> to vector<32x8xf32>
    %396 = arith.mulf %393, %395 : vector<32x8xf32>
    %397 = arith.addf %392, %396 : vector<32x8xf32>
    %c0_240 = arith.constant 0 : index
    %c3_241 = arith.constant 3 : index
    %398 = vector.load %arg37[%c0_240, %c3_241] : memref<32x12xf32, #tpu.memory_space<vmem>>, vector<32x8xf32>
    %399 = vector.extract_strided_slice %381 {offsets = [0, 3], sizes = [32, 1], strides = [1, 1]} : vector<32x5xf32> to vector<32x1xf32>
    %400 = vector.broadcast %399 : vector<32x1xf32> to vector<32x8xf32>
    %401 = arith.mulf %398, %400 : vector<32x8xf32>
    %402 = arith.addf %397, %401 : vector<32x8xf32>
    %c0_242 = arith.constant 0 : index
    %c4_243 = arith.constant 4 : index
    %403 = vector.load %arg37[%c0_242, %c4_243] : memref<32x12xf32, #tpu.memory_space<vmem>>, vector<32x8xf32>
    %404 = vector.extract_strided_slice %381 {offsets = [0, 4], sizes = [32, 1], strides = [1, 1]} : vector<32x5xf32> to vector<32x1xf32>
    %405 = vector.broadcast %404 : vector<32x1xf32> to vector<32x8xf32>
    %406 = arith.mulf %403, %405 : vector<32x8xf32>
    %407 = arith.addf %402, %406 : vector<32x8xf32>
    %c7_244 = arith.constant 7 : index
    %c0_245 = arith.constant 0 : index
    %c0_246 = arith.constant 0 : index
    %408 = vector.load %arg27[%c7_244, %c0_245, %c0_246] : memref<9x32x1xf32, #tpu.memory_space<vmem>>, vector<1x32x1xf32>
    %409 = vector.shape_cast %408 : vector<1x32x1xf32> to vector<32x1xf32>
    %c7_247 = arith.constant 7 : index
    %c0_248 = arith.constant 0 : index
    %c0_249 = arith.constant 0 : index
    %410 = vector.load %arg28[%c7_247, %c0_248, %c0_249] : memref<9x32x1xf32, #tpu.memory_space<vmem>>, vector<1x32x1xf32>
    %411 = vector.shape_cast %410 : vector<1x32x1xf32> to vector<32x1xf32>
    %412 = vector.shape_cast %407 : vector<32x8xf32> to vector<1x32x8xf32>
    %cst_250 = arith.constant dense<0.000000e+00> : vector<1xf32>
    %413 = vector.multi_reduction <add>, %412, %cst_250 [1, 2] : vector<1x32x8xf32> to vector<1xf32>
    %414 = vector.shape_cast %413 : vector<1xf32> to vector<1x1x1xf32>
    %415 = vector.extract %414[0, 0, 0] : f32 from vector<1x1x1xf32>
    %cst_251 = arith.constant 3.906250e-03 : f32
    %416 = arith.mulf %415, %cst_251 : f32
    %417 = arith.mulf %407, %407 : vector<32x8xf32>
    %418 = vector.shape_cast %417 : vector<32x8xf32> to vector<1x32x8xf32>
    %cst_252 = arith.constant dense<0.000000e+00> : vector<1xf32>
    %419 = vector.multi_reduction <add>, %418, %cst_252 [1, 2] : vector<1x32x8xf32> to vector<1xf32>
    %420 = vector.shape_cast %419 : vector<1xf32> to vector<1x1x1xf32>
    %421 = vector.extract %420[0, 0, 0] : f32 from vector<1x1x1xf32>
    %cst_253 = arith.constant 3.906250e-03 : f32
    %422 = arith.mulf %421, %cst_253 : f32
    %423 = arith.mulf %416, %416 : f32
    %424 = arith.subf %422, %423 : f32
    %cst_254 = arith.constant 0.000000e+00 : f32
    %425 = arith.maximumf %424, %cst_254 : f32
    %426 = vector.broadcast %416 : f32 to vector<32x8xf32>
    %427 = arith.subf %407, %426 : vector<32x8xf32>
    %cst_255 = arith.constant 9.99999993E-9 : f32
    %428 = arith.addf %425, %cst_255 : f32
    %429 = math.rsqrt %428 : f32
    %430 = vector.broadcast %429 : f32 to vector<32x8xf32>
    %431 = arith.mulf %427, %430 : vector<32x8xf32>
    %432 = vector.broadcast %409 : vector<32x1xf32> to vector<32x8xf32>
    %433 = arith.mulf %431, %432 : vector<32x8xf32>
    %434 = vector.broadcast %411 : vector<32x1xf32> to vector<32x8xf32>
    %435 = arith.addf %433, %434 : vector<32x8xf32>
    %c8 = arith.constant 8 : index
    %c0_256 = arith.constant 0 : index
    %c0_257 = arith.constant 0 : index
    %436 = vector.load %arg26[%c8, %c0_256, %c0_257] : memref<9x32x5xf32, #tpu.memory_space<vmem>>, vector<1x32x5xf32>
    %437 = vector.shape_cast %436 : vector<1x32x5xf32> to vector<32x5xf32>
    %cst_258 = arith.constant 0.000000e+00 : f32
    %438 = vector.broadcast %cst_258 : f32 to vector<32x8xf32>
    %c0_259 = arith.constant 0 : index
    %c0_260 = arith.constant 0 : index
    %439 = vector.load %arg37[%c0_259, %c0_260] : memref<32x12xf32, #tpu.memory_space<vmem>>, vector<32x8xf32>
    %440 = vector.extract_strided_slice %437 {offsets = [0, 0], sizes = [32, 1], strides = [1, 1]} : vector<32x5xf32> to vector<32x1xf32>
    %441 = vector.broadcast %440 : vector<32x1xf32> to vector<32x8xf32>
    %442 = arith.mulf %439, %441 : vector<32x8xf32>
    %443 = arith.addf %438, %442 : vector<32x8xf32>
    %c0_261 = arith.constant 0 : index
    %c1_262 = arith.constant 1 : index
    %444 = vector.load %arg37[%c0_261, %c1_262] : memref<32x12xf32, #tpu.memory_space<vmem>>, vector<32x8xf32>
    %445 = vector.extract_strided_slice %437 {offsets = [0, 1], sizes = [32, 1], strides = [1, 1]} : vector<32x5xf32> to vector<32x1xf32>
    %446 = vector.broadcast %445 : vector<32x1xf32> to vector<32x8xf32>
    %447 = arith.mulf %444, %446 : vector<32x8xf32>
    %448 = arith.addf %443, %447 : vector<32x8xf32>
    %c0_263 = arith.constant 0 : index
    %c2_264 = arith.constant 2 : index
    %449 = vector.load %arg37[%c0_263, %c2_264] : memref<32x12xf32, #tpu.memory_space<vmem>>, vector<32x8xf32>
    %450 = vector.extract_strided_slice %437 {offsets = [0, 2], sizes = [32, 1], strides = [1, 1]} : vector<32x5xf32> to vector<32x1xf32>
    %451 = vector.broadcast %450 : vector<32x1xf32> to vector<32x8xf32>
    %452 = arith.mulf %449, %451 : vector<32x8xf32>
    %453 = arith.addf %448, %452 : vector<32x8xf32>
    %c0_265 = arith.constant 0 : index
    %c3_266 = arith.constant 3 : index
    %454 = vector.load %arg37[%c0_265, %c3_266] : memref<32x12xf32, #tpu.memory_space<vmem>>, vector<32x8xf32>
    %455 = vector.extract_strided_slice %437 {offsets = [0, 3], sizes = [32, 1], strides = [1, 1]} : vector<32x5xf32> to vector<32x1xf32>
    %456 = vector.broadcast %455 : vector<32x1xf32> to vector<32x8xf32>
    %457 = arith.mulf %454, %456 : vector<32x8xf32>
    %458 = arith.addf %453, %457 : vector<32x8xf32>
    %c0_267 = arith.constant 0 : index
    %c4_268 = arith.constant 4 : index
    %459 = vector.load %arg37[%c0_267, %c4_268] : memref<32x12xf32, #tpu.memory_space<vmem>>, vector<32x8xf32>
    %460 = vector.extract_strided_slice %437 {offsets = [0, 4], sizes = [32, 1], strides = [1, 1]} : vector<32x5xf32> to vector<32x1xf32>
    %461 = vector.broadcast %460 : vector<32x1xf32> to vector<32x8xf32>
    %462 = arith.mulf %459, %461 : vector<32x8xf32>
    %463 = arith.addf %458, %462 : vector<32x8xf32>
    %c8_269 = arith.constant 8 : index
    %c0_270 = arith.constant 0 : index
    %c0_271 = arith.constant 0 : index
    %464 = vector.load %arg27[%c8_269, %c0_270, %c0_271] : memref<9x32x1xf32, #tpu.memory_space<vmem>>, vector<1x32x1xf32>
    %465 = vector.shape_cast %464 : vector<1x32x1xf32> to vector<32x1xf32>
    %c8_272 = arith.constant 8 : index
    %c0_273 = arith.constant 0 : index
    %c0_274 = arith.constant 0 : index
    %466 = vector.load %arg28[%c8_272, %c0_273, %c0_274] : memref<9x32x1xf32, #tpu.memory_space<vmem>>, vector<1x32x1xf32>
    %467 = vector.shape_cast %466 : vector<1x32x1xf32> to vector<32x1xf32>
    %468 = vector.shape_cast %463 : vector<32x8xf32> to vector<1x32x8xf32>
    %cst_275 = arith.constant dense<0.000000e+00> : vector<1xf32>
    %469 = vector.multi_reduction <add>, %468, %cst_275 [1, 2] : vector<1x32x8xf32> to vector<1xf32>
    %470 = vector.shape_cast %469 : vector<1xf32> to vector<1x1x1xf32>
    %471 = vector.extract %470[0, 0, 0] : f32 from vector<1x1x1xf32>
    %cst_276 = arith.constant 3.906250e-03 : f32
    %472 = arith.mulf %471, %cst_276 : f32
    %473 = arith.mulf %463, %463 : vector<32x8xf32>
    %474 = vector.shape_cast %473 : vector<32x8xf32> to vector<1x32x8xf32>
    %cst_277 = arith.constant dense<0.000000e+00> : vector<1xf32>
    %475 = vector.multi_reduction <add>, %474, %cst_277 [1, 2] : vector<1x32x8xf32> to vector<1xf32>
    %476 = vector.shape_cast %475 : vector<1xf32> to vector<1x1x1xf32>
    %477 = vector.extract %476[0, 0, 0] : f32 from vector<1x1x1xf32>
    %cst_278 = arith.constant 3.906250e-03 : f32
    %478 = arith.mulf %477, %cst_278 : f32
    %479 = arith.mulf %472, %472 : f32
    %480 = arith.subf %478, %479 : f32
    %cst_279 = arith.constant 0.000000e+00 : f32
    %481 = arith.maximumf %480, %cst_279 : f32
    %482 = vector.broadcast %472 : f32 to vector<32x8xf32>
    %483 = arith.subf %463, %482 : vector<32x8xf32>
    %cst_280 = arith.constant 9.99999993E-9 : f32
    %484 = arith.addf %481, %cst_280 : f32
    %485 = math.rsqrt %484 : f32
    %486 = vector.broadcast %485 : f32 to vector<32x8xf32>
    %487 = arith.mulf %483, %486 : vector<32x8xf32>
    %488 = vector.broadcast %465 : vector<32x1xf32> to vector<32x8xf32>
    %489 = arith.mulf %487, %488 : vector<32x8xf32>
    %490 = vector.broadcast %467 : vector<32x1xf32> to vector<32x8xf32>
    %491 = arith.addf %489, %490 : vector<32x8xf32>
    %c0_281 = arith.constant 0 : index
    %c0_282 = arith.constant 0 : index
    %492 = vector.load %arg29[%c0_281, %c0_282] : memref<8x4xbf16, #tpu.memory_space<vmem>>, vector<8x4xbf16>
    %493 = arith.negf %435 : vector<32x8xf32>
    %494 = math.exp %493 : vector<32x8xf32>
    %cst_283 = arith.constant 1.000000e+00 : f32
    %495 = vector.broadcast %cst_283 : f32 to vector<32x8xf32>
    %496 = arith.addf %495, %494 : vector<32x8xf32>
    %497 = arith.divf %495, %496 : vector<32x8xf32>
    %498 = arith.truncf %497 : vector<32x8xf32> to vector<32x8xbf16>
    %cst_284 = arith.constant dense<0.000000e+00> : vector<32x4xf32>
    %499 = tpu.matmul %498, %492, %cst_284 {dimension_numbers = #tpu.dot_dimension_numbers<[1], [0], [0], [1], [0, 0, 1, 1], [], []>} : vector<32x8xbf16>, vector<8x4xbf16>, vector<32x4xf32> -> vector<32x4xf32>
    %500 = arith.truncf %491 : vector<32x8xf32> to vector<32x8xbf16>
    %cst_285 = arith.constant dense<0.000000e+00> : vector<32x4xf32>
    %501 = tpu.matmul %500, %492, %cst_285 {dimension_numbers = #tpu.dot_dimension_numbers<[1], [0], [0], [1], [0, 0, 1, 1], [], []>} : vector<32x8xbf16>, vector<8x4xbf16>, vector<32x4xf32> -> vector<32x4xf32>
    %502 = arith.mulf %374, %499 : vector<32x4xf32>
    %503 = arith.addf %502, %501 : vector<32x4xf32>
    %cst_286 = arith.constant 0.000000e+00 : f32
    %504 = vector.broadcast %cst_286 : f32 to vector<32x2xf32>
    %c0_287 = arith.constant 0 : index
    %c0_288 = arith.constant 0 : index
    %505 = vector.load %arg37[%c0_287, %c0_288] : memref<32x12xf32, #tpu.memory_space<vmem>>, vector<32x2xf32>
    tpu.vector_store %arg37[%c0_287, %c0_288], %504 {strides = array<i32>} : memref<32x12xf32, #tpu.memory_space<vmem>>, vector<32x2xf32>,
    %cst_289 = arith.constant 0.000000e+00 : f32
    %506 = vector.broadcast %cst_289 : f32 to vector<32x2xf32>
    %c0_290 = arith.constant 0 : index
    %c10_291 = arith.constant 10 : index
    %507 = vector.load %arg37[%c0_290, %c10_291] : memref<32x12xf32, #tpu.memory_space<vmem>>, vector<32x2xf32>
    tpu.vector_store %arg37[%c0_290, %c10_291], %506 {strides = array<i32>} : memref<32x12xf32, #tpu.memory_space<vmem>>, vector<32x2xf32>,
    %c0_292 = arith.constant 0 : index
    %c2_293 = arith.constant 2 : index
    %508 = vector.load %arg37[%c0_292, %c2_293] : memref<32x12xf32, #tpu.memory_space<vmem>>, vector<32x8xf32>
    tpu.vector_store %arg37[%c0_292, %c2_293], %309 {strides = array<i32>} : memref<32x12xf32, #tpu.memory_space<vmem>>, vector<32x8xf32>,
    %c3_294 = arith.constant 3 : index
    %c0_295 = arith.constant 0 : index
    %c0_296 = arith.constant 0 : index
    %509 = vector.load %arg26[%c3_294, %c0_295, %c0_296] : memref<9x32x5xf32, #tpu.memory_space<vmem>>, vector<1x32x5xf32>
    %510 = vector.shape_cast %509 : vector<1x32x5xf32> to vector<32x5xf32>
    %cst_297 = arith.constant 0.000000e+00 : f32
    %511 = vector.broadcast %cst_297 : f32 to vector<32x8xf32>
    %c0_298 = arith.constant 0 : index
    %c0_299 = arith.constant 0 : index
    %512 = vector.load %arg37[%c0_298, %c0_299] : memref<32x12xf32, #tpu.memory_space<vmem>>, vector<32x8xf32>
    %513 = vector.extract_strided_slice %510 {offsets = [0, 0], sizes = [32, 1], strides = [1, 1]} : vector<32x5xf32> to vector<32x1xf32>
    %514 = vector.broadcast %513 : vector<32x1xf32> to vector<32x8xf32>
    %515 = arith.mulf %512, %514 : vector<32x8xf32>
    %516 = arith.addf %511, %515 : vector<32x8xf32>
    %c0_300 = arith.constant 0 : index
    %c1_301 = arith.constant 1 : index
    %517 = vector.load %arg37[%c0_300, %c1_301] : memref<32x12xf32, #tpu.memory_space<vmem>>, vector<32x8xf32>
    %518 = vector.extract_strided_slice %510 {offsets = [0, 1], sizes = [32, 1], strides = [1, 1]} : vector<32x5xf32> to vector<32x1xf32>
    %519 = vector.broadcast %518 : vector<32x1xf32> to vector<32x8xf32>
    %520 = arith.mulf %517, %519 : vector<32x8xf32>
    %521 = arith.addf %516, %520 : vector<32x8xf32>
    %c0_302 = arith.constant 0 : index
    %c2_303 = arith.constant 2 : index
    %522 = vector.load %arg37[%c0_302, %c2_303] : memref<32x12xf32, #tpu.memory_space<vmem>>, vector<32x8xf32>
    %523 = vector.extract_strided_slice %510 {offsets = [0, 2], sizes = [32, 1], strides = [1, 1]} : vector<32x5xf32> to vector<32x1xf32>
    %524 = vector.broadcast %523 : vector<32x1xf32> to vector<32x8xf32>
    %525 = arith.mulf %522, %524 : vector<32x8xf32>
    %526 = arith.addf %521, %525 : vector<32x8xf32>
    %c0_304 = arith.constant 0 : index
    %c3_305 = arith.constant 3 : index
    %527 = vector.load %arg37[%c0_304, %c3_305] : memref<32x12xf32, #tpu.memory_space<vmem>>, vector<32x8xf32>
    %528 = vector.extract_strided_slice %510 {offsets = [0, 3], sizes = [32, 1], strides = [1, 1]} : vector<32x5xf32> to vector<32x1xf32>
    %529 = vector.broadcast %528 : vector<32x1xf32> to vector<32x8xf32>
    %530 = arith.mulf %527, %529 : vector<32x8xf32>
    %531 = arith.addf %526, %530 : vector<32x8xf32>
    %c0_306 = arith.constant 0 : index
    %c4_307 = arith.constant 4 : index
    %532 = vector.load %arg37[%c0_306, %c4_307] : memref<32x12xf32, #tpu.memory_space<vmem>>, vector<32x8xf32>
    %533 = vector.extract_strided_slice %510 {offsets = [0, 4], sizes = [32, 1], strides = [1, 1]} : vector<32x5xf32> to vector<32x1xf32>
    %534 = vector.broadcast %533 : vector<32x1xf32> to vector<32x8xf32>
    %535 = arith.mulf %532, %534 : vector<32x8xf32>
    %536 = arith.addf %531, %535 : vector<32x8xf32>
    %c3_308 = arith.constant 3 : index
    %c0_309 = arith.constant 0 : index
    %c0_310 = arith.constant 0 : index
    %537 = vector.load %arg27[%c3_308, %c0_309, %c0_310] : memref<9x32x1xf32, #tpu.memory_space<vmem>>, vector<1x32x1xf32>
    %538 = vector.shape_cast %537 : vector<1x32x1xf32> to vector<32x1xf32>
    %c3_311 = arith.constant 3 : index
    %c0_312 = arith.constant 0 : index
    %c0_313 = arith.constant 0 : index
    %539 = vector.load %arg28[%c3_311, %c0_312, %c0_313] : memref<9x32x1xf32, #tpu.memory_space<vmem>>, vector<1x32x1xf32>
    %540 = vector.shape_cast %539 : vector<1x32x1xf32> to vector<32x1xf32>
    %541 = vector.shape_cast %536 : vector<32x8xf32> to vector<1x32x8xf32>
    %cst_314 = arith.constant dense<0.000000e+00> : vector<1xf32>
    %542 = vector.multi_reduction <add>, %541, %cst_314 [1, 2] : vector<1x32x8xf32> to vector<1xf32>
    %543 = vector.shape_cast %542 : vector<1xf32> to vector<1x1x1xf32>
    %544 = vector.extract %543[0, 0, 0] : f32 from vector<1x1x1xf32>
    %cst_315 = arith.constant 3.906250e-03 : f32
    %545 = arith.mulf %544, %cst_315 : f32
    %546 = arith.mulf %536, %536 : vector<32x8xf32>
    %547 = vector.shape_cast %546 : vector<32x8xf32> to vector<1x32x8xf32>
    %cst_316 = arith.constant dense<0.000000e+00> : vector<1xf32>
    %548 = vector.multi_reduction <add>, %547, %cst_316 [1, 2] : vector<1x32x8xf32> to vector<1xf32>
    %549 = vector.shape_cast %548 : vector<1xf32> to vector<1x1x1xf32>
    %550 = vector.extract %549[0, 0, 0] : f32 from vector<1x1x1xf32>
    %cst_317 = arith.constant 3.906250e-03 : f32
    %551 = arith.mulf %550, %cst_317 : f32
    %552 = arith.mulf %545, %545 : f32
    %553 = arith.subf %551, %552 : f32
    %cst_318 = arith.constant 0.000000e+00 : f32
    %554 = arith.maximumf %553, %cst_318 : f32
    %555 = vector.broadcast %545 : f32 to vector<32x8xf32>
    %556 = arith.subf %536, %555 : vector<32x8xf32>
    %cst_319 = arith.constant 9.99999993E-9 : f32
    %557 = arith.addf %554, %cst_319 : f32
    %558 = math.rsqrt %557 : f32
    %559 = vector.broadcast %558 : f32 to vector<32x8xf32>
    %560 = arith.mulf %556, %559 : vector<32x8xf32>
    %561 = vector.broadcast %538 : vector<32x1xf32> to vector<32x8xf32>
    %562 = arith.mulf %560, %561 : vector<32x8xf32>
    %563 = vector.broadcast %540 : vector<32x1xf32> to vector<32x8xf32>
    %564 = arith.addf %562, %563 : vector<32x8xf32>
    %cst_320 = arith.constant 0.000000e+00 : f32
    %565 = vector.broadcast %cst_320 : f32 to vector<32x2xf32>
    %c0_321 = arith.constant 0 : index
    %c0_322 = arith.constant 0 : index
    %566 = vector.load %arg38[%c0_321, %c0_322] : memref<32x8xf32, #tpu.memory_space<vmem>>, vector<32x2xf32>
    tpu.vector_store %arg38[%c0_321, %c0_322], %565 {strides = array<i32>} : memref<32x8xf32, #tpu.memory_space<vmem>>, vector<32x2xf32>,
    %cst_323 = arith.constant 0.000000e+00 : f32
    %567 = vector.broadcast %cst_323 : f32 to vector<32x2xf32>
    %c0_324 = arith.constant 0 : index
    %c6_325 = arith.constant 6 : index
    %568 = vector.load %arg38[%c0_324, %c6_325] : memref<32x8xf32, #tpu.memory_space<vmem>>, vector<32x2xf32>
    tpu.vector_store %arg38[%c0_324, %c6_325], %567 {strides = array<i32>} : memref<32x8xf32, #tpu.memory_space<vmem>>, vector<32x2xf32>,
    %c0_326 = arith.constant 0 : index
    %c2_327 = arith.constant 2 : index
    %569 = vector.load %arg38[%c0_326, %c2_327] : memref<32x8xf32, #tpu.memory_space<vmem>>, vector<32x4xf32>
    tpu.vector_store %arg38[%c0_326, %c2_327], %503 {strides = array<i32>} : memref<32x8xf32, #tpu.memory_space<vmem>>, vector<32x4xf32>,
    %c4_328 = arith.constant 4 : index
    %c0_329 = arith.constant 0 : index
    %c0_330 = arith.constant 0 : index
    %570 = vector.load %arg26[%c4_328, %c0_329, %c0_330] : memref<9x32x5xf32, #tpu.memory_space<vmem>>, vector<1x32x5xf32>
    %571 = vector.shape_cast %570 : vector<1x32x5xf32> to vector<32x5xf32>
    %cst_331 = arith.constant 0.000000e+00 : f32
    %572 = vector.broadcast %cst_331 : f32 to vector<32x4xf32>
    %c0_332 = arith.constant 0 : index
    %c0_333 = arith.constant 0 : index
    %573 = vector.load %arg38[%c0_332, %c0_333] : memref<32x8xf32, #tpu.memory_space<vmem>>, vector<32x4xf32>
    %574 = vector.extract_strided_slice %571 {offsets = [0, 0], sizes = [32, 1], strides = [1, 1]} : vector<32x5xf32> to vector<32x1xf32>
    %575 = vector.broadcast %574 : vector<32x1xf32> to vector<32x4xf32>
    %576 = arith.mulf %573, %575 : vector<32x4xf32>
    %577 = arith.addf %572, %576 : vector<32x4xf32>
    %c0_334 = arith.constant 0 : index
    %c1_335 = arith.constant 1 : index
    %578 = vector.load %arg38[%c0_334, %c1_335] : memref<32x8xf32, #tpu.memory_space<vmem>>, vector<32x4xf32>
    %579 = vector.extract_strided_slice %571 {offsets = [0, 1], sizes = [32, 1], strides = [1, 1]} : vector<32x5xf32> to vector<32x1xf32>
    %580 = vector.broadcast %579 : vector<32x1xf32> to vector<32x4xf32>
    %581 = arith.mulf %578, %580 : vector<32x4xf32>
    %582 = arith.addf %577, %581 : vector<32x4xf32>
    %c0_336 = arith.constant 0 : index
    %c2_337 = arith.constant 2 : index
    %583 = vector.load %arg38[%c0_336, %c2_337] : memref<32x8xf32, #tpu.memory_space<vmem>>, vector<32x4xf32>
    %584 = vector.extract_strided_slice %571 {offsets = [0, 2], sizes = [32, 1], strides = [1, 1]} : vector<32x5xf32> to vector<32x1xf32>
    %585 = vector.broadcast %584 : vector<32x1xf32> to vector<32x4xf32>
    %586 = arith.mulf %583, %585 : vector<32x4xf32>
    %587 = arith.addf %582, %586 : vector<32x4xf32>
    %c0_338 = arith.constant 0 : index
    %c3_339 = arith.constant 3 : index
    %588 = vector.load %arg38[%c0_338, %c3_339] : memref<32x8xf32, #tpu.memory_space<vmem>>, vector<32x4xf32>
    %589 = vector.extract_strided_slice %571 {offsets = [0, 3], sizes = [32, 1], strides = [1, 1]} : vector<32x5xf32> to vector<32x1xf32>
    %590 = vector.broadcast %589 : vector<32x1xf32> to vector<32x4xf32>
    %591 = arith.mulf %588, %590 : vector<32x4xf32>
    %592 = arith.addf %587, %591 : vector<32x4xf32>
    %c0_340 = arith.constant 0 : index
    %c4_341 = arith.constant 4 : index
    %593 = vector.load %arg38[%c0_340, %c4_341] : memref<32x8xf32, #tpu.memory_space<vmem>>, vector<32x4xf32>
    %594 = vector.extract_strided_slice %571 {offsets = [0, 4], sizes = [32, 1], strides = [1, 1]} : vector<32x5xf32> to vector<32x1xf32>
    %595 = vector.broadcast %594 : vector<32x1xf32> to vector<32x4xf32>
    %596 = arith.mulf %593, %595 : vector<32x4xf32>
    %597 = arith.addf %592, %596 : vector<32x4xf32>
    %c4_342 = arith.constant 4 : index
    %c0_343 = arith.constant 0 : index
    %c0_344 = arith.constant 0 : index
    %598 = vector.load %arg27[%c4_342, %c0_343, %c0_344] : memref<9x32x1xf32, #tpu.memory_space<vmem>>, vector<1x32x1xf32>
    %599 = vector.shape_cast %598 : vector<1x32x1xf32> to vector<32x1xf32>
    %c4_345 = arith.constant 4 : index
    %c0_346 = arith.constant 0 : index
    %c0_347 = arith.constant 0 : index
    %600 = vector.load %arg28[%c4_345, %c0_346, %c0_347] : memref<9x32x1xf32, #tpu.memory_space<vmem>>, vector<1x32x1xf32>
    %601 = vector.shape_cast %600 : vector<1x32x1xf32> to vector<32x1xf32>
    %602 = vector.shape_cast %597 : vector<32x4xf32> to vector<1x32x4xf32>
    %cst_348 = arith.constant dense<0.000000e+00> : vector<1xf32>
    %603 = vector.multi_reduction <add>, %602, %cst_348 [1, 2] : vector<1x32x4xf32> to vector<1xf32>
    %604 = vector.shape_cast %603 : vector<1xf32> to vector<1x1x1xf32>
    %605 = vector.extract %604[0, 0, 0] : f32 from vector<1x1x1xf32>
    %cst_349 = arith.constant 7.812500e-03 : f32
    %606 = arith.mulf %605, %cst_349 : f32
    %607 = arith.mulf %597, %597 : vector<32x4xf32>
    %608 = vector.shape_cast %607 : vector<32x4xf32> to vector<1x32x4xf32>
    %cst_350 = arith.constant dense<0.000000e+00> : vector<1xf32>
    %609 = vector.multi_reduction <add>, %608, %cst_350 [1, 2] : vector<1x32x4xf32> to vector<1xf32>
    %610 = vector.shape_cast %609 : vector<1xf32> to vector<1x1x1xf32>
    %611 = vector.extract %610[0, 0, 0] : f32 from vector<1x1x1xf32>
    %cst_351 = arith.constant 7.812500e-03 : f32
    %612 = arith.mulf %611, %cst_351 : f32
    %613 = arith.mulf %606, %606 : f32
    %614 = arith.subf %612, %613 : f32
    %cst_352 = arith.constant 0.000000e+00 : f32
    %615 = arith.maximumf %614, %cst_352 : f32
    %616 = vector.broadcast %606 : f32 to vector<32x4xf32>
    %617 = arith.subf %597, %616 : vector<32x4xf32>
    %cst_353 = arith.constant 9.99999993E-9 : f32
    %618 = arith.addf %615, %cst_353 : f32
    %619 = math.rsqrt %618 : f32
    %620 = vector.broadcast %619 : f32 to vector<32x4xf32>
    %621 = arith.mulf %617, %620 : vector<32x4xf32>
    %622 = vector.broadcast %599 : vector<32x1xf32> to vector<32x4xf32>
    %623 = arith.mulf %621, %622 : vector<32x4xf32>
    %624 = vector.broadcast %601 : vector<32x1xf32> to vector<32x4xf32>
    %625 = arith.addf %623, %624 : vector<32x4xf32>
    %c5 = arith.constant 5 : index
    %c0_354 = arith.constant 0 : index
    %c0_355 = arith.constant 0 : index
    %626 = vector.load %arg26[%c5, %c0_354, %c0_355] : memref<9x32x5xf32, #tpu.memory_space<vmem>>, vector<1x32x5xf32>
    %627 = vector.shape_cast %626 : vector<1x32x5xf32> to vector<32x5xf32>
    %cst_356 = arith.constant 0.000000e+00 : f32
    %628 = vector.broadcast %cst_356 : f32 to vector<32x4xf32>
    %c0_357 = arith.constant 0 : index
    %c0_358 = arith.constant 0 : index
    %629 = vector.load %arg38[%c0_357, %c0_358] : memref<32x8xf32, #tpu.memory_space<vmem>>, vector<32x4xf32>
    %630 = vector.extract_strided_slice %627 {offsets = [0, 0], sizes = [32, 1], strides = [1, 1]} : vector<32x5xf32> to vector<32x1xf32>
    %631 = vector.broadcast %630 : vector<32x1xf32> to vector<32x4xf32>
    %632 = arith.mulf %629, %631 : vector<32x4xf32>
    %633 = arith.addf %628, %632 : vector<32x4xf32>
    %c0_359 = arith.constant 0 : index
    %c1_360 = arith.constant 1 : index
    %634 = vector.load %arg38[%c0_359, %c1_360] : memref<32x8xf32, #tpu.memory_space<vmem>>, vector<32x4xf32>
    %635 = vector.extract_strided_slice %627 {offsets = [0, 1], sizes = [32, 1], strides = [1, 1]} : vector<32x5xf32> to vector<32x1xf32>
    %636 = vector.broadcast %635 : vector<32x1xf32> to vector<32x4xf32>
    %637 = arith.mulf %634, %636 : vector<32x4xf32>
    %638 = arith.addf %633, %637 : vector<32x4xf32>
    %c0_361 = arith.constant 0 : index
    %c2_362 = arith.constant 2 : index
    %639 = vector.load %arg38[%c0_361, %c2_362] : memref<32x8xf32, #tpu.memory_space<vmem>>, vector<32x4xf32>
    %640 = vector.extract_strided_slice %627 {offsets = [0, 2], sizes = [32, 1], strides = [1, 1]} : vector<32x5xf32> to vector<32x1xf32>
    %641 = vector.broadcast %640 : vector<32x1xf32> to vector<32x4xf32>
    %642 = arith.mulf %639, %641 : vector<32x4xf32>
    %643 = arith.addf %638, %642 : vector<32x4xf32>
    %c0_363 = arith.constant 0 : index
    %c3_364 = arith.constant 3 : index
    %644 = vector.load %arg38[%c0_363, %c3_364] : memref<32x8xf32, #tpu.memory_space<vmem>>, vector<32x4xf32>
    %645 = vector.extract_strided_slice %627 {offsets = [0, 3], sizes = [32, 1], strides = [1, 1]} : vector<32x5xf32> to vector<32x1xf32>
    %646 = vector.broadcast %645 : vector<32x1xf32> to vector<32x4xf32>
    %647 = arith.mulf %644, %646 : vector<32x4xf32>
    %648 = arith.addf %643, %647 : vector<32x4xf32>
    %c0_365 = arith.constant 0 : index
    %c4_366 = arith.constant 4 : index
    %649 = vector.load %arg38[%c0_365, %c4_366] : memref<32x8xf32, #tpu.memory_space<vmem>>, vector<32x4xf32>
    %650 = vector.extract_strided_slice %627 {offsets = [0, 4], sizes = [32, 1], strides = [1, 1]} : vector<32x5xf32> to vector<32x1xf32>
    %651 = vector.broadcast %650 : vector<32x1xf32> to vector<32x4xf32>
    %652 = arith.mulf %649, %651 : vector<32x4xf32>
    %653 = arith.addf %648, %652 : vector<32x4xf32>
    %c5_367 = arith.constant 5 : index
    %c0_368 = arith.constant 0 : index
    %c0_369 = arith.constant 0 : index
    %654 = vector.load %arg27[%c5_367, %c0_368, %c0_369] : memref<9x32x1xf32, #tpu.memory_space<vmem>>, vector<1x32x1xf32>
    %655 = vector.shape_cast %654 : vector<1x32x1xf32> to vector<32x1xf32>
    %c5_370 = arith.constant 5 : index
    %c0_371 = arith.constant 0 : index
    %c0_372 = arith.constant 0 : index
    %656 = vector.load %arg28[%c5_370, %c0_371, %c0_372] : memref<9x32x1xf32, #tpu.memory_space<vmem>>, vector<1x32x1xf32>
    %657 = vector.shape_cast %656 : vector<1x32x1xf32> to vector<32x1xf32>
    %658 = vector.shape_cast %653 : vector<32x4xf32> to vector<1x32x4xf32>
    %cst_373 = arith.constant dense<0.000000e+00> : vector<1xf32>
    %659 = vector.multi_reduction <add>, %658, %cst_373 [1, 2] : vector<1x32x4xf32> to vector<1xf32>
    %660 = vector.shape_cast %659 : vector<1xf32> to vector<1x1x1xf32>
    %661 = vector.extract %660[0, 0, 0] : f32 from vector<1x1x1xf32>
    %cst_374 = arith.constant 7.812500e-03 : f32
    %662 = arith.mulf %661, %cst_374 : f32
    %663 = arith.mulf %653, %653 : vector<32x4xf32>
    %664 = vector.shape_cast %663 : vector<32x4xf32> to vector<1x32x4xf32>
    %cst_375 = arith.constant dense<0.000000e+00> : vector<1xf32>
    %665 = vector.multi_reduction <add>, %664, %cst_375 [1, 2] : vector<1x32x4xf32> to vector<1xf32>
    %666 = vector.shape_cast %665 : vector<1xf32> to vector<1x1x1xf32>
    %667 = vector.extract %666[0, 0, 0] : f32 from vector<1x1x1xf32>
    %cst_376 = arith.constant 7.812500e-03 : f32
    %668 = arith.mulf %667, %cst_376 : f32
    %669 = arith.mulf %662, %662 : f32
    %670 = arith.subf %668, %669 : f32
    %cst_377 = arith.constant 0.000000e+00 : f32
    %671 = arith.maximumf %670, %cst_377 : f32
    %672 = vector.broadcast %662 : f32 to vector<32x4xf32>
    %673 = arith.subf %653, %672 : vector<32x4xf32>
    %cst_378 = arith.constant 9.99999993E-9 : f32
    %674 = arith.addf %671, %cst_378 : f32
    %675 = math.rsqrt %674 : f32
    %676 = vector.broadcast %675 : f32 to vector<32x4xf32>
    %677 = arith.mulf %673, %676 : vector<32x4xf32>
    %678 = vector.broadcast %655 : vector<32x1xf32> to vector<32x4xf32>
    %679 = arith.mulf %677, %678 : vector<32x4xf32>
    %680 = vector.broadcast %657 : vector<32x1xf32> to vector<32x4xf32>
    %681 = arith.addf %679, %680 : vector<32x4xf32>
    %c0_379 = arith.constant 0 : index
    %c0_380 = arith.constant 0 : index
    %682 = vector.load %arg30[%c0_379, %c0_380] : memref<4x8xbf16, #tpu.memory_space<vmem>>, vector<4x8xbf16>
    %683 = arith.negf %625 : vector<32x4xf32>
    %684 = math.exp %683 : vector<32x4xf32>
    %cst_381 = arith.constant 1.000000e+00 : f32
    %685 = vector.broadcast %cst_381 : f32 to vector<32x4xf32>
    %686 = arith.addf %685, %684 : vector<32x4xf32>
    %687 = arith.divf %685, %686 : vector<32x4xf32>
    %688 = arith.truncf %687 : vector<32x4xf32> to vector<32x4xbf16>
    %cst_382 = arith.constant dense<0.000000e+00> : vector<32x8xf32>
    %689 = tpu.matmul %688, %682, %cst_382 {dimension_numbers = #tpu.dot_dimension_numbers<[1], [0], [0], [1], [0, 0, 1, 1], [], []>} : vector<32x4xbf16>, vector<4x8xbf16>, vector<32x8xf32> -> vector<32x8xf32>
    %690 = arith.truncf %681 : vector<32x4xf32> to vector<32x4xbf16>
    %cst_383 = arith.constant dense<0.000000e+00> : vector<32x8xf32>
    %691 = tpu.matmul %690, %682, %cst_383 {dimension_numbers = #tpu.dot_dimension_numbers<[1], [0], [0], [1], [0, 0, 1, 1], [], []>} : vector<32x4xbf16>, vector<4x8xbf16>, vector<32x8xf32> -> vector<32x8xf32>
    %692 = arith.mulf %564, %689 : vector<32x8xf32>
    %693 = arith.addf %692, %691 : vector<32x8xf32>
    %cst_384 = arith.constant 0.000000e+00 : f32
    %694 = vector.broadcast %cst_384 : f32 to vector<32x2xf32>
    %c0_385 = arith.constant 0 : index
    %c0_386 = arith.constant 0 : index
    %695 = vector.load %arg35[%c0_385, %c0_386] : memref<32x20xf32, #tpu.memory_space<vmem>>, vector<32x2xf32>
    tpu.vector_store %arg35[%c0_385, %c0_386], %694 {strides = array<i32>} : memref<32x20xf32, #tpu.memory_space<vmem>>, vector<32x2xf32>,
    %cst_387 = arith.constant 0.000000e+00 : f32
    %696 = vector.broadcast %cst_387 : f32 to vector<32x2xf32>
    %c0_388 = arith.constant 0 : index
    %c18_389 = arith.constant 18 : index
    %697 = vector.load %arg35[%c0_388, %c18_389] : memref<32x20xf32, #tpu.memory_space<vmem>>, vector<32x2xf32>
    tpu.vector_store %arg35[%c0_388, %c18_389], %696 {strides = array<i32>} : memref<32x20xf32, #tpu.memory_space<vmem>>, vector<32x2xf32>,
    %c0_390 = arith.constant 0 : index
    %c2_391 = arith.constant 2 : index
    %698 = vector.load %arg35[%c0_390, %c2_391] : memref<32x20xf32, #tpu.memory_space<vmem>>, vector<32x16xf32>
    tpu.vector_store %arg35[%c0_390, %c2_391], %305 {strides = array<i32>} : memref<32x20xf32, #tpu.memory_space<vmem>>, vector<32x16xf32>,
    %c0_392 = arith.constant 0 : index
    %c0_393 = arith.constant 0 : index
    %c0_394 = arith.constant 0 : index
    %699 = vector.load %arg26[%c0_392, %c0_393, %c0_394] : memref<9x32x5xf32, #tpu.memory_space<vmem>>, vector<1x32x5xf32>
    %700 = vector.shape_cast %699 : vector<1x32x5xf32> to vector<32x5xf32>
    %cst_395 = arith.constant 0.000000e+00 : f32
    %701 = vector.broadcast %cst_395 : f32 to vector<32x16xf32>
    %c0_396 = arith.constant 0 : index
    %c0_397 = arith.constant 0 : index
    %702 = vector.load %arg35[%c0_396, %c0_397] : memref<32x20xf32, #tpu.memory_space<vmem>>, vector<32x16xf32>
    %703 = vector.extract_strided_slice %700 {offsets = [0, 0], sizes = [32, 1], strides = [1, 1]} : vector<32x5xf32> to vector<32x1xf32>
    %704 = vector.broadcast %703 : vector<32x1xf32> to vector<32x16xf32>
    %705 = arith.mulf %702, %704 : vector<32x16xf32>
    %706 = arith.addf %701, %705 : vector<32x16xf32>
    %c0_398 = arith.constant 0 : index
    %c1_399 = arith.constant 1 : index
    %707 = vector.load %arg35[%c0_398, %c1_399] : memref<32x20xf32, #tpu.memory_space<vmem>>, vector<32x16xf32>
    %708 = vector.extract_strided_slice %700 {offsets = [0, 1], sizes = [32, 1], strides = [1, 1]} : vector<32x5xf32> to vector<32x1xf32>
    %709 = vector.broadcast %708 : vector<32x1xf32> to vector<32x16xf32>
    %710 = arith.mulf %707, %709 : vector<32x16xf32>
    %711 = arith.addf %706, %710 : vector<32x16xf32>
    %c0_400 = arith.constant 0 : index
    %c2_401 = arith.constant 2 : index
    %712 = vector.load %arg35[%c0_400, %c2_401] : memref<32x20xf32, #tpu.memory_space<vmem>>, vector<32x16xf32>
    %713 = vector.extract_strided_slice %700 {offsets = [0, 2], sizes = [32, 1], strides = [1, 1]} : vector<32x5xf32> to vector<32x1xf32>
    %714 = vector.broadcast %713 : vector<32x1xf32> to vector<32x16xf32>
    %715 = arith.mulf %712, %714 : vector<32x16xf32>
    %716 = arith.addf %711, %715 : vector<32x16xf32>
    %c0_402 = arith.constant 0 : index
    %c3_403 = arith.constant 3 : index
    %717 = vector.load %arg35[%c0_402, %c3_403] : memref<32x20xf32, #tpu.memory_space<vmem>>, vector<32x16xf32>
    %718 = vector.extract_strided_slice %700 {offsets = [0, 3], sizes = [32, 1], strides = [1, 1]} : vector<32x5xf32> to vector<32x1xf32>
    %719 = vector.broadcast %718 : vector<32x1xf32> to vector<32x16xf32>
    %720 = arith.mulf %717, %719 : vector<32x16xf32>
    %721 = arith.addf %716, %720 : vector<32x16xf32>
    %c0_404 = arith.constant 0 : index
    %c4_405 = arith.constant 4 : index
    %722 = vector.load %arg35[%c0_404, %c4_405] : memref<32x20xf32, #tpu.memory_space<vmem>>, vector<32x16xf32>
    %723 = vector.extract_strided_slice %700 {offsets = [0, 4], sizes = [32, 1], strides = [1, 1]} : vector<32x5xf32> to vector<32x1xf32>
    %724 = vector.broadcast %723 : vector<32x1xf32> to vector<32x16xf32>
    %725 = arith.mulf %722, %724 : vector<32x16xf32>
    %726 = arith.addf %721, %725 : vector<32x16xf32>
    %c0_406 = arith.constant 0 : index
    %c0_407 = arith.constant 0 : index
    %c0_408 = arith.constant 0 : index
    %727 = vector.load %arg27[%c0_406, %c0_407, %c0_408] : memref<9x32x1xf32, #tpu.memory_space<vmem>>, vector<1x32x1xf32>
    %728 = vector.shape_cast %727 : vector<1x32x1xf32> to vector<32x1xf32>
    %c0_409 = arith.constant 0 : index
    %c0_410 = arith.constant 0 : index
    %c0_411 = arith.constant 0 : index
    %729 = vector.load %arg28[%c0_409, %c0_410, %c0_411] : memref<9x32x1xf32, #tpu.memory_space<vmem>>, vector<1x32x1xf32>
    %730 = vector.shape_cast %729 : vector<1x32x1xf32> to vector<32x1xf32>
    %731 = vector.shape_cast %726 : vector<32x16xf32> to vector<1x32x16xf32>
    %cst_412 = arith.constant dense<0.000000e+00> : vector<1xf32>
    %732 = vector.multi_reduction <add>, %731, %cst_412 [1, 2] : vector<1x32x16xf32> to vector<1xf32>
    %733 = vector.shape_cast %732 : vector<1xf32> to vector<1x1x1xf32>
    %734 = vector.extract %733[0, 0, 0] : f32 from vector<1x1x1xf32>
    %cst_413 = arith.constant 0.001953125 : f32
    %735 = arith.mulf %734, %cst_413 : f32
    %736 = arith.mulf %726, %726 : vector<32x16xf32>
    %737 = vector.shape_cast %736 : vector<32x16xf32> to vector<1x32x16xf32>
    %cst_414 = arith.constant dense<0.000000e+00> : vector<1xf32>
    %738 = vector.multi_reduction <add>, %737, %cst_414 [1, 2] : vector<1x32x16xf32> to vector<1xf32>
    %739 = vector.shape_cast %738 : vector<1xf32> to vector<1x1x1xf32>
    %740 = vector.extract %739[0, 0, 0] : f32 from vector<1x1x1xf32>
    %cst_415 = arith.constant 0.001953125 : f32
    %741 = arith.mulf %740, %cst_415 : f32
    %742 = arith.mulf %735, %735 : f32
    %743 = arith.subf %741, %742 : f32
    %cst_416 = arith.constant 0.000000e+00 : f32
    %744 = arith.maximumf %743, %cst_416 : f32
    %745 = vector.broadcast %735 : f32 to vector<32x16xf32>
    %746 = arith.subf %726, %745 : vector<32x16xf32>
    %cst_417 = arith.constant 9.99999993E-9 : f32
    %747 = arith.addf %744, %cst_417 : f32
    %748 = math.rsqrt %747 : f32
    %749 = vector.broadcast %748 : f32 to vector<32x16xf32>
    %750 = arith.mulf %746, %749 : vector<32x16xf32>
    %751 = vector.broadcast %728 : vector<32x1xf32> to vector<32x16xf32>
    %752 = arith.mulf %750, %751 : vector<32x16xf32>
    %753 = vector.broadcast %730 : vector<32x1xf32> to vector<32x16xf32>
    %754 = arith.addf %752, %753 : vector<32x16xf32>
    %cst_418 = arith.constant 0.000000e+00 : f32
    %755 = vector.broadcast %cst_418 : f32 to vector<32x2xf32>
    %c0_419 = arith.constant 0 : index
    %c0_420 = arith.constant 0 : index
    %756 = vector.load %arg37[%c0_419, %c0_420] : memref<32x12xf32, #tpu.memory_space<vmem>>, vector<32x2xf32>
    tpu.vector_store %arg37[%c0_419, %c0_420], %755 {strides = array<i32>} : memref<32x12xf32, #tpu.memory_space<vmem>>, vector<32x2xf32>,
    %cst_421 = arith.constant 0.000000e+00 : f32
    %757 = vector.broadcast %cst_421 : f32 to vector<32x2xf32>
    %c0_422 = arith.constant 0 : index
    %c10_423 = arith.constant 10 : index
    %758 = vector.load %arg37[%c0_422, %c10_423] : memref<32x12xf32, #tpu.memory_space<vmem>>, vector<32x2xf32>
    tpu.vector_store %arg37[%c0_422, %c10_423], %757 {strides = array<i32>} : memref<32x12xf32, #tpu.memory_space<vmem>>, vector<32x2xf32>,
    %c0_424 = arith.constant 0 : index
    %c2_425 = arith.constant 2 : index
    %759 = vector.load %arg37[%c0_424, %c2_425] : memref<32x12xf32, #tpu.memory_space<vmem>>, vector<32x8xf32>
    tpu.vector_store %arg37[%c0_424, %c2_425], %693 {strides = array<i32>} : memref<32x12xf32, #tpu.memory_space<vmem>>, vector<32x8xf32>,
    %c1_426 = arith.constant 1 : index
    %c0_427 = arith.constant 0 : index
    %c0_428 = arith.constant 0 : index
    %760 = vector.load %arg26[%c1_426, %c0_427, %c0_428] : memref<9x32x5xf32, #tpu.memory_space<vmem>>, vector<1x32x5xf32>
    %761 = vector.shape_cast %760 : vector<1x32x5xf32> to vector<32x5xf32>
    %cst_429 = arith.constant 0.000000e+00 : f32
    %762 = vector.broadcast %cst_429 : f32 to vector<32x8xf32>
    %c0_430 = arith.constant 0 : index
    %c0_431 = arith.constant 0 : index
    %763 = vector.load %arg37[%c0_430, %c0_431] : memref<32x12xf32, #tpu.memory_space<vmem>>, vector<32x8xf32>
    %764 = vector.extract_strided_slice %761 {offsets = [0, 0], sizes = [32, 1], strides = [1, 1]} : vector<32x5xf32> to vector<32x1xf32>
    %765 = vector.broadcast %764 : vector<32x1xf32> to vector<32x8xf32>
    %766 = arith.mulf %763, %765 : vector<32x8xf32>
    %767 = arith.addf %762, %766 : vector<32x8xf32>
    %c0_432 = arith.constant 0 : index
    %c1_433 = arith.constant 1 : index
    %768 = vector.load %arg37[%c0_432, %c1_433] : memref<32x12xf32, #tpu.memory_space<vmem>>, vector<32x8xf32>
    %769 = vector.extract_strided_slice %761 {offsets = [0, 1], sizes = [32, 1], strides = [1, 1]} : vector<32x5xf32> to vector<32x1xf32>
    %770 = vector.broadcast %769 : vector<32x1xf32> to vector<32x8xf32>
    %771 = arith.mulf %768, %770 : vector<32x8xf32>
    %772 = arith.addf %767, %771 : vector<32x8xf32>
    %c0_434 = arith.constant 0 : index
    %c2_435 = arith.constant 2 : index
    %773 = vector.load %arg37[%c0_434, %c2_435] : memref<32x12xf32, #tpu.memory_space<vmem>>, vector<32x8xf32>
    %774 = vector.extract_strided_slice %761 {offsets = [0, 2], sizes = [32, 1], strides = [1, 1]} : vector<32x5xf32> to vector<32x1xf32>
    %775 = vector.broadcast %774 : vector<32x1xf32> to vector<32x8xf32>
    %776 = arith.mulf %773, %775 : vector<32x8xf32>
    %777 = arith.addf %772, %776 : vector<32x8xf32>
    %c0_436 = arith.constant 0 : index
    %c3_437 = arith.constant 3 : index
    %778 = vector.load %arg37[%c0_436, %c3_437] : memref<32x12xf32, #tpu.memory_space<vmem>>, vector<32x8xf32>
    %779 = vector.extract_strided_slice %761 {offsets = [0, 3], sizes = [32, 1], strides = [1, 1]} : vector<32x5xf32> to vector<32x1xf32>
    %780 = vector.broadcast %779 : vector<32x1xf32> to vector<32x8xf32>
    %781 = arith.mulf %778, %780 : vector<32x8xf32>
    %782 = arith.addf %777, %781 : vector<32x8xf32>
    %c0_438 = arith.constant 0 : index
    %c4_439 = arith.constant 4 : index
    %783 = vector.load %arg37[%c0_438, %c4_439] : memref<32x12xf32, #tpu.memory_space<vmem>>, vector<32x8xf32>
    %784 = vector.extract_strided_slice %761 {offsets = [0, 4], sizes = [32, 1], strides = [1, 1]} : vector<32x5xf32> to vector<32x1xf32>
    %785 = vector.broadcast %784 : vector<32x1xf32> to vector<32x8xf32>
    %786 = arith.mulf %783, %785 : vector<32x8xf32>
    %787 = arith.addf %782, %786 : vector<32x8xf32>
    %c1_440 = arith.constant 1 : index
    %c0_441 = arith.constant 0 : index
    %c0_442 = arith.constant 0 : index
    %788 = vector.load %arg27[%c1_440, %c0_441, %c0_442] : memref<9x32x1xf32, #tpu.memory_space<vmem>>, vector<1x32x1xf32>
    %789 = vector.shape_cast %788 : vector<1x32x1xf32> to vector<32x1xf32>
    %c1_443 = arith.constant 1 : index
    %c0_444 = arith.constant 0 : index
    %c0_445 = arith.constant 0 : index
    %790 = vector.load %arg28[%c1_443, %c0_444, %c0_445] : memref<9x32x1xf32, #tpu.memory_space<vmem>>, vector<1x32x1xf32>
    %791 = vector.shape_cast %790 : vector<1x32x1xf32> to vector<32x1xf32>
    %792 = vector.shape_cast %787 : vector<32x8xf32> to vector<1x32x8xf32>
    %cst_446 = arith.constant dense<0.000000e+00> : vector<1xf32>
    %793 = vector.multi_reduction <add>, %792, %cst_446 [1, 2] : vector<1x32x8xf32> to vector<1xf32>
    %794 = vector.shape_cast %793 : vector<1xf32> to vector<1x1x1xf32>
    %795 = vector.extract %794[0, 0, 0] : f32 from vector<1x1x1xf32>
    %cst_447 = arith.constant 3.906250e-03 : f32
    %796 = arith.mulf %795, %cst_447 : f32
    %797 = arith.mulf %787, %787 : vector<32x8xf32>
    %798 = vector.shape_cast %797 : vector<32x8xf32> to vector<1x32x8xf32>
    %cst_448 = arith.constant dense<0.000000e+00> : vector<1xf32>
    %799 = vector.multi_reduction <add>, %798, %cst_448 [1, 2] : vector<1x32x8xf32> to vector<1xf32>
    %800 = vector.shape_cast %799 : vector<1xf32> to vector<1x1x1xf32>
    %801 = vector.extract %800[0, 0, 0] : f32 from vector<1x1x1xf32>
    %cst_449 = arith.constant 3.906250e-03 : f32
    %802 = arith.mulf %801, %cst_449 : f32
    %803 = arith.mulf %796, %796 : f32
    %804 = arith.subf %802, %803 : f32
    %cst_450 = arith.constant 0.000000e+00 : f32
    %805 = arith.maximumf %804, %cst_450 : f32
    %806 = vector.broadcast %796 : f32 to vector<32x8xf32>
    %807 = arith.subf %787, %806 : vector<32x8xf32>
    %cst_451 = arith.constant 9.99999993E-9 : f32
    %808 = arith.addf %805, %cst_451 : f32
    %809 = math.rsqrt %808 : f32
    %810 = vector.broadcast %809 : f32 to vector<32x8xf32>
    %811 = arith.mulf %807, %810 : vector<32x8xf32>
    %812 = vector.broadcast %789 : vector<32x1xf32> to vector<32x8xf32>
    %813 = arith.mulf %811, %812 : vector<32x8xf32>
    %814 = vector.broadcast %791 : vector<32x1xf32> to vector<32x8xf32>
    %815 = arith.addf %813, %814 : vector<32x8xf32>
    %c2_452 = arith.constant 2 : index
    %c0_453 = arith.constant 0 : index
    %c0_454 = arith.constant 0 : index
    %816 = vector.load %arg26[%c2_452, %c0_453, %c0_454] : memref<9x32x5xf32, #tpu.memory_space<vmem>>, vector<1x32x5xf32>
    %817 = vector.shape_cast %816 : vector<1x32x5xf32> to vector<32x5xf32>
    %cst_455 = arith.constant 0.000000e+00 : f32
    %818 = vector.broadcast %cst_455 : f32 to vector<32x8xf32>
    %c0_456 = arith.constant 0 : index
    %c0_457 = arith.constant 0 : index
    %819 = vector.load %arg37[%c0_456, %c0_457] : memref<32x12xf32, #tpu.memory_space<vmem>>, vector<32x8xf32>
    %820 = vector.extract_strided_slice %817 {offsets = [0, 0], sizes = [32, 1], strides = [1, 1]} : vector<32x5xf32> to vector<32x1xf32>
    %821 = vector.broadcast %820 : vector<32x1xf32> to vector<32x8xf32>
    %822 = arith.mulf %819, %821 : vector<32x8xf32>
    %823 = arith.addf %818, %822 : vector<32x8xf32>
    %c0_458 = arith.constant 0 : index
    %c1_459 = arith.constant 1 : index
    %824 = vector.load %arg37[%c0_458, %c1_459] : memref<32x12xf32, #tpu.memory_space<vmem>>, vector<32x8xf32>
    %825 = vector.extract_strided_slice %817 {offsets = [0, 1], sizes = [32, 1], strides = [1, 1]} : vector<32x5xf32> to vector<32x1xf32>
    %826 = vector.broadcast %825 : vector<32x1xf32> to vector<32x8xf32>
    %827 = arith.mulf %824, %826 : vector<32x8xf32>
    %828 = arith.addf %823, %827 : vector<32x8xf32>
    %c0_460 = arith.constant 0 : index
    %c2_461 = arith.constant 2 : index
    %829 = vector.load %arg37[%c0_460, %c2_461] : memref<32x12xf32, #tpu.memory_space<vmem>>, vector<32x8xf32>
    %830 = vector.extract_strided_slice %817 {offsets = [0, 2], sizes = [32, 1], strides = [1, 1]} : vector<32x5xf32> to vector<32x1xf32>
    %831 = vector.broadcast %830 : vector<32x1xf32> to vector<32x8xf32>
    %832 = arith.mulf %829, %831 : vector<32x8xf32>
    %833 = arith.addf %828, %832 : vector<32x8xf32>
    %c0_462 = arith.constant 0 : index
    %c3_463 = arith.constant 3 : index
    %834 = vector.load %arg37[%c0_462, %c3_463] : memref<32x12xf32, #tpu.memory_space<vmem>>, vector<32x8xf32>
    %835 = vector.extract_strided_slice %817 {offsets = [0, 3], sizes = [32, 1], strides = [1, 1]} : vector<32x5xf32> to vector<32x1xf32>
    %836 = vector.broadcast %835 : vector<32x1xf32> to vector<32x8xf32>
    %837 = arith.mulf %834, %836 : vector<32x8xf32>
    %838 = arith.addf %833, %837 : vector<32x8xf32>
    %c0_464 = arith.constant 0 : index
    %c4_465 = arith.constant 4 : index
    %839 = vector.load %arg37[%c0_464, %c4_465] : memref<32x12xf32, #tpu.memory_space<vmem>>, vector<32x8xf32>
    %840 = vector.extract_strided_slice %817 {offsets = [0, 4], sizes = [32, 1], strides = [1, 1]} : vector<32x5xf32> to vector<32x1xf32>
    %841 = vector.broadcast %840 : vector<32x1xf32> to vector<32x8xf32>
    %842 = arith.mulf %839, %841 : vector<32x8xf32>
    %843 = arith.addf %838, %842 : vector<32x8xf32>
    %c2_466 = arith.constant 2 : index
    %c0_467 = arith.constant 0 : index
    %c0_468 = arith.constant 0 : index
    %844 = vector.load %arg27[%c2_466, %c0_467, %c0_468] : memref<9x32x1xf32, #tpu.memory_space<vmem>>, vector<1x32x1xf32>
    %845 = vector.shape_cast %844 : vector<1x32x1xf32> to vector<32x1xf32>
    %c2_469 = arith.constant 2 : index
    %c0_470 = arith.constant 0 : index
    %c0_471 = arith.constant 0 : index
    %846 = vector.load %arg28[%c2_469, %c0_470, %c0_471] : memref<9x32x1xf32, #tpu.memory_space<vmem>>, vector<1x32x1xf32>
    %847 = vector.shape_cast %846 : vector<1x32x1xf32> to vector<32x1xf32>
    %848 = vector.shape_cast %843 : vector<32x8xf32> to vector<1x32x8xf32>
    %cst_472 = arith.constant dense<0.000000e+00> : vector<1xf32>
    %849 = vector.multi_reduction <add>, %848, %cst_472 [1, 2] : vector<1x32x8xf32> to vector<1xf32>
    %850 = vector.shape_cast %849 : vector<1xf32> to vector<1x1x1xf32>
    %851 = vector.extract %850[0, 0, 0] : f32 from vector<1x1x1xf32>
    %cst_473 = arith.constant 3.906250e-03 : f32
    %852 = arith.mulf %851, %cst_473 : f32
    %853 = arith.mulf %843, %843 : vector<32x8xf32>
    %854 = vector.shape_cast %853 : vector<32x8xf32> to vector<1x32x8xf32>
    %cst_474 = arith.constant dense<0.000000e+00> : vector<1xf32>
    %855 = vector.multi_reduction <add>, %854, %cst_474 [1, 2] : vector<1x32x8xf32> to vector<1xf32>
    %856 = vector.shape_cast %855 : vector<1xf32> to vector<1x1x1xf32>
    %857 = vector.extract %856[0, 0, 0] : f32 from vector<1x1x1xf32>
    %cst_475 = arith.constant 3.906250e-03 : f32
    %858 = arith.mulf %857, %cst_475 : f32
    %859 = arith.mulf %852, %852 : f32
    %860 = arith.subf %858, %859 : f32
    %cst_476 = arith.constant 0.000000e+00 : f32
    %861 = arith.maximumf %860, %cst_476 : f32
    %862 = vector.broadcast %852 : f32 to vector<32x8xf32>
    %863 = arith.subf %843, %862 : vector<32x8xf32>
    %cst_477 = arith.constant 9.99999993E-9 : f32
    %864 = arith.addf %861, %cst_477 : f32
    %865 = math.rsqrt %864 : f32
    %866 = vector.broadcast %865 : f32 to vector<32x8xf32>
    %867 = arith.mulf %863, %866 : vector<32x8xf32>
    %868 = vector.broadcast %845 : vector<32x1xf32> to vector<32x8xf32>
    %869 = arith.mulf %867, %868 : vector<32x8xf32>
    %870 = vector.broadcast %847 : vector<32x1xf32> to vector<32x8xf32>
    %871 = arith.addf %869, %870 : vector<32x8xf32>
    %c0_478 = arith.constant 0 : index
    %c0_479 = arith.constant 0 : index
    %872 = vector.load %arg31[%c0_478, %c0_479] : memref<8x16xbf16, #tpu.memory_space<vmem>>, vector<8x16xbf16>
    %873 = arith.negf %815 : vector<32x8xf32>
    %874 = math.exp %873 : vector<32x8xf32>
    %cst_480 = arith.constant 1.000000e+00 : f32
    %875 = vector.broadcast %cst_480 : f32 to vector<32x8xf32>
    %876 = arith.addf %875, %874 : vector<32x8xf32>
    %877 = arith.divf %875, %876 : vector<32x8xf32>
    %878 = arith.truncf %877 : vector<32x8xf32> to vector<32x8xbf16>
    %cst_481 = arith.constant dense<0.000000e+00> : vector<32x16xf32>
    %879 = tpu.matmul %878, %872, %cst_481 {dimension_numbers = #tpu.dot_dimension_numbers<[1], [0], [0], [1], [0, 0, 1, 1], [], []>} : vector<32x8xbf16>, vector<8x16xbf16>, vector<32x16xf32> -> vector<32x16xf32>
    %880 = arith.truncf %871 : vector<32x8xf32> to vector<32x8xbf16>
    %cst_482 = arith.constant dense<0.000000e+00> : vector<32x16xf32>
    %881 = tpu.matmul %880, %872, %cst_482 {dimension_numbers = #tpu.dot_dimension_numbers<[1], [0], [0], [1], [0, 0, 1, 1], [], []>} : vector<32x8xbf16>, vector<8x16xbf16>, vector<32x16xf32> -> vector<32x16xf32>
    %882 = arith.mulf %754, %879 : vector<32x16xf32>
    %883 = arith.addf %882, %881 : vector<32x16xf32>
    %c0_483 = arith.constant 0 : index
    %c0_484 = arith.constant 0 : index
    %884 = vector.load %arg32[%c0_483, %c0_484] : memref<16x32xf32, #tpu.memory_space<vmem>>, vector<16x32xf32>
    %cst_485 = arith.constant dense<0.000000e+00> : vector<16x16xf32>
    %885 = tpu.matmul %884, %883, %cst_485 {dimension_numbers = #tpu.dot_dimension_numbers<[1], [0], [0], [1], [0, 0, 1, 1], [], []>} : vector<16x32xf32>, vector<32x16xf32>, vector<16x16xf32> -> vector<16x16xf32>
    %c0_486 = arith.constant 0 : index
    %c0_487 = arith.constant 0 : index
    %886 = vector.load %arg33[%c0_486, %c0_487] : memref<16x1xf32, #tpu.memory_space<vmem>>, vector<16x1xf32>
    %887 = vector.broadcast %886 : vector<16x1xf32> to vector<16x16xf32>
    %888 = arith.addf %885, %887 : vector<16x16xf32>
    %889 = arith.addf %888, %1 : vector<16x16xf32>
    %c0_488 = arith.constant 0 : index
    %c0_489 = arith.constant 0 : index
    %c0_490 = arith.constant 0 : index
    %890 = vector.load %arg34[%c0_488, %c0_489, %c0_490] : memref<1x16x16xf32, #tpu.memory_space<vmem>>, vector<1x16x16xf32>
    %891 = vector.shape_cast %890 : vector<1x16x16xf32> to vector<16x16xf32>
    %892 = vector.shape_cast %889 : vector<16x16xf32> to vector<1x16x16xf32>
    tpu.vector_store %arg34[%c0_488, %c0_489, %c0_490], %892 {strides = array<i32>} : memref<1x16x16xf32, #tpu.memory_space<vmem>>, vector<1x16x16xf32>,
    return
  }
  func.func @transform_0(%arg0: i32) -> (i32, i32, i32) {
    %c0_i32 = arith.constant 0 : i32
    %c0_i32_0 = arith.constant 0 : i32
    %c0_i32_1 = arith.constant 0 : i32
    return %arg0, %c0_i32, %c0_i32_0 : i32, i32, i32
  }
  func.func @transform_1(%arg0: i32) -> (i32, i32) {
    %c0_i32 = arith.constant 0 : i32
    %c0_i32_0 = arith.constant 0 : i32
    %c0_i32_1 = arith.constant 0 : i32
    return %c0_i32, %c0_i32_0 : i32, i32
  }
  func.func @transform_2(%arg0: i32) -> (i32, i32) {
    %c0_i32 = arith.constant 0 : i32
    %c0_i32_0 = arith.constant 0 : i32
    %c0_i32_1 = arith.constant 0 : i32
    return %c0_i32, %c0_i32_0 : i32, i32
  }
  func.func @transform_3(%arg0: i32) -> (i32, i32) {
    %c0_i32 = arith.constant 0 : i32
    %c0_i32_0 = arith.constant 0 : i32
    %c0_i32_1 = arith.constant 0 : i32
    return %c0_i32, %c0_i32_0 : i32, i32
  }
  func.func @transform_4(%arg0: i32) -> (i32, i32) {
    %c0_i32 = arith.constant 0 : i32
    %c0_i32_0 = arith.constant 0 : i32
    %c0_i32_1 = arith.constant 0 : i32
    return %c0_i32, %c0_i32_0 : i32, i32
  }
  func.func @transform_5(%arg0: i32) -> (i32, i32) {
    %c0_i32 = arith.constant 0 : i32
    %c0_i32_0 = arith.constant 0 : i32
    %c0_i32_1 = arith.constant 0 : i32
    return %c0_i32, %c0_i32_0 : i32, i32
  }
  func.func @transform_6(%arg0: i32) -> (i32, i32, i32) {
    %c0_i32 = arith.constant 0 : i32
    %c0_i32_0 = arith.constant 0 : i32
    %c0_i32_1 = arith.constant 0 : i32
    %c0_i32_2 = arith.constant 0 : i32
    return %c0_i32, %c0_i32_0, %c0_i32_1 : i32, i32, i32
  }
  func.func @transform_7(%arg0: i32) -> (i32, i32, i32) {
    %c0_i32 = arith.constant 0 : i32
    %c0_i32_0 = arith.constant 0 : i32
    %c0_i32_1 = arith.constant 0 : i32
    %c0_i32_2 = arith.constant 0 : i32
    return %c0_i32, %c0_i32_0, %c0_i32_1 : i32, i32, i32
  }
  func.func @transform_8(%arg0: i32) -> (i32, i32) {
    %c0_i32 = arith.constant 0 : i32
    %c0_i32_0 = arith.constant 0 : i32
    %c0_i32_1 = arith.constant 0 : i32
    return %c0_i32, %c0_i32_0 : i32, i32
  }
  func.func @transform_9(%arg0: i32) -> (i32, i32) {
    %c0_i32 = arith.constant 0 : i32
    %c0_i32_0 = arith.constant 0 : i32
    %c0_i32_1 = arith.constant 0 : i32
    return %c0_i32, %c0_i32_0 : i32, i32
  }
  func.func @transform_10(%arg0: i32) -> (i32, i32) {
    %c0_i32 = arith.constant 0 : i32
    %c0_i32_0 = arith.constant 0 : i32
    %c0_i32_1 = arith.constant 0 : i32
    return %c0_i32, %c0_i32_0 : i32, i32
  }
  func.func @transform_11(%arg0: i32) -> (i32, i32) {
    %c0_i32 = arith.constant 0 : i32
    %c0_i32_0 = arith.constant 0 : i32
    %c0_i32_1 = arith.constant 0 : i32
    return %c0_i32, %c0_i32_0 : i32, i32
  }
  func.func @transform_12(%arg0: i32) -> (i32, i32) {
    %c0_i32 = arith.constant 0 : i32
    %c0_i32_0 = arith.constant 0 : i32
    %c0_i32_1 = arith.constant 0 : i32
    return %c0_i32, %c0_i32_0 : i32, i32
  }
  func.func @transform_13(%arg0: i32) -> (i32, i32) {
    %c0_i32 = arith.constant 0 : i32
    %c0_i32_0 = arith.constant 0 : i32
    %c0_i32_1 = arith.constant 0 : i32
    return %c0_i32, %c0_i32_0 : i32, i32
  }
  func.func @transform_14(%arg0: i32) -> (i32, i32) {
    %c0_i32 = arith.constant 0 : i32
    %c0_i32_0 = arith.constant 0 : i32
    %c0_i32_1 = arith.constant 0 : i32
    return %c0_i32, %c0_i32_0 : i32, i32
  }
  func.func @transform_15(%arg0: i32) -> (i32, i32) {
    %c0_i32 = arith.constant 0 : i32
    %c0_i32_0 = arith.constant 0 : i32
    %c0_i32_1 = arith.constant 0 : i32
    return %c0_i32, %c0_i32_0 : i32, i32
  }
  func.func @transform_16(%arg0: i32) -> (i32, i32) {
    %c0_i32 = arith.constant 0 : i32
    %c0_i32_0 = arith.constant 0 : i32
    %c0_i32_1 = arith.constant 0 : i32
    return %c0_i32, %c0_i32_0 : i32, i32
  }
  func.func @transform_17(%arg0: i32) -> (i32, i32) {
    %c0_i32 = arith.constant 0 : i32
    %c0_i32_0 = arith.constant 0 : i32
    %c0_i32_1 = arith.constant 0 : i32
    return %c0_i32, %c0_i32_0 : i32, i32
  }
  func.func @transform_18(%arg0: i32) -> (i32, i32) {
    %c0_i32 = arith.constant 0 : i32
    %c0_i32_0 = arith.constant 0 : i32
    %c0_i32_1 = arith.constant 0 : i32
    return %c0_i32, %c0_i32_0 : i32, i32
  }
  func.func @transform_19(%arg0: i32) -> (i32, i32) {
    %c0_i32 = arith.constant 0 : i32
    %c0_i32_0 = arith.constant 0 : i32
    %c0_i32_1 = arith.constant 0 : i32
    return %c0_i32, %c0_i32_0 : i32, i32
  }
  func.func @transform_20(%arg0: i32) -> (i32, i32) {
    %c0_i32 = arith.constant 0 : i32
    %c0_i32_0 = arith.constant 0 : i32
    %c0_i32_1 = arith.constant 0 : i32
    return %c0_i32, %c0_i32_0 : i32, i32
  }
  func.func @transform_21(%arg0: i32) -> (i32, i32) {
    %c0_i32 = arith.constant 0 : i32
    %c0_i32_0 = arith.constant 0 : i32
    %c0_i32_1 = arith.constant 0 : i32
    return %c0_i32, %c0_i32_0 : i32, i32
  }
  func.func @transform_22(%arg0: i32) -> (i32, i32) {
    %c0_i32 = arith.constant 0 : i32
    %c0_i32_0 = arith.constant 0 : i32
    %c0_i32_1 = arith.constant 0 : i32
    return %c0_i32, %c0_i32_0 : i32, i32
  }
  func.func @transform_23(%arg0: i32) -> (i32, i32) {
    %c0_i32 = arith.constant 0 : i32
    %c0_i32_0 = arith.constant 0 : i32
    %c0_i32_1 = arith.constant 0 : i32
    return %c0_i32, %c0_i32_0 : i32, i32
  }
  func.func @transform_24(%arg0: i32) -> (i32, i32) {
    %c0_i32 = arith.constant 0 : i32
    %c0_i32_0 = arith.constant 0 : i32
    %c0_i32_1 = arith.constant 0 : i32
    return %c0_i32, %c0_i32_0 : i32, i32
  }
  func.func @transform_25(%arg0: i32) -> (i32, i32, i32) {
    %c0_i32 = arith.constant 0 : i32
    %c0_i32_0 = arith.constant 0 : i32
    %c0_i32_1 = arith.constant 0 : i32
    %c0_i32_2 = arith.constant 0 : i32
    return %c0_i32, %c0_i32_0, %c0_i32_1 : i32, i32, i32
  }
  func.func @transform_26(%arg0: i32) -> (i32, i32, i32) {
    %c0_i32 = arith.constant 0 : i32
    %c0_i32_0 = arith.constant 0 : i32
    %c0_i32_1 = arith.constant 0 : i32
    %c0_i32_2 = arith.constant 0 : i32
    return %c0_i32, %c0_i32_0, %c0_i32_1 : i32, i32, i32
  }
  func.func @transform_27(%arg0: i32) -> (i32, i32, i32) {
    %c0_i32 = arith.constant 0 : i32
    %c0_i32_0 = arith.constant 0 : i32
    %c0_i32_1 = arith.constant 0 : i32
    %c0_i32_2 = arith.constant 0 : i32
    return %c0_i32, %c0_i32_0, %c0_i32_1 : i32, i32, i32
  }
  func.func @transform_28(%arg0: i32) -> (i32, i32) {
    %c0_i32 = arith.constant 0 : i32
    %c0_i32_0 = arith.constant 0 : i32
    %c0_i32_1 = arith.constant 0 : i32
    return %c0_i32, %c0_i32_0 : i32, i32
  }
  func.func @transform_29(%arg0: i32) -> (i32, i32) {
    %c0_i32 = arith.constant 0 : i32
    %c0_i32_0 = arith.constant 0 : i32
    %c0_i32_1 = arith.constant 0 : i32
    return %c0_i32, %c0_i32_0 : i32, i32
  }
  func.func @transform_30(%arg0: i32) -> (i32, i32) {
    %c0_i32 = arith.constant 0 : i32
    %c0_i32_0 = arith.constant 0 : i32
    %c0_i32_1 = arith.constant 0 : i32
    return %c0_i32, %c0_i32_0 : i32, i32
  }
  func.func @transform_31(%arg0: i32) -> (i32, i32) {
    %c0_i32 = arith.constant 0 : i32
    %c0_i32_0 = arith.constant 0 : i32
    %c0_i32_1 = arith.constant 0 : i32
    return %c0_i32, %c0_i32_0 : i32, i32
  }
  func.func @transform_32(%arg0: i32) -> (i32, i32) {
    %c0_i32 = arith.constant 0 : i32
    %c0_i32_0 = arith.constant 0 : i32
    %c0_i32_1 = arith.constant 0 : i32
    return %c0_i32, %c0_i32_0 : i32, i32
  }
  func.func @transform_33(%arg0: i32) -> (i32, i32, i32) {
    %c0_i32 = arith.constant 0 : i32
    %c0_i32_0 = arith.constant 0 : i32
    %c0_i32_1 = arith.constant 0 : i32
    return %arg0, %c0_i32, %c0_i32_0 : i32, i32, i32
  }
}

</mosaic_0001>

<bundles_post_ra>
// kernel: tpu_custom_call.1
= control target key start
LH: loop header
LB: loop body
LE: loop exit
PB: predicated region body
PF: predicated region fallthrough
CT: control target
= control target key end

     0   :  { %s7786_s6 = smov 1   ;;  %s7787_s10 = smov 2   ;;  %s11304_s0 = inlined_call_operand.smem [shape: u32[34], index: -1, kind: input, shape index: {}] }
   0x1   :  { %s7841_s5 = sld [smem:[%s11304_s0]]   ;;  %s7788_s14 = smov 3  }
   0x2   :  { %s7846_s9 = sld [smem:[%s11304_s0 + %s7786_s6]]   ;;  %s7789_s18 = smov 4  }
   0x3   :  { %s7851_s13 = sld [smem:[%s11304_s0 + %s7787_s10]]   ;;  %s7790_s22 = smov 5  }
   0x4   :  { %s7856_s17 = sld [smem:[%s11304_s0 + %s7788_s14]]   ;;  %s7791_s26 = smov 6  }
   0x5   :  { %s7861_s21 = sld [smem:[%s11304_s0 + %s7789_s18]]   ;;  %s7792_s30 = smov 7  }
   0x6   :  { %s7048_s25 = sld [smem:[%s11304_s0 + %s7790_s22]]   ;;  %s7793_s4 = smov 8  }
   0x7   :  { %11374 = sst [smem:[#allocation11_spill]] %s7841_s5  ;;  %s7794_s10 = smov 9  }
   0x8   :  { %11375 = sst [smem:[#allocation12_spill]] %s7846_s9  ;;  %s7795_s15 = smov 10  }
   0x9   :  { %11376 = sst [smem:[#allocation13_spill]] %s7851_s13  ;;  %s7796_s20 = smov 11  }
   0xa   :  { %11377 = sst [smem:[#allocation14_spill]] %s7856_s17  ;;  %s7798_s1 = smov 13  }
   0xb   :  { %11378 = sst [smem:[#allocation15_spill]] %s7861_s21  ;;  %s7799_s7 = smov 14  }
   0xc   :  { %s7869_s29 = sld [smem:[%s11304_s0 + %s7791_s26]]   ;;  %v72_v0 = vstv %s7048_s25  ;;  %s7797_s26 = smov 12  }
   0xd   :  { %s7874_s3 = sld [smem:[%s11304_s0 + %s7792_s30]]   ;;  %73 = vst [vmem:[#allocation7] sm:$0x1] %v72_v0  ;;  %s7800_s25 = smov 15  }
   0xe   :  { %s7879_s8 = sld [smem:[%s11304_s0 + %s7793_s4]]   ;;  %s7802_s27 = smov 17  }
   0xf   :  { %s7884_s14 = sld [smem:[%s11304_s0 + %s7794_s10]]   ;;  %s7803_s4 = smov 18  }
  0x10   :  { %s7889_s19 = sld [smem:[%s11304_s0 + %s7795_s15]]  }
  0x11   :  { %s7894_s24 = sld [smem:[%s11304_s0 + %s7796_s20]]   ;;  %s7801_s20 = smov 16  }
  0x12   :  { %11379 = sst [smem:[#allocation16_spill]] %s7869_s29 }
  0x13   :  { %11380 = sst [smem:[#allocation17_spill]] %s7874_s3 }
  0x14   :  { %11381 = sst [smem:[#allocation18_spill]] %s7879_s8 }
  0x15   :  { %11382 = sst [smem:[#allocation19_spill]] %s7884_s14 }
  0x16   :  { %11383 = sst [smem:[#allocation20_spill]] %s7889_s19 }
  0x17   :  { %11384 = sst [smem:[#allocation21_spill]] %s7894_s24 }
  0x18   :  { %s7899_s30 = sld [smem:[%s11304_s0 + %s7797_s26]]  }
  0x19   :  { %s7904_s6 = sld [smem:[%s11304_s0 + %s7798_s1]]  }
  0x1a   :  { %s7909_s12 = sld [smem:[%s11304_s0 + %s7799_s7]]  }
  0x1b   :  { %s7914_s18 = sld [smem:[%s11304_s0 + %s7800_s25]]   ;;  %s7804_s25 = smov 19  }
  0x1c   :  { %s7919_s26 = sld [smem:[%s11304_s0 + %s7801_s20]]   ;;  %s7805_s20 = smov 20  }
  0x1d   :  { %s7924_s2 = sld [smem:[%s11304_s0 + %s7802_s27]]   ;;  %s7806_s27 = smov 21  }
  0x1e   :  { %11385 = sst [smem:[#allocation22_spill]] %s7899_s30 }
  0x1f   :  { %11386 = sst [smem:[#allocation23_spill]] %s7904_s6 }
  0x20   :  { %11387 = sst [smem:[#allocation24_spill]] %s7909_s12 }
  0x21   :  { %11388 = sst [smem:[#allocation25_spill]] %s7914_s18 }
  0x22   :  { %11389 = sst [smem:[#allocation26_spill]] %s7919_s26 }
  0x23   :  { %11390 = sst [smem:[#allocation27_spill]] %s7924_s2 }
  0x24   :  { %s7929_s11 = sld [smem:[%s11304_s0 + %s7803_s4]]   ;;  %s7807_s4 = smov 22  }
  0x25   :  { %s7934_s18 = sld [smem:[%s11304_s0 + %s7804_s25]]   ;;  %s7808_s25 = smov 23  }
  0x26   :  { %s7939_s12 = sld [smem:[%s11304_s0 + %s7805_s20]]   ;;  %s7809_s20 = smov 24  }
  0x27   :  { %s7944_s26 = sld [smem:[%s11304_s0 + %s7806_s27]]   ;;  %s7810_s27 = smov 25  }
  0x28   :  { %s7949_s2 = sld [smem:[%s11304_s0 + %s7807_s4]]   ;;  %s7811_s4 = smov 26  }
  0x29   :  { %s7954_s6 = sld [smem:[%s11304_s0 + %s7808_s25]]   ;;  %s7812_s25 = smov 27  }
  0x2a   :  { %11391 = sst [smem:[#allocation28_spill]] %s7929_s11 }
  0x2b   :  { %11392 = sst [smem:[#allocation29_spill]] %s7934_s18 }
  0x2c   :  { %11393 = sst [smem:[#allocation30_spill]] %s7939_s12 }
  0x2d   :  { %11394 = sst [smem:[#allocation31_spill]] %s7944_s26 }
  0x2e   :  { %11395 = sst [smem:[#allocation32_spill]] %s7949_s2 }
  0x2f   :  { %11396 = sst [smem:[#allocation33_spill]] %s7954_s6 }
  0x30   :  { %s7959_s12 = sld [smem:[%s11304_s0 + %s7809_s20]]   ;;  %s7813_s20 = smov 28  }
  0x31   :  { %s7964_s26 = sld [smem:[%s11304_s0 + %s7810_s27]]   ;;  %s7814_s27 = smov 29  }
  0x32   :  { %s7969_s2 = sld [smem:[%s11304_s0 + %s7811_s4]]   ;;  %s7815_s4 = smov 30  }
  0x33   :  { %s7974_s6 = sld [smem:[%s11304_s0 + %s7812_s25]]   ;;  %s7816_s25 = smov 31  }
  0x36   :  { %11397 = sst [smem:[#allocation34_spill]] %s7959_s12 }
  0x37   :  { %11398 = sst [smem:[#allocation35_spill]] %s7964_s26 }
  0x38   :  { %11399 = sst [smem:[#allocation36_spill]] %s7969_s2 }
  0x39   :  { %11400 = sst [smem:[#allocation37_spill]] %s7974_s6 }
  0x3a   :  { %s7979_s12 = sld [smem:[%s11304_s0 + %s7813_s20]]   ;;  %s7817_s20 = smov 32  }
  0x3b   :  { %s7984_s26 = sld [smem:[%s11304_s0 + %s7814_s27]]   ;;  %s7818_s27 = smov 33  }
  0x3c   :  { %s7989_s2 = sld [smem:[%s11304_s0 + %s7815_s4]]  }
  0x3d   :  { %s7994_s6 = sld [smem:[%s11304_s0 + %s7816_s25]]  }
  0x40   :  { %11401 = sst [smem:[#allocation38_spill]] %s7979_s12 }
  0x41   :  { %11402 = sst [smem:[#allocation39_spill]] %s7984_s26 }
  0x42   :  { %s7999_s12 = sld [smem:[%s11304_s0 + %s7817_s20]]  }
  0x43   :  { %s8004_s26 = sld [smem:[%s11304_s0 + %s7818_s27]]  }
  0x44   :  { %74 = vsyncpa [#allocation9], 0 }
  0x45   :  { %76 = vsyncpa [#allocation9 + $0x1], 0  ;;  %s8006_s4 = smov 0   ;;  %s8008_s7 = smov 0  }
  0x46   :  { %s8010_s10 = smov 0   ;;  %s8012_s25 = smov 0  }
  0x47 LB: > { %s11403_s29 = sld [smem:[#allocation16_spill]]  ;;  %s8027_s0 = sadd.s32 4294967295, %s7784_s25   ;;  %s7784_s25 = sphi %s8012_s25, %s11534_s25   ;;  %s7780_s10 = sphi %s8010_s10, %s11533_s10   ;;  %s7776_s7 = sphi %s8008_s7, %s11532_s7   ;;  %s7772_s4 = sphi %s8006_s4, %s11531_s4  }
  0x48   : > { %s11404_s18 = sld [smem:[#allocation29_spill]]  ;;  %s7078_s15 = sadd.s32 4294967294, %s7784_s25  }
  0x49   : > { %s11405_s11 = sld [smem:[#allocation28_spill]]  ;;  %s8031_s16 = sadd.s32 1, %s7784_s25  }
  0x4a   : > { %s11406_s3 = sld [smem:[#allocation17_spill]]  ;;  %s787_s20 = sadd.s32 1, %s7780_s10 }
  0x4b   : > { %s11407_s21 = sld [smem:[#allocation15_spill]]  ;;  %s784_s22 = ssub.s32 %s7784_s25, %s8031_s16 }
  0x4c   : > { %s11408_s17 = sld [smem:[#allocation14_spill]]  ;;  %p797_p0 = scmp.ne.s32.totalorder %s7780_s10, %s7776_s7 }
  0x4d   : > { %s11409_s13 = sld [smem:[#allocation13_spill]]  ;;  %p785_p1 = scmp.eq.s32.totalorder %s784_s22, 0 }
  0x4e   : > { %s11410_s9 = sld [smem:[#allocation12_spill]]  ;;  %p798_p2 = scmp.eq.s32.totalorder %s8027_s0, 1 }
  0x4f   : > { %p803_p3 = scmp.ne.s32.totalorder %s7776_s7, %s7772_s4  ;;  %p804_p4 = scmp.eq.s32.totalorder %s7078_s15, 1 }
  0x50   : > { %s8042_s23 = scalar_select %p785_p1, %s7780_s10, %s787_s20  }
  0x51   : > { %p8044_p5 = por %p798_p2, %p797_p0  ;;  %p8048_p6 = por %p804_p4, %p803_p3 }
  0x52   : > { %11411 = sst [smem:[#allocation40_spill]] %s8042_s23  ;;  %p7081_p7 = scmp.ge.s32.totalorder %s7784_s25, 1 }
  0x53   : > { %p926_p8 = scmp.lt.s32.totalorder %s7784_s25, 3 }
  0x55   : > { %p927_p9 = pnand %p7081_p7, %p926_p8 }
  0x57   : > { %930 = sbr.rel (%p927_p9) target bundleno = 6709 (0x1a35), region = 152 }
  0x5c   : > { %s11414_s5 = sld [smem:[#allocation11_spill]]  ;;  %v1024_v1 = vld [vmem:[%s11409_s13 + $0x10] sm:$0xff]  ;;  %v1022_v2 = vld [vmem:[%s11409_s13] sm:$0xff]  ;;  %p1010_p10 = scmp.lt.s32.totalorder %s8027_s0, 1  ;;  %v11333_v3 = vmov 0   ;;  %v1025_v6 = vld [vmem:[%s11409_s13 + $0x18] sm:$0xff] }
  0x5d   : > { %7441 = vset.pattern.permute.xlu1 %v11333_v3  ;;  %7440 = vset.pattern.permute.xlu0 %v11333_v3  ;;  %v1023_v7 = vld [vmem:[%s11409_s13 + $0x8] sm:$0xff]  ;;  %v1018_v8 = vld [vmem:[%s11410_s9] sm:$0xff]  ;;  %vm1046_vm0 = vcmask 130048   ;;  %v1091_v13 = vld [vmem:[%s11408_s17 + $0x18] sm:$0xff]  ;;  %vm1227_vm7 = vcmask 15360   ;;  %vm1232_vm8 = vcmask 162960  }
  0x5e   : > { %1038 = vperm.xlu1 %7441, %v1024_v1   ;;  %1028 = vperm.xlu0 %7440, %v1022_v2   ;;  %s1011_s1 = scalar_select %p1010_p10, %s8027_s0, 1  ;;  %v1089_v9 = vld [vmem:[%s11408_s17 + $0x8] sm:$0xff]  ;;  %v1088_v10 = vld [vmem:[%s11408_s17] sm:$0xff]  ;;  %v1020_v14 = vld [vmem:[%s11410_s9 + $0x10] sm:$0xff]  ;;  %v11341_v2 = vmov 1   ;;  %vm1253_vm10 = vcmask 146448  }
  0x5f   : > { %7442 = vset.pattern.permute.xlu2 %v11333_v3  ;;  %v1019_v11 = vld [vmem:[%s11410_s9 + $0x8] sm:$0xff]  ;;  %v1092_v12 = vld [vmem:[%s11407_s21] sm:$0xff]  ;;  %v1094_v15 = vld [vmem:[%s11407_s21 + $0x10] sm:$0xff]  ;;  %s11415_s8 = sld [smem:[#allocation18_spill]]  ;;  %vm2029_vm11 = vcmask 1043456   ;;  %vm2022_vm12 = vcmask 64512  }
  0x60   : > { %s7278_s15 = sshll.u32 %s1011_s1, 4  ;;  %v1093_v16 = vld [vmem:[%s11407_s21 + $0x8] sm:$0xff]  ;;  %v1021_v17 = vld [vmem:[%s11410_s9 + $0x18] sm:$0xff]  ;;  %v7647_v18 = vld [vmem:[#allocation7] ss:$0 sm:$0xff]  ;;  %s11420_s24 = sld [smem:[#allocation21_spill]] }
  0x61   : > { %v1095_v19 = vld [vmem:[%s11407_s21 + $0x18] sm:$0xff]  ;;  %v8084_v20 = vld [vmem:[%s11403_s29 + $0x8] sm:$0xff]  ;;  %v1090_v51 = vld [vmem:[%s11408_s17 + $0x10] sm:$0xff]  ;;  %s11421_s14 = sld [smem:[#allocation19_spill]]  ;;  %vm1771_vm13 = vcmask 97360   ;;  %vm1792_vm14 = vcmask 80912  }
  0x62   : > { %s8062_s20 = scalar_lea.vmem %s11414_s5, %s7278_s15  ;;  %s11426_s30 = sld [smem:[#allocation22_spill]]  ;;  %vm2314_vm15 = vcmask 1041408  }
  0x63   : > { %v1017_v4 = vld [vmem:[%s8062_s20 + $0x8] sm:$0xff]  ;;  %v1016_v5 = vld [vmem:[%s8062_s20] sm:$0xff]  ;;  %s11427_s19 = sld [smem:[#allocation20_spill]] }
  0x64   : > { %1073 = vmatpush.msra.mxu0 %v1017_v4  ;;  %v8118_v4 = vld [vmem:[%s11403_s29] sm:$0xff] }
  0x66   : > { %1074 = vmatpush.msra.mxu0 %v1016_v5  ;;  %1043 = vperm.xlu1 %7441, %v1025_v6   ;;  %v8122_v5 = vld [vmem:[%s11403_s29 + $0x10] sm:$0xff]  ;;  %v11339_v6 = vmov 2  }
  0x67   : > { %1033 = vperm.xlu0 %7440, %v1023_v7   ;;  %7085 = vmatmul.msk.f32.vlgmr.msra.gmra.mxu0 %vm1046_vm0, %v1018_v8  ;;  %v11335_v7 = vmov 4   ;;  %v11337_v8 = vmov 3  }
  0x6e   : > { %1167 = vperm.xlu1 %7441, %v1089_v9  }
  0x6f   : > { %1162 = vperm.xlu0 %7440, %v1088_v10   ;;  %7086 = vmatmul.msk.f32.gmra.mxu0 %vm1046_vm0, %v1019_v11 }
  0x76   : > { %1186 = vperm.xlu1 %7441, %v1092_v12  }
  0x77   : > { %1177 = vperm.xlu0 %7440, %v1091_v13   ;;  %7087 = vmatmul.msk.f32.gmra.mxu0 %vm1046_vm0, %v1020_v14  ;;  %v1261_v14 = vld [vmem:[%s11403_s29 + $0x18] sm:$0xff] }
  0x7e   : > { %1196 = vperm.xlu1 %7441, %v1094_v15  }
  0x7f   : > { %1191 = vperm.xlu0 %7440, %v1093_v16   ;;  %7088 = vmatmul.msk.f32.gmra.mxu0 %vm1046_vm0, %v1021_v17 }
  0x86   : > { %1216 = vperm.xlu1 %7441, %v7647_v18   ;;  %v1262_v18 = vld [vmem:[%s11406_s3] sm:$0xff] }
  0x87   : > { %1201 = vperm.xlu0 %7440, %v1095_v19  }
  0x8e   : > { %1277 = vperm.xlu1 %7441, %v8084_v20  }
  0x8f   : > { %7445 = vset.pattern.permute.xlu0 %v11339_v6 }
  0x90   : > { %1339 = vperm.xlu0 %7445, %v8118_v4  }
  0x96   : > { %7443 = vset.pattern.permute.xlu1 %v11341_v2 }
  0x97   : > { %1299 = vperm.xlu1 %7443, %v8118_v4  }
  0x98   : > { %7450 = vset.pattern.permute.xlu0 %v11335_v7 }
  0x99   : > { %1423 = vperm.xlu0 %7450, %v8084_v20  }
  0x9f   : > { %7446 = vset.pattern.permute.xlu1 %v11339_v6 }
  0xa0   : > { %1343 = vperm.xlu1 %7446, %v8084_v20  }
  0xa1   : > { %7455 = vset.pattern.permute.xlu0 %v11337_v8 }
  0xa2   : > { %1387 = vperm.xlu0 %7455, %v8122_v5  }
  0xa8   : > { %7448 = vset.pattern.permute.xlu1 %v11337_v8 }
  0xa9   : > { %1383 = vperm.xlu1 %7448, %v8084_v20  }
  0xaa   : > { %7456 = vset.pattern.permute.xlu0 %v11333_v3 }
  0xb1   : > { %7451 = vset.pattern.permute.xlu1 %v11341_v2 }
  0xb2   : > { %1307 = vperm.xlu1 %7451, %v8122_v5  }
  0xba   : > { %7453 = vset.pattern.permute.xlu1 %v11339_v6 }
  0xbb   : > { %1347 = vperm.xlu1 %7453, %v8122_v5  }
  0xc3   : > { %7457 = vset.pattern.permute.xlu1 %v11337_v8 }
  0xc4   : > { %1391 = vperm.xlu1 %7457, %v1261_v14  }
  0xcc   : > { %7459 = vset.pattern.permute.xlu1 %v11335_v7 }
  0xcd   : > { %1431 = vperm.xlu1 %7459, %v1261_v14  }
  0xd0   : > { %v1029_v22 = vpop.permute.xlu0 %1028  ;;  %v1039_v24 = vpop.permute.xlu1 %1038 }
  0xd5   : > { %7460 = vset.pattern.permute.xlu1 %v11333_v3 }
  0xd6   : > { %1460 = vperm.xlu1 %7460, %v1262_v18  }
  0xd8   : > { %v1044_v33 = vpop.permute.xlu1 %1043 }
  0xd9   : > { %v1034_v25 = vpop.permute.xlu0 %1033 }
  0xde   : > { %7462 = vset.pattern.permute.xlu1 %v11341_v2 }
  0xe0   : > { %v1168_v19 = vpop.permute.xlu1 %1167 }
  0xe4   : > { %v1076_v21 = vpop.f32.mrf.mxu0 }
  0xe5   : > { %v8089_v28 = vadd.f32 %v1076_v21, %v1029_v22 }
  0xe7   : > { %v1096_v31 = vsel %vm1046_vm0, %v8089_v28, 0.0  ;;  %v1113_v39 = vmul.f32 %v8089_v28, %v8089_v28 }
  0xe8   : > { %v1187_v21 = vpop.permute.xlu1 %1186 }
  0xe9   : > { %v1117_v45 = vsel %vm1046_vm0, %v1113_v39, 0.0 }
  0xec   : > { %v1079_v23 = vpop.f32.mrf.mxu0 }
  0xed   : > { %v8087_v27 = vadd.f32 %v1079_v23, %v1034_v25 }
  0xef   : > { %v1097_v30 = vsel %vm1046_vm0, %v8087_v27, 0.0  ;;  %v1114_v36 = vmul.f32 %v8087_v27, %v8087_v27 }
  0xf0   : > { %v1098_v35 = vadd.f32 %v1097_v30, %v1096_v31  ;;  %v1197_v23 = vpop.permute.xlu1 %1196 }
  0xf1   : > { %v1118_v44 = vsel %vm1046_vm0, %v1114_v36, 0.0 }
  0xf2   : > { %v1119_v47 = vadd.f32 %v1118_v44, %v1117_v45 }
  0xf4   : > { %v1082_v26 = vpop.f32.mrf.mxu0 }
  0xf5   : > { %v8091_v29 = vadd.f32 %v1082_v26, %v1039_v24 }
  0xf7   : > { %v1099_v32 = vsel %vm1046_vm0, %v8091_v29, 0.0  ;;  %v1115_v40 = vmul.f32 %v8091_v29, %v8091_v29 }
  0xf8   : > { %v1100_v38 = vadd.f32 %v1099_v32, %v1098_v35  ;;  %v1217_v44 = vpop.permute.xlu1 %1216 }
  0xf9   : > { %v1120_v46 = vsel %vm1046_vm0, %v1115_v40, 0.0 }
  0xfa   : > { %v1121_v49 = vadd.f32 %v1120_v46, %v1119_v47 }
  0xfc   : > { %v1085_v34 = vpop.f32.mrf.mxu0 }
  0xfd   : > { %v8101_v37 = vadd.f32 %v1085_v34, %v1044_v33 }
  0xff   : > { %v1101_v41 = vsel %vm1046_vm0, %v8101_v37, 0.0  ;;  %v1116_v43 = vmul.f32 %v8101_v37, %v8101_v37 }
 0x100   : > { %v1102_v42 = vadd.f32 %v1101_v41, %v1100_v38 }
 0x101   : > { %v1122_v48 = vsel %vm1046_vm0, %v1116_v43, 0.0 }
 0x102   : > { %1103 = vadd.xlane.f32.xlu2 %v1102_v42  ;;  %v1123_v50 = vadd.f32 %v1122_v48, %v1121_v49  ;;  %v1263_v49 = vld [vmem:[%s11406_s3 + $0x8] sm:$0xff] }
 0x10a   : > { %1124 = vadd.xlane.f32.xlu2 %v1123_v50 }
 0x122   : > { %1172 = vperm.xlu2 %7442, %v1090_v51  }
 0x12a   : > { %1282 = vperm.xlu2 %7442, %v8122_v5  }
 0x132   : > { %7444 = vset.pattern.permute.xlu2 %v11341_v2 }
 0x133   : > { %1303 = vperm.xlu2 %7444, %v8084_v20   ;;  %v1163_v20 = vpop.permute.xlu0 %1162 }
 0x13b   : > { %7447 = vset.pattern.permute.xlu2 %v11337_v8  ;;  %v1178_v22 = vpop.permute.xlu0 %1177 }
 0x13c   : > { %1379 = vperm.xlu2 %7447, %v8118_v4  }
 0x143   : > { %v1192_v40 = vpop.permute.xlu0 %1191 }
 0x144   : > { %7449 = vset.pattern.permute.xlu2 %v11335_v7 }
 0x145   : > { %1419 = vperm.xlu2 %7449, %v8118_v4  }
 0x14d   : > { %7452 = vset.pattern.permute.xlu2 %v11341_v2 }
 0x14e   : > { %1311 = vperm.xlu2 %7452, %v1261_v14  }
 0x156   : > { %7454 = vset.pattern.permute.xlu2 %v11339_v6 }
 0x157   : > { %1351 = vperm.xlu2 %7454, %v1261_v14  }
 0x15f   : > { %7458 = vset.pattern.permute.xlu2 %v11335_v7 }
 0x175   : > { %v1104_v52 = vpop.xlane.xlu2 %1103 }
 0x176   : > { %v1105_v53 = vrot.slane %v1104_v52, 4 }
 0x178   : > { %v1106_v54 = vadd.f32 %v1105_v53, %v1104_v52  ;;  %v1264_v52 = vld [vmem:[%s11406_s3 + $0x10] sm:$0xff]  ;;  %v1202_v53 = vpop.permute.xlu0 %1201 }
 0x17a   : > { %v1107_v55 = vrot.slane %v1106_v54, 2 }
 0x17c   : > { %v1108_v56 = vadd.f32 %v1107_v55, %v1106_v54  ;;  %v11343_v55 = vmov 0.0  }
 0x17d   : > { %v1125_v57 = vpop.xlane.xlu2 %1124  ;;  %1228 = vst.msk [vmem:[#allocation2] sm:$0xff] %vm1227_vm7, %v11343_v55 }
 0x17e   : > { %v1126_v58 = vrot.slane %v1125_v57, 4  ;;  %v1109_v59 = vrot.slane %v1108_v56, 1  ;;  %1233 = vst.msk [vmem:[#allocation2] sm:$0xff] %vm1232_vm8, %v11343_v55 }
 0x17f   : > { %1229 = vst.msk [vmem:[#allocation2 + $0x8] sm:$0xff] %vm1227_vm7, %v11343_v55 }
 0x180   : > { %v1127_v60 = vadd.f32 %v1126_v58, %v1125_v57  ;;  %v1110_v61 = vadd.f32 %v1109_v59, %v1108_v56  ;;  %1230 = vst.msk [vmem:[#allocation2 + $0x10] sm:$0xff] %vm1227_vm7, %v11343_v55 }
 0x181   : > { %1231 = vst.msk [vmem:[#allocation2 + $0x18] sm:$0xff] %vm1227_vm7, %v11343_v55 }
 0x182   : > { %7282 = vpush %v1110_v61  ;;  %v1128_v62 = vrot.slane %v1127_v60, 2 }
 0x183   : > { %1482 = vst.msk [vmem:[#allocation3] sm:$0xff] %vm1227_vm7, %v11343_v55 }
 0x184   : > { %v1129_v63 = vadd.f32 %v1128_v62, %v1127_v60  ;;  %1483 = vst.msk [vmem:[#allocation3 + $0x8] sm:$0xff] %vm1227_vm7, %v11343_v55 }
 0x185   : > { %v1173_v32 = vpop.permute.xlu2 %1172  ;;  %1484 = vst.msk [vmem:[#allocation3 + $0x10] sm:$0xff] %vm1227_vm7, %v11343_v55 }
 0x186   : > { %v1130_v0 = vrot.slane %v1129_v63, 1  ;;  %1485 = vst.msk [vmem:[#allocation3 + $0x18] sm:$0xff] %vm1227_vm7, %v11343_v55 }
 0x187   : > { %1767 = vst.msk [vmem:[#allocation4] sm:$0xff] %vm1227_vm7, %v11343_v55 }
 0x188   : > { %v1131_v1 = vadd.f32 %v1130_v0, %v1129_v63  ;;  %1768 = vst.msk [vmem:[#allocation4 + $0x8] sm:$0xff] %vm1227_vm7, %v11343_v55 }
 0x189   : > { %1769 = vst.msk [vmem:[#allocation4 + $0x10] sm:$0xff] %vm1227_vm7, %v11343_v55 }
 0x18a   : > { %7284 = vpush %v1131_v1 }
 0x18b   : > { %1770 = vst.msk [vmem:[#allocation4 + $0x18] sm:$0xff] %vm1227_vm7, %v11343_v55 }
 0x18c   : > { %2052 = vst.msk [vmem:[#allocation5] sm:$0xff] %vm1227_vm7, %v11343_v55 }
 0x18d   : > { %v8189_v57 = vpop.permute.xlu2 %1282  ;;  %2053 = vst.msk [vmem:[#allocation5 + $0x8] sm:$0xff] %vm1227_vm7, %v11343_v55 }
 0x18e   : > { %2054 = vst.msk [vmem:[#allocation5 + $0x10] sm:$0xff] %vm1227_vm7, %v11343_v55 }
 0x18f   : > { %2055 = vst.msk [vmem:[#allocation5 + $0x18] sm:$0xff] %vm1227_vm7, %v11343_v55 }
 0x190   : > { %2724 = vst.msk [vmem:[#allocation6] sm:$0xff] %vm1227_vm7, %v11343_v55 }
 0x191   : > { %2725 = vst.msk [vmem:[#allocation6 + $0x8] sm:$0xff] %vm1227_vm7, %v11343_v55 }
 0x192   : > { %2726 = vst.msk [vmem:[#allocation6 + $0x10] sm:$0xff] %vm1227_vm7, %v11343_v55 }
 0x193   : > { %2727 = vst.msk [vmem:[#allocation6 + $0x18] sm:$0xff] %vm1227_vm7, %v11343_v55 }
 0x194   : > { %2728 = vst.msk [vmem:[#allocation6 + $0x20] sm:$0xff] %vm1227_vm7, %v11343_v55 }
 0x195   : > { %v1304_v60 = vpop.permute.xlu2 %1303  ;;  %2729 = vst.msk [vmem:[#allocation6 + $0x28] sm:$0xff] %vm1227_vm7, %v11343_v55 }
 0x196   : > { %2730 = vst.msk [vmem:[#allocation6 + $0x30] sm:$0xff] %vm1227_vm7, %v11343_v55 }
 0x197   : > { %2731 = vst.msk [vmem:[#allocation6 + $0x38] sm:$0xff] %vm1227_vm7, %v11343_v55 }
 0x198   : > { %1234 = vst.msk [vmem:[#allocation2 + $0x8] sm:$0xff] %vm1232_vm8, %v11343_v55 }
 0x199   : > { %1235 = vst.msk [vmem:[#allocation2 + $0x10] sm:$0xff] %vm1232_vm8, %v11343_v55 }
 0x19a   : > { %1236 = vst.msk [vmem:[#allocation2 + $0x18] sm:$0xff] %vm1232_vm8, %v11343_v55 }
 0x19b   : > { %1486 = vst.msk [vmem:[#allocation3] sm:$0xff] %vm1232_vm8, %v11343_v55 }
 0x19c   : > { %1487 = vst.msk [vmem:[#allocation3 + $0x8] sm:$0xff] %vm1232_vm8, %v11343_v55 }
 0x19d   : > { %v1380_v62 = vpop.permute.xlu2 %1379  ;;  %1488 = vst.msk [vmem:[#allocation3 + $0x10] sm:$0xff] %vm1232_vm8, %v11343_v55 }
 0x19e   : > { %1489 = vst.msk [vmem:[#allocation3 + $0x18] sm:$0xff] %vm1232_vm8, %v11343_v55 }
 0x19f   : > { %1772 = vst.msk [vmem:[#allocation4] sm:$0xff] %vm1771_vm13, %v11343_v55 }
 0x1a0   : > { %1773 = vst.msk [vmem:[#allocation4 + $0x8] sm:$0xff] %vm1771_vm13, %v11343_v55 }
 0x1a1   : > { %1774 = vst.msk [vmem:[#allocation4 + $0x10] sm:$0xff] %vm1771_vm13, %v11343_v55 }
 0x1a2   : > { %1775 = vst.msk [vmem:[#allocation4 + $0x18] sm:$0xff] %vm1771_vm13, %v11343_v55 }
 0x1a5   : > { %v1420_v0 = vpop.permute.xlu2 %1419 }
 0x1b3   : > { %s7283_s22 = spop %7282 }
 0x1b4   : > { %s8131_s1 = smul.f32 0.001953125, %s7283_s22  ;;  %s11328_s22 = smov 0.0  }
 0x1b6   : > { %s1134_s15 = smul.f32 %s8131_s1, %s8131_s1  ;;  %v1137_v24 = vstv %s8131_s1  ;;  %s11318_s1 = smov 124  }
 0x1b7   : > { %v1138_v25 = vsub.f32 %v8089_v28, %v1137_v24  ;;  %v1139_v26 = vsub.f32 %v8087_v27, %v1137_v24  ;;  %v1140_v30 = vsub.f32 %v8091_v29, %v1137_v24  ;;  %v1141_v48 = vsub.f32 %v8101_v37, %v1137_v24  ;;  %v8177_v37 = vpop.permute.xlu1 %1277 }
 0x1bb   : > { %s7285_s5 = spop %7284 }
 0x1bc   : > { %s1133_s9 = smul.f32 0.001953125, %s7285_s5 }
 0x1be   : > { %s1135_s13 = ssub.f32 %s1133_s9, %s1134_s15  ;;  %s11326_s9 = smov 2  }
 0x1bf   : > { %v1300_v59 = vpop.permute.xlu1 %1299  ;;  %s11432_s15 = sld [smem:[#allocation30_spill]] }
 0x1c0   : > { %s1136_s17 = smax.f32 %s11328_s22, %s1135_s13  ;;  %s11322_s13 = smov 126  }
 0x1c1   : > { %s1142_s21 = sadd.f32 1e-08, %s1136_s17  ;;  %s11324_s17 = smov 127  }
 0x1c3   : > { %v1143_v9 = vstv %s1142_s21  ;;  %s11320_s21 = smov 125  }
 0x1c4   : > { %7648 = vrsqrt.f32 %v1143_v9  ;;  %vm1150_vm2 = vweird.f32 %v1143_v9 }
 0x1c7   : > { %v1344_v61 = vpop.permute.xlu1 %1343 }
 0x1ca   : > { %v7649_v10 = vpop.eup %7648 }
 0x1cb   : > { %v1145_v11 = vmul.f32 %v7649_v10, %v1143_v9  ;;  %vm1151_vm1 = vweird.f32 %v7649_v10 }
 0x1cc   : > { %vm1152_vm3 = vmor %vm1150_vm2, %vm1151_vm1  ;;  %vm2307_vm1 = vcmask 31744   ;;  %vm2056_vm2 = vcmask 64560  }
 0x1cd   : > { %v1146_v12 = vmul.f32 %v7649_v10, %v1145_v11  ;;  %2058 = vst.msk [vmem:[#allocation5 + $0x8] sm:$0xff] %vm2056_vm2, %v11343_v55 }
 0x1ce   : > { %2057 = vst.msk [vmem:[#allocation5] sm:$0xff] %vm2056_vm2, %v11343_v55 }
 0x1cf   : > { %v1147_v13 = vmul.f32 0.5, %v1146_v12  ;;  %v1384_v63 = vpop.permute.xlu1 %1383  ;;  %2059 = vst.msk [vmem:[#allocation5 + $0x10] sm:$0xff] %vm2056_vm2, %v11343_v55 }
 0x1d0   : > { %2060 = vst.msk [vmem:[#allocation5 + $0x18] sm:$0xff] %vm2056_vm2, %v11343_v55 }
 0x1d1   : > { %v1148_v15 = vsub.f32 1.5, %v1147_v13 }
 0x1d3   : > { %v1149_v16 = vmul.f32 %v7649_v10, %v1148_v15 }
 0x1d5   : > { %v1153_v17 = vsel %vm1152_vm3, %v7649_v10, %v1149_v16  ;;  %v1340_v10 = vpop.permute.xlu0 %1339  ;;  %vm2077_vm3 = vcmask 48144  }
 0x1d6   : > { %7286 = vpush %v1153_v17 }
 0x1d7   : > { %v1308_v1 = vpop.permute.xlu1 %1307 }
 0x1dd   : > { %v1424_v13 = vpop.permute.xlu0 %1423 }
 0x207   : > { %s7287_s5 = spop %7286 }
 0x208   : > { %v1155_v31 = vstv %s7287_s5  ;;  %s11433_s5 = sld [smem:[#allocation23_spill]] }
 0x209   : > { %v1156_v33 = vmul.f32 %v1155_v31, %v1138_v25  ;;  %v1157_v34 = vmul.f32 %v1155_v31, %v1139_v26  ;;  %v1158_v35 = vmul.f32 %v1155_v31, %v1140_v30  ;;  %v1159_v50 = vmul.f32 %v1155_v31, %v1141_v48  ;;  %v8344_v48 = vld [vmem:[%s11403_s29 + $0x38] sm:$0xff] }
 0x20b   : > { %v1180_v36 = vmul.f32 %v1163_v20, %v1156_v33  ;;  %v1181_v38 = vmul.f32 %v1168_v19, %v1157_v34  ;;  %v1182_v39 = vmul.f32 %v1173_v32, %v1158_v35  ;;  %v1183_v51 = vmul.f32 %v1178_v22, %v1159_v50  ;;  %v1388_v19 = vpop.permute.xlu0 %1387  ;;  %v7280_v50 = vld [vmem:[%s11415_s8] sm:$0xff] }
 0x20c   : > { %2360 = vmatpush.bf16.msrb.mxu0 %v7280_v50 }
 0x20d   : > { %v1206_v41 = vadd.f32 %v1197_v23, %v1182_v39  ;;  %v1205_v42 = vadd.f32 %v1192_v40, %v1181_v38  ;;  %v1204_v43 = vadd.f32 %v1187_v21, %v1180_v36  ;;  %v1207_v54 = vadd.f32 %v1202_v53, %v1183_v51 }
 0x20f   : > { %vm1209_vm4 = vcmp.ge.f32.partialorder %v1205_v42, 0.0  ;;  %v1220_v28 = vmul.f32 %v1217_v44, %v1205_v42  ;;  %vm1208_vm5 = vcmp.ge.f32.partialorder %v1204_v43, 0.0  ;;  %v1219_v27 = vmul.f32 %v1217_v44, %v1204_v43 }
 0x210   : > { %vm1210_vm6 = vcmp.ge.f32.partialorder %v1206_v41, 0.0  ;;  %v1221_v29 = vmul.f32 %v1217_v44, %v1206_v41  ;;  %v1222_v56 = vmul.f32 %v1217_v44, %v1207_v54  ;;  %vm1211_vm9 = vcmp.ge.f32.partialorder %v1207_v54, 0.0  ;;  %v8308_v44 = vld [vmem:[%s11403_s29 + $0x20] sm:$0xff] }
 0x211   : > { %v1224_v45 = vsel %vm1209_vm4, %v1205_v42, %v1220_v28  ;;  %v1223_v46 = vsel %vm1208_vm5, %v1204_v43, %v1219_v27  ;;  %v8315_v27 = vld [vmem:[%s11403_s29 + $0x28] sm:$0xff]  ;;  %vm11373_vm4 = vcmask 261120  }
 0x212   : > { %1243 = vrot.lane.b32.xlu0 %v1224_v45, %s11326_s9  ;;  %1241 = vrot.lane.b32.xlu2 %v1223_v46, %s11326_s9  ;;  %v1225_v47 = vsel %vm1210_vm6, %v1206_v41, %v1221_v29  ;;  %v1226_v58 = vsel %vm1211_vm9, %v1207_v54, %v1222_v56  ;;  %v1265_v45 = vld [vmem:[%s11406_s3 + $0x18] sm:$0xff]  ;;  %vm2732_vm9 = vcmask 48160  }
 0x213   : > { %1245 = vrot.lane.b32.xlu1 %v1225_v47, %s11326_s9  ;;  %v8339_v47 = vld [vmem:[%s11403_s29 + $0x30] sm:$0xff] }
 0x21a   : > { %1272 = vperm.xlu0 %7456, %v8118_v4   ;;  %1427 = vperm.xlu2 %7458, %v8122_v5   ;;  %v1312_v4 = vpop.permute.xlu2 %1311  ;;  %v1348_v5 = vpop.permute.xlu1 %1347 }
 0x222   : > { %7461 = vset.pattern.permute.xlu2 %v11333_v3  ;;  %1287 = vperm.xlu0 %7456, %v1261_v14   ;;  %v8243_v9 = vpop.permute.xlu2 %1351  ;;  %v1392_v11 = vpop.permute.xlu1 %1391 }
 0x223   : > { %1465 = vperm.xlu2 %7461, %v1263_v49  }
 0x22a   : > { %v8246_v14 = vpop.permute.xlu1 %1431 }
 0x22b   : > { %1470 = vperm.xlu2 %7461, %v1264_v52  }
 0x232   : > { %v8258_v20 = vpop.permute.xlu1 %1460 }
 0x233   : > { %1247 = vrot.lane.b32.xlu2 %v1226_v58, %s11326_s9 }
 0x234   : > { %7463 = vset.pattern.permute.xlu2 %v11341_v2 }
 0x26c   : > { %v1242_v12 = vpop.permute.xlu2 %1241 }
 0x26d   : > { %1254 = vst.msk [vmem:[#allocation2] sm:$0xff] %vm1253_vm10, %v1242_v12 }
 0x274   : > { %v8248_v15 = vld [vmem:[#allocation2] sm:$0xff]  ;;  %v1428_v16 = vpop.permute.xlu2 %1427 }
 0x275   : > { %5772 = vst.msk [vmem:[#allocation2] sm:$0xff] %vm1227_vm7, %v11343_v55  ;;  %v1354_v17 = vmul.f32 %v1340_v10, %v8248_v15  ;;  %v1314_v18 = vmul.f32 %v1300_v59, %v8248_v15  ;;  %v1394_v34 = vmul.f32 %v1380_v62, %v8248_v15  ;;  %v1434_v35 = vmul.f32 %v1420_v0, %v8248_v15 }
 0x276   : > { %5776 = vst.msk [vmem:[#allocation2] sm:$0xff] %vm1232_vm8, %v11343_v55 }
 0x277   : > { %1362 = vrot.lane.b32.xlu1 %v1354_v17, %s11322_s13  ;;  %1322 = vrot.lane.b32.xlu2 %v1314_v18, %s11324_s17 }
 0x27d   : > { %v8260_v21 = vpop.permute.xlu2 %1465 }
 0x284   : > { %v1244_v22 = vpop.permute.xlu0 %1243 }
 0x285   : > { %1255 = vst.msk [vmem:[#allocation2 + $0x8] sm:$0xff] %vm1253_vm10, %v1244_v22  ;;  %v1246_v23 = vpop.permute.xlu1 %1245  ;;  %v8263_v24 = vpop.permute.xlu2 %1470 }
 0x286   : > { %1256 = vst.msk [vmem:[#allocation2 + $0x10] sm:$0xff] %vm1253_vm10, %v1246_v23 }
 0x28c   : > { %v8266_v25 = vld [vmem:[#allocation2 + $0x8] sm:$0xff]  ;;  %v1273_v49 = vpop.permute.xlu0 %1272 }
 0x28d   : > { %5773 = vst.msk [vmem:[#allocation2 + $0x8] sm:$0xff] %vm1227_vm7, %v11343_v55  ;;  %v1315_v26 = vmul.f32 %v1304_v60, %v8266_v25  ;;  %v1395_v30 = vmul.f32 %v1384_v63, %v8266_v25  ;;  %v1355_v31 = vmul.f32 %v1344_v61, %v8266_v25  ;;  %v8275_v32 = vld [vmem:[#allocation2 + $0x10] sm:$0xff]  ;;  %v1248_v33 = vpop.permute.xlu2 %1247  ;;  %v1435_v39 = vmul.f32 %v1424_v13, %v8266_v25 }
 0x28e   : > { %5777 = vst.msk [vmem:[#allocation2 + $0x8] sm:$0xff] %vm1232_vm8, %v11343_v55  ;;  %v1356_v40 = vmul.f32 %v1348_v5, %v8275_v32  ;;  %v1396_v41 = vmul.f32 %v1388_v19, %v8275_v32  ;;  %v1316_v42 = vmul.f32 %v1308_v1, %v8275_v32  ;;  %v1436_v29 = vmul.f32 %v1428_v16, %v8275_v32 }
 0x28f   : > { %5774 = vst.msk [vmem:[#allocation2 + $0x10] sm:$0xff] %vm1227_vm7, %v11343_v55  ;;  %1324 = vrot.lane.b32.xlu0 %v1315_v26, %s11324_s17  ;;  %1404 = vrot.lane.b32.xlu1 %v1395_v30, %s11320_s21  ;;  %v1290_v59 = vmul.f32 %v1273_v49, %v8248_v15  ;;  %v1291_v61 = vmul.f32 %v8177_v37, %v8266_v25 }
 0x290   : > { %5778 = vst.msk [vmem:[#allocation2 + $0x10] sm:$0xff] %vm1232_vm8, %v11343_v55  ;;  %1364 = vrot.lane.b32.xlu2 %v1355_v31, %s11322_s13  ;;  %v1292_v19 = vmul.f32 %v8189_v57, %v8275_v32 }
 0x291   : > { %1257 = vst.msk [vmem:[#allocation2 + $0x18] sm:$0xff] %vm1253_vm10, %v1248_v33 }
 0x294   : > { %v1288_v51 = vpop.permute.xlu0 %1287 }
 0x297   : > { %1402 = vrot.lane.b32.xlu0 %v1394_v34, %s11320_s21 }
 0x298   : > { %v8288_v36 = vld [vmem:[#allocation2 + $0x18] sm:$0xff]  ;;  %1442 = vrot.lane.b32.xlu2 %v1434_v35, %s11318_s1 }
 0x299   : > { %5775 = vst.msk [vmem:[#allocation2 + $0x18] sm:$0xff] %vm1227_vm7, %v11343_v55  ;;  %v1317_v38 = vmul.f32 %v1312_v4, %v8288_v36  ;;  %v1397_v43 = vmul.f32 %v1392_v11, %v8288_v36  ;;  %v1357_v28 = vmul.f32 %v8243_v9, %v8288_v36  ;;  %v1437_v46 = vmul.f32 %v8246_v14, %v8288_v36 }
 0x29a   : > { %5779 = vst.msk [vmem:[#allocation2 + $0x18] sm:$0xff] %vm1232_vm8, %v11343_v55  ;;  %v1293_v34 = vmul.f32 %v1288_v51, %v8288_v36 }
 0x29b   : > { %1328 = vrot.lane.b32.xlu1 %v1317_v38, %s11324_s17 }
 0x29f   : > { %1444 = vrot.lane.b32.xlu0 %v1435_v39, %s11318_s1 }
 0x2a0   : > { %1366 = vrot.lane.b32.xlu2 %v1356_v40, %s11322_s13 }
 0x2a3   : > { %1406 = vrot.lane.b32.xlu1 %v1396_v41, %s11320_s21 }
 0x2a7   : > { %1326 = vrot.lane.b32.xlu0 %v1316_v42, %s11324_s17 }
 0x2a8   : > { %1408 = vrot.lane.b32.xlu2 %v1397_v43, %s11320_s21 }
 0x2ab   : > { %1555 = vperm.xlu1 %7462, %v8308_v44  }
 0x2af   : > { %1368 = vrot.lane.b32.xlu0 %v1357_v28, %s11322_s13 }
 0x2b0   : > { %1559 = vperm.xlu2 %7463, %v8315_v27  }
 0x2b3   : > { %7464 = vset.pattern.permute.xlu1 %v11339_v6 }
 0x2b4   : > { %1599 = vperm.xlu1 %7464, %v8315_v27  }
 0x2b7   : > { %1446 = vrot.lane.b32.xlu0 %v1436_v29, %s11318_s1 }
 0x2b8   : > { %7465 = vset.pattern.permute.xlu2 %v11337_v8 }
 0x2b9   : > { %1635 = vperm.xlu2 %7465, %v8308_v44  }
 0x2bc   : > { %7466 = vset.pattern.permute.xlu1 %v11337_v8 }
 0x2bd   : > { %1639 = vperm.xlu1 %7466, %v8315_v27  }
 0x2bf   : > { %1475 = vperm.xlu0 %7456, %v1265_v45  }
 0x2c1   : > { %7467 = vset.pattern.permute.xlu2 %v11335_v7 }
 0x2c2   : > { %1675 = vperm.xlu2 %7467, %v8308_v44  }
 0x2c5   : > { %1448 = vrot.lane.b32.xlu1 %v1437_v46, %s11318_s1 }
 0x2c6   : > { %7470 = vset.pattern.permute.xlu1 %v11341_v2 }
 0x2c7   : > { %7468 = vset.pattern.permute.xlu0 %v11335_v7 }
 0x2c8   : > { %1679 = vperm.xlu0 %7468, %v8315_v27  }
 0x2ca   : > { %7471 = vset.pattern.permute.xlu2 %v11341_v2 }
 0x2cb   : > { %1567 = vperm.xlu2 %7471, %v8344_v48  }
 0x2cd   : > { %1563 = vperm.xlu1 %7470, %v8339_v47  }
 0x2d0   : > { %7469 = vset.pattern.permute.xlu0 %v11339_v6 }
 0x2d1   : > { %1595 = vperm.xlu0 %7469, %v8308_v44   ;;  %v1323_v52 = vpop.permute.xlu2 %1322 }
 0x2d2   : > { %v1334_v60 = vadd.f32 %v1323_v52, %v1290_v59 }
 0x2d3   : > { %7473 = vset.pattern.permute.xlu2 %v11337_v8 }
 0x2d4   : > { %1643 = vperm.xlu2 %7473, %v8339_v47  }
 0x2d5   : > { %7472 = vset.pattern.permute.xlu1 %v11339_v6 }
 0x2d6   : > { %1607 = vperm.xlu1 %7472, %v8344_v48  }
 0x2d9   : > { %1603 = vperm.xlu0 %7469, %v8339_v47  }
 0x2dc   : > { %7475 = vset.pattern.permute.xlu2 %v11335_v7 }
 0x2de   : > { %7474 = vset.pattern.permute.xlu1 %v11337_v8 }
 0x2df   : > { %1647 = vperm.xlu1 %7474, %v8344_v48  }
 0x2e1   : > { %7476 = vset.pattern.permute.xlu0 %v11335_v7 }
 0x2e2   : > { %1687 = vperm.xlu0 %7476, %v8344_v48  }
 0x2e7   : > { %7477 = vset.pattern.permute.xlu1 %v11333_v3 }
 0x2e9   : > { %v1363_v53 = vpop.permute.xlu1 %1362 }
 0x2ea   : > { %7479 = vset.pattern.permute.xlu0 %v11333_v3  ;;  %v1365_v54 = vpop.permute.xlu2 %1364  ;;  %v1374_v62 = vadd.f32 %v1363_v53, %v1334_v60 }
 0x2f2   : > { %v1443_v4 = vpop.permute.xlu2 %1442 }
 0x2fa   : > { %v1367_v22 = vpop.permute.xlu2 %1366 }
 0x301   : > { %v1325_v56 = vpop.permute.xlu0 %1324  ;;  %v1405_v58 = vpop.permute.xlu1 %1404 }
 0x302   : > { %v1335_v63 = vadd.f32 %v1325_v56, %v1291_v61  ;;  %v1409_v38 = vpop.permute.xlu2 %1408 }
 0x304   : > { %v1375_v5 = vadd.f32 %v1365_v54, %v1335_v63 }
 0x306   : > { %v1415_v12 = vadd.f32 %v1405_v58, %v1375_v5 }
 0x309   : > { %v1403_v0 = vpop.permute.xlu0 %1402 }
 0x30a   : > { %v1414_v1 = vadd.f32 %v1403_v0, %v1374_v62  ;;  %v1560_v36 = vpop.permute.xlu2 %1559 }
 0x30c   : > { %v1454_v9 = vadd.f32 %v1443_v4, %v1414_v1 }
 0x30d   : > { %v1329_v10 = vpop.permute.xlu1 %1328 }
 0x30e   : > { %v8363_v11 = vadd.f32 %v8258_v20, %v1454_v9  ;;  %v1337_v32 = vadd.f32 %v1329_v10, %v1293_v34 }
 0x310   : > { %11416 = vst [vmem:[#allocation41_spill] sm:$0xff] %v8363_v11  ;;  %1494 = vrot.lane.b32.xlu1 %v8363_v11, %s11326_s9 }
 0x311   : > { %v1445_v13 = vpop.permute.xlu0 %1444 }
 0x312   : > { %v1455_v14 = vadd.f32 %v1445_v13, %v1415_v12 }
 0x314   : > { %v8368_v15 = vadd.f32 %v8260_v21, %v1455_v14 }
 0x315   : > { %v1407_v37 = vpop.permute.xlu1 %1406 }
 0x316   : > { %11417 = vst [vmem:[#allocation42_spill] sm:$0xff] %v8368_v15  ;;  %1496 = vrot.lane.b32.xlu2 %v8368_v15, %s11326_s9  ;;  %v2339_v16 = vpack.c.bf16 %v8368_v15, %v8363_v11 }
 0x318   : > { %1528 = vperm.xlu1 %7477, %v8308_v44   ;;  %7127 = vmatmul.msk.bf16.vlgmr.msrb.gmra.mxu0 %vm1046_vm0, %v2339_v16  ;;  %v1636_v44 = vpop.permute.xlu2 %1635 }
 0x319   : > { %v1327_v17 = vpop.permute.xlu0 %1326 }
 0x31a   : > { %v1336_v20 = vadd.f32 %v1327_v17, %v1292_v19 }
 0x31c   : > { %v1376_v23 = vadd.f32 %v1367_v22, %v1336_v20 }
 0x31d   : > { %v1556_v18 = vpop.permute.xlu1 %1555 }
 0x31e   : > { %1683 = vperm.xlu2 %7475, %v8339_v47   ;;  %v1416_v26 = vadd.f32 %v1407_v37, %v1376_v23  ;;  %v7093_v23 = vld [vmem:[%s11406_s3 + $0x20] sm:$0xff] }
 0x320   : > { %v1676_v28 = vpop.permute.xlu2 %1675 }
 0x321   : > { %v1369_v21 = vpop.permute.xlu0 %1368 }
 0x322   : > { %v1377_v35 = vadd.f32 %v1369_v21, %v1337_v32 }
 0x324   : > { %v1417_v39 = vadd.f32 %v1409_v38, %v1377_v35 }
 0x326   : > { %v1600_v25 = vpop.permute.xlu1 %1599  ;;  %7478 = vset.pattern.permute.xlu2 %v11333_v3 }
 0x328   : > { %v1568_v29 = vpop.permute.xlu2 %1567 }
 0x329   : > { %v1447_v30 = vpop.permute.xlu0 %1446 }
 0x32a   : > { %v1456_v31 = vadd.f32 %v1447_v30, %v1416_v26  ;;  %v7096_v26 = vld [vmem:[%s11406_s3 + $0x38] sm:$0xff] }
 0x32c   : > { %v8381_v33 = vadd.f32 %v8263_v24, %v1456_v31  ;;  %v7279_v31 = vld [vmem:[%s11420_s24] sm:$0xff] }
 0x32d   : > { %1755 = vmatpush.bf16.msra.mxu1 %v7279_v31 }
 0x32e   : > { %11418 = vst [vmem:[#allocation43_spill] sm:$0xff] %v8381_v33  ;;  %1498 = vrot.lane.b32.xlu1 %v8381_v33, %s11326_s9 }
 0x32f   : > { %v1640_v57 = vpop.permute.xlu1 %1639 }
 0x330   : > { %v1644_v46 = vpop.permute.xlu2 %1643 }
 0x331   : > { %v1476_v42 = vpop.permute.xlu0 %1475 }
 0x337   : > { %v1449_v40 = vpop.permute.xlu1 %1448 }
 0x338   : > { %v1457_v41 = vadd.f32 %v1449_v40, %v1417_v39 }
 0x33a   : > { %v8386_v43 = vadd.f32 %v1476_v42, %v1457_v41  ;;  %v1680_v54 = vpop.permute.xlu0 %1679 }
 0x33c   : > { %11419 = vst [vmem:[#allocation44_spill] sm:$0xff] %v8386_v43  ;;  %1500 = vrot.lane.b32.xlu2 %v8386_v43, %s11326_s9  ;;  %v2340_v24 = vpack.c.bf16 %v8386_v43, %v8381_v33 }
 0x33e   : > { %7128 = vmatmul.msk.bf16.gmra.mxu0 %vm1046_vm0, %v2340_v24 }
 0x33f   : > { %v1564_v45 = vpop.permute.xlu1 %1563 }
 0x344   : > { %1533 = vperm.xlu2 %7478, %v8315_v27   ;;  %v1596_v27 = vpop.permute.xlu0 %1595 }
 0x348   : > { %v1608_v49 = vpop.permute.xlu1 %1607 }
 0x34c   : > { %v1604_v16 = vpop.permute.xlu0 %1603 }
 0x351   : > { %v1648_v52 = vpop.permute.xlu1 %1647 }
 0x354   : > { %v1688_v20 = vpop.permute.xlu0 %1687 }
 0x370   : > { %v1497_v50 = vpop.permute.xlu2 %1496 }
 0x371   : > { %1507 = vst.msk [vmem:[#allocation3 + $0x8] sm:$0xff] %vm1253_vm10, %v1497_v50  ;;  %v8444_v50 = vld [vmem:[%s11403_s29 + $0x40] sm:$0xff] }
 0x378   : > { %v8395_v51 = vld [vmem:[#allocation3 + $0x8] sm:$0xff]  ;;  %v1684_v62 = vpop.permute.xlu2 %1683 }
 0x379   : > { %v1571_v53 = vmul.f32 %v1560_v36, %v8395_v51  ;;  %v1651_v63 = vmul.f32 %v1640_v57, %v8395_v51  ;;  %v1611_v0 = vmul.f32 %v1600_v25, %v8395_v51  ;;  %v1691_v1 = vmul.f32 %v1680_v54, %v8395_v51  ;;  %v7095_v25 = vld [vmem:[%s11406_s3 + $0x30] sm:$0xff] }
 0x37b   : > { %1580 = vrot.lane.b32.xlu2 %v1571_v53, %s11324_s17 }
 0x382   : > { %v1495_v56 = vpop.permute.xlu1 %1494 }
 0x383   : > { %1506 = vst.msk [vmem:[#allocation3] sm:$0xff] %vm1253_vm10, %v1495_v56 }
 0x38a   : > { %v1522_v58 = vld [vmem:[#allocation3] sm:$0xff]  ;;  %v1529_v5 = vpop.permute.xlu1 %1528 }
 0x38b   : > { %v1610_v59 = vmul.f32 %v1596_v27, %v1522_v58  ;;  %v1570_v60 = vmul.f32 %v1556_v18, %v1522_v58  ;;  %v1650_v61 = vmul.f32 %v1636_v44, %v1522_v58  ;;  %v1690_v12 = vmul.f32 %v1676_v28, %v1522_v58  ;;  %v7094_v18 = vld [vmem:[%s11406_s3 + $0x28] sm:$0xff] }
 0x38c   : > { %v1546_v39 = vmul.f32 %v1529_v5, %v1522_v58 }
 0x38d   : > { %1618 = vrot.lane.b32.xlu0 %v1610_v59, %s11322_s13  ;;  %1578 = vrot.lane.b32.xlu1 %v1570_v60, %s11324_s17  ;;  %v8454_v59 = vld [vmem:[%s11403_s29 + $0x58] sm:$0xff] }
 0x38e   : > { %1658 = vrot.lane.b32.xlu2 %v1650_v61, %s11320_s21 }
 0x395   : > { %1660 = vrot.lane.b32.xlu0 %v1651_v63, %s11320_s21  ;;  %1620 = vrot.lane.b32.xlu1 %v1611_v0, %s11322_s13 }
 0x396   : > { %v1501_v4 = vpop.permute.xlu2 %1500  ;;  %1700 = vrot.lane.b32.xlu2 %v1691_v1, %s11318_s1 }
 0x397   : > { %1509 = vst.msk [vmem:[#allocation3 + $0x18] sm:$0xff] %vm1253_vm10, %v1501_v4 }
 0x39d   : > { %1538 = vperm.xlu0 %7479, %v8339_v47   ;;  %1543 = vperm.xlu1 %7477, %v8344_v48  }
 0x39e   : > { %v8412_v9 = vld [vmem:[#allocation3 + $0x18] sm:$0xff]  ;;  %v1534_v30 = vpop.permute.xlu2 %1533 }
 0x39f   : > { %v1613_v13 = vmul.f32 %v1608_v49, %v8412_v9  ;;  %v1573_v48 = vmul.f32 %v1568_v29, %v8412_v9  ;;  %v1653_v21 = vmul.f32 %v1648_v52, %v8412_v9  ;;  %v1693_v22 = vmul.f32 %v1688_v20, %v8412_v9  ;;  %v8447_v52 = vld [vmem:[%s11403_s29 + $0x48] sm:$0xff] }
 0x3a0   : > { %v1499_v10 = vpop.permute.xlu1 %1498  ;;  %v1547_v40 = vmul.f32 %v1534_v30, %v8395_v51 }
 0x3a1   : > { %1508 = vst.msk [vmem:[#allocation3 + $0x10] sm:$0xff] %vm1253_vm10, %v1499_v10 }
 0x3a5   : > { %1698 = vrot.lane.b32.xlu1 %v1690_v12, %s11318_s1  ;;  %1624 = vrot.lane.b32.xlu0 %v1613_v13, %s11322_s13 }
 0x3a8   : > { %v8418_v14 = vld [vmem:[#allocation3 + $0x10] sm:$0xff] }
 0x3a9   : > { %v1572_v37 = vmul.f32 %v1564_v45, %v8418_v14  ;;  %v1692_v47 = vmul.f32 %v1684_v62, %v8418_v14  ;;  %v1612_v17 = vmul.f32 %v1604_v16, %v8418_v14  ;;  %v1652_v19 = vmul.f32 %v1644_v46, %v8418_v14  ;;  %v7105_v16 = vld [vmem:[%s11403_s29 + $0x50] sm:$0xff] }
 0x3ab   : > { %1582 = vrot.lane.b32.xlu2 %v1572_v37, %s11324_s17 }
 0x3ad   : > { %1702 = vrot.lane.b32.xlu0 %v1692_v47, %s11318_s1  ;;  %1584 = vrot.lane.b32.xlu1 %v1573_v48, %s11324_s17 }
 0x3b3   : > { %1622 = vrot.lane.b32.xlu2 %v1612_v17, %s11322_s13 }
 0x3b5   : > { %1723 = vperm.xlu0 %7479, %v7094_v18   ;;  %1662 = vrot.lane.b32.xlu1 %v1652_v19, %s11320_s21  ;;  %v2376_v18 = vld [vmem:[%s11421_s14] sm:$0xf] }
 0x3b6   : > { %v2386_v19 = vsel %vm2029_vm11, %v2376_v18, 0 }
 0x3b7   : > { %2395 = vmatpush.bf16.msrb.mxu1 %v2386_v19 }
 0x3bb   : > { %1664 = vrot.lane.b32.xlu2 %v1653_v21, %s11320_s21 }
 0x3bd   : > { %1704 = vrot.lane.b32.xlu1 %v1693_v22, %s11318_s1  ;;  %7481 = vset.pattern.permute.xlu0 %v11341_v2 }
 0x3be   : > { %1845 = vperm.xlu0 %7481, %v8447_v52  }
 0x3c3   : > { %1718 = vperm.xlu2 %7478, %v7093_v23  }
 0x3c5   : > { %1728 = vperm.xlu1 %7477, %v7095_v25  }
 0x3c6   : > { %1853 = vperm.xlu0 %7481, %v8454_v59  }
 0x3cb   : > { %1733 = vperm.xlu2 %7478, %v7096_v26  }
 0x3cd   : > { %7482 = vset.pattern.permute.xlu1 %v11339_v6 }
 0x3ce   : > { %1881 = vperm.xlu1 %7482, %v8444_v50   ;;  %7488 = vset.pattern.permute.xlu0 %v11335_v7 }
 0x3d3   : > { %7480 = vset.pattern.permute.xlu2 %v11341_v2 }
 0x3d4   : > { %1841 = vperm.xlu2 %7480, %v8444_v50  }
 0x3d5   : > { %v1581_v34 = vpop.permute.xlu2 %1580 }
 0x3d6   : > { %v1591_v41 = vadd.f32 %v1581_v34, %v1547_v40  ;;  %7484 = vset.pattern.permute.xlu1 %v11337_v8 }
 0x3d7   : > { %1921 = vperm.xlu1 %7484, %v8444_v50  }
 0x3dc   : > { %7483 = vset.pattern.permute.xlu2 %v11339_v6 }
 0x3dd   : > { %1885 = vperm.xlu2 %7483, %v8447_v52  }
 0x3df   : > { %7486 = vset.pattern.permute.xlu1 %v11335_v7 }
 0x3e0   : > { %1965 = vperm.xlu1 %7486, %v8447_v52  }
 0x3e5   : > { %7485 = vset.pattern.permute.xlu2 %v11337_v8 }
 0x3e6   : > { %1925 = vperm.xlu2 %7485, %v8447_v52  }
 0x3e8   : > { %v1659_v32 = vpop.permute.xlu2 %1658  ;;  %7489 = vset.pattern.permute.xlu1 %v11339_v6 }
 0x3e9   : > { %1889 = vperm.xlu1 %7489, %v7105_v16  }
 0x3ee   : > { %7487 = vset.pattern.permute.xlu2 %v11341_v2 }
 0x3ef   : > { %1849 = vperm.xlu2 %7487, %v7105_v16  }
 0x3f0   : > { %v1701_v44 = vpop.permute.xlu2 %1700 }
 0x3f1   : > { %7491 = vset.pattern.permute.xlu1 %v11337_v8 }
 0x3f2   : > { %1929 = vperm.xlu1 %7491, %v7105_v16  }
 0x3f7   : > { %7490 = vset.pattern.permute.xlu2 %v11339_v6 }
 0x3f8   : > { %1893 = vperm.xlu2 %7490, %v8454_v59  }
 0x3fa   : > { %7493 = vset.pattern.permute.xlu1 %v11335_v7 }
 0x3ff   : > { %v1579_v57 = vpop.permute.xlu1 %1578  ;;  %v1619_v35 = vpop.permute.xlu0 %1618 }
 0x400   : > { %v1590_v42 = vadd.f32 %v1579_v57, %v1546_v39  ;;  %7492 = vset.pattern.permute.xlu2 %v11337_v8 }
 0x401   : > { %1933 = vperm.xlu2 %7492, %v8454_v59  }
 0x402   : > { %v1630_v29 = vadd.f32 %v1619_v35, %v1590_v42 }
 0x404   : > { %v1670_v46 = vadd.f32 %v1659_v32, %v1630_v29 }
 0x405   : > { %v1583_v51 = vpop.permute.xlu2 %1582 }
 0x407   : > { %v1621_v38 = vpop.permute.xlu1 %1620  ;;  %v1661_v28 = vpop.permute.xlu0 %1660 }
 0x408   : > { %v1631_v36 = vadd.f32 %v1621_v38, %v1591_v41 }
 0x409   : > { %7494 = vset.pattern.permute.xlu2 %v11333_v3 }
 0x40a   : > { %v1671_v45 = vadd.f32 %v1661_v28, %v1631_v36 }
 0x40c   : > { %v1711_v54 = vadd.f32 %v1701_v44, %v1671_v45 }
 0x40d   : > { %v1623_v61 = vpop.permute.xlu2 %1622 }
 0x40f   : > { %v1544_v24 = vpop.permute.xlu1 %1543  ;;  %v1539_v27 = vpop.permute.xlu0 %1538 }
 0x410   : > { %v1548_v60 = vmul.f32 %v1539_v27, %v8418_v14  ;;  %v1549_v62 = vmul.f32 %v1544_v24, %v8412_v9 }
 0x412   : > { %v1592_v0 = vadd.f32 %v1583_v51, %v1548_v60 }
 0x414   : > { %v1632_v10 = vadd.f32 %v1623_v61, %v1592_v0 }
 0x415   : > { %v1665_v13 = vpop.permute.xlu2 %1664 }
 0x417   : > { %v1699_v49 = vpop.permute.xlu1 %1698  ;;  %v1625_v63 = vpop.permute.xlu0 %1624 }
 0x418   : > { %v1710_v53 = vadd.f32 %v1699_v49, %v1670_v46 }
 0x41a   : > { %v1714_v56 = vpack.c.bf16 %v1711_v54, %v1710_v53 }
 0x41c   : > { %7101 = vmatmul.msk.bf16.vlgmr.msra.gmra.mxu1 %vm1046_vm0, %v1714_v56 }
 0x41d   : > { %v1719_v20 = vpop.permute.xlu2 %1718 }
 0x41f   : > { %v1585_v58 = vpop.permute.xlu1 %1584  ;;  %v1703_v14 = vpop.permute.xlu0 %1702 }
 0x420   : > { %v1593_v1 = vadd.f32 %v1585_v58, %v1549_v62 }
 0x422   : > { %v1633_v5 = vadd.f32 %v1625_v63, %v1593_v1 }
 0x424   : > { %v1673_v9 = vadd.f32 %v1665_v13, %v1633_v5 }
 0x425   : > { %v1734_v32 = vpop.permute.xlu2 %1733 }
 0x427   : > { %v1663_v4 = vpop.permute.xlu1 %1662  ;;  %v1724_v23 = vpop.permute.xlu0 %1723 }
 0x428   : > { %v1672_v12 = vadd.f32 %v1663_v4, %v1632_v10 }
 0x42a   : > { %v1712_v47 = vadd.f32 %v1703_v14, %v1672_v12 }
 0x42e   : > { %v1842_v40 = vpop.permute.xlu2 %1841 }
 0x42f   : > { %v1705_v37 = vpop.permute.xlu1 %1704 }
 0x430   : > { %v1713_v48 = vadd.f32 %v1705_v37, %v1673_v9  ;;  %v1846_v45 = vpop.permute.xlu0 %1845 }
 0x432   : > { %v1715_v17 = vpack.c.bf16 %v1713_v48, %v1712_v47 }
 0x434   : > { %7102 = vmatmul.msk.bf16.gmra.mxu1 %vm1046_vm0, %v1715_v17 }
 0x437   : > { %v1729_v31 = vpop.permute.xlu1 %1728  ;;  %v1886_v41 = vpop.permute.xlu2 %1885 }
 0x440   : > { %v1882_v42 = vpop.permute.xlu1 %1881  ;;  %v1926_v24 = vpop.permute.xlu2 %1925 }
 0x449   : > { %v1922_v36 = vpop.permute.xlu1 %1921  ;;  %v1850_v44 = vpop.permute.xlu2 %1849 }
 0x452   : > { %v1966_v28 = vpop.permute.xlu1 %1965  ;;  %v1894_v29 = vpop.permute.xlu2 %1893 }
 0x45b   : > { %v1890_v46 = vpop.permute.xlu1 %1889  ;;  %v1934_v49 = vpop.permute.xlu2 %1933 }
 0x464   : > { %v1930_v53 = vpop.permute.xlu1 %1929 }
 0x499   : > { %v1757_v21 = vpop.f32.mrf.mxu1 }
 0x49a   : > { %v8481_v22 = vadd.f32 %v1757_v21, %v1719_v20  ;;  %v7109_v20 = vld [vmem:[%s11406_s3 + $0x50] sm:$0xff]  ;;  %v7107_v21 = vld [vmem:[%s11406_s3 + $0x40] sm:$0xff] }
 0x49c   : > { %11422 = vst [vmem:[#allocation45_spill] sm:$0xff] %v8481_v22  ;;  %1780 = vrot.lane.b32.xlu0 %v8481_v22, %s11326_s9 }
 0x4a1   : > { %v1759_v25 = vpop.f32.mrf.mxu1 }
 0x4a2   : > { %v8485_v26 = vadd.f32 %v1759_v25, %v1724_v23  ;;  %v7110_v23 = vld [vmem:[%s11406_s3 + $0x58] sm:$0xff] }
 0x4a4   : > { %11423 = vst [vmem:[#allocation46_spill] sm:$0xff] %v8485_v26  ;;  %v2377_v30 = vpack.c.bf16 %v8485_v26, %v8481_v22  ;;  %1782 = vrot.lane.b32.xlu1 %v8485_v26, %s11326_s9  ;;  %1961 = vperm.xlu0 %7488, %v8444_v50  }
 0x4a6   : > { %7129 = vmatmul.msk.bf16.vlgmr.msrb.gmra.mxu1 %vm2022_vm12, %v2377_v30 }
 0x4ac   : > { %1969 = vperm.xlu0 %7488, %v7105_v16   ;;  %1973 = vperm.xlu1 %7493, %v8454_v59  }
 0x4b1   : > { %v1762_v34 = vpop.f32.mrf.mxu1 }
 0x4b2   : > { %v8494_v57 = vadd.f32 %v1762_v34, %v1729_v31  ;;  %v1802_v31 = vld [vmem:[%s11426_s30] sm:$0xf] }
 0x4b3   : > { %v2031_v34 = vsel %vm2029_vm11, %v1802_v31, 0 }
 0x4b4   : > { %11424 = vst [vmem:[#allocation47_spill] sm:$0xff] %v8494_v57  ;;  %1784 = vrot.lane.b32.xlu2 %v8494_v57, %s11326_s9  ;;  %7495 = vset.pattern.permute.xlu1 %v11333_v3 }
 0x4b5   : > { %7496 = vset.pattern.permute.xlu0 %v11333_v3  ;;  %2040 = vmatpush.bf16.msra.mxu2 %v2031_v34 }
 0x4b9   : > { %v1764_v35 = vpop.f32.mrf.mxu1 }
 0x4ba   : > { %v8508_v38 = vadd.f32 %v1764_v35, %v1734_v32 }
 0x4bc   : > { %11425 = vst [vmem:[#allocation48_spill] sm:$0xff] %v8508_v38  ;;  %1814 = vperm.xlu2 %7494, %v8444_v50   ;;  %1786 = vrot.lane.b32.xlu1 %v8508_v38, %s11326_s9  ;;  %v2378_v39 = vpack.c.bf16 %v8508_v38, %v8494_v57  ;;  %v1854_v50 = vpop.permute.xlu0 %1853 }
 0x4be   : > { %7130 = vmatmul.msk.bf16.gmra.mxu1 %vm2022_vm12, %v2378_v39 }
 0x4c4   : > { %1819 = vperm.xlu1 %7495, %v8447_v52  }
 0x4cc   : > { %1824 = vperm.xlu1 %7495, %v7105_v16  }
 0x50e   : > { %v1781_v54 = vpop.permute.xlu0 %1780  ;;  %v1785_v51 = vpop.permute.xlu2 %1784 }
 0x50f   : > { %1793 = vst.msk [vmem:[#allocation4] sm:$0xff] %vm1792_vm14, %v1781_v54  ;;  %v8582_v54 = vld [vmem:[%s11403_s29 + $0x68] sm:$0xff] }
 0x510   : > { %1795 = vst.msk [vmem:[#allocation4 + $0x10] sm:$0xff] %vm1792_vm14, %v1785_v51  ;;  %v8585_v51 = vld [vmem:[%s11403_s29 + $0x60] sm:$0xff] }
 0x516   : > { %v8519_v52 = vld [vmem:[#allocation4] sm:$0xff]  ;;  %v1783_v61 = vpop.permute.xlu1 %1782  ;;  %v1962_v62 = vpop.permute.xlu0 %1961 }
 0x517   : > { %3833 = vst.msk [vmem:[#allocation4] sm:$0xff] %vm1227_vm7, %v11343_v55  ;;  %v1936_v56 = vmul.f32 %v1922_v36, %v8519_v52  ;;  %v1896_v27 = vmul.f32 %v1882_v42, %v8519_v52  ;;  %v1856_v58 = vmul.f32 %v1842_v40, %v8519_v52  ;;  %v8528_v60 = vld [vmem:[#allocation4 + $0x10] sm:$0xff]  ;;  %v1976_v63 = vmul.f32 %v1962_v62, %v8519_v52  ;;  %v1815_v25 = vpop.permute.xlu2 %1814 }
 0x518   : > { %3837 = vst.msk [vmem:[#allocation4] sm:$0xff] %vm1771_vm13, %v11343_v55  ;;  %v1938_v13 = vmul.f32 %v1930_v53, %v8528_v60  ;;  %v1858_v14 = vmul.f32 %v1850_v44, %v8528_v60  ;;  %v1898_v48 = vmul.f32 %v1890_v46, %v8528_v60  ;;  %v1832_v42 = vmul.f32 %v1815_v25, %v8519_v52  ;;  %v7108_v53 = vld [vmem:[%s11406_s3 + $0x48] sm:$0xff] }
 0x519   : > { %3835 = vst.msk [vmem:[#allocation4 + $0x10] sm:$0xff] %vm1227_vm7, %v11343_v55  ;;  %1944 = vrot.lane.b32.xlu0 %v1936_v56, %s11320_s21  ;;  %1904 = vrot.lane.b32.xlu1 %v1896_v27, %s11322_s13 }
 0x51a   : > { %3839 = vst.msk [vmem:[#allocation4 + $0x10] sm:$0xff] %vm1771_vm13, %v11343_v55  ;;  %1864 = vrot.lane.b32.xlu2 %v1856_v58, %s11324_s17 }
 0x51b   : > { %1794 = vst.msk [vmem:[#allocation4 + $0x8] sm:$0xff] %vm1792_vm14, %v1783_v61 }
 0x51e   : > { %v1974_v5 = vpop.permute.xlu1 %1973  ;;  %v1970_v17 = vpop.permute.xlu0 %1969 }
 0x51f   : > { %v1978_v19 = vmul.f32 %v1970_v17, %v8528_v60 }
 0x522   : > { %v1809_v0 = vld [vmem:[#allocation4 + $0x8] sm:$0xff]  ;;  %1984 = vrot.lane.b32.xlu2 %v1976_v63, %s11318_s1 }
 0x523   : > { %3834 = vst.msk [vmem:[#allocation4 + $0x8] sm:$0xff] %vm1227_vm7, %v11343_v55  ;;  %v1857_v1 = vmul.f32 %v1846_v45, %v1809_v0  ;;  %v1937_v4 = vmul.f32 %v1926_v24, %v1809_v0  ;;  %v1897_v10 = vmul.f32 %v1886_v41, %v1809_v0  ;;  %v1977_v12 = vmul.f32 %v1966_v28, %v1809_v0 }
 0x524   : > { %3838 = vst.msk [vmem:[#allocation4 + $0x8] sm:$0xff] %vm1771_vm13, %v11343_v55 }
 0x525   : > { %1866 = vrot.lane.b32.xlu0 %v1857_v1, %s11324_s17  ;;  %1946 = vrot.lane.b32.xlu1 %v1937_v4, %s11320_s21 }
 0x52a   : > { %1906 = vrot.lane.b32.xlu2 %v1897_v10, %s11322_s13 }
 0x52d   : > { %1986 = vrot.lane.b32.xlu0 %v1977_v12, %s11318_s1  ;;  %1948 = vrot.lane.b32.xlu1 %v1938_v13, %s11320_s21  ;;  %v8599_v13 = vld [vmem:[%s11403_s29 + $0x70] sm:$0xff] }
 0x52e   : > { %v1787_v9 = vpop.permute.xlu1 %1786 }
 0x52f   : > { %1796 = vst.msk [vmem:[#allocation4 + $0x18] sm:$0xff] %vm1792_vm14, %v1787_v9 }
 0x532   : > { %1829 = vperm.xlu2 %7494, %v8454_v59  }
 0x535   : > { %1868 = vrot.lane.b32.xlu0 %v1858_v14, %s11324_s17 }
 0x536   : > { %v8554_v37 = vld [vmem:[#allocation4 + $0x18] sm:$0xff]  ;;  %v1820_v30 = vpop.permute.xlu1 %1819 }
 0x537   : > { %3836 = vst.msk [vmem:[#allocation4 + $0x18] sm:$0xff] %vm1227_vm7, %v11343_v55  ;;  %v1859_v47 = vmul.f32 %v1854_v50, %v8554_v37  ;;  %v1899_v59 = vmul.f32 %v1894_v29, %v8554_v37  ;;  %v1979_v16 = vmul.f32 %v1974_v5, %v8554_v37  ;;  %v1939_v18 = vmul.f32 %v1934_v49, %v8554_v37 }
 0x538   : > { %3840 = vst.msk [vmem:[#allocation4 + $0x18] sm:$0xff] %vm1771_vm13, %v11343_v55  ;;  %v1833_v36 = vmul.f32 %v1820_v30, %v1809_v0 }
 0x539   : > { %1870 = vrot.lane.b32.xlu1 %v1859_v47, %s11324_s17 }
 0x53a   : > { %1908 = vrot.lane.b32.xlu2 %v1898_v48, %s11322_s13 }
 0x53d   : > { %1910 = vrot.lane.b32.xlu0 %v1899_v59, %s11322_s13 }
 0x53e   : > { %v1825_v35 = vpop.permute.xlu1 %1824 }
 0x53f   : > { %v1834_v10 = vmul.f32 %v1825_v35, %v8528_v60 }
 0x541   : > { %1990 = vrot.lane.b32.xlu1 %v1979_v16, %s11318_s1  ;;  %v8607_v16 = vld [vmem:[%s11403_s29 + $0x78] sm:$0xff] }
 0x542   : > { %1950 = vrot.lane.b32.xlu2 %v1939_v18, %s11320_s21 }
 0x545   : > { %1988 = vrot.lane.b32.xlu0 %v1978_v19, %s11318_s1 }
 0x549   : > { %2014 = vperm.xlu1 %7495, %v7109_v20  }
 0x54a   : > { %2004 = vperm.xlu2 %7494, %v7107_v21  }
 0x54d   : > { %2009 = vperm.xlu0 %7496, %v7108_v53  }
 0x551   : > { %7498 = vset.pattern.permute.xlu1 %v11341_v2 }
 0x552   : > { %2019 = vperm.xlu2 %7494, %v7110_v23   ;;  %2130 = vperm.xlu1 %7498, %v8582_v54   ;;  %v2411_v23 = vld [vmem:[%s11427_s19] sm:$0x3] }
 0x553   : > { %v2421_v25 = vsel %vm2314_vm15, %v2411_v23, 0 }
 0x554   : > { %2430 = vmatpush.bf16.msrb.mxu2 %v2421_v25 }
 0x555   : > { %7497 = vset.pattern.permute.xlu0 %v11341_v2 }
 0x556   : > { %2126 = vperm.xlu0 %7497, %v8585_v51  }
 0x55a   : > { %7499 = vset.pattern.permute.xlu2 %v11339_v6  ;;  %7500 = vset.pattern.permute.xlu1 %v11339_v6 }
 0x55b   : > { %2166 = vperm.xlu2 %7499, %v8585_v51   ;;  %2170 = vperm.xlu1 %7500, %v8582_v54  }
 0x55e   : > { %2134 = vperm.xlu0 %7497, %v8599_v13  }
 0x563   : > { %7501 = vset.pattern.permute.xlu2 %v11337_v8  ;;  %7502 = vset.pattern.permute.xlu1 %v11335_v7 }
 0x564   : > { %2206 = vperm.xlu2 %7501, %v8585_v51   ;;  %2246 = vperm.xlu1 %7502, %v8585_v51  }
 0x566   : > { %7504 = vset.pattern.permute.xlu0 %v11337_v8 }
 0x567   : > { %2210 = vperm.xlu0 %7504, %v8582_v54  }
 0x56c   : > { %7503 = vset.pattern.permute.xlu2 %v11335_v7  ;;  %7505 = vset.pattern.permute.xlu1 %v11341_v2 }
 0x56d   : > { %2250 = vperm.xlu2 %7503, %v8582_v54   ;;  %2138 = vperm.xlu1 %7505, %v8607_v16  }
 0x56f   : > { %2218 = vperm.xlu0 %7504, %v8607_v16  }
 0x574   : > { %v1865_v32 = vpop.permute.xlu2 %1864 }
 0x575   : > { %v1876_v44 = vadd.f32 %v1865_v32, %v1832_v42  ;;  %7506 = vset.pattern.permute.xlu2 %v11339_v6  ;;  %7507 = vset.pattern.permute.xlu1 %v11339_v6 }
 0x576   : > { %2174 = vperm.xlu2 %7506, %v8599_v13   ;;  %2178 = vperm.xlu1 %7507, %v8607_v16  }
 0x577   : > { %7513 = vset.pattern.permute.xlu0 %v11333_v3 }
 0x57c   : > { %v1985_v39 = vpop.permute.xlu2 %1984 }
 0x57e   : > { %7508 = vset.pattern.permute.xlu2 %v11337_v8  ;;  %7509 = vset.pattern.permute.xlu1 %v11335_v7 }
 0x57f   : > { %2214 = vperm.xlu2 %7508, %v8599_v13  }
 0x584   : > { %v1907_v24 = vpop.permute.xlu2 %1906 }
 0x587   : > { %7510 = vset.pattern.permute.xlu2 %v11335_v7 }
 0x58b   : > { %v1945_v40 = vpop.permute.xlu0 %1944  ;;  %v1905_v41 = vpop.permute.xlu1 %1904 }
 0x58c   : > { %v1916_v29 = vadd.f32 %v1905_v41, %v1876_v44  ;;  %v1830_v52 = vpop.permute.xlu2 %1829 }
 0x58d   : > { %v1835_v4 = vmul.f32 %v1830_v52, %v8554_v37 }
 0x58e   : > { %v1956_v50 = vadd.f32 %v1945_v40, %v1916_v29 }
 0x590   : > { %v1996_v58 = vadd.f32 %v1985_v39, %v1956_v50 }
 0x594   : > { %v1909_v1 = vpop.permute.xlu2 %1908 }
 0x597   : > { %v1867_v28 = vpop.permute.xlu0 %1866  ;;  %v1947_v46 = vpop.permute.xlu1 %1946 }
 0x598   : > { %v1877_v45 = vadd.f32 %v1867_v28, %v1833_v36 }
 0x59a   : > { %v1917_v49 = vadd.f32 %v1907_v24, %v1877_v45 }
 0x59c   : > { %v1957_v56 = vadd.f32 %v1947_v46, %v1917_v49  ;;  %v1951_v48 = vpop.permute.xlu2 %1950 }
 0x59f   : > { %v1987_v27 = vpop.permute.xlu0 %1986  ;;  %v1949_v63 = vpop.permute.xlu1 %1948 }
 0x5a0   : > { %v1997_v61 = vadd.f32 %v1987_v27, %v1957_v56 }
 0x5a2   : > { %v2000_v62 = vpack.c.bf16 %v1997_v61, %v1996_v58 }
 0x5a4   : > { %7111 = vmatmul.msk.bf16.vlgmr.msra.gmra.mxu2 %vm2022_vm12, %v2000_v62  ;;  %v2005_v30 = vpop.permute.xlu2 %2004 }
 0x5a7   : > { %v1869_v0 = vpop.permute.xlu0 %1868 }
 0x5a8   : > { %v1878_v9 = vadd.f32 %v1869_v0, %v1834_v10 }
 0x5aa   : > { %v1918_v37 = vadd.f32 %v1909_v1, %v1878_v9 }
 0x5ab   : > { %v1871_v5 = vpop.permute.xlu1 %1870 }
 0x5ac   : > { %v1879_v12 = vadd.f32 %v1871_v5, %v1835_v4  ;;  %v1958_v18 = vadd.f32 %v1949_v63, %v1918_v37  ;;  %v2020_v36 = vpop.permute.xlu2 %2019 }
 0x5af   : > { %v1911_v14 = vpop.permute.xlu0 %1910 }
 0x5b0   : > { %v1919_v47 = vadd.f32 %v1911_v14, %v1879_v12 }
 0x5b2   : > { %v1959_v60 = vadd.f32 %v1951_v48, %v1919_v47 }
 0x5b3   : > { %v1991_v59 = vpop.permute.xlu1 %1990 }
 0x5b4   : > { %v1999_v17 = vadd.f32 %v1991_v59, %v1959_v60 }
 0x5b5   : > { %v2167_v45 = vpop.permute.xlu2 %2166 }
 0x5b7   : > { %v1989_v19 = vpop.permute.xlu0 %1988 }
 0x5b8   : > { %v1998_v20 = vadd.f32 %v1989_v19, %v1958_v18 }
 0x5ba   : > { %v2001_v21 = vpack.c.bf16 %v1999_v17, %v1998_v20 }
 0x5bb   : > { %v2015_v41 = vpop.permute.xlu1 %2014 }
 0x5bc   : > { %7112 = vmatmul.msk.bf16.gmra.mxu2 %vm2022_vm12, %v2001_v21 }
 0x5be   : > { %v2207_v46 = vpop.permute.xlu2 %2206 }
 0x5bf   : > { %v2010_v32 = vpop.permute.xlu0 %2009 }
 0x5c4   : > { %v2131_v49 = vpop.permute.xlu1 %2130 }
 0x5c7   : > { %v2251_v50 = vpop.permute.xlu2 %2250 }
 0x5cd   : > { %v2171_v53 = vpop.permute.xlu1 %2170 }
 0x5d0   : > { %v2175_v56 = vpop.permute.xlu2 %2174 }
 0x5d6   : > { %v2247_v52 = vpop.permute.xlu1 %2246 }
 0x5df   : > { %v2139_v27 = vpop.permute.xlu1 %2138 }
 0x5e8   : > { %v2179_v61 = vpop.permute.xlu1 %2178 }
 0x627   : > { %v2042_v31 = vpop.f32.mrf.mxu2 }
 0x628   : > { %v8626_v34 = vadd.f32 %v2042_v31, %v2005_v30 }
 0x62a   : > { %11428 = vst [vmem:[#allocation49_spill] sm:$0xff] %v8626_v34  ;;  %2065 = vrot.lane.b32.xlu1 %v8626_v34, %s11326_s9 }
 0x62f   : > { %v2044_v35 = vpop.f32.mrf.mxu2 }
 0x630   : > { %v8630_v39 = vadd.f32 %v2044_v35, %v2010_v32  ;;  %v7118_v32 = vld [vmem:[%s11406_s3 + $0x68] sm:$0xff] }
 0x632   : > { %11429 = vst [vmem:[#allocation50_spill] sm:$0xff] %v8630_v39  ;;  %v2412_v40 = vpack.c.bf16 %v8630_v39, %v8626_v34  ;;  %2067 = vrot.lane.b32.xlu2 %v8630_v39, %s11326_s9  ;;  %2254 = vperm.xlu1 %7509, %v8599_v13  }
 0x634   : > { %7131 = vmatmul.msk.bf16.vlgmr.msrb.gmra.mxu2 %vm2307_vm1, %v2412_v40 }
 0x63a   : > { %2258 = vperm.xlu2 %7510, %v8607_v16   ;;  %7511 = vset.pattern.permute.xlu1 %v11333_v3 }
 0x63f   : > { %v2047_v42 = vpop.f32.mrf.mxu2 }
 0x640   : > { %v8648_v24 = vadd.f32 %v2047_v42, %v2015_v41  ;;  %v7119_v41 = vld [vmem:[%s11406_s3 + $0x70] sm:$0xff]  ;;  %v2525_v42 = vld [vmem:[%s11405_s11 + $0x28] sm:$0xff] }
 0x642   : > { %11430 = vst [vmem:[#allocation51_spill] sm:$0xff] %v8648_v24  ;;  %2069 = vrot.lane.b32.xlu1 %v8648_v24, %s11326_s9  ;;  %7512 = vset.pattern.permute.xlu2 %v11333_v3 }
 0x647   : > { %v2049_v44 = vpop.f32.mrf.mxu2 }
 0x648   : > { %v8653_v28 = vadd.f32 %v2049_v44, %v2020_v36  ;;  %v7117_v36 = vld [vmem:[%s11406_s3 + $0x60] sm:$0xff]  ;;  %v2530_v44 = vld [vmem:[%s11404_s18 + $0x10] sm:$0xff] }
 0x64a   : > { %11431 = vst [vmem:[#allocation52_spill] sm:$0xff] %v8653_v28  ;;  %2099 = vperm.xlu1 %7511, %v8585_v51   ;;  %2071 = vrot.lane.b32.xlu2 %v8653_v28, %s11326_s9  ;;  %v2413_v29 = vpack.c.bf16 %v8653_v28, %v8648_v24  ;;  %v2215_v51 = vpop.permute.xlu2 %2214 }
 0x64c   : > { %7132 = vmatmul.msk.bf16.gmra.mxu2 %vm2307_vm1, %v2413_v29  ;;  %v7120_v29 = vld [vmem:[%s11406_s3 + $0x78] sm:$0xff] }
 0x652   : > { %2104 = vperm.xlu2 %7512, %v8582_v54   ;;  %v2127_v54 = vpop.permute.xlu0 %2126 }
 0x65a   : > { %2109 = vperm.xlu2 %7512, %v8599_v13   ;;  %v2135_v1 = vpop.permute.xlu0 %2134 }
 0x662   : > { %v2211_v9 = vpop.permute.xlu0 %2210 }
 0x68c   : > { %v2068_v58 = vpop.permute.xlu2 %2067 }
 0x68d   : > { %2079 = vst.msk [vmem:[#allocation5 + $0x8] sm:$0xff] %vm2077_vm3, %v2068_v58 }
 0x694   : > { %v8664_v62 = vld [vmem:[#allocation5 + $0x8] sm:$0xff]  ;;  %v2259_v63 = vpop.permute.xlu2 %2258 }
 0x695   : > { %3487 = vst.msk [vmem:[#allocation5 + $0x8] sm:$0xff] %vm1227_vm7, %v11343_v55  ;;  %v2222_v47 = vmul.f32 %v2211_v9, %v8664_v62  ;;  %v2142_v59 = vmul.f32 %v2131_v49, %v8664_v62  ;;  %v2182_v17 = vmul.f32 %v2171_v53, %v8664_v62  ;;  %v2262_v19 = vmul.f32 %v2251_v50, %v8664_v62  ;;  %v8734_v49 = vld [vmem:[%s11432_s15 + $0x8] sm:$0xff]  ;;  %v8739_v53 = vld [vmem:[%s11432_s15 + $0x20] sm:$0xff] }
 0x696   : > { %3491 = vst.msk [vmem:[#allocation5 + $0x8] sm:$0xff] %vm2056_vm2, %v11343_v55  ;;  %v2521_v50 = vld [vmem:[%s11405_s11 + $0x8] sm:$0xff] }
 0x69c   : > { %v2066_v0 = vpop.permute.xlu1 %2065 }
 0x69d   : > { %2078 = vst.msk [vmem:[#allocation5] sm:$0xff] %vm2077_vm3, %v2066_v0 }
 0x6a4   : > { %v8671_v4 = vld [vmem:[#allocation5] sm:$0xff]  ;;  %v2072_v5 = vpop.permute.xlu2 %2071  ;;  %v2255_v14 = vpop.permute.xlu1 %2254 }
 0x6a5   : > { %3486 = vst.msk [vmem:[#allocation5] sm:$0xff] %vm1227_vm7, %v11343_v55  ;;  %v2141_v10 = vmul.f32 %v2127_v54, %v8671_v4  ;;  %v2181_v12 = vmul.f32 %v2167_v45, %v8671_v4  ;;  %v2221_v13 = vmul.f32 %v2207_v46, %v8671_v4  ;;  %v2261_v37 = vmul.f32 %v2247_v52, %v8671_v4  ;;  %v2533_v45 = vld [vmem:[%s11404_s18 + $0x28] sm:$0xff]  ;;  %v2520_v46 = vld [vmem:[%s11405_s11] sm:$0xff]  ;;  %v8744_v52 = vld [vmem:[%s11432_s15 + $0x38] sm:$0xff] }
 0x6a6   : > { %3490 = vst.msk [vmem:[#allocation5] sm:$0xff] %vm2056_vm2, %v11343_v55  ;;  %v2087_v54 = vld [vmem:[%s11433_s5] sm:$0x3]  ;;  %s11434_s5 = sld [smem:[#allocation27_spill]] }
 0x6a7   : > { %2081 = vst.msk [vmem:[#allocation5 + $0x18] sm:$0xff] %vm2077_vm3, %v2072_v5  ;;  %2149 = vrot.lane.b32.xlu0 %v2141_v10, %s11324_s17  ;;  %2189 = vrot.lane.b32.xlu2 %v2181_v12, %s11322_s13  ;;  %v8754_v5 = vld [vmem:[%s11432_s15] sm:$0xff] }
 0x6a8   : > { %2229 = vrot.lane.b32.xlu1 %v2221_v13, %s11320_s21  ;;  %v2528_v10 = vld [vmem:[%s11404_s18] sm:$0xff] }
 0x6ac   : > { %v2105_v58 = vpop.permute.xlu2 %2104 }
 0x6ae   : > { %v8686_v48 = vld [vmem:[#allocation5 + $0x18] sm:$0xff] }
 0x6af   : > { %3489 = vst.msk [vmem:[#allocation5 + $0x18] sm:$0xff] %vm1227_vm7, %v11343_v55  ;;  %2269 = vrot.lane.b32.xlu0 %v2261_v37, %s11318_s1  ;;  %2231 = vrot.lane.b32.xlu2 %v2222_v47, %s11320_s21  ;;  %v2144_v18 = vmul.f32 %v2139_v27, %v8686_v48  ;;  %v2184_v23 = vmul.f32 %v2179_v61, %v8686_v48  ;;  %v2524_v27 = vld [vmem:[%s11405_s11 + $0x20] sm:$0xff]  ;;  %v2526_v61 = vld [vmem:[%s11405_s11 + $0x30] sm:$0xff] }
 0x6b0   : > { %3493 = vst.msk [vmem:[#allocation5 + $0x18] sm:$0xff] %vm2056_vm2, %v11343_v55  ;;  %2151 = vrot.lane.b32.xlu1 %v2142_v59, %s11324_s17  ;;  %v2264_v35 = vmul.f32 %v2259_v63, %v8686_v48  ;;  %v2316_v63 = vsel %vm2314_vm15, %v2087_v54, 0 }
 0x6b1   : > { %2325 = vmatpush.bf16.msra.mxu3 %v2316_v63 }
 0x6b4   : > { %v2070_v60 = vpop.permute.xlu1 %2069 }
 0x6b5   : > { %2080 = vst.msk [vmem:[#allocation5 + $0x10] sm:$0xff] %vm2077_vm3, %v2070_v60 }
 0x6b7   : > { %2191 = vrot.lane.b32.xlu0 %v2182_v17, %s11322_s13  ;;  %2155 = vrot.lane.b32.xlu2 %v2144_v18, %s11324_s17  ;;  %v2532_v18 = vld [vmem:[%s11404_s18 + $0x20] sm:$0xff] }
 0x6b8   : > { %2271 = vrot.lane.b32.xlu1 %v2262_v19, %s11318_s1  ;;  %v2118_v19 = vmul.f32 %v2105_v58, %v8664_v62  ;;  %v8768_v58 = vld [vmem:[%s11432_s15 + $0x18] sm:$0xff] }
 0x6bc   : > { %v8703_v20 = vld [vmem:[#allocation5 + $0x10] sm:$0xff]  ;;  %v2100_v0 = vpop.permute.xlu1 %2099 }
 0x6bd   : > { %3488 = vst.msk [vmem:[#allocation5 + $0x10] sm:$0xff] %vm1227_vm7, %v11343_v55  ;;  %v2143_v21 = vmul.f32 %v2135_v1, %v8703_v20  ;;  %v2223_v25 = vmul.f32 %v2215_v51, %v8703_v20  ;;  %v2263_v30 = vmul.f32 %v2255_v14, %v8703_v20  ;;  %v2183_v31 = vmul.f32 %v2175_v56, %v8703_v20  ;;  %v2522_v56 = vld [vmem:[%s11405_s11 + $0x10] sm:$0xff]  ;;  %v2523_v51 = vld [vmem:[%s11405_s11 + $0x18] sm:$0xff]  ;;  %v2110_v1 = vpop.permute.xlu2 %2109  ;;  %v2529_v14 = vld [vmem:[%s11404_s18 + $0x8] sm:$0xff] }
 0x6be   : > { %3492 = vst.msk [vmem:[#allocation5 + $0x10] sm:$0xff] %vm2056_vm2, %v11343_v55  ;;  %v2117_v37 = vmul.f32 %v2100_v0, %v8671_v4  ;;  %v2119_v62 = vmul.f32 %v2110_v1, %v8703_v20 }
 0x6bf   : > { %2114 = vperm.xlu0 %7513, %v8607_v16   ;;  %2195 = vrot.lane.b32.xlu2 %v2184_v23, %s11322_s13  ;;  %v2219_v16 = vpop.permute.xlu0 %2218 }
 0x6c0   : > { %2153 = vrot.lane.b32.xlu1 %v2143_v21, %s11324_s17  ;;  %v2224_v40 = vmul.f32 %v2219_v16, %v8686_v48 }
 0x6c7   : > { %2233 = vrot.lane.b32.xlu0 %v2223_v25, %s11320_s21  ;;  %2273 = vrot.lane.b32.xlu2 %v2263_v30, %s11318_s1 }
 0x6c8   : > { %2193 = vrot.lane.b32.xlu1 %v2183_v31, %s11322_s13 }
 0x6cf   : > { %2275 = vrot.lane.b32.xlu0 %v2264_v35, %s11318_s1  ;;  %2294 = vperm.xlu2 %7512, %v7118_v32   ;;  %v2535_v35 = vld [vmem:[%s11404_s18 + $0x38] sm:$0xff]  ;;  %s11439_s1 = sld [smem:[#allocation31_spill]] }
 0x6d0   : > { %2235 = vrot.lane.b32.xlu1 %v2224_v40, %s11320_s21 }
 0x6d7   : > { %2299 = vperm.xlu0 %7513, %v7119_v41   ;;  %2655 = vperm.xlu2 %7512, %v2525_v42  }
 0x6d8   : > { %2289 = vperm.xlu1 %7511, %v7117_v36  }
 0x6df   : > { %2688 = vperm.xlu2 %7512, %v2530_v44   ;;  %7514 = vset.pattern.permute.xlu0 %v11341_v2 }
 0x6e0   : > { %2304 = vperm.xlu1 %7511, %v7120_v29   ;;  %2863 = vperm.xlu0 %7514, %v8754_v5  }
 0x6e7   : > { %2703 = vperm.xlu2 %7512, %v2533_v45  }
 0x6e8   : > { %2630 = vperm.xlu1 %7511, %v2520_v46  }
 0x6ef   : > { %2813 = vperm.xlu2 %7512, %v8734_v49  }
 0x6f0   : > { %2635 = vperm.xlu1 %7511, %v2521_v50  }
 0x6f7   : > { %2828 = vperm.xlu2 %7512, %v8739_v53  }
 0x6f8   : > { %2640 = vperm.xlu1 %7511, %v2522_v56  }
 0x6ff   : > { %2843 = vperm.xlu2 %7512, %v8744_v52  }
 0x700   : > { %2645 = vperm.xlu1 %7511, %v2523_v51  }
 0x701   : > { %v2190_v9 = vpop.permute.xlu2 %2189 }
 0x707   : > { %7516 = vset.pattern.permute.xlu2 %v11341_v2 }
 0x708   : > { %2650 = vperm.xlu1 %7511, %v2524_v27  }
 0x709   : > { %v2232_v17 = vpop.permute.xlu2 %2231 }
 0x710   : > { %2660 = vperm.xlu1 %7511, %v2526_v61  }
 0x711   : > { %v2156_v42 = vpop.permute.xlu2 %2155 }
 0x718   : > { %2678 = vperm.xlu1 %7511, %v2528_v10  }
 0x719   : > { %v2150_v12 = vpop.permute.xlu0 %2149  ;;  %v2196_v29 = vpop.permute.xlu2 %2195 }
 0x71a   : > { %v2230_v13 = vpop.permute.xlu1 %2229  ;;  %v2161_v60 = vadd.f32 %v2150_v12, %v2117_v37  ;;  %v2432_v37 = vpop.f32.mrf.mxu2 }
 0x71c   : > { %v2201_v21 = vadd.f32 %v2190_v9, %v2161_v60  ;;  %v2362_v9 = vpop.f32.mrf.mxu0 }
 0x71e   : > { %v2241_v16 = vadd.f32 %v2230_v13, %v2201_v21  ;;  %v8772_v13 = vld [vmem:[%s11432_s15 + $0x30] sm:$0xff] }
 0x720   : > { %2683 = vperm.xlu1 %7511, %v2529_v14  }
 0x721   : > { %v2270_v47 = vpop.permute.xlu0 %2269  ;;  %v2274_v10 = vpop.permute.xlu2 %2273 }
 0x722   : > { %v2152_v59 = vpop.permute.xlu1 %2151  ;;  %v2281_v40 = vadd.f32 %v2270_v47, %v2241_v16  ;;  %v2397_v47 = vpop.f32.mrf.mxu1 }
 0x723   : > { %v2162_v23 = vadd.f32 %v2152_v59, %v2118_v19 }
 0x724   : > { %v2364_v59 = vpop.f32.mrf.mxu0 }
 0x728   : > { %2698 = vperm.xlu1 %7511, %v2532_v18   ;;  %v2434_v18 = vpop.f32.mrf.mxu2 }
 0x729   : > { %v2192_v25 = vpop.permute.xlu0 %2191 }
 0x72a   : > { %v2202_v30 = vadd.f32 %v2192_v25, %v2162_v23  ;;  %v2272_v31 = vpop.permute.xlu1 %2271 }
 0x72c   : > { %v2242_v32 = vadd.f32 %v2232_v17, %v2202_v30  ;;  %v2399_v17 = vpop.f32.mrf.mxu1  ;;  %v2367_v21 = vpop.f32.mrf.mxu0 }
 0x72e   : > { %v2282_v41 = vadd.f32 %v2272_v31, %v2242_v32  ;;  %v2295_v32 = vpop.permute.xlu2 %2294 }
 0x730   : > { %v2285_v4 = vpack.c.bf16 %v2282_v41, %v2281_v40  ;;  %2713 = vperm.xlu1 %7511, %v2535_v35   ;;  %v2437_v30 = vpop.f32.mrf.mxu2 }
 0x731   : > { %v2115_v36 = vpop.permute.xlu0 %2114 }
 0x732   : > { %v2154_v44 = vpop.permute.xlu1 %2153  ;;  %7121 = vmatmul.msk.bf16.vlgmr.msra.gmra.mxu3 %vm2307_vm1, %v2285_v4  ;;  %v2120_v45 = vmul.f32 %v2115_v36, %v8686_v48 }
 0x733   : > { %v2163_v56 = vadd.f32 %v2154_v44, %v2119_v62 }
 0x734   : > { %v2164_v51 = vadd.f32 %v2156_v42, %v2120_v45  ;;  %v2402_v25 = vpop.f32.mrf.mxu1  ;;  %v2369_v44 = vpop.f32.mrf.mxu0 }
 0x736   : > { %v2204_v54 = vadd.f32 %v2196_v29, %v2164_v51 }
 0x738   : > { %2808 = vperm.xlu1 %7511, %v8754_v5   ;;  %v2439_v51 = vpop.f32.mrf.mxu2 }
 0x739   : > { %v2234_v46 = vpop.permute.xlu0 %2233 }
 0x73a   : > { %v2194_v50 = vpop.permute.xlu1 %2193 }
 0x73b   : > { %v2203_v27 = vadd.f32 %v2194_v50, %v2163_v56 }
 0x73c   : > { %v2404_v45 = vpop.f32.mrf.mxu1 }
 0x73d   : > { %v2243_v61 = vadd.f32 %v2234_v46, %v2203_v27 }
 0x73f   : > { %v2283_v20 = vadd.f32 %v2274_v10, %v2243_v61 }
 0x740   : > { %2823 = vperm.xlu1 %7511, %v8768_v58  }
 0x741   : > { %v2276_v12 = vpop.permute.xlu0 %2275 }
 0x742   : > { %v2236_v63 = vpop.permute.xlu1 %2235 }
 0x743   : > { %v2244_v0 = vadd.f32 %v2236_v63, %v2204_v54 }
 0x745   : > { %v2284_v1 = vadd.f32 %v2276_v12, %v2244_v0  ;;  %v2446_v12 = vld [vmem:[%s11434_s5] sm:$0xff] }
 0x747   : > { %v2286_v48 = vpack.c.bf16 %v2284_v1, %v2283_v20  ;;  %v2447_v20 = vld [vmem:[%s11434_s5 + $0x8] sm:$0xff]  ;;  %v2448_v1 = vld [vmem:[%s11434_s5 + $0x10] sm:$0xff] }
 0x748   : > { %2838 = vperm.xlu1 %7511, %v8772_v13  }
 0x749   : > { %7122 = vmatmul.msk.bf16.gmra.mxu3 %vm2307_vm1, %v2286_v48  ;;  %v2300_v31 = vpop.permute.xlu0 %2299  ;;  %v2449_v48 = vld [vmem:[%s11434_s5 + $0x18] sm:$0xff] }
 0x74a   : > { %v2290_v19 = vpop.permute.xlu1 %2289 }
 0x750   : > { %7515 = vset.pattern.permute.xlu1 %v11341_v2 }
 0x751   : > { %2867 = vperm.xlu1 %7515, %v8734_v49  }
 0x752   : > { %v2305_v40 = vpop.permute.xlu1 %2304 }
 0x759   : > { %2875 = vperm.xlu1 %7515, %v8768_v58  }
 0x761   : > { %2887 = vperm.xlu1 %7515, %v8772_v13  }
 0x769   : > { %7519 = vset.pattern.permute.xlu1 %v11339_v6 }
 0x7b5   : > { %v2327_v14 = vpop.f32.mrf.mxu3 }
 0x7b6   : > { %v2328_v42 = vadd.f32 %v2327_v14, %v2290_v19  ;;  %v2450_v14 = vld [vmem:[%s11434_s5 + $0x20] sm:$0xff] }
 0x7b8   : > { %v2372_v46 = vadd.f32 %v2362_v9, %v2328_v42  ;;  %v8802_v9 = vld [vmem:[%s11432_s15 + $0x28] sm:$0xff] }
 0x7b9   : > { %2883 = vperm.xlu0 %7514, %v8802_v9  }
 0x7ba   : > { %v2407_v63 = vadd.f32 %v2397_v47, %v2372_v46  ;;  %v2451_v47 = vld [vmem:[%s11434_s5 + $0x28] sm:$0xff] }
 0x7bc   : > { %v8790_v10 = vadd.f32 %v2432_v37, %v2407_v63  ;;  %v2452_v37 = vld [vmem:[%s11434_s5 + $0x30] sm:$0xff] }
 0x7bd   : > { %v2329_v60 = vpop.f32.mrf.mxu3 }
 0x7be   : > { %v2330_v35 = vadd.f32 %v2329_v60, %v2295_v32  ;;  %11438 = vst [vmem:[#allocation56_spill] sm:$0xff] %v8790_v10 }
 0x7c0   : > { %v2373_v62 = vadd.f32 %v2364_v59, %v2330_v35  ;;  %v2453_v59 = vld [vmem:[%s11434_s5 + $0x38] sm:$0xff]  ;;  %s11440_s5 = smov 0.0  }
 0x7c1   : > { %7518 = vset.pattern.permute.xlu0 %v11339_v6 }
 0x7c2   : > { %v2408_v61 = vadd.f32 %v2399_v17, %v2373_v62  ;;  %2947 = vperm.xlu0 %7518, %v8734_v49  }
 0x7c4   : > { %v8787_v0 = vadd.f32 %v2434_v18, %v2408_v61 }
 0x7c6   : > { %11437 = vst [vmem:[#allocation55_spill] sm:$0xff] %v8787_v0 }
 0x7ca   : > { %2967 = vperm.xlu0 %7518, %v8772_v13  }
 0x7cc   : > { %v2332_v23 = vpop.f32.mrf.mxu3 }
 0x7cd   : > { %v2333_v16 = vadd.f32 %v2332_v23, %v2300_v31 }
 0x7cf   : > { %v2374_v4 = vadd.f32 %v2367_v21, %v2333_v16  ;;  %v8826_v21 = vld [vmem:[%s11432_s15 + $0x10] sm:$0xff]  ;;  %s11457_s15 = sld [smem:[#allocation37_spill]] }
 0x7d0   : > { %2951 = vperm.xlu1 %7519, %v8826_v21  }
 0x7d1   : > { %v2409_v56 = vadd.f32 %v2402_v25, %v2374_v4 }
 0x7d2   : > { %7522 = vset.pattern.permute.xlu0 %v11337_v8 }
 0x7d3   : > { %v8784_v54 = vadd.f32 %v2437_v30, %v2409_v56 }
 0x7d4   : > { %v2334_v41 = vpop.f32.mrf.mxu3 }
 0x7d5   : > { %v2335_v36 = vadd.f32 %v2334_v41, %v2305_v40  ;;  %11436 = vst [vmem:[#allocation54_spill] sm:$0xff] %v8784_v54 }
 0x7d7   : > { %v2375_v29 = vadd.f32 %v2369_v44, %v2335_v36 }
 0x7d8   : > { %2959 = vperm.xlu1 %7519, %v8739_v53  }
 0x7d9   : > { %v2410_v50 = vadd.f32 %v2404_v45, %v2375_v29 }
 0x7db   : > { %v8781_v27 = vadd.f32 %v2439_v51, %v2410_v50 }
 0x7dd   : > { %11435 = vst [vmem:[#allocation53_spill] sm:$0xff] %v8781_v27  ;;  %2491 = vmatpush.msrb.mxu3 %v8781_v27 }
 0x7df   : > { %2492 = vmatpush.msrb.mxu3 %v8784_v54 }
 0x7e0   : > { %2971 = vperm.xlu1 %7519, %v8744_v52  }
 0x7e1   : > { %2493 = vmatpush.msrb.mxu3 %v8787_v0 }
 0x7e3   : > { %2494 = vmatpush.msrb.mxu3 %v8790_v10 }
 0x7e4   : > { %7133 = vmatmul.msk.f32.vlgmr.msrb.gmra.mxu3 %vm11373_vm4, %v2446_v12 }
 0x7e8   : > { %7520 = vset.pattern.permute.xlu1 %v11337_v8 }
 0x7e9   : > { %3023 = vperm.xlu1 %7520, %v8754_v5  }
 0x7ec   : > { %7134 = vmatmul.msk.f32.gmra.mxu3 %vm11373_vm4, %v2447_v20 }
 0x7f1   : > { %3035 = vperm.xlu1 %7520, %v8768_v58  }
 0x7f4   : > { %7135 = vmatmul.msk.f32.gmra.mxu3 %vm11373_vm4, %v2448_v1 }
 0x7f9   : > { %3043 = vperm.xlu1 %7520, %v8802_v9  }
 0x7fc   : > { %7136 = vmatmul.msk.f32.gmra.mxu3 %vm11373_vm4, %v2449_v48 }
 0x801   : > { %7524 = vset.pattern.permute.xlu1 %v11335_v7 }
 0x802   : > { %3107 = vperm.xlu1 %7524, %v8734_v49  }
 0x804   : > { %7137 = vmatmul.msk.f32.gmra.mxu3 %vm11373_vm4, %v2450_v14 }
 0x80a   : > { %3115 = vperm.xlu1 %7524, %v8768_v58  }
 0x80c   : > { %7138 = vmatmul.msk.f32.gmra.mxu3 %vm11373_vm4, %v2451_v47 }
 0x812   : > { %3127 = vperm.xlu1 %7524, %v8772_v13  }
 0x814   : > { %7139 = vmatmul.msk.f32.gmra.mxu3 %vm11373_vm4, %v2452_v37 }
 0x81a   : > { %7528 = vset.pattern.permute.xlu1 %v11333_v3 }
 0x81c   : > { %7140 = vmatmul.msk.f32.gmra.mxu3 %vm11373_vm4, %v2453_v59 }
 0x867   : > { %v8817_v60 = vpop.f32.mrf.mxu3 }
 0x868   : > { %v2561_v31 = vmul.f32 %v8817_v60, %v8817_v60  ;;  %v2536_v35 = vsel %vm1227_vm7, %v8817_v60, 0.0 }
 0x86a   : > { %v2569_v36 = vsel %vm1227_vm7, %v2561_v31, 0.0 }
 0x86f   : > { %v8819_v17 = vpop.f32.mrf.mxu3 }
 0x870   : > { %v2562_v30 = vmul.f32 %v8819_v17, %v8819_v17  ;;  %v2537_v16 = vsel %vm1227_vm7, %v8819_v17, 0.0 }
 0x871   : > { %v2538_v4 = vadd.f32 %v2537_v16, %v2536_v35 }
 0x872   : > { %v2570_v40 = vsel %vm1227_vm7, %v2562_v30, 0.0 }
 0x873   : > { %v2571_v45 = vadd.f32 %v2570_v40, %v2569_v36 }
 0x877   : > { %v8821_v18 = vpop.f32.mrf.mxu3 }
 0x878   : > { %v2563_v32 = vmul.f32 %v8821_v18, %v8821_v18  ;;  %v2539_v41 = vsel %vm1227_vm7, %v8821_v18, 0.0 }
 0x879   : > { %v2540_v46 = vadd.f32 %v2539_v41, %v2538_v4 }
 0x87a   : > { %v2572_v44 = vsel %vm1227_vm7, %v2563_v32, 0.0 }
 0x87b   : > { %v2573_v63 = vadd.f32 %v2572_v44, %v2571_v45 }
 0x87f   : > { %v8823_v19 = vpop.f32.mrf.mxu3 }
 0x880   : > { %v2564_v42 = vmul.f32 %v8823_v19, %v8823_v19  ;;  %v2541_v62 = vsel %vm1227_vm7, %v8823_v19, 0.0 }
 0x881   : > { %v2542_v12 = vadd.f32 %v2541_v62, %v2540_v46 }
 0x882   : > { %v2574_v56 = vsel %vm1227_vm7, %v2564_v42, 0.0 }
 0x883   : > { %v2575_v14 = vadd.f32 %v2574_v56, %v2573_v63  ;;  %v8909_v56 = vpop.permute.xlu0 %2863 }
 0x887   : > { %v8829_v23 = vpop.f32.mrf.mxu3 }
 0x888   : > { %v2565_v29 = vmul.f32 %v8829_v23, %v8829_v23  ;;  %v2543_v51 = vsel %vm1227_vm7, %v8829_v23, 0.0 }
 0x889   : > { %v2544_v47 = vadd.f32 %v2543_v51, %v2542_v12  ;;  %v2527_v51 = vld [vmem:[%s11405_s11 + $0x38] sm:$0xff]  ;;  %v2534_v12 = vld [vmem:[%s11404_s18 + $0x30] sm:$0xff] }
 0x88a   : > { %v2576_v20 = vsel %vm1227_vm7, %v2565_v29, 0.0  ;;  %v8899_v29 = vpop.permute.xlu2 %2655 }
 0x88b   : > { %v2577_v30 = vadd.f32 %v2576_v20, %v2575_v14 }
 0x88f   : > { %v8832_v25 = vpop.f32.mrf.mxu3 }
 0x890   : > { %v2566_v61 = vmul.f32 %v8832_v25, %v8832_v25  ;;  %v2545_v1 = vsel %vm1227_vm7, %v8832_v25, 0.0 }
 0x891   : > { %v2546_v31 = vadd.f32 %v2545_v1, %v2544_v47 }
 0x892   : > { %v2578_v37 = vsel %vm1227_vm7, %v2566_v61, 0.0  ;;  %v8903_v45 = vpop.permute.xlu2 %2688  ;;  %v8915_v61 = vpop.permute.xlu0 %2883 }
 0x893   : > { %v2579_v32 = vadd.f32 %v2578_v37, %v2577_v30 }
 0x897   : > { %v8856_v50 = vpop.f32.mrf.mxu3 }
 0x898   : > { %v2567_v48 = vmul.f32 %v8856_v50, %v8856_v50  ;;  %v2547_v59 = vsel %vm1227_vm7, %v8856_v50, 0.0 }
 0x899   : > { %v2548_v35 = vadd.f32 %v2547_v59, %v2546_v31  ;;  %v8933_v59 = vpop.permute.xlu1 %2630 }
 0x89a   : > { %v2580_v16 = vsel %vm1227_vm7, %v2567_v48, 0.0  ;;  %v8907_v46 = vpop.permute.xlu2 %2703 }
 0x89b   : > { %v2581_v36 = vadd.f32 %v2580_v16, %v2579_v32 }
 0x89f   : > { %v8873_v40 = vpop.f32.mrf.mxu3 }
 0x8a0   : > { %v2549_v41 = vsel %vm1227_vm7, %v8873_v40, 0.0  ;;  %v2568_v42 = vmul.f32 %v8873_v40, %v8873_v40 }
 0x8a1   : > { %v2550_v4 = vadd.f32 %v2549_v41, %v2548_v35  ;;  %v2791_v41 = vld [vmem:[%s11439_s1 + $0x8] sm:$0xff] }
 0x8a2   : > { %v2582_v44 = vsel %vm1227_vm7, %v2568_v42, 0.0 }
 0x8a3   : > { %2551 = vadd.xlane.f32.xlu2 %v2550_v4  ;;  %v2583_v62 = vadd.f32 %v2582_v44, %v2581_v36  ;;  %v8938_v4 = vpop.permute.xlu1 %2635 }
 0x8a5   : > { %2584 = vadd.xlane.f32.xlu0 %v2583_v62 }
 0x8ab   : > { %v2641_v36 = vpop.permute.xlu1 %2640 }
 0x8b9   : > { %3031 = vperm.xlu0 %7522, %v8826_v21  }
 0x8bb   : > { %2871 = vperm.xlu2 %7516, %v8826_v21  }
 0x8c1   : > { %3051 = vperm.xlu0 %7522, %v8744_v52  }
 0x8c3   : > { %2879 = vperm.xlu2 %7516, %v8739_v53  }
 0x8c9   : > { %7523 = vset.pattern.permute.xlu0 %v11335_v7 }
 0x8ca   : > { %3103 = vperm.xlu0 %7523, %v8754_v5  }
 0x8cb   : > { %2891 = vperm.xlu2 %7516, %v8744_v52  }
 0x8d2   : > { %3123 = vperm.xlu0 %7523, %v8802_v9  }
 0x8d3   : > { %7517 = vset.pattern.permute.xlu2 %v11339_v6 }
 0x8d4   : > { %2943 = vperm.xlu2 %7517, %v8754_v5   ;;  %v8912_v5 = vpop.permute.xlu2 %2813 }
 0x8da   : > { %7526 = vset.pattern.permute.xlu0 %v11333_v3 }
 0x8db   : > { %2665 = vperm.xlu0 %7526, %v2527_v51   ;;  %v2790_v51 = vld [vmem:[%s11439_s1] sm:$0xff] }
 0x8dc   : > { %2955 = vperm.xlu2 %7517, %v8768_v58   ;;  %v2531_v58 = vld [vmem:[%s11404_s18 + $0x18] sm:$0xff]  ;;  %v8919_v63 = vpop.permute.xlu2 %2828 }
 0x8e3   : > { %2693 = vperm.xlu0 %7526, %v2531_v58  }
 0x8e4   : > { %2963 = vperm.xlu2 %7517, %v8802_v9   ;;  %v8926_v20 = vpop.permute.xlu2 %2843 }
 0x8eb   : > { %2708 = vperm.xlu0 %7526, %v2534_v12   ;;  %v2797_v12 = vld [vmem:[%s11439_s1 + $0x38] sm:$0xff] }
 0x8ec   : > { %7521 = vset.pattern.permute.xlu2 %v11337_v8  ;;  %3219 = vperm.xlu1 %7528, %v2797_v12  }
 0x8ed   : > { %3027 = vperm.xlu2 %7521, %v8734_v49   ;;  %v8922_v49 = vpop.permute.xlu0 %2947 }
 0x8f3   : > { %2818 = vperm.xlu0 %7526, %v8826_v21  }
 0x8f5   : > { %3039 = vperm.xlu2 %7521, %v8739_v53   ;;  %v8929_v1 = vpop.permute.xlu0 %2967 }
 0x8fb   : > { %2833 = vperm.xlu0 %7526, %v8802_v9   ;;  %v8940_v9 = vpop.permute.xlu1 %2645 }
 0x8fd   : > { %3047 = vperm.xlu2 %7521, %v8772_v13  }
 0x903   : > { %3189 = vperm.xlu0 %7526, %v2791_v41   ;;  %v8942_v44 = vpop.permute.xlu1 %2650 }
 0x905   : > { %7525 = vset.pattern.permute.xlu2 %v11335_v7 }
 0x906   : > { %3111 = vperm.xlu2 %7525, %v8826_v21  }
 0x90b   : > { %v8944_v62 = vpop.permute.xlu1 %2660 }
 0x90e   : > { %3119 = vperm.xlu2 %7525, %v8739_v53  }
 0x913   : > { %v2679_v58 = vpop.permute.xlu1 %2678 }
 0x916   : > { %v2552_v13 = vpop.xlane.xlu2 %2551  ;;  %3131 = vperm.xlu2 %7525, %v8744_v52  }
 0x917   : > { %v2553_v48 = vrot.slane %v2552_v13, 4 }
 0x918   : > { %v2585_v14 = vpop.xlane.xlu0 %2584 }
 0x919   : > { %v2554_v47 = vadd.f32 %v2553_v48, %v2552_v13  ;;  %v2586_v37 = vrot.slane %v2585_v14, 4  ;;  %v2796_v13 = vld [vmem:[%s11439_s1 + $0x30] sm:$0xff] }
 0x91b   : > { %v2587_v30 = vadd.f32 %v2586_v37, %v2585_v14  ;;  %v2555_v31 = vrot.slane %v2554_v47, 2  ;;  %v2684_v14 = vpop.permute.xlu1 %2683 }
 0x91d   : > { %v2556_v16 = vadd.f32 %v2555_v31, %v2554_v47  ;;  %v2588_v53 = vrot.slane %v2587_v30, 2 }
 0x91e   : > { %7527 = vset.pattern.permute.xlu2 %v11333_v3 }
 0x91f   : > { %v2557_v32 = vrot.slane %v2556_v16, 1  ;;  %v2589_v21 = vadd.f32 %v2588_v53, %v2587_v30  ;;  %3184 = vperm.xlu2 %7527, %v2790_v51  }
 0x921   : > { %v2558_v35 = vadd.f32 %v2557_v32, %v2556_v16  ;;  %v2590_v52 = vrot.slane %v2589_v21, 1 }
 0x923   : > { %7288 = vpush %v2558_v35  ;;  %v2591_v42 = vadd.f32 %v2590_v52, %v2589_v21  ;;  %v2699_v31 = vpop.permute.xlu1 %2698  ;;  %v8954_v52 = vpop.permute.xlu2 %2871 }
 0x925   : > { %7290 = vpush %v2591_v42 }
 0x927   : > { %3214 = vperm.xlu2 %7527, %v2796_v13  }
 0x92b   : > { %v2714_v35 = vpop.permute.xlu1 %2713  ;;  %v8956_v41 = vpop.permute.xlu0 %3031 }
 0x92c   : > { %v8960_v51 = vpop.permute.xlu2 %2879 }
 0x933   : > { %v8958_v42 = vpop.permute.xlu1 %2808  ;;  %v8962_v12 = vpop.permute.xlu0 %3051 }
 0x93b   : > { %v8964_v13 = vpop.permute.xlu1 %2823 }
 0x954   : > { %s7289_s21 = spop %7288 }
 0x955   : > { %s8946_s13 = smul.f32 0.0078125, %s7289_s21  ;;  %s11448_s21 = sld [smem:[#allocation34_spill]] }
 0x956   : > { %s7291_s17 = spop %7290 }
 0x957   : > { %s2594_s9 = smul.f32 %s8946_s13, %s8946_s13 }
 0x958   : > { %s2593_s22 = smul.f32 0.0078125, %s7291_s17  ;;  %s11447_s17 = sld [smem:[#allocation33_spill]] }
 0x95a   : > { %s2595_s3 = ssub.f32 %s2593_s22, %s2594_s9  ;;  %s11444_s22 = smov 126  }
 0x95b   : > { %s11445_s9 = smov 125  }
 0x95c   : > { %s2596_s8 = smax.f32 %s11440_s5, %s2595_s3 }
 0x95d   : > { %s2606_s11 = sadd.f32 1e-08, %s2596_s8  ;;  %s11441_s8 = smov 2  }
 0x95f   : > { %v2607_v48 = vstv %s2606_s11  ;;  %s11443_s11 = smov 127  }
 0x960   : > { %7650 = vrsqrt.f32 %v2607_v48  ;;  %vm2614_vm6 = vweird.f32 %v2607_v48 }
 0x966   : > { %v7651_v47 = vpop.eup %7650 }
 0x967   : > { %v2609_v37 = vmul.f32 %v7651_v47, %v2607_v48  ;;  %vm2615_vm5 = vweird.f32 %v7651_v47  ;;  %v8968_v48 = vpop.permute.xlu0 %3103 }
 0x968   : > { %vm2616_vm8 = vmor %vm2614_vm6, %vm2615_vm5  ;;  %vm2773_vm5 = vcmask 31760   ;;  %vm3242_vm6 = vcmask 523264  }
 0x969   : > { %v2610_v30 = vmul.f32 %v7651_v47, %v2609_v37  ;;  %v8966_v37 = vpop.permute.xlu2 %2891 }
 0x96b   : > { %v2611_v16 = vmul.f32 0.5, %v2610_v30  ;;  %v8970_v30 = vpop.permute.xlu1 %2838 }
 0x96d   : > { %v2612_v53 = vsub.f32 1.5, %v2611_v16 }
 0x96f   : > { %v2613_v32 = vmul.f32 %v7651_v47, %v2612_v53  ;;  %v8974_v16 = vpop.permute.xlu0 %3123 }
 0x971   : > { %v2617_v21 = vsel %vm2616_vm8, %v7651_v47, %v2613_v32  ;;  %v8972_v47 = vpop.permute.xlu2 %2943  ;;  %v2597_v32 = vstv %s8946_s13  ;;  %s11446_s13 = smov 124  }
 0x972   : > { %7292 = vpush %v2617_v21  ;;  %v2600_v3 = vsub.f32 %v8821_v18, %v2597_v32  ;;  %v2599_v7 = vsub.f32 %v8819_v17, %v2597_v32  ;;  %v2598_v8 = vsub.f32 %v8817_v60, %v2597_v32  ;;  %v2603_v11 = vsub.f32 %v8832_v25, %v2597_v32 }
 0x973   : > { %v8976_v53 = vpop.permute.xlu1 %2867  ;;  %v2602_v18 = vsub.f32 %v8829_v23, %v2597_v32  ;;  %v2601_v17 = vsub.f32 %v8823_v19, %v2597_v32 }
 0x977   : > { %v2666_v2 = vpop.permute.xlu0 %2665 }
 0x979   : > { %v8979_v21 = vpop.permute.xlu2 %2955 }
 0x97b   : > { %v8984_v43 = vpop.permute.xlu1 %2875 }
 0x97f   : > { %v2694_v19 = vpop.permute.xlu0 %2693 }
 0x9a3   : > { %s7293_s3 = spop %7292 }
 0x9a4   : > { %v2619_v6 = vstv %s7293_s3  ;;  %s11449_s3 = sld [smem:[#allocation35_spill]] }
 0x9a5   : > { %v2622_v55 = vmul.f32 %v2619_v6, %v2600_v3  ;;  %v2621_v15 = vmul.f32 %v2619_v6, %v2599_v7  ;;  %v2620_v33 = vmul.f32 %v2619_v6, %v2598_v8  ;;  %v2625_v57 = vmul.f32 %v2619_v6, %v2603_v11 }
 0x9a6   : > { %v2624_v7 = vmul.f32 %v2619_v6, %v2602_v18  ;;  %v2623_v8 = vmul.f32 %v2619_v6, %v2601_v17 }
 0x9a7   : > { %v2670_v38 = vmul.f32 %v2641_v36, %v2622_v55  ;;  %v2669_v26 = vmul.f32 %v8938_v4, %v2621_v15  ;;  %v2668_v28 = vmul.f32 %v8933_v59, %v2620_v33  ;;  %v8995_v55 = vpop.permute.xlu2 %2963  ;;  %v2673_v15 = vmul.f32 %v8899_v29, %v2625_v57  ;;  %v2709_v4 = vpop.permute.xlu0 %2708 }
 0x9a8   : > { %v2672_v11 = vmul.f32 %v8942_v44, %v2624_v7  ;;  %v2671_v33 = vmul.f32 %v8940_v9, %v2623_v8  ;;  %v11442_v44 = vmov 0.0  }
 0x9a9   : > { %v2718_v60 = vadd.f32 %v8903_v45, %v2670_v38  ;;  %v2717_v24 = vadd.f32 %v2684_v14, %v2669_v26  ;;  %v2716_v3 = vadd.f32 %v2679_v58, %v2668_v28  ;;  %v2605_v26 = vsub.f32 %v8873_v40, %v2597_v32  ;;  %v9001_v38 = vpop.permute.xlu1 %2887  ;;  %2733 = vst.msk [vmem:[#allocation6] sm:$0xff] %vm2732_vm9, %v11442_v44 }
 0x9aa   : > { %v2604_v28 = vsub.f32 %v8856_v50, %v2597_v32  ;;  %v2721_v23 = vadd.f32 %v8907_v46, %v2673_v15  ;;  %v2719_v45 = vadd.f32 %v2694_v19, %v2671_v33  ;;  %2734 = vst.msk [vmem:[#allocation6 + $0x8] sm:$0xff] %vm2732_vm9, %v11442_v44 }
 0x9ab   : > { %2753 = vrot.lane.b32.xlu1 %v2718_v60, %s11441_s8  ;;  %2751 = vrot.lane.b32.xlu0 %v2717_v24, %s11441_s8  ;;  %v2720_v24 = vadd.f32 %v2699_v31, %v2672_v11  ;;  %v2627_v25 = vmul.f32 %v2619_v6, %v2605_v26  ;;  %2735 = vst.msk [vmem:[#allocation6 + $0x10] sm:$0xff] %vm2732_vm9, %v11442_v44 }
 0x9ac   : > { %2749 = vrot.lane.b32.xlu2 %v2716_v3, %s11441_s8  ;;  %v2626_v59 = vmul.f32 %v2619_v6, %v2604_v28  ;;  %2736 = vst.msk [vmem:[#allocation6 + $0x18] sm:$0xff] %vm2732_vm9, %v11442_v44 }
 0x9ad   : > { %v2675_v57 = vmul.f32 %v2666_v2, %v2627_v25  ;;  %2737 = vst.msk [vmem:[#allocation6 + $0x20] sm:$0xff] %vm2732_vm9, %v11442_v44 }
 0x9ae   : > { %v2674_v29 = vmul.f32 %v8944_v62, %v2626_v59  ;;  %2738 = vst.msk [vmem:[#allocation6 + $0x28] sm:$0xff] %vm2732_vm9, %v11442_v44 }
 0x9af   : > { %v9009_v40 = vpop.permute.xlu2 %3027  ;;  %v2723_v36 = vadd.f32 %v2714_v35, %v2675_v57  ;;  %2739 = vst.msk [vmem:[#allocation6 + $0x30] sm:$0xff] %vm2732_vm9, %v11442_v44  ;;  %v9049_v8 = vpop.permute.xlu0 %2818 }
 0x9b0   : > { %v2722_v46 = vadd.f32 %v2709_v4, %v2674_v29  ;;  %2740 = vst.msk [vmem:[#allocation6 + $0x38] sm:$0xff] %vm2732_vm9, %v11442_v44 }
 0x9b1   : > { %v9011_v50 = vpop.permute.xlu1 %2951 }
 0x9b3   : > { %2759 = vrot.lane.b32.xlu1 %v2721_v23, %s11441_s8  ;;  %2757 = vrot.lane.b32.xlu0 %v2720_v24, %s11441_s8 }
 0x9b4   : > { %2755 = vrot.lane.b32.xlu2 %v2719_v45, %s11441_s8 }
 0x9b7   : > { %v9015_v6 = vpop.permute.xlu2 %3039  ;;  %v9054_v33 = vpop.permute.xlu0 %2833 }
 0x9b9   : > { %v9017_v9 = vpop.permute.xlu1 %2959 }
 0x9bb   : > { %2763 = vrot.lane.b32.xlu0 %v2723_v36, %s11441_s8 }
 0x9bc   : > { %2761 = vrot.lane.b32.xlu2 %v2722_v46, %s11441_s8 }
 0x9bf   : > { %v9024_v2 = vpop.permute.xlu2 %3047  ;;  %v9064_v24 = vpop.permute.xlu0 %3189 }
 0x9c1   : > { %v2972_v62 = vpop.permute.xlu1 %2971 }
 0x9c7   : > { %v9029_v58 = vpop.permute.xlu2 %3111 }
 0x9c9   : > { %v9031_v14 = vpop.permute.xlu1 %3023 }
 0x9cf   : > { %v9033_v31 = vpop.permute.xlu2 %3119 }
 0x9d1   : > { %v9035_v35 = vpop.permute.xlu1 %3035 }
 0x9d7   : > { %v9037_v32 = vpop.permute.xlu2 %3131 }
 0x9d9   : > { %v9039_v18 = vpop.permute.xlu1 %3043 }
 0x9df   : > { %v9041_v17 = vpop.permute.xlu2 %3184 }
 0x9e1   : > { %v9043_v60 = vpop.permute.xlu1 %3107 }
 0x9e7   : > { %v9045_v3 = vpop.permute.xlu2 %3214 }
 0x9e9   : > { %v9047_v7 = vpop.permute.xlu1 %3115 }
 0x9f1   : > { %v9052_v11 = vpop.permute.xlu1 %3127 }
 0x9f9   : > { %v9062_v23 = vpop.permute.xlu1 %3219 }
 0xa06   : > { %v2750_v15 = vpop.permute.xlu2 %2749 }
 0xa07   : > { %2774 = vst.msk [vmem:[#allocation6] sm:$0xff] %vm2773_vm5, %v2750_v15 }
 0xa0e   : > { %v2756_v19 = vpop.permute.xlu2 %2755  ;;  %v9056_v26 = vld [vmem:[#allocation6] sm:$0xff] }
 0xa0f   : > { %2777 = vst.msk [vmem:[#allocation6 + $0x18] sm:$0xff] %vm2773_vm5, %v2756_v19  ;;  %v2894_v28 = vmul.f32 %v8909_v56, %v9056_v26 }
 0xa11   : > { %2910 = vrot.lane.b32.xlu0 %v2894_v28, %s11443_s11 }
 0xa16   : > { %v2762_v25 = vpop.permute.xlu2 %2761  ;;  %v9066_v45 = vld [vmem:[#allocation6 + $0x18] sm:$0xff] }
 0xa17   : > { %2780 = vst.msk [vmem:[#allocation6 + $0x30] sm:$0xff] %vm2773_vm5, %v2762_v25  ;;  %v2897_v59 = vmul.f32 %v8984_v43, %v9066_v45 }
 0xa19   : > { %2916 = vrot.lane.b32.xlu0 %v2897_v59, %s11443_s11 }
 0xa1d   : > { %v2754_v57 = vpop.permute.xlu1 %2753  ;;  %v2752_v29 = vpop.permute.xlu0 %2751 }
 0xa1e   : > { %2776 = vst.msk [vmem:[#allocation6 + $0x10] sm:$0xff] %vm2773_vm5, %v2754_v57  ;;  %v9073_v56 = vld [vmem:[#allocation6 + $0x30] sm:$0xff] }
 0xa1f   : > { %2775 = vst.msk [vmem:[#allocation6 + $0x8] sm:$0xff] %vm2773_vm5, %v2752_v29  ;;  %v2900_v4 = vmul.f32 %v9001_v38, %v9073_v56 }
 0xa21   : > { %2922 = vrot.lane.b32.xlu0 %v2900_v4, %s11443_s11 }
 0xa25   : > { %v2760_v36 = vpop.permute.xlu1 %2759  ;;  %v2758_v46 = vpop.permute.xlu0 %2757  ;;  %v9079_v15 = vld [vmem:[#allocation6 + $0x10] sm:$0xff] }
 0xa26   : > { %2779 = vst.msk [vmem:[#allocation6 + $0x28] sm:$0xff] %vm2773_vm5, %v2760_v36  ;;  %v9082_v43 = vld [vmem:[#allocation6 + $0x8] sm:$0xff]  ;;  %v2896_v19 = vmul.f32 %v8954_v52, %v9079_v15 }
 0xa27   : > { %2778 = vst.msk [vmem:[#allocation6 + $0x20] sm:$0xff] %vm2773_vm5, %v2758_v46  ;;  %v2895_v28 = vmul.f32 %v8976_v53, %v9082_v43  ;;  %v2975_v38 = vmul.f32 %v8922_v49, %v9082_v43  ;;  %v2795_v46 = vld [vmem:[%s11439_s1 + $0x28] sm:$0xff] }
 0xa28   : > { %2914 = vrot.lane.b32.xlu2 %v2896_v19, %s11443_s11 }
 0xa29   : > { %2912 = vrot.lane.b32.xlu1 %v2895_v28, %s11443_s11  ;;  %2992 = vrot.lane.b32.xlu0 %v2975_v38, %s11444_s22  ;;  %v3284_v28 = vld [vmem:[%s11447_s17] sm:$0xff] }
 0xa2d   : > { %v2764_v25 = vpop.permute.xlu0 %2763  ;;  %v9094_v59 = vld [vmem:[#allocation6 + $0x28] sm:$0xff] }
 0xa2e   : > { %2781 = vst.msk [vmem:[#allocation6 + $0x38] sm:$0xff] %vm2773_vm5, %v2764_v25  ;;  %v2899_v52 = vmul.f32 %v8915_v61, %v9094_v59  ;;  %v9099_v57 = vld [vmem:[#allocation6 + $0x20] sm:$0xff]  ;;  %v2974_v61 = vmul.f32 %v8972_v47, %v9056_v26  ;;  %v2980_v47 = vmul.f32 %v8929_v1, %v9073_v56  ;;  %v3134_v1 = vmul.f32 %v8968_v48, %v9056_v26  ;;  %v3285_v25 = vld [vmem:[%s11447_s17 + $0x8] sm:$0xff] }
 0xa2f   : > { %v2898_v53 = vmul.f32 %v8960_v51, %v9099_v57  ;;  %v2978_v49 = vmul.f32 %v9017_v9, %v9099_v57  ;;  %v2977_v51 = vmul.f32 %v8979_v21, %v9066_v45  ;;  %v2976_v9 = vmul.f32 %v9011_v50, %v9079_v15 }
 0xa30   : > { %2920 = vrot.lane.b32.xlu2 %v2899_v52, %s11443_s11  ;;  %v3059_v21 = vmul.f32 %v9039_v18, %v9094_v59  ;;  %v3054_v50 = vmul.f32 %v9031_v14, %v9056_v26  ;;  %v3057_v18 = vmul.f32 %v9035_v35, %v9066_v45  ;;  %v3060_v14 = vmul.f32 %v9024_v2, %v9073_v56 }
 0xa31   : > { %2918 = vrot.lane.b32.xlu1 %v2898_v53, %s11443_s11  ;;  %2998 = vrot.lane.b32.xlu0 %v2978_v49, %s11444_s22  ;;  %v3136_v35 = vmul.f32 %v9029_v58, %v9079_v15  ;;  %v3139_v2 = vmul.f32 %v8974_v16, %v9094_v59  ;;  %v2794_v58 = vld [vmem:[%s11439_s1 + $0x20] sm:$0xff]  ;;  %v2792_v16 = vld [vmem:[%s11439_s1 + $0x10] sm:$0xff]  ;;  %v2850_v39 = vmul.f32 %v8919_v63, %v9099_v57 }
 0xa32   : > { %v3286_v49 = vld [vmem:[%s11447_s17 + $0x10] sm:$0xff]  ;;  %v2851_v34 = vmul.f32 %v9054_v33, %v9094_v59  ;;  %v2847_v63 = vmul.f32 %v8912_v5, %v9082_v43 }
 0xa35   : > { %v9108_v29 = vld [vmem:[#allocation6 + $0x38] sm:$0xff] }
 0xa36   : > { %v2901_v4 = vmul.f32 %v8966_v37, %v9108_v29  ;;  %v2981_v36 = vmul.f32 %v2972_v62, %v9108_v29  ;;  %v3056_v37 = vmul.f32 %v8956_v41, %v9079_v15  ;;  %v2979_v62 = vmul.f32 %v8995_v55, %v9094_v59 }
 0xa37   : > { %v3055_v41 = vmul.f32 %v9009_v40, %v9082_v43  ;;  %v3058_v55 = vmul.f32 %v9015_v6, %v9099_v57  ;;  %v3137_v40 = vmul.f32 %v9047_v7, %v9066_v45  ;;  %v3061_v48 = vmul.f32 %v8962_v12, %v9108_v29  ;;  %v2793_v7 = vld [vmem:[%s11439_s1 + $0x18] sm:$0xff]  ;;  %s11451_s1 = sld [smem:[#allocation32_spill]] }
 0xa38   : > { %2990 = vrot.lane.b32.xlu2 %v2974_v61, %s11444_s22  ;;  %v3140_v6 = vmul.f32 %v9052_v11, %v9073_v56  ;;  %v3135_v12 = vmul.f32 %v9043_v60, %v9082_v43  ;;  %v3138_v11 = vmul.f32 %v9033_v31, %v9099_v57  ;;  %v3141_v60 = vmul.f32 %v9037_v32, %v9108_v29 }
 0xa39   : > { %2924 = vrot.lane.b32.xlu1 %v2901_v4, %s11443_s11  ;;  %3004 = vrot.lane.b32.xlu0 %v2981_v36, %s11444_s22 }
 0xa40   : > { %2996 = vrot.lane.b32.xlu2 %v2977_v51, %s11444_s22  ;;  %v3287_v51 = vld [vmem:[%s11447_s17 + $0x18] sm:$0xff] }
 0xa41   : > { %2994 = vrot.lane.b32.xlu1 %v2976_v9, %s11444_s22  ;;  %3074 = vrot.lane.b32.xlu0 %v3056_v37, %s11445_s9 }
 0xa48   : > { %3002 = vrot.lane.b32.xlu2 %v2980_v47, %s11444_s22 }
 0xa49   : > { %3000 = vrot.lane.b32.xlu1 %v2979_v62, %s11444_s22  ;;  %3080 = vrot.lane.b32.xlu0 %v3059_v21, %s11445_s9  ;;  %v3288_v62 = vld [vmem:[%s11448_s21] sm:$0xff] }
 0xa50   : > { %3072 = vrot.lane.b32.xlu2 %v3055_v41, %s11445_s9 }
 0xa51   : > { %3070 = vrot.lane.b32.xlu1 %v3054_v50, %s11445_s9  ;;  %3150 = vrot.lane.b32.xlu0 %v3134_v1, %s11446_s13  ;;  %v3291_v50 = vld [vmem:[%s11448_s21 + $0x18] sm:$0xff] }
 0xa58   : > { %3078 = vrot.lane.b32.xlu2 %v3058_v55, %s11445_s9 }
 0xa59   : > { %3076 = vrot.lane.b32.xlu1 %v3057_v18, %s11445_s9  ;;  %3156 = vrot.lane.b32.xlu0 %v3137_v40, %s11446_s13  ;;  %v9201_v18 = vld [vmem:[%s11449_s3 + $0xc0] sm:$0xff] }
 0xa60   : > { %3084 = vrot.lane.b32.xlu2 %v3061_v48, %s11445_s9 }
 0xa61   : > { %3082 = vrot.lane.b32.xlu1 %v3060_v14, %s11445_s9  ;;  %3162 = vrot.lane.b32.xlu0 %v3140_v6, %s11446_s13  ;;  %v9211_v6 = vld [vmem:[%s11449_s3 + $0xd8] sm:$0xff] }
 0xa68   : > { %3154 = vrot.lane.b32.xlu2 %v3136_v35, %s11446_s13 }
 0xa69   : > { %3152 = vrot.lane.b32.xlu1 %v3135_v12, %s11446_s13  ;;  %3199 = vperm.xlu0 %7526, %v2793_v7  }
 0xa70   : > { %3160 = vrot.lane.b32.xlu2 %v3139_v2, %s11446_s13  ;;  %v11450_v2 = vmov 1  }
 0xa71   : > { %3158 = vrot.lane.b32.xlu1 %v3138_v11, %s11446_s13 }
 0xa78   : > { %3204 = vperm.xlu2 %7527, %v2794_v58  }
 0xa79   : > { %3164 = vrot.lane.b32.xlu1 %v3141_v60, %s11446_s13 }
 0xa81   : > { %3209 = vperm.xlu1 %7528, %v2795_v46  }
 0xa82   : > { %v9184_v31 = vpop.permute.xlu2 %2914 }
 0xa83   : > { %v9181_v19 = vpop.permute.xlu0 %2910 }
 0xa89   : > { %3194 = vperm.xlu1 %7528, %v2792_v16  }
 0xa8a   : > { %v2921_v52 = vpop.permute.xlu2 %2920 }
 0xa8b   : > { %v2917_v38 = vpop.permute.xlu0 %2916 }
 0xa91   : > { %3358 = vperm.xlu1 %7528, %v3284_v28  }
 0xa92   : > { %v9191_v4 = vpop.permute.xlu2 %2990 }
 0xa93   : > { %v2923_v32 = vpop.permute.xlu0 %2922 }
 0xa99   : > { %3363 = vperm.xlu1 %7528, %v3285_v25   ;;  %v2852_v25 = vmul.f32 %v8970_v30, %v9073_v56  ;;  %v2849_v30 = vmul.f32 %v8964_v13, %v9066_v45  ;;  %v2939_v56 = vadd.f32 %v2921_v52, %v2851_v34  ;;  %v2846_v13 = vmul.f32 %v8958_v42, %v9056_v26 }
 0xa9a   : > { %v2997_v37 = vpop.permute.xlu2 %2996 }
 0xa9b   : > { %v9188_v53 = vpop.permute.xlu1 %2912  ;;  %v9193_v61 = vpop.permute.xlu0 %2992  ;;  %v2934_v5 = vadd.f32 %v9181_v19, %v2846_v13 }
 0xa9c   : > { %v2935_v34 = vadd.f32 %v9188_v53, %v2847_v63 }
 0xa9e   : > { %v3015_v42 = vadd.f32 %v9193_v61, %v2935_v34  ;;  %v3290_v34 = vld [vmem:[%s11448_s21 + $0x10] sm:$0xff] }
 0xaa1   : > { %3368 = vperm.xlu1 %7528, %v3286_v49   ;;  %v2940_v49 = vadd.f32 %v2923_v32, %v2852_v25 }
 0xaa2   : > { %v3003_v41 = vpop.permute.xlu2 %3002 }
 0xaa3   : > { %v2919_v36 = vpop.permute.xlu1 %2918  ;;  %v2999_v47 = vpop.permute.xlu0 %2998 }
 0xaa4   : > { %v2938_v27 = vadd.f32 %v2919_v36, %v2850_v39 }
 0xaa9   : > { %3373 = vperm.xlu1 %7528, %v3287_v51   ;;  %v2853_v51 = vmul.f32 %v8926_v20, %v9108_v29 }
 0xaaa   : > { %v9203_v40 = vpop.permute.xlu2 %3072 }
 0xaab   : > { %v2925_v9 = vpop.permute.xlu1 %2924  ;;  %v3005_v1 = vpop.permute.xlu0 %3004  ;;  %v3095_v19 = vadd.f32 %v9203_v40, %v3015_v42 }
 0xaac   : > { %v2941_v44 = vadd.f32 %v2925_v9, %v2853_v51  ;;  %v3018_v9 = vadd.f32 %v2999_v47, %v2938_v27 }
 0xaae   : > { %v3021_v54 = vadd.f32 %v3005_v1, %v2941_v44 }
 0xab1   : > { %3382 = vperm.xlu1 %7528, %v3288_v62  }
 0xab2   : > { %v3079_v35 = vpop.permute.xlu2 %3078 }
 0xab3   : > { %v9197_v21 = vpop.permute.xlu1 %2994  ;;  %v9205_v48 = vpop.permute.xlu0 %3074  ;;  %v3098_v33 = vadd.f32 %v3079_v35, %v3018_v9 }
 0xab9   : > { %3397 = vperm.xlu1 %7528, %v3291_v50   ;;  %v3020_v50 = vadd.f32 %v3003_v41, %v2940_v49  ;;  %v2937_v41 = vadd.f32 %v2917_v38, %v2849_v30  ;;  %v3014_v38 = vadd.f32 %v9191_v4, %v2934_v5  ;;  %v11454_v5 = vmov 4  }
 0xaba   : > { %v3085_v58 = vpop.permute.xlu2 %3084 }
 0xabb   : > { %v3001_v55 = vpop.permute.xlu1 %3000  ;;  %v3081_v7 = vpop.permute.xlu0 %3080  ;;  %v3101_v32 = vadd.f32 %v3085_v58, %v3021_v54  ;;  %v3017_v57 = vadd.f32 %v2997_v37, %v2937_v41  ;;  %v3238_v58 = vld [vmem:[%s11451_s1] sm:$0xff] }
 0xabc   : > { %v3019_v25 = vadd.f32 %v3001_v55, %v2939_v56 }
 0xabe   : > { %v3099_v27 = vadd.f32 %v3081_v7, %v3019_v25 }
 0xac1   : > { %3525 = vperm.xlu1 %7528, %v9201_v18  }
 0xac2   : > { %v3155_v16 = vpop.permute.xlu2 %3154 }
 0xac3   : > { %v9208_v14 = vpop.permute.xlu1 %3070  ;;  %v3151_v60 = vpop.permute.xlu0 %3150 }
 0xac9   : > { %3540 = vperm.xlu1 %7528, %v9211_v6  }
 0xaca   : > { %v3161_v0 = vpop.permute.xlu2 %3160 }
 0xacb   : > { %v3077_v12 = vpop.permute.xlu1 %3076  ;;  %v3157_v28 = vpop.permute.xlu0 %3156  ;;  %v3179_v59 = vadd.f32 %v3161_v0, %v3099_v27  ;;  %v3289_v27 = vld [vmem:[%s11448_s21 + $0x8] sm:$0xff] }
 0xacc   : > { %v3097_v54 = vadd.f32 %v3077_v12, %v3017_v57 }
 0xace   : > { %v3177_v52 = vadd.f32 %v3157_v28, %v3097_v54  ;;  %v9279_v54 = vld [vmem:[%s11449_s3 + $0xc8] sm:$0xff] }
 0xad1   : > { %7530 = vset.pattern.permute.xlu1 %v11450_v2 }
 0xad3   : > { %v3083_v11 = vpop.permute.xlu1 %3082  ;;  %v3163_v10 = vpop.permute.xlu0 %3162 }
 0xad4   : > { %v3100_v22 = vadd.f32 %v3083_v11, %v3020_v50 }
 0xad6   : > { %v3180_v20 = vadd.f32 %v3163_v10, %v3100_v22  ;;  %v2848_v22 = vmul.f32 %v9049_v8, %v9079_v15 }
 0xad8   : > { %v3228_v39 = vadd.f32 %v9045_v3, %v3180_v20  ;;  %v2936_v43 = vadd.f32 %v9184_v31, %v2848_v22  ;;  %v3205_v3 = vpop.permute.xlu2 %3204  ;;  %v3094_v31 = vadd.f32 %v9208_v14, %v3014_v38 }
 0xada   : > { %v3016_v15 = vadd.f32 %v9197_v21, %v2936_v43  ;;  %v3174_v61 = vadd.f32 %v3151_v60, %v3094_v31  ;;  %v3239_v60 = vld [vmem:[%s11451_s1 + $0x8] sm:$0xff]  ;;  %v9297_v43 = vld [vmem:[%s11449_s3 + $0xd0] sm:$0xff] }
 0xadb   : > { %v3153_v46 = vpop.permute.xlu1 %3152  ;;  %v3200_v26 = vpop.permute.xlu0 %3199  ;;  %3560 = vperm.xlu1 %7530, %v9297_v43  }
 0xadc   : > { %v3225_v0 = vadd.f32 %v3200_v26, %v3177_v52  ;;  %v3096_v47 = vadd.f32 %v9205_v48, %v3016_v15  ;;  %v3175_v1 = vadd.f32 %v3153_v46, %v3095_v19  ;;  %v3222_v14 = vadd.f32 %v9041_v17, %v3174_v61  ;;  %v3240_v46 = vld [vmem:[%s11451_s1 + $0x10] sm:$0xff] }
 0xade   : > { %v3176_v55 = vadd.f32 %v3155_v16, %v3096_v47  ;;  %v3233_v35 = vmax.f32 %v3225_v0, 0.0  ;;  %v3223_v7 = vadd.f32 %v9064_v24, %v3175_v1  ;;  %v3230_v11 = vmax.f32 %v3222_v14, 0.0  ;;  %v3241_v16 = vld [vmem:[%s11451_s1 + $0x18] sm:$0xff]  ;;  %s11456_s1 = sld [smem:[#allocation36_spill]] }
 0xae0   : > { %v3231_v48 = vmax.f32 %v3223_v7, 0.0 }
 0xae3   : > { %v3159_v62 = vpop.permute.xlu1 %3158 }
 0xae4   : > { %v3178_v10 = vadd.f32 %v3159_v62, %v3098_v33  ;;  %v7155_v0 = vld [vmem:[%s11456_s1 + $0xc0] sm:$0xff]  ;;  %v7157_v47 = vld [vmem:[%s11456_s1 + $0xd0] sm:$0xff] }
 0xae6   : > { %v3226_v53 = vadd.f32 %v3205_v3, %v3178_v10  ;;  %v11452_v10 = vmov 2  }
 0xae7   : > { %7533 = vset.pattern.permute.xlu1 %v11452_v10 }
 0xae8   : > { %v3234_v4 = vmax.f32 %v3226_v53, 0.0  ;;  %3600 = vperm.xlu1 %7533, %v9297_v43  }
 0xaeb   : > { %v3165_v29 = vpop.permute.xlu1 %3164 }
 0xaec   : > { %v3181_v49 = vadd.f32 %v3165_v29, %v3101_v32 }
 0xaee   : > { %v3229_v44 = vadd.f32 %v9062_v23, %v3181_v49  ;;  %v3236_v23 = vmax.f32 %v3228_v39, 0.0 }
 0xaf0   : > { %v3237_v45 = vmax.f32 %v3229_v44, 0.0 }
 0xaf2   : > { %3263 = vmatpush.msra.mxu0 %v3237_v45  ;;  %v11453_v45 = vmov 3  }
 0xaf3   : > { %v3210_v8 = vpop.permute.xlu1 %3209  ;;  %7535 = vset.pattern.permute.xlu1 %v11453_v45 }
 0xaf4   : > { %v3227_v36 = vadd.f32 %v3210_v8, %v3179_v59  ;;  %3264 = vmatpush.msra.mxu0 %v3236_v23  ;;  %v11455_v59 = vmov 0   ;;  %3640 = vperm.xlu1 %7535, %v9297_v43  }
 0xaf6   : > { %v3235_v37 = vmax.f32 %v3227_v36, 0.0 }
 0xaf8   : > { %3265 = vmatpush.msra.mxu0 %v3235_v37  ;;  %v7156_v37 = vld [vmem:[%s11456_s1 + $0xc8] sm:$0xff] }
 0xafa   : > { %3266 = vmatpush.msra.mxu0 %v3234_v4  ;;  %v7158_v4 = vld [vmem:[%s11456_s1 + $0xd8] sm:$0xff] }
 0xafb   : > { %v3195_v21 = vpop.permute.xlu1 %3194 }
 0xafc   : > { %v3224_v40 = vadd.f32 %v3195_v21, %v3176_v55  ;;  %3267 = vmatpush.msra.mxu0 %v3233_v35  ;;  %7537 = vset.pattern.permute.xlu1 %v11454_v5  ;;  %v7159_v35 = vld [vmem:[%s11457_s15 + $0xc0] sm:$0xff] }
 0xafd   : > { %3680 = vperm.xlu1 %7537, %v9297_v43  }
 0xafe   : > { %v3232_v12 = vmax.f32 %v3224_v40, 0.0 }
 0xb00   : > { %3268 = vmatpush.msra.mxu0 %v3232_v12  ;;  %v7162_v12 = vld [vmem:[%s11457_s15 + $0xd8] sm:$0xff] }
 0xb02   : > { %3269 = vmatpush.msra.mxu0 %v3231_v48 }
 0xb04   : > { %3270 = vmatpush.msra.mxu0 %v3230_v11  ;;  %v9320_v11 = vld [vmem:[%s11449_s3 + $0xe8] sm:$0xff] }
 0xb05   : > { %7141 = vmatmul.msk.f32.vlgmr.msra.gmra.mxu0 %vm3242_vm6, %v3238_v58  ;;  %7538 = vset.pattern.permute.xlu1 %v11455_v59  ;;  %v3359_v58 = vpop.permute.xlu1 %3358 }
 0xb06   : > { %3787 = vperm.xlu1 %7538, %v7155_v0  }
 0xb0d   : > { %7142 = vmatmul.msk.f32.gmra.mxu0 %vm3242_vm6, %v3239_v60  ;;  %v3364_v60 = vpop.permute.xlu1 %3363 }
 0xb0e   : > { %3792 = vperm.xlu1 %7538, %v7156_v37   ;;  %v11464_v37 = vld [vmem:[#allocation53_spill] sm:$0xff] }
 0xb15   : > { %7143 = vmatmul.msk.f32.gmra.mxu0 %vm3242_vm6, %v3240_v46 }
 0xb16   : > { %3797 = vperm.xlu1 %7538, %v7157_v47  }
 0xb1d   : > { %7144 = vmatmul.msk.f32.gmra.mxu0 %vm3242_vm6, %v3241_v16  ;;  %vm3417_vm6 = vcmask 1040384  }
 0xb1e   : > { %3802 = vperm.xlu1 %7538, %v7158_v4  }
 0xb26   : > { %3811 = vperm.xlu1 %7538, %v7159_v35  }
 0xb2e   : > { %3826 = vperm.xlu1 %7538, %v7162_v12  }
 0xb36   : > { %3877 = vperm.xlu1 %7538, %v9320_v11  }
 0xb3e   : > { %7540 = vset.pattern.permute.xlu1 %v11450_v2 }
 0xb82   : > { %v9248_v24 = vpop.f32.mrf.mxu0 }
 0xb83   : > { %v3309_v62 = vmul.f32 %v9248_v24, %v9248_v24  ;;  %v3292_v56 = vsel %vm1227_vm7, %v9248_v24, 0.0 }
 0xb85   : > { %v3313_v41 = vsel %vm1227_vm7, %v3309_v62, 0.0 }
 0xb8a   : > { %v9250_v28 = vpop.f32.mrf.mxu0 }
 0xb8b   : > { %v3310_v51 = vmul.f32 %v9250_v28, %v9250_v28  ;;  %v3293_v50 = vsel %vm1227_vm7, %v9250_v28, 0.0 }
 0xb8c   : > { %v3294_v29 = vadd.f32 %v3293_v50, %v3292_v56  ;;  %v3369_v56 = vpop.permute.xlu1 %3368 }
 0xb8d   : > { %v3314_v32 = vsel %vm1227_vm7, %v3310_v51, 0.0 }
 0xb8e   : > { %v3315_v25 = vadd.f32 %v3314_v32, %v3313_v41 }
 0xb92   : > { %v9252_v17 = vpop.f32.mrf.mxu0 }
 0xb93   : > { %v3311_v30 = vmul.f32 %v9252_v17, %v9252_v17  ;;  %v3295_v20 = vsel %vm1227_vm7, %v9252_v17, 0.0 }
 0xb94   : > { %v3296_v49 = vadd.f32 %v3295_v20, %v3294_v29  ;;  %v3374_v32 = vpop.permute.xlu1 %3373  ;;  %v7163_v29 = vld [vmem:[%s11449_s3 + $0xe0] sm:$0xff] }
 0xb95   : > { %v3316_v9 = vsel %vm1227_vm7, %v3311_v30, 0.0  ;;  %3899 = vperm.xlu1 %7540, %v7163_v29  }
 0xb96   : > { %v3317_v44 = vadd.f32 %v3316_v9, %v3315_v25 }
 0xb9a   : > { %v9269_v63 = vpop.f32.mrf.mxu0 }
 0xb9b   : > { %v3297_v57 = vsel %vm1227_vm7, %v9269_v63, 0.0  ;;  %v3312_v33 = vmul.f32 %v9269_v63, %v9269_v63 }
 0xb9c   : > { %v3298_v39 = vadd.f32 %v3297_v57, %v3296_v49 }
 0xb9d   : > { %v3318_v13 = vsel %vm1227_vm7, %v3312_v33, 0.0  ;;  %v9332_v33 = vld [vmem:[%s11449_s3 + $0xf8] sm:$0xff] }
 0xb9e   : > { %3299 = vadd.xlane.f32.xlu2 %v3298_v39  ;;  %v3319_v22 = vadd.f32 %v3318_v13, %v3317_v44  ;;  %v3383_v13 = vpop.permute.xlu1 %3382  ;;  %3911 = vperm.xlu1 %7540, %v9332_v33  }
 0xba0   : > { %3320 = vadd.xlane.f32.xlu0 %v3319_v22 }
 0xba6   : > { %7542 = vset.pattern.permute.xlu1 %v11452_v10 }
 0xba7   : > { %3939 = vperm.xlu1 %7542, %v7163_v29  }
 0xbaf   : > { %3951 = vperm.xlu1 %7542, %v9332_v33  }
 0xbb4   : > { %3392 = vperm.xlu0 %7526, %v3290_v34   ;;  %v7160_v34 = vld [vmem:[%s11457_s15 + $0xc8] sm:$0xff] }
 0xbb6   : > { %3387 = vperm.xlu2 %7527, %v3289_v27  }
 0xbb7   : > { %7545 = vset.pattern.permute.xlu1 %v11453_v45 }
 0xbb8   : > { %3979 = vperm.xlu1 %7545, %v7163_v29  }
 0xbbc   : > { %7532 = vset.pattern.permute.xlu0 %v11452_v10 }
 0xbbd   : > { %3596 = vperm.xlu0 %7532, %v9279_v54  }
 0xbbe   : > { %3530 = vperm.xlu2 %7527, %v9279_v54  }
 0xbc0   : > { %3991 = vperm.xlu1 %7545, %v9332_v33  }
 0xbc6   : > { %7529 = vset.pattern.permute.xlu2 %v11450_v2 }
 0xbc7   : > { %3552 = vperm.xlu2 %7529, %v9201_v18  }
 0xbc8   : > { %7548 = vset.pattern.permute.xlu1 %v11454_v5 }
 0xbc9   : > { %4019 = vperm.xlu1 %7548, %v7163_v29  }
 0xbcf   : > { %3564 = vperm.xlu2 %7529, %v9211_v6  }
 0xbd1   : > { %4031 = vperm.xlu1 %7548, %v9332_v33  }
 0xbd7   : > { %7531 = vset.pattern.permute.xlu2 %v11452_v10 }
 0xbd8   : > { %3592 = vperm.xlu2 %7531, %v9201_v18  }
 0xbd9   : > { %7551 = vset.pattern.permute.xlu1 %v11455_v59 }
 0xbe0   : > { %3604 = vperm.xlu2 %7531, %v9211_v6  }
 0xbe8   : > { %7534 = vset.pattern.permute.xlu2 %v11453_v45 }
 0xbe9   : > { %3632 = vperm.xlu2 %7534, %v9201_v18  }
 0xbf1   : > { %3644 = vperm.xlu2 %7534, %v9211_v6  }
 0xbf9   : > { %7536 = vset.pattern.permute.xlu2 %v11454_v5 }
 0xbfa   : > { %3672 = vperm.xlu2 %7536, %v9201_v18  }
 0xc02   : > { %3684 = vperm.xlu2 %7536, %v9211_v6  }
 0xc0a   : > { %7539 = vset.pattern.permute.xlu2 %v11455_v59 }
 0xc0b   : > { %3816 = vperm.xlu2 %7539, %v7160_v34  }
 0xc11   : > { %v3300_v3 = vpop.xlane.xlu2 %3299 }
 0xc12   : > { %v3301_v23 = vrot.slane %v3300_v3, 4 }
 0xc13   : > { %v3321_v38 = vpop.xlane.xlu0 %3320  ;;  %3872 = vperm.xlu2 %7539, %v7163_v29  }
 0xc14   : > { %v3302_v42 = vadd.f32 %v3301_v23, %v3300_v3  ;;  %v3322_v26 = vrot.slane %v3321_v38, 4  ;;  %v11461_v23 = vld [vmem:[#allocation56_spill] sm:$0xff] }
 0xc16   : > { %v3323_v8 = vadd.f32 %v3322_v26, %v3321_v38  ;;  %v3303_v18 = vrot.slane %v3302_v42, 2 }
 0xc18   : > { %v3304_v15 = vadd.f32 %v3303_v18, %v3302_v42  ;;  %v3324_v6 = vrot.slane %v3323_v8, 2  ;;  %v11462_v42 = vld [vmem:[#allocation55_spill] sm:$0xff] }
 0xc19   : > { %v3388_v22 = vpop.permute.xlu2 %3387 }
 0xc1a   : > { %v3305_v52 = vrot.slane %v3304_v15, 1  ;;  %v3325_v53 = vadd.f32 %v3324_v6, %v3323_v8 }
 0xc1c   : > { %v3306_v36 = vadd.f32 %v3305_v52, %v3304_v15  ;;  %v3326_v19 = vrot.slane %v3325_v53, 1 }
 0xc1e   : > { %7294 = vpush %v3306_v36  ;;  %v3327_v31 = vadd.f32 %v3326_v19, %v3325_v53  ;;  %v7165_v19 = vld [vmem:[%s11449_s3 + $0xf0] sm:$0xff] }
 0xc1f   : > { %3947 = vperm.xlu0 %7532, %v7165_v19   ;;  %3882 = vperm.xlu2 %7539, %v7165_v19  }
 0xc20   : > { %7296 = vpush %v3327_v31  ;;  %v11463_v31 = vld [vmem:[#allocation54_spill] sm:$0xff] }
 0xc27   : > { %7544 = vset.pattern.permute.xlu0 %v11453_v45  ;;  %7541 = vset.pattern.permute.xlu2 %v11450_v2 }
 0xc28   : > { %3903 = vperm.xlu2 %7541, %v9320_v11   ;;  %3636 = vperm.xlu0 %7544, %v9279_v54  }
 0xc30   : > { %7543 = vset.pattern.permute.xlu2 %v11452_v10  ;;  %3987 = vperm.xlu0 %7544, %v7165_v19  }
 0xc31   : > { %3943 = vperm.xlu2 %7543, %v9320_v11  }
 0xc38   : > { %7547 = vset.pattern.permute.xlu0 %v11454_v5 }
 0xc39   : > { %7546 = vset.pattern.permute.xlu2 %v11453_v45  ;;  %3676 = vperm.xlu0 %7547, %v9279_v54  }
 0xc3a   : > { %3983 = vperm.xlu2 %7546, %v9320_v11  }
 0xc41   : > { %4027 = vperm.xlu0 %7547, %v7165_v19  }
 0xc42   : > { %7549 = vset.pattern.permute.xlu2 %v11454_v5 }
 0xc43   : > { %4023 = vperm.xlu2 %7549, %v9320_v11  }
 0xc49   : > { %7550 = vset.pattern.permute.xlu0 %v11450_v2 }
 0xc4a   : > { %3556 = vperm.xlu0 %7550, %v9279_v54  }
 0xc4b   : > { %7552 = vset.pattern.permute.xlu2 %v11455_v59 }
 0xc4f   : > { %s7295_s14 = spop %7294 }
 0xc50   : > { %s9310_s17 = smul.f32 0.015625, %s7295_s14  ;;  %s11458_s14 = sld [smem:[#allocation26_spill]] }
 0xc51   : > { %s7297_s18 = spop %7296 }
 0xc52   : > { %s3330_s19 = smul.f32 %s9310_s17, %s9310_s17  ;;  %v3333_v20 = vstv %s9310_s17  ;;  %3907 = vperm.xlu0 %7550, %v7165_v19  }
 0xc53   : > { %s3329_s21 = smul.f32 0.015625, %s7297_s18  ;;  %s11459_s18 = sld [smem:[#allocation24_spill]]  ;;  %v3334_v41 = vsub.f32 %v9248_v24, %v3333_v20  ;;  %v3335_v9 = vsub.f32 %v9250_v28, %v3333_v20  ;;  %v3336_v24 = vsub.f32 %v9252_v17, %v3333_v20  ;;  %v3337_v28 = vsub.f32 %v9269_v63, %v3333_v20  ;;  %v3398_v17 = vpop.permute.xlu1 %3397  ;;  %v3393_v63 = vpop.permute.xlu0 %3392 }
 0xc55   : > { %s3331_s24 = ssub.f32 %s3329_s21, %s3330_s19 }
 0xc56   : > { %s11460_s19 = sld [smem:[#allocation25_spill]]  ;;  %v3463_v46 = vld [vmem:[%s11458_s14] sm:$0x1] }
 0xc57   : > { %s3332_s29 = smax.f32 %s11440_s5, %s3331_s24  ;;  %v3465_v51 = vsel %vm3417_vm6, %v3463_v46, 0 }
 0xc58   : > { %s3338_s30 = sadd.f32 1e-08, %s3332_s29  ;;  %3474 = vmatpush.bf16.msrb.mxu0 %v3465_v51 }
 0xc59   : > { %v3408_v16 = vld [vmem:[%s11459_s18] sm:$0x1] }
 0xc5a   : > { %v3339_v1 = vstv %s3338_s30  ;;  %v3419_v62 = vsel %vm3417_vm6, %v3408_v16, 0  ;;  %v7172_v16 = vld [vmem:[%s11457_s15 + $0xe8] sm:$0xff] }
 0xc5b   : > { %7652 = vrsqrt.f32 %v3339_v1  ;;  %vm3346_vm9 = vweird.f32 %v3339_v1  ;;  %3428 = vmatpush.bf16.msra.mxu1 %v3419_v62  ;;  %v9352_v4 = vpop.permute.xlu1 %3525  ;;  %4163 = vperm.xlu2 %7552, %v7172_v16   ;;  %v9407_v62 = vld [vmem:[%s11449_s3 + $0x110] sm:$0xff] }
 0xc5c   : > { %v3440_v50 = vld [vmem:[%s11460_s19] sm:$0x1] }
 0xc5d   : > { %v3442_v30 = vsel %vm3417_vm6, %v3440_v50, 0 }
 0xc5e   : > { %3451 = vmatpush.bf16.msra.mxu2 %v3442_v30 }
 0xc61   : > { %v7653_v61 = vpop.eup %7652 }
 0xc62   : > { %v3341_v55 = vmul.f32 %v7653_v61, %v3339_v1  ;;  %vm3347_vm8 = vweird.f32 %v7653_v61 }
 0xc63   : > { %vm3348_vm5 = vmor %vm3346_vm9, %vm3347_vm8  ;;  %4197 = vperm.xlu2 %7552, %v9407_v62  }
 0xc64   : > { %v3342_v21 = vmul.f32 %v7653_v61, %v3341_v55 }
 0xc66   : > { %v3343_v7 = vmul.f32 0.5, %v3342_v21  ;;  %v7171_v21 = vld [vmem:[%s11457_s15 + $0xe0] sm:$0xff] }
 0xc67   : > { %4158 = vperm.xlu1 %7551, %v7171_v21  }
 0xc68   : > { %v3344_v40 = vsub.f32 1.5, %v3343_v7  ;;  %v9380_v7 = vpop.permute.xlu2 %3530 }
 0xc6a   : > { %v3345_v14 = vmul.f32 %v7653_v61, %v3344_v40 }
 0xc6b   : > { %7554 = vset.pattern.permute.xlu2 %v11450_v2 }
 0xc6c   : > { %v3349_v48 = vsel %vm3348_vm5, %v7653_v61, %v3345_v14  ;;  %v9360_v61 = vpop.permute.xlu1 %3540  ;;  %v9385_v14 = vld [vmem:[%s11449_s3 + $0x108] sm:$0xff] }
 0xc6d   : > { %7298 = vpush %v3349_v48 }
 0xc6f   : > { %4192 = vperm.xlu1 %7551, %v9385_v14  }
 0xc70   : > { %v9388_v12 = vpop.permute.xlu2 %3552 }
 0xc74   : > { %v9364_v55 = vpop.permute.xlu1 %3560 }
 0xc77   : > { %7553 = vset.pattern.permute.xlu1 %v11450_v2 }
 0xc78   : > { %v9393_v11 = vpop.permute.xlu2 %3564 }
 0xc7c   : > { %v9372_v35 = vpop.permute.xlu1 %3600 }
 0xc80   : > { %v9397_v54 = vpop.permute.xlu2 %3592 }
 0xc84   : > { %v9382_v40 = vpop.permute.xlu1 %3640 }
 0xc88   : > { %v9401_v46 = vpop.permute.xlu2 %3604 }
 0xc8c   : > { %v9390_v48 = vpop.permute.xlu1 %3680 }
 0xc90   : > { %v9410_v50 = vpop.permute.xlu2 %3632 }
 0xc9e   : > { %s7299_s29 = spop %7298 }
 0xc9f   : > { %v3351_v25 = vstv %s7299_s29 }
 0xca0   : > { %v3352_v49 = vmul.f32 %v3351_v25, %v3334_v41  ;;  %v3353_v57 = vmul.f32 %v3351_v25, %v3335_v9  ;;  %v3354_v8 = vmul.f32 %v3351_v25, %v3336_v24  ;;  %v3355_v18 = vmul.f32 %v3351_v25, %v3337_v28  ;;  %v11471_v9 = vld [vmem:[#allocation49_spill] sm:$0xff]  ;;  %v11474_v28 = vld [vmem:[#allocation51_spill] sm:$0xff] }
 0xca2   : > { %v3376_v39 = vmul.f32 %v3359_v58, %v3352_v49  ;;  %v3377_v44 = vmul.f32 %v3364_v60, %v3353_v57  ;;  %v3378_v6 = vmul.f32 %v3369_v56, %v3354_v8  ;;  %v3379_v52 = vmul.f32 %v3374_v32, %v3355_v18  ;;  %v9395_v58 = vpop.permute.xlu1 %3787  ;;  %v9415_v56 = vpop.permute.xlu2 %3644  ;;  %v11476_v18 = vld [vmem:[#allocation47_spill] sm:$0xff] }
 0xca3   : > { %11465 = vst [vmem:[#allocation56_spill] sm:$0xff] %v9395_v58 }
 0xca4   : > { %v3400_v27 = vadd.f32 %v3383_v13, %v3376_v39  ;;  %v3401_v3 = vadd.f32 %v3388_v22, %v3377_v44  ;;  %v3402_v53 = vadd.f32 %v3393_v63, %v3378_v6  ;;  %v3403_v36 = vadd.f32 %v3398_v17, %v3379_v52  ;;  %v11472_v39 = vld [vmem:[#allocation45_spill] sm:$0xff]  ;;  %v11477_v6 = vld [vmem:[#allocation52_spill] sm:$0xff]  ;;  %v11478_v17 = vld [vmem:[#allocation46_spill] sm:$0xff] }
 0xca6   : > { %v3404_v38 = vadd.f32 %v3400_v27, %v11461_v23  ;;  %v3405_v26 = vadd.f32 %v3401_v3, %v11462_v42  ;;  %v3406_v0 = vadd.f32 %v3402_v53, %v11463_v31  ;;  %v3407_v47 = vadd.f32 %v3403_v36, %v11464_v37  ;;  %v11473_v3 = vld [vmem:[#allocation50_spill] sm:$0xff]  ;;  %v11479_v31 = vld [vmem:[#allocation48_spill] sm:$0xff] }
 0xca8   : > { %v3409_v15 = vpack.c.bf16 %v3405_v26, %v3404_v38  ;;  %v3410_v1 = vpack.c.bf16 %v3407_v47, %v3406_v0 }
 0xcaa   : > { %7145 = vmatmul.msk.bf16.vlgmr.msra.gmra.mxu1 %vm1227_vm7, %v3409_v15  ;;  %7147 = vmatmul.msk.bf16.vlgmr.msra.gmra.mxu2 %vm1227_vm7, %v3409_v15  ;;  %v9399_v60 = vpop.permute.xlu1 %3792  ;;  %v9419_v20 = vpop.permute.xlu2 %3672 }
 0xcab   : > { %7149 = vmatmul.msk.bf16.vlgmr.msrb.gmra.mxu0 %vm1227_vm7, %v3409_v15  ;;  %11466 = vst [vmem:[#allocation55_spill] sm:$0xff] %v9399_v60 }
 0xcb2   : > { %v9404_v51 = vpop.permute.xlu1 %3797  ;;  %v9426_v13 = vpop.permute.xlu2 %3684 }
 0xcb3   : > { %11467 = vst [vmem:[#allocation54_spill] sm:$0xff] %v9404_v51 }
 0xcba   : > { %7146 = vmatmul.msk.bf16.gmra.mxu1 %vm1227_vm7, %v3410_v1  ;;  %7148 = vmatmul.msk.bf16.gmra.mxu2 %vm1227_vm7, %v3410_v1  ;;  %v9412_v30 = vpop.permute.xlu1 %3802  ;;  %v9437_v42 = vpop.permute.xlu2 %3816 }
 0xcbb   : > { %7150 = vmatmul.msk.bf16.gmra.mxu0 %vm1227_vm7, %v3410_v1  ;;  %11468 = vst [vmem:[#allocation53_spill] sm:$0xff] %v9412_v30 }
 0xcbc   : > { %11475 = vst [vmem:[#allocation49_spill] sm:$0xff] %v9437_v42 }
 0xcc2   : > { %v9417_v32 = vpop.permute.xlu1 %3811  ;;  %v9447_v36 = vpop.permute.xlu2 %3872 }
 0xcc3   : > { %11469 = vst [vmem:[#allocation57_spill] sm:$0xff] %v9417_v32 }
 0xcca   : > { %v9421_v41 = vpop.permute.xlu1 %3826  ;;  %v9453_v47 = vpop.permute.xlu2 %3882 }
 0xccb   : > { %11470 = vst [vmem:[#allocation58_spill] sm:$0xff] %v9421_v41 }
 0xcd2   : > { %v9428_v22 = vpop.permute.xlu1 %3877  ;;  %v9457_v21 = vpop.permute.xlu2 %3903 }
 0xcda   : > { %v9435_v38 = vpop.permute.xlu1 %3899 }
 0xce2   : > { %v9445_v53 = vpop.permute.xlu1 %3911 }
 0xcea   : > { %v9451_v37 = vpop.permute.xlu1 %3939 }
 0xcf2   : > { %v9455_v1 = vpop.permute.xlu1 %3951 }
 0xcfa   : > { %v9459_v16 = vpop.permute.xlu1 %3979 }
 0xd28   : > { %v3476_v29 = vpop.f32.mrf.mxu0 }
 0xd29   : > { %v3477_v25 = vadd.f32 %v3476_v29, %v11471_v9  ;;  %v9461_v29 = vpop.permute.xlu2 %3943  ;;  %v9463_v9 = vpop.permute.xlu0 %3596 }
 0xd2b   : > { %3498 = vrot.lane.b32.xlu1 %v3477_v25, %s11441_s8  ;;  %v9465_v25 = vpop.permute.xlu1 %3991 }
 0xd2d   : > { %v3453_v49 = vpop.f32.mrf.mxu2 }
 0xd2e   : > { %v3454_v44 = vadd.f32 %v3453_v49, %v11472_v39 }
 0xd30   : > { %v3478_v57 = vpop.f32.mrf.mxu0 }
 0xd31   : > { %v3479_v24 = vadd.f32 %v3478_v57, %v11473_v3  ;;  %v9467_v49 = vpop.permute.xlu2 %3983  ;;  %v9469_v57 = vpop.permute.xlu0 %3947 }
 0xd33   : > { %3845 = vrot.lane.b32.xlu1 %v3454_v44, %s11441_s8  ;;  %v9471_v39 = vpop.permute.xlu1 %4019 }
 0xd35   : > { %v3455_v34 = vpop.f32.mrf.mxu2 }
 0xd36   : > { %v3456_v63 = vadd.f32 %v3455_v34, %v11478_v17  ;;  %v11483_v17 = vmov 0.0  }
 0xd38   : > { %v3481_v27 = vpop.f32.mrf.mxu0 }
 0xd39   : > { %v3482_v23 = vadd.f32 %v3481_v27, %v11474_v28  ;;  %v9473_v44 = vpop.permute.xlu2 %4023  ;;  %v9475_v34 = vpop.permute.xlu0 %3636 }
 0xd3b   : > { %3502 = vrot.lane.b32.xlu2 %v3482_v23, %s11441_s8  ;;  %3500 = vrot.lane.b32.xlu1 %v3479_v24, %s11441_s8  ;;  %v9477_v27 = vpop.permute.xlu1 %4031 }
 0xd3d   : > { %v3458_v26 = vpop.f32.mrf.mxu2 }
 0xd3e   : > { %v3459_v15 = vadd.f32 %v3458_v26, %v11476_v18 }
 0xd40   : > { %v3483_v8 = vpop.f32.mrf.mxu0 }
 0xd41   : > { %v3484_v52 = vadd.f32 %v3483_v8, %v11477_v6  ;;  %v9479_v3 = vpop.permute.xlu2 %4163  ;;  %v9481_v24 = vpop.permute.xlu0 %3987 }
 0xd42   : > { %11480 = vst [vmem:[#allocation45_spill] sm:$0xff] %v9479_v3 }
 0xd43   : > { %3504 = vrot.lane.b32.xlu0 %v3484_v52, %s11441_s8  ;;  %3849 = vrot.lane.b32.xlu2 %v3459_v15, %s11441_s8  ;;  %v9483_v28 = vpop.permute.xlu1 %4158 }
 0xd44   : > { %3847 = vrot.lane.b32.xlu1 %v3456_v63, %s11441_s8  ;;  %11481 = vst [vmem:[#allocation50_spill] sm:$0xff] %v9483_v28 }
 0xd45   : > { %v3460_v19 = vpop.f32.mrf.mxu2 }
 0xd46   : > { %v3461_v0 = vadd.f32 %v3460_v19, %v11479_v31 }
 0xd49   : > { %v9485_v23 = vpop.permute.xlu2 %4197  ;;  %v9487_v26 = vpop.permute.xlu0 %3676 }
 0xd4a   : > { %11482 = vst [vmem:[#allocation51_spill] sm:$0xff] %v9485_v23 }
 0xd4b   : > { %v9489_v8 = vpop.permute.xlu1 %4192 }
 0xd4c   : > { %3851 = vrot.lane.b32.xlu1 %v3461_v0, %s11441_s8 }
 0xd51   : > { %v9492_v15 = vpop.permute.xlu0 %4027 }
 0xd59   : > { %v9505_v31 = vpop.permute.xlu0 %3556 }
 0xd95   : > { %v3503_v18 = vpop.permute.xlu2 %3502 }
 0xd96   : > { %3512 = vst.msk [vmem:[#allocation5 + $0x10] sm:$0xff] %vm2077_vm3, %v3503_v18 }
 0xd9d   : > { %v9494_v6 = vld [vmem:[#allocation5 + $0x10] sm:$0xff]  ;;  %v3499_v52 = vpop.permute.xlu1 %3498  ;;  %v3850_v63 = vpop.permute.xlu2 %3849 }
 0xd9e   : > { %4970 = vst.msk [vmem:[#allocation5 + $0x10] sm:$0xff] %vm1227_vm7, %v11483_v17  ;;  %v3569_v19 = vmul.f32 %v9364_v55, %v9494_v6  ;;  %v3609_v18 = vmul.f32 %v9372_v35, %v9494_v6  ;;  %v9527_v35 = vpop.permute.xlu0 %3907  ;;  %v3649_v30 = vmul.f32 %v9382_v40, %v9494_v6 }
 0xd9f   : > { %4974 = vst.msk [vmem:[#allocation5 + $0x10] sm:$0xff] %vm2056_vm2, %v11483_v17 }
 0xda0   : > { %3510 = vst.msk [vmem:[#allocation5] sm:$0xff] %vm2077_vm3, %v3499_v52  ;;  %3579 = vrot.lane.b32.xlu0 %v3569_v19, %s11443_s11 }
 0xda1   : > { %3859 = vst.msk [vmem:[#allocation4 + $0x10] sm:$0xff] %vm1792_vm14, %v3850_v63 }
 0xda5   : > { %v3846_v0 = vpop.permute.xlu1 %3845 }
 0xda6   : > { %3857 = vst.msk [vmem:[#allocation4] sm:$0xff] %vm1792_vm14, %v3846_v0 }
 0xda7   : > { %v9510_v41 = vld [vmem:[#allocation5] sm:$0xff] }
 0xda8   : > { %4968 = vst.msk [vmem:[#allocation5] sm:$0xff] %vm1227_vm7, %v11483_v17  ;;  %v9514_v55 = vld [vmem:[#allocation4 + $0x10] sm:$0xff]  ;;  %v3567_v52 = vmul.f32 %v9388_v12, %v9510_v41  ;;  %3619 = vrot.lane.b32.xlu0 %v3609_v18, %s11444_s22 }
 0xda9   : > { %4972 = vst.msk [vmem:[#allocation5] sm:$0xff] %vm2056_vm2, %v11483_v17 }
 0xdaa   : > { %4639 = vst.msk [vmem:[#allocation4 + $0x10] sm:$0xff] %vm1227_vm7, %v11483_v17  ;;  %3575 = vrot.lane.b32.xlu1 %v3567_v52, %s11443_s11 }
 0xdab   : > { %4643 = vst.msk [vmem:[#allocation4 + $0x10] sm:$0xff] %vm1771_vm13, %v11483_v17 }
 0xdac   : > { %4647 = vst.msk [vmem:[#allocation4 + $0x10] sm:$0xff] %vm1792_vm14, %v3850_v63  ;;  %v3607_v63 = vmul.f32 %v9397_v54, %v9510_v41 }
 0xdad   : > { %v9529_v19 = vld [vmem:[#allocation4] sm:$0xff]  ;;  %v3501_v12 = vpop.permute.xlu1 %3500 }
 0xdae   : > { %4637 = vst.msk [vmem:[#allocation4] sm:$0xff] %vm1227_vm7, %v11483_v17  ;;  %v3914_v18 = vmul.f32 %v9435_v38, %v9529_v19  ;;  %v3954_v54 = vmul.f32 %v9451_v37, %v9529_v19  ;;  %v3994_v37 = vmul.f32 %v9459_v16, %v9529_v19  ;;  %v4034_v16 = vmul.f32 %v9471_v39, %v9529_v19 }
 0xdaf   : > { %4641 = vst.msk [vmem:[#allocation4] sm:$0xff] %vm1771_vm13, %v11483_v17 }
 0xdb0   : > { %4645 = vst.msk [vmem:[#allocation4] sm:$0xff] %vm1792_vm14, %v3846_v0  ;;  %3922 = vrot.lane.b32.xlu2 %v3914_v18, %s11443_s11  ;;  %3659 = vrot.lane.b32.xlu0 %v3649_v30, %s11445_s9  ;;  %v3689_v30 = vmul.f32 %v9390_v48, %v9494_v6  ;;  %v3647_v18 = vmul.f32 %v9410_v50, %v9510_v41 }
 0xdb1   : > { %3511 = vst.msk [vmem:[#allocation5 + $0x8] sm:$0xff] %vm2077_vm3, %v3501_v12 }
 0xdb2   : > { %3615 = vrot.lane.b32.xlu1 %v3607_v63, %s11444_s22 }
 0xdb3   : > { %v9546_v38 = vld [vmem:[#allocation4 + $0x10] sm:$0xff] }
 0xdb4   : > { %11484 = vst [vmem:[#allocation47_spill] sm:$0xff] %v9546_v38 }
 0xdb5   : > { %6118 = vst.msk [vmem:[#allocation4 + $0x10] sm:$0xff] %vm1227_vm7, %v11483_v17  ;;  %v3505_v40 = vpop.permute.xlu0 %3504 }
 0xdb6   : > { %6122 = vst.msk [vmem:[#allocation4 + $0x10] sm:$0xff] %vm1771_vm13, %v11483_v17  ;;  %v3848_v0 = vpop.permute.xlu1 %3847 }
 0xdb7   : > { %3513 = vst.msk [vmem:[#allocation5 + $0x18] sm:$0xff] %vm2077_vm3, %v3505_v40  ;;  %v9558_v52 = vld [vmem:[#allocation4] sm:$0xff]  ;;  %v3687_v40 = vmul.f32 %v9419_v20, %v9510_v41 }
 0xdb8   : > { %3858 = vst.msk [vmem:[#allocation4 + $0x8] sm:$0xff] %vm1792_vm14, %v3848_v0  ;;  %v9560_v12 = vld [vmem:[#allocation5 + $0x8] sm:$0xff]  ;;  %3962 = vrot.lane.b32.xlu2 %v3954_v54, %s11444_s22  ;;  %3699 = vrot.lane.b32.xlu0 %v3689_v30, %s11446_s13 }
 0xdb9   : > { %11485 = vst [vmem:[#allocation52_spill] sm:$0xff] %v9558_v52 }
 0xdba   : > { %6116 = vst.msk [vmem:[#allocation4] sm:$0xff] %vm1227_vm7, %v11483_v17  ;;  %3655 = vrot.lane.b32.xlu1 %v3647_v18, %s11445_s9  ;;  %v9637_v18 = vld [vmem:[%s11449_s3 + $0x118] sm:$0xff] }
 0xdbb   : > { %4969 = vst.msk [vmem:[#allocation5 + $0x8] sm:$0xff] %vm1227_vm7, %v11483_v17 }
 0xdbc   : > { %4973 = vst.msk [vmem:[#allocation5 + $0x8] sm:$0xff] %vm2056_vm2, %v11483_v17 }
 0xdbd   : > { %6120 = vst.msk [vmem:[#allocation4] sm:$0xff] %vm1771_vm13, %v11483_v17 }
 0xdbe   : > { %v9575_v48 = vld [vmem:[#allocation5 + $0x18] sm:$0xff]  ;;  %v3852_v63 = vpop.permute.xlu1 %3851 }
 0xdbf   : > { %4971 = vst.msk [vmem:[#allocation5 + $0x18] sm:$0xff] %vm1227_vm7, %v11483_v17  ;;  %v9579_v50 = vld [vmem:[#allocation4 + $0x8] sm:$0xff] }
 0xdc0   : > { %4975 = vst.msk [vmem:[#allocation5 + $0x18] sm:$0xff] %vm2056_vm2, %v11483_v17  ;;  %4002 = vrot.lane.b32.xlu2 %v3994_v37, %s11445_s9  ;;  %4222 = vperm.xlu0 %7550, %v9407_v62   ;;  %v3915_v54 = vmul.f32 %v9457_v21, %v9579_v50  ;;  %v3568_v21 = vmul.f32 %v9505_v31, %v9560_v12 }
 0xdc1   : > { %4638 = vst.msk [vmem:[#allocation4 + $0x8] sm:$0xff] %vm1227_vm7, %v11483_v17  ;;  %v3955_v39 = vmul.f32 %v9461_v29, %v9579_v50  ;;  %v3608_v31 = vmul.f32 %v9463_v9, %v9560_v12  ;;  %v3995_v29 = vmul.f32 %v9467_v49, %v9579_v50  ;;  %v3648_v9 = vmul.f32 %v9475_v34, %v9560_v12  ;;  %v7161_v34 = vld [vmem:[%s11457_s15 + $0xd0] sm:$0xff] }
 0xdc2   : > { %4642 = vst.msk [vmem:[#allocation4 + $0x8] sm:$0xff] %vm1771_vm13, %v11483_v17  ;;  %3695 = vrot.lane.b32.xlu1 %v3687_v40, %s11446_s13  ;;  %v3688_v49 = vmul.f32 %v9487_v26, %v9560_v12  ;;  %v3570_v37 = vmul.f32 %v9393_v11, %v9575_v48  ;;  %v3650_v11 = vmul.f32 %v9415_v56, %v9575_v48 }
 0xdc3   : > { %4646 = vst.msk [vmem:[#allocation4 + $0x8] sm:$0xff] %vm1792_vm14, %v3848_v0  ;;  %v3996_v26 = vmul.f32 %v9481_v24, %v9514_v55 }
 0xdc4   : > { %3860 = vst.msk [vmem:[#allocation4 + $0x18] sm:$0xff] %vm1792_vm14, %v3852_v63 }
 0xdc8   : > { %4042 = vrot.lane.b32.xlu2 %v4034_v16, %s11446_s13  ;;  %7557 = vset.pattern.permute.xlu0 %v11452_v10 }
 0xdc9   : > { %4262 = vperm.xlu0 %7557, %v9407_v62  }
 0xdca   : > { %v9603_v20 = vld [vmem:[#allocation4 + $0x8] sm:$0xff]  ;;  %3924 = vrot.lane.b32.xlu1 %v3915_v54, %s11443_s11 }
 0xdcb   : > { %11486 = vst [vmem:[#allocation46_spill] sm:$0xff] %v9603_v20  ;;  %v9605_v30 = vld [vmem:[#allocation4 + $0x18] sm:$0xff] }
 0xdcc   : > { %6117 = vst.msk [vmem:[#allocation4 + $0x8] sm:$0xff] %vm1227_vm7, %v11483_v17  ;;  %v3957_v56 = vmul.f32 %v9455_v1, %v9605_v30 }
 0xdcd   : > { %4640 = vst.msk [vmem:[#allocation4 + $0x18] sm:$0xff] %vm1227_vm7, %v11483_v17 }
 0xdce   : > { %4644 = vst.msk [vmem:[#allocation4 + $0x18] sm:$0xff] %vm1771_vm13, %v11483_v17 }
 0xdcf   : > { %4648 = vst.msk [vmem:[#allocation4 + $0x18] sm:$0xff] %vm1792_vm14, %v3852_v63  ;;  %v3610_v63 = vmul.f32 %v9401_v46, %v9575_v48  ;;  %v3917_v46 = vmul.f32 %v9445_v53, %v9605_v30  ;;  %v4036_v53 = vmul.f32 %v9492_v15, %v9514_v55  ;;  %v4037_v15 = vmul.f32 %v9477_v27, %v9605_v30 }
 0xdd0   : > { %6121 = vst.msk [vmem:[#allocation4 + $0x8] sm:$0xff] %vm1771_vm13, %v11483_v17  ;;  %3577 = vrot.lane.b32.xlu2 %v3568_v21, %s11443_s11 }
 0xdd1   : > { %7560 = vset.pattern.permute.xlu0 %v11453_v45 }
 0xdd2   : > { %3964 = vrot.lane.b32.xlu1 %v3955_v39, %s11444_s22  ;;  %4302 = vperm.xlu0 %7560, %v9407_v62  }
 0xdd6   : > { %v9625_v0 = vld [vmem:[#allocation4 + $0x18] sm:$0xff] }
 0xdd7   : > { %11487 = vst [vmem:[#allocation48_spill] sm:$0xff] %v9625_v0 }
 0xdd8   : > { %6119 = vst.msk [vmem:[#allocation4 + $0x18] sm:$0xff] %vm1227_vm7, %v11483_v17  ;;  %3617 = vrot.lane.b32.xlu2 %v3608_v31, %s11444_s22 }
 0xdd9   : > { %6123 = vst.msk [vmem:[#allocation4 + $0x18] sm:$0xff] %vm1771_vm13, %v11483_v17  ;;  %v4035_v17 = vmul.f32 %v9473_v44, %v9579_v50  ;;  %v3916_v44 = vmul.f32 %v9527_v35, %v9514_v55 }
 0xdda   : > { %4004 = vrot.lane.b32.xlu1 %v3995_v29, %s11445_s9  ;;  %7564 = vset.pattern.permute.xlu0 %v11454_v5 }
 0xddb   : > { %4346 = vperm.xlu0 %7564, %v9637_v18  }
 0xde0   : > { %3657 = vrot.lane.b32.xlu2 %v3648_v9, %s11445_s9 }
 0xde2   : > { %4044 = vrot.lane.b32.xlu1 %v4035_v17, %s11446_s13 }
 0xde3   : > { %7565 = vset.pattern.permute.xlu0 %v11455_v59 }
 0xde4   : > { %3535 = vperm.xlu0 %7565, %v9297_v43   ;;  %v3956_v43 = vmul.f32 %v9469_v57, %v9514_v55  ;;  %v9685_v57 = vld [vmem:[%s11449_s3 + $0x100] sm:$0xff] }
 0xde8   : > { %3697 = vrot.lane.b32.xlu2 %v3688_v49, %s11446_s13 }
 0xdea   : > { %3581 = vrot.lane.b32.xlu1 %v3570_v37, %s11443_s11 }
 0xdec   : > { %3821 = vperm.xlu0 %7565, %v7161_v34  }
 0xdf0   : > { %3926 = vrot.lane.b32.xlu2 %v3916_v44, %s11443_s11 }
 0xdf2   : > { %3621 = vrot.lane.b32.xlu1 %v3610_v63, %s11444_s22 }
 0xdf4   : > { %3887 = vperm.xlu0 %7565, %v9332_v33   ;;  %v3690_v33 = vmul.f32 %v9426_v13, %v9575_v48  ;;  %v3997_v13 = vmul.f32 %v9465_v25, %v9605_v30 }
 0xdf8   : > { %3966 = vrot.lane.b32.xlu2 %v3956_v43, %s11444_s22 }
 0xdfa   : > { %3661 = vrot.lane.b32.xlu1 %v3650_v11, %s11445_s9 }
 0xdfc   : > { %3928 = vrot.lane.b32.xlu0 %v3917_v46, %s11443_s11 }
 0xe00   : > { %4006 = vrot.lane.b32.xlu2 %v3996_v26, %s11445_s9 }
 0xe02   : > { %3701 = vrot.lane.b32.xlu1 %v3690_v33, %s11446_s13 }
 0xe04   : > { %3968 = vrot.lane.b32.xlu0 %v3957_v56, %s11444_s22 }
 0xe08   : > { %4046 = vrot.lane.b32.xlu2 %v4036_v53, %s11446_s13 }
 0xe0a   : > { %4214 = vperm.xlu1 %7553, %v9685_v57   ;;  %v9689_v24 = vpop.permute.xlu2 %3922 }
 0xe0c   : > { %4008 = vrot.lane.b32.xlu0 %v3997_v13, %s11445_s9 }
 0xe10   : > { %4218 = vperm.xlu2 %7554, %v9385_v14  }
 0xe12   : > { %4226 = vperm.xlu1 %7553, %v9637_v18   ;;  %v9696_v1 = vpop.permute.xlu2 %3962  ;;  %v3580_v63 = vpop.permute.xlu0 %3579 }
 0xe14   : > { %4048 = vrot.lane.b32.xlu0 %v4037_v15, %s11446_s13 }
 0xe18   : > { %7556 = vset.pattern.permute.xlu2 %v11452_v10 }
 0xe1a   : > { %v9702_v35 = vpop.permute.xlu2 %4002  ;;  %7555 = vset.pattern.permute.xlu1 %v11452_v10  ;;  %v3620_v26 = vpop.permute.xlu0 %3619 }
 0xe1c   : > { %v9705_v25 = vpop.permute.xlu1 %3575 }
 0xe22   : > { %v9707_v40 = vpop.permute.xlu2 %4042  ;;  %v3660_v15 = vpop.permute.xlu0 %3659 }
 0xe24   : > { %v9709_v16 = vpop.permute.xlu1 %3615 }
 0xe2a   : > { %v9711_v54 = vpop.permute.xlu2 %3577  ;;  %v3700_v42 = vpop.permute.xlu0 %3699 }
 0xe2c   : > { %v9713_v21 = vpop.permute.xlu1 %3655 }
 0xe32   : > { %v9715_v39 = vpop.permute.xlu2 %3617  ;;  %v4223_v58 = vpop.permute.xlu0 %4222 }
 0xe34   : > { %v9717_v27 = vpop.permute.xlu1 %3695 }
 0xe3a   : > { %v9719_v31 = vpop.permute.xlu2 %3657 }
 0xe3c   : > { %v9721_v29 = vpop.permute.xlu1 %3924 }
 0xe42   : > { %v9723_v9 = vpop.permute.xlu2 %3697 }
 0xe44   : > { %v9725_v17 = vpop.permute.xlu1 %3964 }
 0xe4a   : > { %v9727_v49 = vpop.permute.xlu2 %3926 }
 0xe4c   : > { %v9729_v37 = vpop.permute.xlu1 %4004 }
 0xe52   : > { %v9731_v34 = vpop.permute.xlu2 %3966 }
 0xe54   : > { %v9733_v44 = vpop.permute.xlu1 %4044 }
 0xe5a   : > { %v9735_v43 = vpop.permute.xlu2 %4006 }
 0xe5c   : > { %v9737_v11 = vpop.permute.xlu1 %3581 }
 0xe62   : > { %v9739_v46 = vpop.permute.xlu2 %4046 }
 0xe64   : > { %v9741_v33 = vpop.permute.xlu1 %3621 }
 0xe6a   : > { %v4219_v56 = vpop.permute.xlu2 %4218 }
 0xe6b   : > { %v4230_v53 = vmul.f32 %v4219_v56, %v9579_v50  ;;  %v4231_v56 = vmul.f32 %v4223_v58, %v9514_v55 }
 0xe6c   : > { %v9744_v13 = vpop.permute.xlu1 %3661 }
 0xe6d   : > { %4239 = vrot.lane.b32.xlu1 %v4230_v53, %s11443_s11  ;;  %v4263_v53 = vpop.permute.xlu0 %4262 }
 0xe6e   : > { %v4271_v20 = vmul.f32 %v4263_v53, %v9514_v55  ;;  %v3544_v53 = vmul.f32 %v9380_v7, %v9560_v12 }
 0xe74   : > { %v9747_v51 = vpop.permute.xlu1 %3701 }
 0xe75   : > { %4254 = vperm.xlu1 %7555, %v9685_v57   ;;  %v9766_v58 = vpop.permute.xlu0 %4302 }
 0xe7c   : > { %v4215_v60 = vpop.permute.xlu1 %4214 }
 0xe7d   : > { %v4229_v32 = vmul.f32 %v4215_v60, %v9529_v19  ;;  %4266 = vperm.xlu1 %7555, %v9637_v18   ;;  %v9773_v23 = vpop.permute.xlu0 %4346 }
 0xe7f   : > { %4237 = vrot.lane.b32.xlu2 %v4229_v32, %s11443_s11 }
 0xe84   : > { %v4227_v38 = vpop.permute.xlu1 %4226 }
 0xe85   : > { %v4232_v0 = vmul.f32 %v4227_v38, %v9605_v30  ;;  %7558 = vset.pattern.permute.xlu1 %v11453_v45 }
 0xe87   : > { %4243 = vrot.lane.b32.xlu0 %v4232_v0, %s11443_s11  ;;  %4241 = vrot.lane.b32.xlu2 %v4231_v56, %s11443_s11 }
 0xe8f   : > { %4258 = vperm.xlu2 %7556, %v9385_v14  }
 0xe97   : > { %7559 = vset.pattern.permute.xlu2 %v11453_v45 }
 0xed9   : > { %v9760_v60 = vpop.permute.xlu2 %4237 }
 0xedf   : > { %v9762_v32 = vpop.permute.xlu1 %4239 }
 0xee0   : > { %11488 = vst [vmem:[#allocation59_spill] sm:$0xff] %v9762_v32 }
 0xee1   : > { %v9764_v52 = vpop.permute.xlu2 %4241 }
 0xee7   : > { %v4255_v38 = vpop.permute.xlu1 %4254 }
 0xee8   : > { %v4269_v3 = vmul.f32 %v4255_v38, %v9529_v19  ;;  %v3536_v38 = vpop.permute.xlu0 %3535 }
 0xee9   : > { %v4259_v28 = vpop.permute.xlu2 %4258 }
 0xeea   : > { %v4270_v0 = vmul.f32 %v4259_v28, %v9579_v50  ;;  %4277 = vrot.lane.b32.xlu2 %v4269_v3, %s11444_s22  ;;  %v3545_v3 = vmul.f32 %v3536_v38, %v9494_v6 }
 0xeec   : > { %4279 = vrot.lane.b32.xlu1 %v4270_v0, %s11444_s22  ;;  %v3589_v28 = vadd.f32 %v3580_v63, %v3545_v3  ;;  %v7167_v3 = vld [vmem:[%s11456_s1 + $0xe0] sm:$0xff] }
 0xeee   : > { %v3629_v0 = vadd.f32 %v3620_v26, %v3589_v28 }
 0xeef   : > { %v4267_v56 = vpop.permute.xlu1 %4266 }
 0xef0   : > { %v4272_v32 = vmul.f32 %v4267_v56, %v9605_v30  ;;  %v3546_v56 = vmul.f32 %v9360_v61, %v9575_v48  ;;  %v3669_v12 = vadd.f32 %v3660_v15, %v3629_v0 }
 0xef2   : > { %4281 = vrot.lane.b32.xlu2 %v4271_v20, %s11444_s22  ;;  %4283 = vrot.lane.b32.xlu0 %v4272_v32, %s11444_s22  ;;  %v3543_v20 = vmul.f32 %v9352_v4, %v9510_v41  ;;  %v3588_v32 = vadd.f32 %v9711_v54, %v3544_v53  ;;  %v3590_v4 = vadd.f32 %v9737_v11, %v3546_v56 }
 0xef3   : > { %v9808_v61 = vadd.f32 %v3700_v42, %v3669_v12  ;;  %v7173_v12 = vld [vmem:[%s11457_s15 + $0xf0] sm:$0xff] }
 0xef4   : > { %4294 = vperm.xlu1 %7558, %v9685_v57   ;;  %v3587_v6 = vadd.f32 %v9705_v25, %v3543_v20  ;;  %v3628_v63 = vadd.f32 %v9715_v39, %v3588_v32  ;;  %v3630_v26 = vadd.f32 %v9741_v33, %v3590_v4  ;;  %v9845_v4 = vpop.permute.xlu0 %3821 }
 0xef5   : > { %v3724_v28 = vsel %vm2307_vm1, %v9808_v61, 0.0 }
 0xef6   : > { %v3627_v7 = vadd.f32 %v9709_v16, %v3587_v6  ;;  %v3670_v48 = vadd.f32 %v9744_v13, %v3630_v26  ;;  %v7168_v6 = vld [vmem:[%s11456_s1 + $0xe8] sm:$0xff] }
 0xef8   : > { %v3667_v41 = vadd.f32 %v9713_v21, %v3627_v7  ;;  %v9815_v21 = vadd.f32 %v9747_v51, %v3670_v48  ;;  %v7170_v7 = vld [vmem:[%s11456_s1 + $0xf8] sm:$0xff] }
 0xef9   : > { %v7174_v48 = vld [vmem:[%s11457_s15 + $0xf8] sm:$0xff] }
 0xefa   : > { %4298 = vperm.xlu2 %7559, %v9385_v14   ;;  %v9806_v25 = vadd.f32 %v9717_v27, %v3667_v41  ;;  %v3741_v27 = vmul.f32 %v9815_v21, %v9815_v21  ;;  %v3726_v20 = vsel %vm2307_vm1, %v9815_v21, 0.0 }
 0xefc   : > { %7561 = vset.pattern.permute.xlu1 %v11454_v5  ;;  %v3738_v39 = vmul.f32 %v9806_v25, %v9806_v25  ;;  %v3747_v11 = vsel %vm2307_vm1, %v3741_v27, 0.0  ;;  %v3721_v38 = vsel %vm2307_vm1, %v9806_v25, 0.0 }
 0xefd   : > { %4334 = vperm.xlu1 %7561, %v9685_v57  }
 0xf02   : > { %7562 = vset.pattern.permute.xlu2 %v11454_v5 }
 0xf03   : > { %4338 = vperm.xlu2 %7562, %v9385_v14   ;;  %v3668_v14 = vadd.f32 %v9719_v31, %v3628_v63  ;;  %v3742_v31 = vsel %vm2307_vm1, %v3738_v39, 0.0  ;;  %v7169_v63 = vld [vmem:[%s11456_s1 + $0xf0] sm:$0xff] }
 0xf05   : > { %7563 = vset.pattern.permute.xlu1 %v11453_v45  ;;  %v9801_v54 = vadd.f32 %v9723_v9, %v3668_v14 }
 0xf06   : > { %4306 = vperm.xlu1 %7563, %v9637_v18  }
 0xf07   : > { %v3739_v16 = vmul.f32 %v9801_v54, %v9801_v54  ;;  %v3722_v15 = vsel %vm2307_vm1, %v9801_v54, 0.0 }
 0xf08   : > { %v3723_v53 = vadd.f32 %v3722_v15, %v3721_v38  ;;  %v7179_v15 = vld [vmem:[%s11456_s1 + $0x100] sm:$0xff]  ;;  %v3890_v38 = vmul.f32 %v9447_v36, %v9529_v19 }
 0xf09   : > { %v3743_v42 = vsel %vm2307_vm1, %v3739_v16, 0.0  ;;  %v3888_v16 = vpop.permute.xlu0 %3887 }
 0xf0a   : > { %v3744_v51 = vadd.f32 %v3743_v42, %v3742_v31  ;;  %v3725_v32 = vadd.f32 %v3724_v28, %v3723_v53  ;;  %v3892_v28 = vmul.f32 %v9453_v47, %v9514_v55 }
 0xf0b   : > { %4342 = vperm.xlu2 %7562, %v9407_v62   ;;  %v3740_v62 = vmul.f32 %v9808_v61, %v9808_v61 }
 0xf0c   : > { %v3727_v0 = vadd.f32 %v3726_v20, %v3725_v32  ;;  %v7180_v20 = vld [vmem:[%s11456_s1 + $0x108] sm:$0xff] }
 0xf0d   : > { %v3745_v9 = vsel %vm2307_vm1, %v3740_v62, 0.0 }
 0xf0e   : > { %7566 = vset.pattern.permute.xlu1 %v11455_v59  ;;  %v3746_v33 = vadd.f32 %v3745_v9, %v3744_v51  ;;  %v4311_v51 = vmul.f32 %v9766_v58, %v9514_v55  ;;  %v3891_v58 = vmul.f32 %v9428_v22, %v9579_v50 }
 0xf10   : > { %v3748_v13 = vadd.f32 %v3747_v11, %v3746_v33 }
 0xf11   : > { %v3929_v62 = vpop.permute.xlu0 %3928 }
 0xf13   : > { %7567 = vset.pattern.permute.xlu2 %v11455_v59 }
 0xf19   : > { %v3969_v33 = vpop.permute.xlu0 %3968 }
 0xf1c   : > { %3749 = vadd.xlane.f32.xlu0 %v3748_v13 }
 0xf21   : > { %v4009_v13 = vpop.permute.xlu0 %4008 }
 0xf29   : > { %v4049_v53 = vpop.permute.xlu0 %4048 }
 0xf30   : > { %4134 = vperm.xlu0 %7565, %v7167_v3   ;;  %v3935_v3 = vadd.f32 %v9721_v29, %v3891_v58 }
 0xf32   : > { %v3975_v32 = vadd.f32 %v9725_v17, %v3935_v3 }
 0xf34   : > { %3728 = vadd.xlane.f32.xlu2 %v3727_v0  ;;  %v3936_v0 = vadd.f32 %v9727_v49, %v3892_v28  ;;  %v4015_v36 = vadd.f32 %v9729_v37, %v3975_v32  ;;  %v9893_v37 = vpop.permute.xlu0 %4243 }
 0xf36   : > { %v3976_v29 = vadd.f32 %v9731_v34, %v3936_v0  ;;  %v7181_v34 = vld [vmem:[%s11456_s1 + $0x110] sm:$0xff] }
 0xf38   : > { %4139 = vperm.xlu0 %7565, %v7168_v6   ;;  %v3893_v6 = vmul.f32 %v3888_v16, %v9605_v30 }
 0xf40   : > { %4144 = vperm.xlu0 %7565, %v7169_v63   ;;  %v3937_v63 = vadd.f32 %v3929_v62, %v3893_v6 }
 0xf42   : > { %v3977_v17 = vadd.f32 %v3969_v33, %v3937_v63 }
 0xf44   : > { %v9839_v56 = vpop.permute.xlu2 %4277 }
 0xf48   : > { %4149 = vperm.xlu0 %7565, %v7170_v7   ;;  %v9884_v7 = vadd.f32 %v9733_v44, %v4015_v36 }
 0xf4c   : > { %v9842_v14 = vpop.permute.xlu2 %4281 }
 0xf50   : > { %4168 = vperm.xlu0 %7565, %v7173_v12  }
 0xf54   : > { %v4299_v41 = vpop.permute.xlu2 %4298 }
 0xf55   : > { %v4310_v26 = vmul.f32 %v4299_v41, %v9579_v50 }
 0xf57   : > { %4319 = vrot.lane.b32.xlu2 %v4310_v26, %s11445_s9 }
 0xf58   : > { %4173 = vperm.xlu0 %7565, %v7174_v48  }
 0xf5d   : > { %v4339_v31 = vpop.permute.xlu2 %4338 }
 0xf5e   : > { %v9850_v39 = vpop.permute.xlu1 %4279  ;;  %v4350_v9 = vmul.f32 %v4339_v31, %v9579_v50 }
 0xf60   : > { %4187 = vperm.xlu0 %7565, %v9685_v57  }
 0xf65   : > { %v4343_v3 = vpop.permute.xlu2 %4342 }
 0xf66   : > { %v4295_v42 = vpop.permute.xlu1 %4294 }
 0xf67   : > { %v4309_v27 = vmul.f32 %v4295_v42, %v9529_v19  ;;  %v9914_v42 = vpop.permute.xlu0 %4283 }
 0xf68   : > { %4202 = vperm.xlu0 %7565, %v9637_v18   ;;  %v4352_v18 = vmul.f32 %v9773_v23, %v9605_v30  ;;  %v3934_v23 = vadd.f32 %v9689_v24, %v3890_v38  ;;  %v4016_v24 = vadd.f32 %v9735_v43, %v3976_v29  ;;  %v4069_v43 = vsel %vm2022_vm12, %v9884_v7, 0.0  ;;  %v7185_v38 = vld [vmem:[%s11457_s15 + $0x110] sm:$0xff]  ;;  %v9924_v29 = vld [vmem:[%s11449_s3 + $0x68] sm:$0xff] }
 0xf69   : > { %4317 = vrot.lane.b32.xlu1 %v4309_v27, %s11445_s9 }
 0xf6a   : > { %v3974_v22 = vadd.f32 %v9696_v1, %v3934_v23  ;;  %v9891_v12 = vadd.f32 %v9739_v46, %v4016_v24  ;;  %v4017_v1 = vadd.f32 %v4009_v13, %v3977_v17 }
 0xf6c   : > { %v4014_v47 = vadd.f32 %v9702_v35, %v3974_v22  ;;  %v4086_v35 = vmul.f32 %v9884_v7, %v9884_v7  ;;  %v9898_v41 = vadd.f32 %v4049_v53, %v4017_v1  ;;  %v4071_v62 = vsel %vm2022_vm12, %v9891_v12, 0.0 }
 0xf6d   : > { %v4351_v1 = vmul.f32 %v4343_v3, %v9514_v55 }
 0xf6e   : > { %v9888_v49 = vadd.f32 %v9707_v40, %v4014_v47  ;;  %v4087_v40 = vmul.f32 %v9891_v12, %v9891_v12  ;;  %v4090_v46 = vsel %vm2022_vm12, %v4086_v35, 0.0  ;;  %v4088_v26 = vmul.f32 %v9898_v41, %v9898_v41 }
 0xf6f   : > { %v4335_v11 = vpop.permute.xlu1 %4334 }
 0xf70   : > { %v4349_v57 = vmul.f32 %v4335_v11, %v9529_v19  ;;  %4359 = vrot.lane.b32.xlu0 %v4350_v9, %s11446_s13  ;;  %v4085_v44 = vmul.f32 %v9888_v49, %v9888_v49  ;;  %v4068_v48 = vsel %vm2022_vm12, %v9888_v49, 0.0  ;;  %v4092_v27 = vsel %vm2022_vm12, %v4087_v40, 0.0  ;;  %v7182_v9 = vld [vmem:[%s11456_s1 + $0x118] sm:$0xff] }
 0xf71   : > { %4321 = vrot.lane.b32.xlu1 %v4311_v51, %s11445_s9  ;;  %v4070_v31 = vadd.f32 %v4069_v43, %v4068_v48  ;;  %v4073_v11 = vsel %vm2022_vm12, %v9898_v41, 0.0  ;;  %v4094_v33 = vsel %vm2022_vm12, %v4088_v26, 0.0 }
 0xf72   : > { %4357 = vrot.lane.b32.xlu2 %v4349_v57, %s11446_s13  ;;  %v4089_v16 = vsel %vm2022_vm12, %v4085_v44, 0.0 }
 0xf73   : > { %v4091_v51 = vadd.f32 %v4090_v46, %v4089_v16  ;;  %v4072_v57 = vadd.f32 %v4071_v62, %v4070_v31 }
 0xf75   : > { %v4074_v13 = vadd.f32 %v4073_v11, %v4072_v57 }
 0xf78   : > { %4363 = vrot.lane.b32.xlu0 %v4352_v18, %s11446_s13  ;;  %v4093_v18 = vadd.f32 %v4092_v27, %v4091_v51  ;;  %v4307_v47 = vpop.permute.xlu1 %4306 }
 0xf80   : > { %4449 = vperm.xlu0 %7565, %v7179_v15   ;;  %v4095_v15 = vadd.f32 %v4094_v33, %v4093_v18 }
 0xf88   : > { %4454 = vperm.xlu0 %7565, %v7180_v20   ;;  %v7186_v20 = vld [vmem:[%s11457_s15 + $0x118] sm:$0xff] }
 0xf8f   : > { %v3750_v58 = vpop.xlane.xlu0 %3749 }
 0xf90   : > { %4459 = vperm.xlu0 %7565, %v7181_v34   ;;  %v3751_v28 = vrot.slane %v3750_v58, 4  ;;  %v4312_v34 = vmul.f32 %v4307_v47, %v9605_v30 }
 0xf92   : > { %v3752_v53 = vadd.f32 %v3751_v28, %v3750_v58 }
 0xf94   : > { %v3753_v32 = vrot.slane %v3752_v53, 2 }
 0xf96   : > { %v3754_v22 = vadd.f32 %v3753_v32, %v3752_v53 }
 0xf98   : > { %4464 = vperm.xlu0 %7565, %v7182_v9   ;;  %v3755_v24 = vrot.slane %v3754_v22, 1 }
 0xf9a   : > { %v3756_v44 = vadd.f32 %v3755_v24, %v3754_v22 }
 0xf9b   : > { %4075 = vadd.xlane.f32.xlu1 %v4074_v13  ;;  %4096 = vadd.xlane.f32.xlu2 %v4095_v15 }
 0xfa0   : > { %4483 = vperm.xlu0 %7565, %v7185_v38  }
 0xfa2   : > { %v9933_v40 = vpop.permute.xlu0 %4134 }
 0xfa7   : > { %v3729_v23 = vpop.xlane.xlu2 %3728 }
 0xfa8   : > { %v3730_v0 = vrot.slane %v3729_v23, 4  ;;  %4488 = vperm.xlu0 %7565, %v7186_v20  }
 0xfaa   : > { %v3731_v6 = vadd.f32 %v3730_v0, %v3729_v23  ;;  %v9935_v43 = vpop.permute.xlu0 %4139 }
 0xfac   : > { %v3732_v36 = vrot.slane %v3731_v6, 2 }
 0xfae   : > { %v3733_v63 = vadd.f32 %v3732_v36, %v3731_v6 }
 0xfb0   : > { %7569 = vset.pattern.permute.xlu0 %v11450_v2  ;;  %v3734_v17 = vrot.slane %v3733_v63, 1 }
 0xfb1   : > { %4691 = vperm.xlu0 %7569, %v9924_v29   ;;  %v4320_v57 = vpop.permute.xlu2 %4319 }
 0xfb2   : > { %v3735_v35 = vadd.f32 %v3734_v17, %v3733_v63  ;;  %v9937_v46 = vpop.permute.xlu0 %4144 }
 0xfb3   : > { %4361 = vrot.lane.b32.xlu2 %v4351_v1, %s11446_s13  ;;  %v4206_v1 = vmul.f32 %v9489_v8, %v9579_v50 }
 0xfb4   : > { %4323 = vrot.lane.b32.xlu1 %v4312_v34, %s11445_s9  ;;  %7300 = vpush %v3735_v35 }
 0xfb5   : > { %7302 = vpush %v3756_v44  ;;  %v11489_v44 = vld [vmem:[#allocation51_spill] sm:$0xff] }
 0xfb9   : > { %7572 = vset.pattern.permute.xlu0 %v11452_v10 }
 0xfba   : > { %v9939_v26 = vpop.permute.xlu0 %4149 }
 0xfc2   : > { %v9945_v48 = vpop.permute.xlu0 %4168 }
 0xfca   : > { %v9948_v27 = vpop.permute.xlu0 %4173 }
 0xfcc   : > { %v4358_v58 = vpop.permute.xlu2 %4357 }
 0xfd2   : > { %v4188_v13 = vpop.permute.xlu0 %4187 }
 0xfd3   : > { %v4205_v32 = vmul.f32 %v4188_v13, %v9529_v19 }
 0xfd5   : > { %v4249_v47 = vadd.f32 %v9760_v60, %v4205_v32 }
 0xfd7   : > { %v4289_v19 = vadd.f32 %v9839_v56, %v4249_v47 }
 0xfda   : > { %v4203_v3 = vpop.permute.xlu0 %4202 }
 0xfdb   : > { %v4318_v11 = vpop.permute.xlu1 %4317  ;;  %v4208_v13 = vmul.f32 %v4203_v3, %v9605_v30 }
 0xfdc   : > { %v4329_v50 = vadd.f32 %v4318_v11, %v4289_v19 }
 0xfde   : > { %v9964_v56 = vadd.f32 %v4358_v58, %v4329_v50 }
 0xfe2   : > { %v4360_v63 = vpop.permute.xlu0 %4359 }
 0xfe3   : > { %v4322_v38 = vpop.permute.xlu1 %4321 }
 0xfe5   : > { %s7301_s24 = spop %7300 }
 0xfe6   : > { %s9941_s30 = smul.f32 0.0078125, %s7301_s24  ;;  %s7303_s17 = spop %7302 }
 0xfe7   : > { %s3758_s21 = smul.f32 0.0078125, %s7303_s17 }
 0xfe8   : > { %s3759_s14 = smul.f32 %s9941_s30, %s9941_s30 }
 0xfea   : > { %s3760_s18 = ssub.f32 %s3758_s21, %s3759_s14 }
 0xfec   : > { %s3761_s19 = smax.f32 %s11440_s5, %s3760_s18 }
 0xfed   : > { %s3767_s29 = sadd.f32 1e-08, %s3761_s19 }
 0xfef   : > { %v3768_v16 = vstv %s3767_s29 }
 0xff0   : > { %7654 = vrsqrt.f32 %v3768_v16  ;;  %vm3775_vm13 = vweird.f32 %v3768_v16 }
 0xff6   : > { %v7655_v62 = vpop.eup %7654 }
 0xff7   : > { %v3770_v31 = vmul.f32 %v7655_v62, %v3768_v16  ;;  %vm3776_vm7 = vweird.f32 %v7655_v62  ;;  %v4207_v16 = vmul.f32 %v11489_v44, %v9514_v55  ;;  %v3762_v44 = vstv %s9941_s30 }
 0xff8   : > { %vm3777_vm2 = vmor %vm3775_vm13, %vm3776_vm7  ;;  %v3765_v19 = vsub.f32 %v9808_v61, %v3762_v44  ;;  %v10016_v61 = vld [vmem:[%s11449_s3 + $0x78] sm:$0xff] }
 0xff9   : > { %v3771_v9 = vmul.f32 %v7655_v62, %v3770_v31 }
 0xffb   : > { %v3772_v51 = vmul.f32 0.5, %v3771_v9 }
 0xffd   : > { %v3773_v33 = vsub.f32 1.5, %v3772_v51 }
 0xfff   : > { %v3774_v18 = vmul.f32 %v7655_v62, %v3773_v33  ;;  %v4251_v33 = vadd.f32 %v9764_v52, %v4207_v16 }
0x1001   : > { %v3778_v15 = vsel %vm3777_vm2, %v7655_v62, %v3774_v18  ;;  %v11490_v62 = vld [vmem:[#allocation59_spill] sm:$0xff]  ;;  %v4291_v18 = vadd.f32 %v9842_v14, %v4251_v33  ;;  %v4400_v14 = vmul.f32 %v9964_v56, %v9964_v56 }
0x1002   : > { %7304 = vpush %v3778_v15  ;;  %v4250_v31 = vadd.f32 %v11490_v62, %v4206_v1  ;;  %v4364_v15 = vpop.permute.xlu0 %4363  ;;  %v3763_v62 = vsub.f32 %v9806_v25, %v3762_v44  ;;  %v7183_v25 = vld [vmem:[%s11457_s15 + $0x100] sm:$0xff] }
0x1004   : > { %v4290_v60 = vadd.f32 %v9850_v39, %v4250_v31  ;;  %v3764_v31 = vsub.f32 %v9801_v54, %v3762_v44 }
0x1006   : > { %v4330_v8 = vadd.f32 %v4320_v57, %v4290_v60 }
0x100e   : > { %v4076_v28 = vpop.xlane.xlu1 %4075  ;;  %v4097_v53 = vpop.xlane.xlu2 %4096 }
0x100f   : > { %v4077_v20 = vrot.slane %v4076_v28, 4  ;;  %v4098_v23 = vrot.slane %v4097_v53, 4 }
0x1011   : > { %v4078_v0 = vadd.f32 %v4077_v20, %v4076_v28  ;;  %v4099_v6 = vadd.f32 %v4098_v23, %v4097_v53  ;;  %v4331_v28 = vadd.f32 %v4322_v38, %v4291_v18  ;;  %v9962_v53 = vadd.f32 %v4360_v63, %v4330_v8 }
0x1012   : > { %v4252_v20 = vadd.f32 %v9893_v37, %v4208_v13  ;;  %v4383_v37 = vsel %vm2022_vm12, %v9964_v56, 0.0  ;;  %v7184_v13 = vld [vmem:[%s11457_s15 + $0x108] sm:$0xff] }
0x1013   : > { %v4079_v22 = vrot.slane %v4078_v0, 2  ;;  %v4100_v36 = vrot.slane %v4099_v6, 2  ;;  %v4401_v39 = vmul.f32 %v9962_v53, %v9962_v53  ;;  %v4384_v30 = vsel %vm2022_vm12, %v9962_v53, 0.0 }
0x1014   : > { %v4292_v57 = vadd.f32 %v9914_v42, %v4252_v20  ;;  %v4385_v32 = vadd.f32 %v4384_v30, %v4383_v37 }
0x1015   : > { %v4080_v24 = vadd.f32 %v4079_v22, %v4078_v0  ;;  %v4101_v17 = vadd.f32 %v4100_v36, %v4099_v6  ;;  %v4405_v38 = vsel %vm2022_vm12, %v4401_v39, 0.0  ;;  %v9983_v0 = vpop.permute.xlu0 %4449  ;;  %v4404_v22 = vsel %vm2022_vm12, %v4400_v14, 0.0 }
0x1016   : > { %v4362_v55 = vpop.permute.xlu2 %4361  ;;  %v4406_v63 = vadd.f32 %v4405_v38, %v4404_v22  ;;  %v11491_v38 = vld [vmem:[#allocation46_spill] sm:$0xff] }
0x1017   : > { %v4081_v34 = vrot.slane %v4080_v24, 1  ;;  %v4102_v35 = vrot.slane %v4101_v17, 1  ;;  %v9967_v52 = vadd.f32 %v4362_v55, %v4331_v28  ;;  %v10031_v28 = vld [vmem:[%s11449_s3 + $0x60] sm:$0xff] }
0x1019   : > { %v4082_v9 = vadd.f32 %v4081_v34, %v4080_v24  ;;  %v4103_v51 = vadd.f32 %v4102_v35, %v4101_v17  ;;  %v4402_v11 = vmul.f32 %v9967_v52, %v9967_v52  ;;  %v4386_v3 = vsel %vm2022_vm12, %v9967_v52, 0.0 }
0x101a   : > { %v4387_v36 = vadd.f32 %v4386_v3, %v4385_v32 }
0x101b   : > { %7306 = vpush %v4082_v9  ;;  %v4407_v42 = vsel %vm2022_vm12, %v4402_v11, 0.0  ;;  %v3766_v9 = vsub.f32 %v9815_v21, %v3762_v44 }
0x101c   : > { %7308 = vpush %v4103_v51  ;;  %v4408_v1 = vadd.f32 %v4407_v42, %v4406_v63 }
0x101d   : > { %v9995_v16 = vpop.permute.xlu0 %4454 }
0x1025   : > { %v10009_v50 = vpop.permute.xlu0 %4459 }
0x1026   : > { %v4324_v58 = vpop.permute.xlu1 %4323 }
0x1027   : > { %v4332_v23 = vadd.f32 %v4324_v58, %v4292_v57 }
0x1029   : > { %v9985_v6 = vadd.f32 %v4364_v15, %v4332_v23  ;;  %v10028_v15 = vld [vmem:[%s11449_s3 + $0x70] sm:$0xff] }
0x102b   : > { %v4388_v47 = vsel %vm2022_vm12, %v9985_v6, 0.0  ;;  %v4403_v24 = vmul.f32 %v9985_v6, %v9985_v6 }
0x102c   : > { %v4389_v17 = vadd.f32 %v4388_v47, %v4387_v36 }
0x102d   : > { %v4409_v34 = vsel %vm2022_vm12, %v4403_v24, 0.0  ;;  %v10013_v54 = vpop.permute.xlu0 %4464 }
0x102e   : > { %4390 = vadd.xlane.f32.xlu1 %v4389_v17  ;;  %v4410_v35 = vadd.f32 %v4409_v34, %v4408_v1 }
0x1030   : > { %4411 = vadd.xlane.f32.xlu2 %v4410_v35 }
0x1033   : > { %s7305_s24 = spop %7304 }
0x1034   : > { %v3780_v51 = vstv %s7305_s24 }
0x1035   : > { %v10001_v33 = vmul.f32 %v3780_v51, %v3763_v62  ;;  %v10003_v60 = vmul.f32 %v3780_v51, %v3764_v31  ;;  %v10005_v18 = vmul.f32 %v3780_v51, %v3765_v19  ;;  %v10007_v8 = vmul.f32 %v3780_v51, %v3766_v9  ;;  %v10023_v21 = vpop.permute.xlu0 %4483  ;;  %v11494_v19 = vld [vmem:[#allocation45_spill] sm:$0xff] }
0x103d   : > { %v10037_v20 = vpop.permute.xlu0 %4488 }
0x1045   : > { %v4692_v57 = vpop.permute.xlu0 %4691 }
0x1046   : > { %v4703_v3 = vmul.f32 %v4692_v57, %v11491_v38 }
0x1047   : > { %4473 = vperm.xlu1 %7566, %v7183_v25  }
0x1048   : > { %4478 = vperm.xlu2 %7567, %v7184_v13  }
0x104c   : > { %s7307_s30 = spop %7306 }
0x104d   : > { %s10018_s17 = smul.f32 0.00390625, %s7307_s30  ;;  %s7309_s21 = spop %7308 }
0x104e   : > { %s4105_s14 = smul.f32 0.00390625, %s7309_s21  ;;  %s11492_s30 = sld [smem:[#allocation38_spill]] }
0x104f   : > { %s4106_s18 = smul.f32 %s10018_s17, %s10018_s17  ;;  %4675 = vperm.xlu1 %7566, %v10016_v61   ;;  %v4109_v32 = vstv %s10018_s17 }
0x1050   : > { %4665 = vperm.xlu2 %7567, %v9924_v29   ;;  %v4110_v22 = vsub.f32 %v9888_v49, %v4109_v32  ;;  %v4111_v42 = vsub.f32 %v9884_v7, %v4109_v32  ;;  %v4112_v36 = vsub.f32 %v9891_v12, %v4109_v32  ;;  %v4113_v63 = vsub.f32 %v9898_v41, %v4109_v32  ;;  %v11493_v12 = vld [vmem:[#allocation50_spill] sm:$0xff] }
0x1051   : > { %s4107_s19 = ssub.f32 %s4105_s14, %s4106_s18 }
0x1053   : > { %s4108_s29 = smax.f32 %s11440_s5, %s4107_s19 }
0x1054   : > { %s4114_s24 = sadd.f32 1e-08, %s4108_s29  ;;  %v4495_v35 = vld [vmem:[%s11492_s30] sm:$0xf] }
0x1055   : > { %v4581_v44 = vsel %vm2029_vm11, %v4495_v35, 0 }
0x1056   : > { %v4115_v55 = vstv %s4114_s24  ;;  %4590 = vmatpush.bf16.msrb.mxu1 %v4581_v44  ;;  %4617 = vmatpush.bf16.msrb.mxu2 %v4581_v44 }
0x1057   : > { %7656 = vrsqrt.f32 %v4115_v55  ;;  %7570 = vset.pattern.permute.xlu1 %v11450_v2  ;;  %vm4122_vm9 = vweird.f32 %v4115_v55 }
0x1058   : > { %7568 = vset.pattern.permute.xlu2 %v11450_v2  ;;  %4695 = vperm.xlu1 %7570, %v10028_v15  }
0x1059   : > { %4687 = vperm.xlu2 %7568, %v10031_v28  }
0x105d   : > { %v7657_v39 = vpop.eup %7656 }
0x105e   : > { %v4117_v14 = vmul.f32 %v7657_v39, %v4115_v55  ;;  %vm4123_vm8 = vweird.f32 %v7657_v39 }
0x105f   : > { %vm4124_vm5 = vmor %vm4122_vm9, %vm4123_vm8 }
0x1060   : > { %v4118_v30 = vmul.f32 %v7657_v39, %v4117_v14  ;;  %7573 = vset.pattern.permute.xlu1 %v11452_v10 }
0x1061   : > { %4699 = vperm.xlu2 %7568, %v10016_v61  }
0x1062   : > { %v4119_v11 = vmul.f32 0.5, %v4118_v30 }
0x1064   : > { %v4120_v58 = vsub.f32 1.5, %v4119_v11 }
0x1066   : > { %v4121_v37 = vmul.f32 %v7657_v39, %v4120_v58 }
0x1068   : > { %v4125_v23 = vsel %vm4124_vm5, %v7657_v39, %v4121_v37 }
0x1069   : > { %7310 = vpush %v4125_v23  ;;  %4712 = vrot.lane.b32.xlu2 %v4703_v3, %s11443_s11 }
0x106a   : > { %7571 = vset.pattern.permute.xlu2 %v11452_v10 }
0x1071   : > { %4727 = vperm.xlu2 %7571, %v10031_v28  }
0x1079   : > { %4739 = vperm.xlu2 %7571, %v10016_v61  }
0x1081   : > { %7574 = vset.pattern.permute.xlu2 %v11453_v45 }
0x109a   : > { %s7311_s21 = spop %7310 }
0x109b   : > { %v4127_v47 = vstv %s7311_s21 }
0x109c   : > { %v4128_v24 = vmul.f32 %v4127_v47, %v4110_v22  ;;  %v4129_v17 = vmul.f32 %v4127_v47, %v4111_v42  ;;  %v4130_v1 = vmul.f32 %v4127_v47, %v4112_v36  ;;  %v4131_v34 = vmul.f32 %v4127_v47, %v4113_v63 }
0x109e   : > { %v4152_v62 = vmul.f32 %v9933_v40, %v4128_v24  ;;  %v4153_v31 = vmul.f32 %v9935_v43, %v4129_v17  ;;  %v4154_v49 = vmul.f32 %v9937_v46, %v4130_v1  ;;  %v4155_v7 = vmul.f32 %v9939_v26, %v4131_v34 }
0x10a0   : > { %v4176_v41 = vadd.f32 %v11493_v12, %v4152_v62  ;;  %v4177_v9 = vadd.f32 %v11494_v19, %v4153_v31  ;;  %v4178_v51 = vadd.f32 %v9945_v48, %v4154_v49  ;;  %v4179_v25 = vadd.f32 %v9948_v27, %v4155_v7 }
0x10a1   : > { %v4391_v13 = vpop.xlane.xlu1 %4390 }
0x10a2   : > { %v7187_v55 = vmul.f32 -1.442695, %v4176_v41  ;;  %v7188_v39 = vmul.f32 -1.442695, %v4177_v9  ;;  %v7189_v40 = vmul.f32 -1.442695, %v4178_v51 }
0x10a3   : > { %v7190_v14 = vmul.f32 -1.442695, %v4179_v25  ;;  %v4392_v43 = vrot.slane %v4391_v13, 4  ;;  %v4412_v30 = vpop.xlane.xlu2 %4411 }
0x10a4   : > { %7658 = vpow2.f32 %v7187_v55  ;;  %v4413_v46 = vrot.slane %v4412_v30, 4 }
0x10a5   : > { %7660 = vpow2.f32 %v7188_v39  ;;  %v4393_v26 = vadd.f32 %v4392_v43, %v4391_v13 }
0x10a6   : > { %7662 = vpow2.f32 %v7189_v40  ;;  %v4414_v11 = vadd.f32 %v4413_v46, %v4412_v30 }
0x10a7   : > { %7664 = vpow2.f32 %v7190_v14  ;;  %v4394_v57 = vrot.slane %v4393_v26, 2 }
0x10a8   : > { %v4415_v58 = vrot.slane %v4414_v11, 2 }
0x10a9   : > { %v4395_v37 = vadd.f32 %v4394_v57, %v4393_v26  ;;  %v11495_v57 = vld [vmem:[#allocation52_spill] sm:$0xff] }
0x10aa   : > { %v7659_v48 = vpop.eup %7658  ;;  %v4416_v3 = vadd.f32 %v4415_v58, %v4414_v11 }
0x10ab   : > { %v7661_v27 = vpop.eup %7660  ;;  %v4508_v23 = vadd.f32 1.0, %v7659_v48  ;;  %v10062_v32 = vpop.permute.xlu2 %4478  ;;  %v4396_v22 = vrot.slane %v4395_v37, 1 }
0x10ac   : > { %v7663_v42 = vpop.eup %7662  ;;  %v4509_v36 = vadd.f32 1.0, %v7661_v27  ;;  %v4417_v63 = vrot.slane %v4416_v3, 1 }
0x10ad   : > { %v7665_v47 = vpop.eup %7664  ;;  %v10064_v24 = vadd.f32 1.0, %v7663_v42  ;;  %7666 = vrcp.f32 %v4508_v23  ;;  %v4397_v17 = vadd.f32 %v4396_v22, %v4395_v37  ;;  %v4521_v19 = vand.u32 2147483647, %v4508_v23 }
0x10ae   : > { %v10066_v1 = vadd.f32 1.0, %v7665_v47  ;;  %7668 = vrcp.f32 %v4509_v36  ;;  %v4418_v34 = vadd.f32 %v4417_v63, %v4416_v3  ;;  %v4523_v9 = vand.u32 2147483648, %v4508_v23 }
0x10af   : > { %7670 = vrcp.f32 %v10064_v24  ;;  %7312 = vpush %v4397_v17  ;;  %v4536_v13 = vand.u32 2147483647, %v4509_v36  ;;  %v4538_v55 = vand.u32 2147483648, %v4509_v36  ;;  %vm4517_vm13 = vweird.f32 %v4508_v23 }
0x10b0   : > { %7672 = vrcp.f32 %v10066_v1  ;;  %7314 = vpush %v4418_v34  ;;  %vm4522_vm8 = vcmp.eq.f32.partialorder %v4521_v19, 8.507059e+37  ;;  %v4524_v26 = vor.u32 1.1754944e-38, %v4523_v9  ;;  %vm4532_vm9 = vweird.f32 %v4509_v36 }
0x10b1   : > { %vm4537_vm4 = vcmp.eq.f32.partialorder %v4536_v13, 8.507059e+37  ;;  %v4539_v48 = vor.u32 1.1754944e-38, %v4538_v55  ;;  %v4568_v19 = vand.u32 2147483648, %v10066_v1  ;;  %v4551_v9 = vand.u32 2147483647, %v10064_v24 }
0x10b3   : > { %v7667_v35 = vpop.eup %7666  ;;  %v10070_v44 = vpop.permute.xlu2 %4665 }
0x10b4   : > { %v7669_v62 = vpop.eup %7668  ;;  %v4513_v31 = vmul.f32 %v7667_v35, %v4508_v23  ;;  %vm4518_vm6 = vweird.f32 %v7667_v35 }
0x10b5   : > { %v10072_v49 = vpop.eup %7670  ;;  %v4528_v7 = vmul.f32 %v7669_v62, %v4509_v36  ;;  %vm4533_vm7 = vweird.f32 %v7669_v62  ;;  %vm4519_vm2 = vmor %vm4517_vm13, %vm4518_vm6 }
0x10b6   : > { %v10074_v12 = vpop.eup %7672  ;;  %v4514_v41 = vsub.f32 1.0, %v4513_v31  ;;  %v4543_v14 = vmul.f32 %v10072_v49, %v10064_v24  ;;  %vm4534_vm5 = vmor %vm4532_vm9, %vm4533_vm7  ;;  %vm4548_vm6 = vweird.f32 %v10072_v49  ;;  %vm4547_vm7 = vweird.f32 %v10064_v24 }
0x10b7   : > { %v4529_v51 = vsub.f32 1.0, %v4528_v7  ;;  %v4558_v43 = vmul.f32 %v10074_v12, %v10066_v1  ;;  %vm4549_vm13 = vmor %vm4547_vm7, %vm4548_vm6  ;;  %vm4552_vm9 = vcmp.eq.f32.partialorder %v4551_v9, 8.507059e+37 }
0x10b8   : > { %v4515_v25 = vmul.f32 %v7667_v35, %v4514_v41  ;;  %v4544_v22 = vsub.f32 1.0, %v4543_v14  ;;  %v4553_v41 = vand.u32 2147483648, %v10064_v24  ;;  %v4569_v14 = vor.u32 1.1754944e-38, %v4568_v19 }
0x10b9   : > { %v10076_v39 = vpop.permute.xlu1 %4473  ;;  %v4530_v40 = vmul.f32 %v7669_v62, %v4529_v51  ;;  %v4559_v42 = vsub.f32 1.0, %v4558_v43  ;;  %v4566_v51 = vand.u32 2147483647, %v10066_v1  ;;  %v11497_v43 = vld [vmem:[#allocation47_spill] sm:$0xff] }
0x10ba   : > { %v4516_v30 = vadd.f32 %v7667_v35, %v4515_v25  ;;  %v4545_v36 = vmul.f32 %v10072_v49, %v4544_v22 }
0x10bb   : > { %v4688_v46 = vpop.permute.xlu2 %4687  ;;  %v4531_v11 = vadd.f32 %v7669_v62, %v4530_v40  ;;  %v4560_v17 = vmul.f32 %v10074_v12, %v4559_v42  ;;  %v4554_v40 = vor.u32 1.1754944e-38, %v4553_v41 }
0x10bc   : > { %v4702_v58 = vmul.f32 %v4688_v46, %v11495_v57  ;;  %v4520_v37 = vsel %vm4519_vm2, %v7667_v35, %v4516_v30  ;;  %v11496_v35 = vld [vmem:[#allocation48_spill] sm:$0xff]  ;;  %vm4562_vm2 = vweird.f32 %v10066_v1 }
0x10bd   : > { %v4525_v3 = vsel %vm4522_vm8, %v4524_v26, %v4520_v37  ;;  %v4535_v27 = vsel %vm4534_vm5, %v7669_v62, %v4531_v11  ;;  %v4546_v62 = vadd.f32 %v10072_v49, %v4545_v36  ;;  %v4561_v7 = vadd.f32 %v10074_v12, %v4560_v17 }
0x10be   : > { %4710 = vrot.lane.b32.xlu1 %v4702_v58, %s11443_s11  ;;  %v4540_v63 = vsel %vm4537_vm4, %v4539_v48, %v4535_v27  ;;  %vm4563_vm4 = vweird.f32 %v10074_v12  ;;  %vm4567_vm5 = vcmp.eq.f32.partialorder %v4566_v51, 8.507059e+37 }
0x10bf   : > { %v4572_v23 = vpack.c.bf16 %v4540_v63, %v4525_v3  ;;  %vm4564_vm8 = vmor %vm4562_vm2, %vm4563_vm4  ;;  %v4550_v25 = vsel %vm4549_vm13, %v10072_v49, %v4546_v62 }
0x10c0   : > { %v4565_v13 = vsel %vm4564_vm8, %v10074_v12, %v4561_v7  ;;  %v4555_v26 = vsel %vm4552_vm9, %v4554_v40, %v4550_v25 }
0x10c1   : > { %7191 = vmatmul.msk.bf16.vlgmr.msrb.gmra.mxu1 %vm2022_vm12, %v4572_v23  ;;  %v10085_v47 = vpop.permute.xlu1 %4675  ;;  %v4570_v24 = vsel %vm4567_vm5, %v4569_v14, %v4565_v13 }
0x10c2   : > { %v4573_v1 = vpack.c.bf16 %v4570_v24, %v4555_v26 }
0x10c3   : > { %v4700_v34 = vpop.permute.xlu2 %4699 }
0x10c4   : > { %v4705_v31 = vmul.f32 %v4700_v34, %v11496_v35 }
0x10c6   : > { %4716 = vrot.lane.b32.xlu1 %v4705_v31, %s11443_s11 }
0x10ca   : > { %v4696_v55 = vpop.permute.xlu1 %4695 }
0x10cb   : > { %v4704_v30 = vmul.f32 %v4696_v55, %v11497_v43  ;;  %v10104_v46 = vpop.permute.xlu2 %4712 }
0x10cd   : > { %4714 = vrot.lane.b32.xlu0 %v4704_v30, %s11443_s11 }
0x10ce   : > { %4735 = vperm.xlu1 %7573, %v10028_v15  }
0x10d1   : > { %7192 = vmatmul.msk.bf16.gmra.mxu1 %vm2022_vm12, %v4573_v1 }
0x10d3   : > { %v4728_v49 = vpop.permute.xlu2 %4727 }
0x10d4   : > { %v4742_v12 = vmul.f32 %v4728_v49, %v11495_v57 }
0x10d5   : > { %4731 = vperm.xlu0 %7572, %v9924_v29  }
0x10d6   : > { %4750 = vrot.lane.b32.xlu1 %v4742_v12, %s11444_s22 }
0x10d7   : > { %7576 = vset.pattern.permute.xlu1 %v11453_v45 }
0x10db   : > { %v4740_v11 = vpop.permute.xlu2 %4739 }
0x10dc   : > { %v4745_v58 = vmul.f32 %v4740_v11, %v11496_v35 }
0x10dd   : > { %7575 = vset.pattern.permute.xlu0 %v11453_v45 }
0x10de   : > { %4756 = vrot.lane.b32.xlu1 %v4745_v58, %s11444_s22 }
0x10e0   : > { %s7313_s17 = spop %7312 }
0x10e1   : > { %s4399_s14 = smul.f32 0.00390625, %s7313_s17  ;;  %s7315_s18 = spop %7314 }
0x10e2   : > { %s4420_s19 = smul.f32 0.00390625, %s7315_s18 }
0x10e3   : > { %s4421_s29 = smul.f32 %s4399_s14, %s4399_s14  ;;  %v4424_v36 = vstv %s4399_s14 }
0x10e4   : > { %v4425_v17 = vsub.f32 %v9964_v56, %v4424_v36  ;;  %v4426_v34 = vsub.f32 %v9962_v53, %v4424_v36  ;;  %v4427_v55 = vsub.f32 %v9967_v52, %v4424_v36  ;;  %v4428_v56 = vsub.f32 %v9985_v6, %v4424_v36 }
0x10e5   : > { %s4422_s24 = ssub.f32 %s4420_s19, %s4421_s29 }
0x10e6   : > { %4775 = vperm.xlu1 %7576, %v10028_v15  }
0x10e7   : > { %s4423_s30 = smax.f32 %s11440_s5, %s4422_s24 }
0x10e8   : > { %s4429_s21 = sadd.f32 1e-08, %s4423_s30 }
0x10ea   : > { %v4430_v37 = vstv %s4429_s21 }
0x10eb   : > { %7674 = vrsqrt.f32 %v4430_v37  ;;  %vm4437_vm4 = vweird.f32 %v4430_v37 }
0x10ee   : > { %7579 = vset.pattern.permute.xlu1 %v11454_v5 }
0x10f1   : > { %v7675_v48 = vpop.eup %7674 }
0x10f2   : > { %v4432_v3 = vmul.f32 %v7675_v48, %v4430_v37  ;;  %vm4438_vm6 = vweird.f32 %v7675_v48 }
0x10f3   : > { %vm4439_vm7 = vmor %vm4437_vm4, %vm4438_vm6 }
0x10f4   : > { %v4433_v27 = vmul.f32 %v7675_v48, %v4432_v3 }
0x10f6   : > { %v4434_v22 = vmul.f32 0.5, %v4433_v27 }
0x10f8   : > { %v4435_v42 = vsub.f32 1.5, %v4434_v22 }
0x10fa   : > { %v4436_v63 = vmul.f32 %v7675_v48, %v4435_v42 }
0x10fc   : > { %v4440_v23 = vsel %vm4439_vm7, %v7675_v48, %v4436_v63 }
0x10fd   : > { %7316 = vpush %v4440_v23  ;;  %v7205_v23 = vld [vmem:[%s11457_s15 + $0x70] sm:$0xff] }
0x112e   : > { %s7317_s17 = spop %7316 }
0x112f   : > { %v4442_v31 = vstv %s7317_s17 }
0x1130   : > { %v4443_v62 = vmul.f32 %v4442_v31, %v4425_v17  ;;  %v4444_v7 = vmul.f32 %v4442_v31, %v4426_v34  ;;  %v10121_v41 = vpop.permute.xlu1 %4710  ;;  %v4445_v40 = vmul.f32 %v4442_v31, %v4427_v55  ;;  %v4446_v14 = vmul.f32 %v4442_v31, %v4428_v56  ;;  %v7207_v55 = vld [vmem:[%s11449_s3 + $0x80] sm:$0xff]  ;;  %v7200_v56 = vld [vmem:[%s11456_s1 + $0x68] sm:$0xff] }
0x1132   : > { %v4467_v19 = vmul.f32 %v9983_v0, %v4443_v62  ;;  %v4468_v9 = vmul.f32 %v9995_v16, %v4444_v7  ;;  %v4469_v30 = vmul.f32 %v10009_v50, %v4445_v40  ;;  %v4470_v0 = vmul.f32 %v10013_v54, %v4446_v14  ;;  %v10207_v40 = vld [vmem:[%s11449_s3 + $0xa8] sm:$0xff]  ;;  %v7201_v14 = vld [vmem:[%s11456_s1 + $0x70] sm:$0xff] }
0x1134   : > { %v4491_v51 = vadd.f32 %v10076_v39, %v4467_v19  ;;  %v4492_v25 = vadd.f32 %v10062_v32, %v4468_v9  ;;  %v4493_v26 = vadd.f32 %v10023_v21, %v4469_v30  ;;  %v4494_v52 = vadd.f32 %v10037_v20, %v4470_v0  ;;  %v10191_v19 = vld [vmem:[%s11449_s3 + $0x98] sm:$0xff]  ;;  %v7203_v0 = vld [vmem:[%s11457_s15 + $0x60] sm:$0xff] }
0x1135   : > { %v7202_v30 = vld [vmem:[%s11456_s1 + $0x78] sm:$0xff] }
0x1136   : > { %v4602_v13 = vpack.c.bf16 %v4492_v25, %v4491_v51  ;;  %v4603_v6 = vpack.c.bf16 %v4494_v52, %v4493_v26  ;;  %v7199_v25 = vld [vmem:[%s11456_s1 + $0x60] sm:$0xff]  ;;  %v10242_v52 = vld [vmem:[%s11449_s3 + $0xb8] sm:$0xff] }
0x1137   : > { %v10228_v26 = vld [vmem:[%s11449_s3 + $0xa0] sm:$0xff] }
0x1138   : > { %7193 = vmatmul.msk.bf16.vlgmr.msrb.gmra.mxu2 %vm2022_vm12, %v4602_v13  ;;  %v10130_v53 = vpop.permute.xlu1 %4716  ;;  %v10198_v13 = vld [vmem:[%s11449_s3 + $0x90] sm:$0xff] }
0x113f   : > { %v10134_v16 = vpop.permute.xlu0 %4714 }
0x1140   : > { %v4736_v39 = vpop.permute.xlu1 %4735 }
0x1141   : > { %v4744_v32 = vmul.f32 %v4736_v39, %v11497_v43  ;;  %v10219_v39 = vld [vmem:[%s11449_s3 + $0xb0] sm:$0xff] }
0x1143   : > { %4754 = vrot.lane.b32.xlu0 %v4744_v32, %s11444_s22  ;;  %v7204_v32 = vld [vmem:[%s11457_s15 + $0x68] sm:$0xff] }
0x1147   : > { %v4732_v24 = vpop.permute.xlu0 %4731 }
0x1148   : > { %7194 = vmatmul.msk.bf16.gmra.mxu2 %vm2022_vm12, %v4603_v6  ;;  %v4743_v1 = vmul.f32 %v4732_v24, %v11491_v38  ;;  %v10142_v50 = vpop.permute.xlu1 %4750  ;;  %v7206_v6 = vld [vmem:[%s11457_s15 + $0x78] sm:$0xff] }
0x114a   : > { %4752 = vrot.lane.b32.xlu2 %v4743_v1, %s11444_s22 }
0x114b   : > { %4771 = vperm.xlu0 %7575, %v9924_v29  }
0x1150   : > { %v10146_v54 = vpop.permute.xlu1 %4756 }
0x1152   : > { %4767 = vperm.xlu2 %7574, %v10031_v28  }
0x1153   : > { %7578 = vset.pattern.permute.xlu0 %v11454_v5 }
0x1158   : > { %v4776_v21 = vpop.permute.xlu1 %4775 }
0x1159   : > { %v4784_v20 = vmul.f32 %v4776_v21, %v11497_v43 }
0x115a   : > { %4779 = vperm.xlu2 %7574, %v10016_v61  }
0x115b   : > { %4794 = vrot.lane.b32.xlu0 %v4784_v20, %s11445_s9 }
0x1162   : > { %7577 = vset.pattern.permute.xlu2 %v11454_v5 }
0x1163   : > { %4811 = vperm.xlu0 %7578, %v9924_v29  }
0x116b   : > { %7582 = vset.pattern.permute.xlu0 %v11450_v2 }
0x11a4   : > { %v10156_v49 = vpop.permute.xlu2 %4752 }
0x11ac   : > { %v4768_v12 = vpop.permute.xlu2 %4767 }
0x11ad   : > { %v4782_v11 = vmul.f32 %v4768_v12, %v11495_v57  ;;  %v10276_v12 = vpop.f32.mrf.mxu1 }
0x11af   : > { %4790 = vrot.lane.b32.xlu1 %v4782_v11, %s11445_s9 }
0x11b4   : > { %v4780_v58 = vpop.permute.xlu2 %4779 }
0x11b5   : > { %v4785_v37 = vmul.f32 %v4780_v58, %v11496_v35  ;;  %v10161_v48 = vpop.permute.xlu0 %4754 }
0x11b7   : > { %4796 = vrot.lane.b32.xlu1 %v4785_v37, %s11445_s9 }
0x11bd   : > { %v4772_v3 = vpop.permute.xlu0 %4771 }
0x11be   : > { %v4783_v29 = vmul.f32 %v4772_v3, %v11491_v38 }
0x11bf   : > { %4815 = vperm.xlu1 %7579, %v10028_v15  }
0x11c0   : > { %4792 = vrot.lane.b32.xlu2 %v4783_v29, %s11445_s9  ;;  %v10288_v29 = vpop.f32.mrf.mxu1 }
0x11c1   : > { %11502 = vst [vmem:[#allocation45_spill] sm:$0xff] %v10288_v29 }
0x11c7   : > { %7580 = vset.pattern.permute.xlu1 %v11455_v59 }
0x11c8   : > { %4807 = vperm.xlu2 %7577, %v10031_v28  }
0x11cd   : > { %v10169_v27 = vpop.permute.xlu0 %4794 }
0x11d0   : > { %4819 = vperm.xlu2 %7577, %v10016_v61   ;;  %v10183_v61 = vld [vmem:[%s11449_s3 + $0x88] sm:$0xff] }
0x11d5   : > { %v4812_v22 = vpop.permute.xlu0 %4811 }
0x11d6   : > { %v4823_v42 = vmul.f32 %v4812_v22, %v11491_v38 }
0x11d8   : > { %4832 = vrot.lane.b32.xlu2 %v4823_v42, %s11446_s13 }
0x11d9   : > { %7581 = vset.pattern.permute.xlu2 %v11455_v59 }
0x11e0   : > { %4956 = vperm.xlu2 %7581, %v7205_v23   ;;  %v10296_v23 = vpop.f32.mrf.mxu1 }
0x11e8   : > { %5012 = vperm.xlu2 %7581, %v10183_v61  }
0x11f0   : > { %5022 = vperm.xlu2 %7581, %v10191_v19  }
0x11f8   : > { %7584 = vset.pattern.permute.xlu2 %v11450_v2 }
0x11f9   : > { %5042 = vperm.xlu2 %7584, %v10198_v13  }
0x1201   : > { %7586 = vset.pattern.permute.xlu2 %v11452_v10 }
0x1202   : > { %5078 = vperm.xlu2 %7586, %v10183_v61  }
0x120a   : > { %7588 = vset.pattern.permute.xlu2 %v11453_v45 }
0x120b   : > { %5118 = vperm.xlu2 %7588, %v10183_v61  }
0x1213   : > { %5122 = vperm.xlu2 %7588, %v10198_v13  }
0x121a   : > { %v10175_v63 = vpop.permute.xlu2 %4792 }
0x121b   : > { %5126 = vperm.xlu2 %7588, %v10191_v19  }
0x1221   : > { %v10178_v36 = vpop.permute.xlu1 %4790 }
0x1222   : > { %v4808_v17 = vpop.permute.xlu2 %4807 }
0x1223   : > { %v4822_v34 = vmul.f32 %v4808_v17, %v11495_v57  ;;  %7591 = vset.pattern.permute.xlu2 %v11454_v5 }
0x1224   : > { %5166 = vperm.xlu2 %7591, %v10191_v19  }
0x1225   : > { %4830 = vrot.lane.b32.xlu1 %v4822_v34, %s11446_s13 }
0x1229   : > { %v10186_v31 = vpop.permute.xlu1 %4796 }
0x122a   : > { %v4820_v62 = vpop.permute.xlu2 %4819 }
0x122b   : > { %v4825_v7 = vmul.f32 %v4820_v62, %v11496_v35  ;;  %v10304_v62 = vpop.f32.mrf.mxu1 }
0x122c   : > { %7592 = vset.pattern.permute.xlu2 %v11450_v2 }
0x122d   : > { %4836 = vrot.lane.b32.xlu1 %v4825_v7, %s11446_s13  ;;  %5349 = vperm.xlu2 %7592, %v10228_v26  }
0x1231   : > { %v4816_v9 = vpop.permute.xlu1 %4815 }
0x1232   : > { %v4824_v51 = vmul.f32 %v4816_v9, %v11497_v43  ;;  %v4833_v17 = vpop.permute.xlu2 %4832 }
0x1234   : > { %4834 = vrot.lane.b32.xlu0 %v4824_v51, %s11446_s13  ;;  %v4592_v51 = vpop.f32.mrf.mxu1 }
0x1235   : > { %4922 = vperm.xlu1 %7580, %v7199_v25   ;;  %7595 = vset.pattern.permute.xlu2 %v11452_v10  ;;  %v11506_v25 = vld [vmem:[#allocation56_spill] sm:$0xff] }
0x1236   : > { %5389 = vperm.xlu2 %7595, %v10228_v26  }
0x123a   : > { %v10306_v7 = vpop.permute.xlu2 %4956 }
0x123b   : > { %11505 = vst [vmem:[#allocation47_spill] sm:$0xff] %v10306_v7  ;;  %v4679_v7 = vmul.f32 %v10070_v44, %v11491_v38 }
0x123c   : > { %5034 = vperm.xlu0 %7582, %v7207_v55  }
0x123d   : > { %4927 = vperm.xlu1 %7580, %v7200_v56  }
0x123e   : > { %7597 = vset.pattern.permute.xlu2 %v11450_v2 }
0x123f   : > { %5361 = vperm.xlu2 %7597, %v10242_v52  }
0x1242   : > { %v10316_v56 = vpop.permute.xlu2 %5012 }
0x1244   : > { %5353 = vperm.xlu0 %7582, %v10207_v40  }
0x1245   : > { %4932 = vperm.xlu1 %7580, %v7201_v14  }
0x1247   : > { %7600 = vset.pattern.permute.xlu2 %v11453_v45 }
0x1248   : > { %5433 = vperm.xlu2 %7600, %v10207_v40  }
0x124a   : > { %v10334_v38 = vpop.permute.xlu2 %5022 }
0x124c   : > { %7593 = vset.pattern.permute.xlu0 %v11452_v10 }
0x124d   : > { %4937 = vperm.xlu1 %7580, %v7202_v30   ;;  %5082 = vperm.xlu0 %7593, %v10198_v13   ;;  %v11507_v30 = vld [vmem:[#allocation57_spill] sm:$0xff] }
0x1250   : > { %5437 = vperm.xlu2 %7600, %v10219_v39  }
0x1255   : > { %4946 = vperm.xlu1 %7580, %v7203_v0   ;;  %5397 = vperm.xlu0 %7593, %v10219_v39  }
0x1258   : > { %5441 = vperm.xlu2 %7600, %v10242_v52  }
0x125d   : > { %4951 = vperm.xlu1 %7580, %v7204_v32   ;;  %7598 = vset.pattern.permute.xlu0 %v11454_v5 }
0x125e   : > { %5154 = vperm.xlu0 %7598, %v7207_v55  }
0x1260   : > { %7604 = vset.pattern.permute.xlu2 %v11454_v5 }
0x1261   : > { %5481 = vperm.xlu2 %7604, %v10242_v52  }
0x1265   : > { %5007 = vperm.xlu1 %7580, %v7207_v55  }
0x1266   : > { %5469 = vperm.xlu0 %7598, %v10228_v26  }
0x1269   : > { %7605 = vset.pattern.permute.xlu2 %v11455_v59 }
0x126d   : > { %5017 = vperm.xlu1 %7580, %v10198_v13  }
0x126e   : > { %7602 = vset.pattern.permute.xlu0 %v11455_v59 }
0x126f   : > { %4660 = vperm.xlu0 %7602, %v10031_v28  }
0x1275   : > { %7583 = vset.pattern.permute.xlu1 %v11450_v2 }
0x1276   : > { %5038 = vperm.xlu1 %7583, %v10183_v61  }
0x1277   : > { %4670 = vperm.xlu0 %7602, %v10028_v15  }
0x127e   : > { %5046 = vperm.xlu1 %7583, %v10191_v19  }
0x127f   : > { %4961 = vperm.xlu0 %7602, %v7206_v6  }
0x1286   : > { %7585 = vset.pattern.permute.xlu1 %v11452_v10 }
0x1287   : > { %5074 = vperm.xlu1 %7585, %v7207_v55  }
0x128f   : > { %7587 = vset.pattern.permute.xlu1 %v11453_v45 }
0x1290   : > { %5114 = vperm.xlu1 %7587, %v7207_v55   ;;  %v4619_v55 = vpop.f32.mrf.mxu2 }
0x1297   : > { %v10254_v15 = vpop.permute.xlu1 %4830 }
0x1298   : > { %7589 = vset.pattern.permute.xlu1 %v11452_v10  ;;  %v4621_v29 = vpop.f32.mrf.mxu2 }
0x1299   : > { %5086 = vperm.xlu1 %7589, %v10191_v19  }
0x129f   : > { %v10259_v28 = vpop.permute.xlu1 %4836 }
0x12a1   : > { %7590 = vset.pattern.permute.xlu1 %v11454_v5 }
0x12a2   : > { %5158 = vperm.xlu1 %7590, %v10183_v61  }
0x12a6   : > { %v10264_v24 = vpop.permute.xlu0 %4834 }
0x12a7   : > { %v10266_v1 = vpop.permute.xlu1 %4922 }
0x12a8   : > { %11498 = vst [vmem:[#allocation51_spill] sm:$0xff] %v10266_v1 }
0x12aa   : > { %5162 = vperm.xlu1 %7590, %v10198_v13   ;;  %v3805_v13 = vmul.f32 %v11506_v25, %v10001_v33  ;;  %v11508_v33 = vld [vmem:[#allocation55_spill] sm:$0xff] }
0x12ab   : > { %v3806_v25 = vmul.f32 %v11508_v33, %v10003_v60  ;;  %v11509_v60 = vld [vmem:[#allocation49_spill] sm:$0xff] }
0x12ac   : > { %v3829_v0 = vadd.f32 %v11507_v30, %v3805_v13 }
0x12ae   : > { %v10270_v21 = vpop.permute.xlu0 %5034 }
0x12af   : > { %v10272_v20 = vpop.permute.xlu1 %4927 }
0x12b0   : > { %11499 = vst [vmem:[#allocation59_spill] sm:$0xff] %v10272_v20  ;;  %v4723_v20 = vadd.f32 %v10104_v46, %v4679_v7  ;;  %v3830_v46 = vadd.f32 %v11509_v60, %v3806_v25 }
0x12b2   : > { %7594 = vset.pattern.permute.xlu1 %v11450_v2 }
0x12b3   : > { %5357 = vperm.xlu1 %7594, %v10219_v39  }
0x12b6   : > { %v10278_v11 = vpop.permute.xlu0 %5353 }
0x12b7   : > { %v10280_v58 = vpop.permute.xlu1 %4932 }
0x12b8   : > { %11500 = vst [vmem:[#allocation46_spill] sm:$0xff] %v10280_v58 }
0x12bb   : > { %7596 = vset.pattern.permute.xlu1 %v11452_v10 }
0x12bc   : > { %5393 = vperm.xlu1 %7596, %v10207_v40  }
0x12bf   : > { %v10284_v37 = vpop.permute.xlu0 %5082  ;;  %v10286_v3 = vpop.permute.xlu1 %4937 }
0x12c0   : > { %11501 = vst [vmem:[#allocation50_spill] sm:$0xff] %v10286_v3  ;;  %v4629_v3 = vmul.f32 %v4592_v51, %v3829_v0  ;;  %v4763_v51 = vadd.f32 %v10156_v49, %v4723_v20  ;;  %v11510_v20 = vld [vmem:[#allocation54_spill] sm:$0xff] }
0x12c1   : > { %v3807_v7 = vmul.f32 %v11510_v20, %v10005_v18 }
0x12c4   : > { %7599 = vset.pattern.permute.xlu1 %v11453_v45 }
0x12c5   : > { %5429 = vperm.xlu1 %7599, %v10228_v26  }
0x12c7   : > { %v10292_v22 = vpop.permute.xlu0 %5397  ;;  %v10294_v42 = vpop.permute.xlu1 %4946 }
0x12c8   : > { %11503 = vst [vmem:[#allocation52_spill] sm:$0xff] %v10294_v42  ;;  %v4594_v42 = vpop.f32.mrf.mxu1 }
0x12cd   : > { %7601 = vset.pattern.permute.xlu1 %v11452_v10 }
0x12ce   : > { %5401 = vperm.xlu1 %7601, %v10242_v52  }
0x12cf   : > { %v10300_v34 = vpop.permute.xlu1 %4951 }
0x12d0   : > { %11504 = vst [vmem:[#allocation48_spill] sm:$0xff] %v10300_v34  ;;  %v10302_v61 = vpop.permute.xlu0 %5154  ;;  %v4633_v34 = vadd.f32 %v4629_v3, %v4619_v55 }
0x12d6   : > { %7603 = vset.pattern.permute.xlu1 %v11454_v5 }
0x12d7   : > { %5473 = vperm.xlu1 %7603, %v10207_v40   ;;  %v10310_v19 = vpop.permute.xlu1 %5007 }
0x12d8   : > { %v10312_v9 = vpop.permute.xlu0 %5469 }
0x12df   : > { %5477 = vperm.xlu1 %7603, %v10219_v39   ;;  %v10319_v14 = vpop.permute.xlu1 %5017 }
0x12e1   : > { %v4661_v32 = vpop.permute.xlu0 %4660 }
0x12e2   : > { %v4678_v6 = vmul.f32 %v4661_v32, %v11495_v57  ;;  %v4681_v57 = vmul.f32 %v10085_v47, %v11496_v35  ;;  %v4630_v35 = vmul.f32 %v4594_v42, %v3830_v46 }
0x12e4   : > { %v4722_v58 = vadd.f32 %v10121_v41, %v4678_v6  ;;  %v4634_v13 = vadd.f32 %v4630_v35, %v4621_v29 }
0x12e6   : > { %v4762_v1 = vadd.f32 %v10142_v50, %v4722_v58  ;;  %v4725_v50 = vadd.f32 %v10130_v53, %v4681_v57  ;;  %v4803_v58 = vadd.f32 %v10175_v63, %v4763_v51 }
0x12e7   : > { %4980 = vrot.lane.b32.xlu1 %v4633_v34, %s11441_s8 }
0x12e8   : > { %v4802_v44 = vadd.f32 %v10178_v36, %v4762_v1  ;;  %v10337_v41 = vpop.permute.xlu1 %5038  ;;  %7606 = vset.pattern.permute.xlu1 %v11455_v59  ;;  %v4765_v49 = vadd.f32 %v10146_v54, %v4725_v50  ;;  %v10348_v36 = vadd.f32 %v4833_v17, %v4803_v58  ;;  %v4624_v17 = vpop.f32.mrf.mxu2 }
0x12e9   : > { %v4671_v3 = vpop.permute.xlu0 %4670 }
0x12ea   : > { %v10344_v34 = vadd.f32 %v10254_v15, %v4802_v44  ;;  %v4680_v47 = vmul.f32 %v4671_v3, %v11497_v43  ;;  %v4805_v53 = vadd.f32 %v10186_v31, %v4765_v49  ;;  %v4597_v43 = vpop.f32.mrf.mxu1  ;;  %v4874_v54 = vmul.f32 %v10348_v36, %v10348_v36 }
0x12eb   : > { %v4857_v55 = vsel %vm2022_vm12, %v10348_v36, 0.0 }
0x12ec   : > { %v4724_v1 = vadd.f32 %v10134_v16, %v4680_v47  ;;  %v4873_v15 = vmul.f32 %v10344_v34, %v10344_v34  ;;  %v10361_v42 = vadd.f32 %v10259_v28, %v4805_v53  ;;  %v10363_v16 = vpop.permute.xlu2 %5042  ;;  %v4856_v31 = vsel %vm2022_vm12, %v10344_v34, 0.0 }
0x12ed   : > { %v4858_v32 = vadd.f32 %v4857_v55, %v4856_v31 }
0x12ee   : > { %v4764_v63 = vadd.f32 %v10161_v48, %v4724_v1  ;;  %v3831_v48 = vadd.f32 %v9845_v4, %v3807_v7  ;;  %v4877_v28 = vsel %vm2022_vm12, %v4873_v15, 0.0  ;;  %v4876_v6 = vmul.f32 %v10361_v42, %v10361_v42  ;;  %v11511_v1 = vld [vmem:[#allocation53_spill] sm:$0xff] }
0x12ef   : > { %4982 = vrot.lane.b32.xlu1 %v4634_v13, %s11441_s8  ;;  %v3808_v20 = vmul.f32 %v11511_v1, %v10007_v8  ;;  %v11512_v13 = vld [vmem:[#allocation58_spill] sm:$0xff] }
0x12f0   : > { %v4804_v18 = vadd.f32 %v10169_v27, %v4764_v63  ;;  %v10369_v29 = vpop.permute.xlu1 %5046  ;;  %v4631_v0 = vmul.f32 %v4597_v43, %v3831_v48  ;;  %v4878_v27 = vsel %vm2022_vm12, %v4874_v54, 0.0  ;;  %v4882_v3 = vsel %vm2022_vm12, %v4876_v6, 0.0  ;;  %v4626_v15 = vpop.f32.mrf.mxu2 }
0x12f1   : > { %v4879_v51 = vadd.f32 %v4878_v27, %v4877_v28  ;;  %v3832_v53 = vadd.f32 %v11512_v13, %v3808_v20  ;;  %v10445_v1 = vpop.permute.xlu0 %4961 }
0x12f2   : > { %v10374_v30 = vadd.f32 %v10264_v24, %v4804_v18  ;;  %v4635_v25 = vadd.f32 %v4631_v0, %v4624_v17  ;;  %v4861_v24 = vsel %vm2022_vm12, %v10361_v42, 0.0  ;;  %v4599_v7 = vpop.f32.mrf.mxu1 }
0x12f3   : > { %v4632_v43 = vmul.f32 %v4599_v7, %v3832_v53 }
0x12f4   : > { %v4859_v4 = vsel %vm2022_vm12, %v10374_v30, 0.0  ;;  %v4875_v33 = vmul.f32 %v10374_v30, %v10374_v30  ;;  %v10389_v47 = vpop.permute.xlu2 %5078 }
0x12f5   : > { %v4860_v57 = vadd.f32 %v4859_v4, %v4858_v32  ;;  %v4636_v18 = vadd.f32 %v4632_v43, %v4626_v15 }
0x12f6   : > { %v4880_v44 = vsel %vm2022_vm12, %v4875_v33, 0.0 }
0x12f7   : > { %4984 = vrot.lane.b32.xlu1 %v4635_v25, %s11441_s8  ;;  %v4862_v60 = vadd.f32 %v4861_v24, %v4860_v57  ;;  %v4881_v46 = vadd.f32 %v4880_v44, %v4879_v51 }
0x12f9   : > { %4863 = vadd.xlane.f32.xlu2 %v4862_v60  ;;  %v4883_v50 = vadd.f32 %v4882_v3, %v4881_v46  ;;  %v5075_v58 = vpop.permute.xlu1 %5074 }
0x12fb   : > { %4884 = vadd.xlane.f32.xlu0 %v4883_v50 }
0x12fc   : > { %v5119_v49 = vpop.permute.xlu2 %5118 }
0x1302   : > { %v5115_v35 = vpop.permute.xlu1 %5114 }
0x1304   : > { %v10396_v54 = vpop.permute.xlu2 %5122 }
0x130b   : > { %v10394_v63 = vpop.permute.xlu1 %5086 }
0x130c   : > { %v10399_v48 = vpop.permute.xlu2 %5126 }
0x1311   : > { %4986 = vrot.lane.b32.xlu2 %v4636_v18, %s11441_s8 }
0x1314   : > { %v5159_v31 = vpop.permute.xlu1 %5158  ;;  %v10404_v8 = vpop.permute.xlu2 %5166 }
0x1319   : > { %5322 = vperm.xlu2 %7605, %v10228_v26  }
0x131c   : > { %v10402_v17 = vpop.permute.xlu1 %5162  ;;  %v10409_v28 = vpop.permute.xlu2 %5349 }
0x1321   : > { %5327 = vperm.xlu2 %7605, %v10207_v40  }
0x1324   : > { %v10413_v32 = vpop.permute.xlu2 %5389 }
0x1325   : > { %v10407_v55 = vpop.permute.xlu1 %5357 }
0x132c   : > { %v10417_v6 = vpop.permute.xlu2 %5361 }
0x132e   : > { %v10411_v0 = vpop.permute.xlu1 %5393 }
0x1334   : > { %v10421_v26 = vpop.permute.xlu2 %5433 }
0x1337   : > { %v10415_v27 = vpop.permute.xlu1 %5429 }
0x133c   : > { %v10427_v40 = vpop.permute.xlu2 %5437 }
0x1340   : > { %v10419_v4 = vpop.permute.xlu1 %5401 }
0x1344   : > { %v10430_v51 = vpop.permute.xlu2 %5441 }
0x1349   : > { %v10423_v33 = vpop.permute.xlu1 %5473 }
0x134c   : > { %v10440_v50 = vpop.permute.xlu2 %5481 }
0x1351   : > { %v10425_v25 = vpop.permute.xlu1 %5477 }
0x1359   : > { %v4981_v57 = vpop.permute.xlu1 %4980 }
0x135a   : > { %4992 = vst.msk [vmem:[#allocation5] sm:$0xff] %vm2077_vm3, %v4981_v57 }
0x1361   : > { %v4983_v24 = vpop.permute.xlu1 %4982  ;;  %v10432_v44 = vld [vmem:[#allocation5] sm:$0xff] }
0x1362   : > { %4993 = vst.msk [vmem:[#allocation5 + $0x8] sm:$0xff] %vm2077_vm3, %v4983_v24  ;;  %v5169_v60 = vmul.f32 %v10302_v61, %v10432_v44  ;;  %v5089_v46 = vmul.f32 %v5075_v58, %v10432_v44  ;;  %v5049_v3 = vmul.f32 %v10270_v21, %v10432_v44  ;;  %v5129_v58 = vmul.f32 %v5115_v35, %v10432_v44 }
0x1364   : > { %5177 = vrot.lane.b32.xlu0 %v5169_v60, %s11446_s13  ;;  %5097 = vrot.lane.b32.xlu1 %v5089_v46, %s11444_s22 }
0x1365   : > { %5057 = vrot.lane.b32.xlu2 %v5049_v3, %s11443_s11 }
0x1369   : > { %v4985_v20 = vpop.permute.xlu1 %4984  ;;  %v10447_v7 = vld [vmem:[#allocation5 + $0x8] sm:$0xff] }
0x136a   : > { %4994 = vst.msk [vmem:[#allocation5 + $0x10] sm:$0xff] %vm2077_vm3, %v4985_v20  ;;  %v5170_v61 = vmul.f32 %v5159_v31, %v10447_v7  ;;  %v5050_v21 = vmul.f32 %v10337_v41, %v10447_v7  ;;  %v5130_v60 = vmul.f32 %v5119_v49, %v10447_v7  ;;  %v5090_v35 = vmul.f32 %v10389_v47, %v10447_v7 }
0x136c   : > { %v4864_v13 = vpop.xlane.xlu2 %4863  ;;  %5179 = vrot.lane.b32.xlu1 %v5170_v61, %s11446_s13  ;;  %5059 = vrot.lane.b32.xlu0 %v5050_v21, %s11443_s11 }
0x136d   : > { %v4865_v53 = vrot.slane %v4864_v13, 4  ;;  %5137 = vrot.lane.b32.xlu2 %v5129_v58, %s11445_s9 }
0x136e   : > { %v4885_v15 = vpop.xlane.xlu0 %4884 }
0x136f   : > { %v4866_v43 = vadd.f32 %v4865_v53, %v4864_v13  ;;  %v4886_v18 = vrot.slane %v4885_v15, 4 }
0x1371   : > { %v4887_v57 = vadd.f32 %v4886_v18, %v4885_v15  ;;  %v10457_v24 = vld [vmem:[#allocation5 + $0x10] sm:$0xff]  ;;  %v4867_v31 = vrot.slane %v4866_v43, 2 }
0x1372   : > { %v5091_v41 = vmul.f32 %v10284_v37, %v10457_v24  ;;  %v5051_v47 = vmul.f32 %v10363_v16, %v10457_v24  ;;  %v5131_v13 = vmul.f32 %v10396_v54, %v10457_v24  ;;  %v5404_v54 = vmul.f32 %v10413_v32, %v10432_v44 }
0x1373   : > { %v4868_v46 = vadd.f32 %v4867_v31, %v4866_v43  ;;  %v4888_v3 = vrot.slane %v4887_v57, 2  ;;  %v5171_v43 = vmul.f32 %v10402_v17, %v10457_v24  ;;  %v5444_v17 = vmul.f32 %v10415_v27, %v10432_v44 }
0x1374   : > { %v4987_v20 = vpop.permute.xlu2 %4986  ;;  %5139 = vrot.lane.b32.xlu0 %v5130_v60, %s11445_s9  ;;  %5101 = vrot.lane.b32.xlu1 %v5091_v41, %s11444_s22 }
0x1375   : > { %4995 = vst.msk [vmem:[#allocation5 + $0x18] sm:$0xff] %vm2077_vm3, %v4987_v20  ;;  %5099 = vrot.lane.b32.xlu2 %v5090_v35, %s11444_s22  ;;  %v4869_v61 = vrot.slane %v4868_v46, 1  ;;  %v4889_v21 = vadd.f32 %v4888_v3, %v4887_v57  ;;  %v5484_v57 = vmul.f32 %v10312_v9, %v10432_v44  ;;  %v5486_v35 = vmul.f32 %v10425_v25, %v10457_v24 }
0x1376   : > { %v5025_v25 = vmul.f32 %v10310_v19, %v10432_v44 }
0x1377   : > { %v4870_v49 = vadd.f32 %v4869_v61, %v4868_v46  ;;  %v4890_v58 = vrot.slane %v4889_v21, 1 }
0x1379   : > { %7318 = vpush %v4870_v49  ;;  %v4891_v37 = vadd.f32 %v4890_v58, %v4889_v21 }
0x137b   : > { %7320 = vpush %v4891_v37 }
0x137c   : > { %5061 = vrot.lane.b32.xlu0 %v5051_v47, %s11443_s11  ;;  %v10473_v53 = vld [vmem:[#allocation5 + $0x18] sm:$0xff]  ;;  %v10537_v41 = vpop.permute.xlu2 %5322 }
0x137d   : > { %5141 = vrot.lane.b32.xlu2 %v5131_v13, %s11445_s9  ;;  %v5092_v15 = vmul.f32 %v10394_v63, %v10473_v53  ;;  %v5132_v16 = vmul.f32 %v10399_v48, %v10473_v53  ;;  %v5052_v63 = vmul.f32 %v10369_v29, %v10473_v53  ;;  %v5364_v48 = vmul.f32 %v10409_v28, %v10432_v44 }
0x137e   : > { %v5172_v32 = vmul.f32 %v10404_v8, %v10473_v53  ;;  %v5365_v29 = vmul.f32 %v10278_v11, %v10447_v7  ;;  %v5366_v8 = vmul.f32 %v10407_v55, %v10457_v24  ;;  %v5407_v28 = vmul.f32 %v10419_v4, %v10473_v53 }
0x137f   : > { %5103 = vrot.lane.b32.xlu1 %v5092_v15, %s11444_s22  ;;  %v5405_v11 = vmul.f32 %v10411_v0, %v10447_v7  ;;  %v5406_v55 = vmul.f32 %v10292_v22, %v10457_v24  ;;  %v5445_v0 = vmul.f32 %v10421_v26, %v10447_v7  ;;  %v5367_v26 = vmul.f32 %v10417_v6, %v10473_v53 }
0x1380   : > { %v5026_v15 = vmul.f32 %v10316_v56, %v10447_v7  ;;  %v5028_v56 = vmul.f32 %v10334_v38, %v10473_v53 }
0x1384   : > { %5181 = vrot.lane.b32.xlu0 %v5171_v43, %s11446_s13  ;;  %v10543_v3 = vpop.permute.xlu2 %5327 }
0x1385   : > { %5143 = vrot.lane.b32.xlu2 %v5132_v16, %s11445_s9  ;;  %v5027_v16 = vmul.f32 %v10319_v14, %v10457_v24 }
0x1387   : > { %5412 = vrot.lane.b32.xlu1 %v5404_v54, %s11444_s22 }
0x138c   : > { %5063 = vrot.lane.b32.xlu0 %v5052_v63, %s11443_s11 }
0x138d   : > { %5332 = vperm.xlu2 %7605, %v10219_v39   ;;  %v5446_v39 = vmul.f32 %v10427_v40, %v10457_v24 }
0x138f   : > { %5452 = vrot.lane.b32.xlu1 %v5444_v17, %s11445_s9 }
0x1394   : > { %5337 = vperm.xlu0 %7602, %v10242_v52   ;;  %v5485_v52 = vmul.f32 %v10423_v33, %v10447_v7 }
0x1395   : > { %5372 = vrot.lane.b32.xlu2 %v5364_v48, %s11443_s11 }
0x1397   : > { %5183 = vrot.lane.b32.xlu1 %v5172_v32, %s11446_s13 }
0x139c   : > { %5456 = vrot.lane.b32.xlu0 %v5446_v39, %s11445_s9 }
0x139d   : > { %5374 = vrot.lane.b32.xlu2 %v5365_v29, %s11443_s11  ;;  %7608 = vset.pattern.permute.xlu0 %v11450_v2 }
0x139f   : > { %5494 = vrot.lane.b32.xlu1 %v5485_v52, %s11446_s13 }
0x13a5   : > { %5376 = vrot.lane.b32.xlu2 %v5366_v8, %s11443_s11 }
0x13a7   : > { %5418 = vrot.lane.b32.xlu1 %v5407_v28, %s11444_s22 }
0x13aa   : > { %s7319_s14 = spop %7318 }
0x13ab   : > { %s10518_s18 = smul.f32 0.00390625, %s7319_s14 }
0x13ac   : > { %s7321_s19 = spop %7320 }
0x13ad   : > { %s4894_s29 = smul.f32 %s10518_s18, %s10518_s18  ;;  %5414 = vrot.lane.b32.xlu2 %v5405_v11, %s11444_s22 }
0x13ae   : > { %s4893_s24 = smul.f32 0.00390625, %s7321_s19 }
0x13b0   : > { %s4895_s30 = ssub.f32 %s4893_s24, %s4894_s29 }
0x13b2   : > { %s4896_s21 = smax.f32 %s11440_s5, %s4895_s30 }
0x13b3   : > { %s4902_s17 = sadd.f32 1e-08, %s4896_s21 }
0x13b5   : > { %v4903_v27 = vstv %s4902_s17  ;;  %5416 = vrot.lane.b32.xlu2 %v5406_v55, %s11444_s22 }
0x13b6   : > { %7676 = vrsqrt.f32 %v4903_v27  ;;  %vm4910_vm13 = vweird.f32 %v4903_v27 }
0x13bc   : > { %v7677_v4 = vpop.eup %7676 }
0x13bd   : > { %v4905_v33 = vmul.f32 %v7677_v4, %v4903_v27  ;;  %5454 = vrot.lane.b32.xlu2 %v5445_v0, %s11445_s9  ;;  %vm4911_vm3 = vweird.f32 %v7677_v4 }
0x13be   : > { %vm4912_vm2 = vmor %vm4910_vm13, %vm4911_vm3 }
0x13bf   : > { %v4906_v40 = vmul.f32 %v7677_v4, %v4905_v33  ;;  %v5058_v61 = vpop.permute.xlu2 %5057 }
0x13c0   : > { %v5069_v63 = vadd.f32 %v5058_v61, %v5025_v25 }
0x13c1   : > { %v4907_v18 = vmul.f32 0.5, %v4906_v40 }
0x13c3   : > { %v4908_v31 = vsub.f32 1.5, %v4907_v18 }
0x13c5   : > { %5492 = vrot.lane.b32.xlu2 %v5484_v57, %s11446_s13  ;;  %v4909_v22 = vmul.f32 %v7677_v4, %v4908_v31 }
0x13c7   : > { %v4913_v60 = vsel %vm4912_vm2, %v7677_v4, %v4909_v22  ;;  %v5138_v58 = vpop.permute.xlu2 %5137 }
0x13c8   : > { %7322 = vpush %v4913_v60 }
0x13cd   : > { %5378 = vrot.lane.b32.xlu2 %v5367_v26, %s11443_s11 }
0x13cf   : > { %v5100_v13 = vpop.permute.xlu2 %5099 }
0x13d5   : > { %5496 = vrot.lane.b32.xlu2 %v5486_v35, %s11446_s13 }
0x13d6   : > { %v5178_v9 = vpop.permute.xlu0 %5177  ;;  %v5098_v46 = vpop.permute.xlu1 %5097 }
0x13d7   : > { %v5109_v32 = vadd.f32 %v5098_v46, %v5069_v63  ;;  %v5142_v8 = vpop.permute.xlu2 %5141  ;;  %v7212_v63 = vld [vmem:[%s11456_s1 + $0x88] sm:$0xff] }
0x13d9   : > { %v5149_v28 = vadd.f32 %v5138_v58, %v5109_v32  ;;  %v7215_v32 = vld [vmem:[%s11457_s15 + $0x80] sm:$0xff] }
0x13db   : > { %v10559_v0 = vadd.f32 %v5178_v9, %v5149_v28  ;;  %v7223_v28 = vld [vmem:[%s11456_s1 + $0xa0] sm:$0xff] }
0x13dd   : > { %v5220_v18 = vmul.f32 %v10559_v0, %v10559_v0  ;;  %v5203_v26 = vsel %vm2307_vm1, %v10559_v0, 0.0 }
0x13de   : > { %v5060_v20 = vpop.permute.xlu0 %5059  ;;  %v5180_v21 = vpop.permute.xlu1 %5179 }
0x13df   : > { %v5070_v43 = vadd.f32 %v5060_v20, %v5026_v15  ;;  %v5144_v31 = vpop.permute.xlu2 %5143  ;;  %v5224_v61 = vsel %vm2307_vm1, %v5220_v18, 0.0 }
0x13e1   : > { %v5110_v39 = vadd.f32 %v5100_v13, %v5070_v43  ;;  %v5447_v43 = vmul.f32 %v10430_v51, %v10473_v53  ;;  %v7216_v51 = vld [vmem:[%s11457_s15 + $0x88] sm:$0xff] }
0x13e6   : > { %v5140_v49 = vpop.permute.xlu0 %5139  ;;  %v5102_v37 = vpop.permute.xlu1 %5101 }
0x13e7   : > { %v5150_v29 = vadd.f32 %v5140_v49, %v5110_v39 }
0x13e9   : > { %v10555_v19 = vadd.f32 %v5180_v21, %v5150_v29 }
0x13eb   : > { %v5221_v33 = vmul.f32 %v10555_v19, %v10555_v19  ;;  %v5204_v38 = vsel %vm2307_vm1, %v10555_v19, 0.0 }
0x13ec   : > { %v5205_v46 = vadd.f32 %v5204_v38, %v5203_v26  ;;  %v11513_v38 = vld [vmem:[#allocation41_spill] sm:$0xff]  ;;  %v11514_v26 = vld [vmem:[#allocation44_spill] sm:$0xff] }
0x13ed   : > { %v5225_v35 = vsel %vm2307_vm1, %v5221_v33, 0.0 }
0x13ee   : > { %v5062_v6 = vpop.permute.xlu0 %5061  ;;  %v5226_v58 = vadd.f32 %v5225_v35, %v5224_v61  ;;  %v3438_v35 = vadd.f32 %v10304_v62, %v11514_v26  ;;  %v5341_v62 = vmul.f32 %v10543_v3, %v10447_v7 }
0x13ef   : > { %v5071_v17 = vadd.f32 %v5062_v6, %v5027_v16  ;;  %v5487_v16 = vmul.f32 %v10440_v50, %v10473_v53 }
0x13f1   : > { %v5104_v47 = vpop.permute.xlu1 %5103  ;;  %v5111_v52 = vadd.f32 %v5102_v37, %v5071_v17  ;;  %v5333_v17 = vpop.permute.xlu2 %5332 }
0x13f3   : > { %v5151_v55 = vadd.f32 %v5142_v8, %v5111_v52  ;;  %v7213_v52 = vld [vmem:[%s11456_s1 + $0x90] sm:$0xff]  ;;  %v7218_v8 = vld [vmem:[%s11457_s15 + $0x98] sm:$0xff] }
0x13f6   : > { %v5182_v54 = vpop.permute.xlu0 %5181 }
0x13f7   : > { %v10561_v4 = vadd.f32 %v5182_v54, %v5151_v55  ;;  %v7211_v54 = vld [vmem:[%s11456_s1 + $0x80] sm:$0xff] }
0x13f9   : > { %v10551_v48 = vpop.permute.xlu1 %5412  ;;  %v5222_v57 = vmul.f32 %v10561_v4, %v10561_v4  ;;  %v5206_v22 = vsel %vm2307_vm1, %v10561_v4, 0.0  ;;  %v5373_v39 = vpop.permute.xlu2 %5372  ;;  %s10679_s14 = spop %7322 }
0x13fa   : > { %v5207_v49 = vadd.f32 %v5206_v22, %v5205_v46 }
0x13fb   : > { %v5227_v21 = vsel %vm2307_vm1, %v5222_v57, 0.0  ;;  %v3431_v57 = vadd.f32 %v10276_v12, %v11513_v38  ;;  %v10608_v12 = vld [vmem:[%s11449_s3 + $0x10] sm:$0xff]  ;;  %v10639_v38 = vld [vmem:[%s11449_s3] sm:$0xff] }
0x13fc   : > { %v5228_v13 = vadd.f32 %v5227_v21, %v5226_v58 }
0x13fe   : > { %v5064_v11 = vpop.permute.xlu0 %5063 }
0x13ff   : > { %v5072_v27 = vadd.f32 %v5064_v11, %v5028_v56  ;;  %v7227_v11 = vld [vmem:[%s11457_s15 + $0xa0] sm:$0xff] }
0x1401   : > { %v10557_v14 = vpop.permute.xlu1 %5452  ;;  %v5112_v40 = vadd.f32 %v5104_v47, %v5072_v27  ;;  %v5375_v29 = vpop.permute.xlu2 %5374  ;;  %v7226_v27 = vld [vmem:[%s11456_s1 + $0xb8] sm:$0xff] }
0x1403   : > { %v5152_v60 = vadd.f32 %v5144_v31, %v5112_v40 }
0x1406   : > { %v5338_v33 = vpop.permute.xlu0 %5337 }
0x1407   : > { %v5343_v3 = vmul.f32 %v5338_v33, %v10473_v53 }
0x1409   : > { %v5184_v9 = vpop.permute.xlu1 %5183  ;;  %v5377_v50 = vpop.permute.xlu2 %5376 }
0x140a   : > { %v10576_v20 = vadd.f32 %v5184_v9, %v5152_v60 }
0x140c   : > { %v5223_v37 = vmul.f32 %v10576_v20, %v10576_v20  ;;  %v5208_v6 = vsel %vm2307_vm1, %v10576_v20, 0.0 }
0x140d   : > { %v5209_v47 = vadd.f32 %v5208_v6, %v5207_v49 }
0x140e   : > { %v5229_v15 = vsel %vm2307_vm1, %v5223_v37, 0.0  ;;  %v5457_v31 = vpop.permute.xlu0 %5456 }
0x140f   : > { %5210 = vadd.xlane.f32.xlu0 %v5209_v47  ;;  %v5230_v25 = vadd.f32 %v5229_v15, %v5228_v13  ;;  %v5340_v15 = vmul.f32 %v10537_v41, %v10432_v44  ;;  %v10618_v41 = vld [vmem:[%s11449_s3 + $0x8] sm:$0xff] }
0x1411   : > { %5231 = vadd.xlane.f32.xlu1 %v5230_v25  ;;  %v5415_v56 = vpop.permute.xlu2 %5414  ;;  %v5495_v40 = vpop.permute.xlu1 %5494  ;;  %v5342_v25 = vmul.f32 %v5333_v17, %v10457_v24 }
0x1419   : > { %v5417_v55 = vpop.permute.xlu2 %5416  ;;  %v5419_v22 = vpop.permute.xlu1 %5418 }
0x1421   : > { %v5455_v18 = vpop.permute.xlu2 %5454 }
0x1423   : > { %5458 = vrot.lane.b32.xlu0 %v5447_v43, %s11445_s9 }
0x1429   : > { %v5493_v60 = vpop.permute.xlu2 %5492 }
0x142a   : > { %5498 = vrot.lane.b32.xlu1 %v5487_v16, %s11446_s13 }
0x1431   : > { %v5379_v6 = vpop.permute.xlu2 %5378 }
0x1432   : > { %5269 = vperm.xlu1 %7606, %v7211_v54   ;;  %v5384_v54 = vadd.f32 %v5373_v39, %v5340_v15  ;;  %v10658_v15 = vld [vmem:[%s11449_s3 + $0x18] sm:$0xff] }
0x1439   : > { %v5497_v24 = vpop.permute.xlu2 %5496 }
0x143a   : > { %5274 = vperm.xlu1 %7606, %v7212_v63   ;;  %v5385_v63 = vadd.f32 %v5375_v29, %v5341_v62  ;;  %v5387_v29 = vadd.f32 %v5379_v6, %v5343_v3 }
0x1442   : > { %5293 = vperm.xlu1 %7606, %v7215_v32   ;;  %v5386_v32 = vadd.f32 %v5377_v50, %v5342_v25 }
0x144a   : > { %5298 = vperm.xlu1 %7606, %v7216_v51  }
0x1452   : > { %5279 = vperm.xlu1 %7606, %v7213_v52  }
0x145a   : > { %5308 = vperm.xlu1 %7606, %v7218_v8   ;;  %v5424_v8 = vadd.f32 %v10551_v48, %v5384_v54 }
0x1462   : > { %5584 = vperm.xlu1 %7606, %v7223_v28   ;;  %v5425_v28 = vadd.f32 %v5415_v56, %v5385_v63  ;;  %v7217_v63 = vld [vmem:[%s11457_s15 + $0x90] sm:$0xff] }
0x1464   : > { %v5465_v7 = vadd.f32 %v5455_v18, %v5425_v28  ;;  %v5427_v18 = vadd.f32 %v5419_v22, %v5387_v29  ;;  %v7214_v29 = vld [vmem:[%s11456_s1 + $0x98] sm:$0xff] }
0x1466   : > { %v10626_v48 = vadd.f32 %v5495_v40, %v5465_v7 }
0x1468   : > { %v5519_v40 = vsel %vm2307_vm1, %v10626_v48, 0.0 }
0x146a   : > { %5608 = vperm.xlu1 %7606, %v7227_v11   ;;  %v5426_v11 = vadd.f32 %v5417_v55, %v5386_v32  ;;  %v5536_v55 = vmul.f32 %v10626_v48, %v10626_v48 }
0x146c   : > { %v5466_v17 = vadd.f32 %v5457_v31, %v5426_v11  ;;  %v5540_v22 = vsel %vm2307_vm1, %v5536_v55, 0.0 }
0x146e   : > { %v10628_v50 = vadd.f32 %v5497_v24, %v5466_v17 }
0x1470   : > { %v5537_v33 = vmul.f32 %v10628_v50, %v10628_v50  ;;  %v5521_v31 = vsel %vm2307_vm1, %v10628_v50, 0.0 }
0x1472   : > { %5599 = vperm.xlu1 %7606, %v7226_v27   ;;  %v5464_v27 = vadd.f32 %v10557_v14, %v5424_v8 }
0x1474   : > { %v10623_v39 = vadd.f32 %v5493_v60, %v5464_v27  ;;  %v11517_v27 = vld [vmem:[#allocation45_spill] sm:$0xff] }
0x1476   : > { %v5535_v14 = vmul.f32 %v10623_v39, %v10623_v39  ;;  %v5518_v53 = vsel %vm2307_vm1, %v10623_v39, 0.0 }
0x1477   : > { %v5520_v26 = vadd.f32 %v5519_v40, %v5518_v53 }
0x147a   : > { %5784 = vrot.lane.b32.xlu1 %v3431_v57, %s11441_s8  ;;  %v5539_v57 = vsel %vm2307_vm1, %v5535_v14, 0.0 }
0x147b   : > { %7609 = vset.pattern.permute.xlu1 %v11450_v2 }
0x1482   : > { %5790 = vrot.lane.b32.xlu1 %v3438_v35, %s11441_s8  ;;  %v5211_v9 = vpop.xlane.xlu0 %5210 }
0x1483   : > { %v5212_v46 = vrot.slane %v5211_v9, 4 }
0x1484   : > { %v5232_v61 = vpop.xlane.xlu1 %5231 }
0x1485   : > { %v5213_v21 = vadd.f32 %v5212_v46, %v5211_v9  ;;  %v5233_v49 = vrot.slane %v5232_v61, 4  ;;  %v5542_v46 = vsel %vm2307_vm1, %v5537_v33, 0.0 }
0x1487   : > { %v5214_v58 = vrot.slane %v5213_v21, 2  ;;  %v5234_v37 = vadd.f32 %v5233_v49, %v5232_v61  ;;  %v5522_v61 = vadd.f32 %v5521_v31, %v5520_v26 }
0x1489   : > { %v5215_v47 = vadd.f32 %v5214_v58, %v5213_v21  ;;  %v5235_v13 = vrot.slane %v5234_v37, 2  ;;  %v5541_v21 = vadd.f32 %v5540_v22, %v5539_v57  ;;  %v7225_v57 = vld [vmem:[%s11456_s1 + $0xb0] sm:$0xff] }
0x148a   : > { %5845 = vperm.xlu1 %7609, %v10608_v12  }
0x148b   : > { %v5216_v43 = vrot.slane %v5215_v47, 1  ;;  %v5236_v16 = vadd.f32 %v5235_v13, %v5234_v37  ;;  %v5543_v6 = vadd.f32 %v5542_v46, %v5541_v21 }
0x148d   : > { %v5217_v51 = vadd.f32 %v5216_v43, %v5215_v47  ;;  %v5237_v52 = vrot.slane %v5236_v16, 1  ;;  %v11515_v43 = vld [vmem:[#allocation43_spill] sm:$0xff] }
0x148f   : > { %7324 = vpush %v5217_v51  ;;  %v5238_v44 = vadd.f32 %v5237_v52, %v5236_v16  ;;  %v3436_v16 = vadd.f32 %v10296_v23, %v11515_v43  ;;  %v7228_v23 = vld [vmem:[%s11457_s15 + $0xa8] sm:$0xff]  ;;  %v7229_v52 = vld [vmem:[%s11457_s15 + $0xb0] sm:$0xff] }
0x1491   : > { %7326 = vpush %v5238_v44  ;;  %v11516_v44 = vld [vmem:[#allocation42_spill] sm:$0xff] }
0x1492   : > { %7611 = vset.pattern.permute.xlu1 %v11452_v10  ;;  %v3433_v7 = vadd.f32 %v11517_v27, %v11516_v44 }
0x1493   : > { %5881 = vperm.xlu1 %7611, %v10618_v41  }
0x1495   : > { %v5459_v56 = vpop.permute.xlu0 %5458 }
0x1496   : > { %v5467_v60 = vadd.f32 %v5459_v56, %v5427_v18  ;;  %v7224_v18 = vld [vmem:[%s11456_s1 + $0xa8] sm:$0xff] }
0x149b   : > { %7614 = vset.pattern.permute.xlu1 %v11453_v45 }
0x149c   : > { %5917 = vperm.xlu1 %7614, %v10639_v38   ;;  %v5499_v35 = vpop.permute.xlu1 %5498 }
0x149d   : > { %v10648_v9 = vadd.f32 %v5499_v35, %v5467_v60  ;;  %v7230_v60 = vld [vmem:[%s11457_s15 + $0xb8] sm:$0xff] }
0x149f   : > { %v5538_v49 = vmul.f32 %v10648_v9, %v10648_v9  ;;  %v5523_v58 = vsel %vm2307_vm1, %v10648_v9, 0.0 }
0x14a0   : > { %v5524_v37 = vadd.f32 %v5523_v58, %v5522_v61 }
0x14a1   : > { %v5544_v47 = vsel %vm2307_vm1, %v5538_v49, 0.0 }
0x14a2   : > { %5525 = vadd.xlane.f32.xlu0 %v5524_v37  ;;  %v5545_v13 = vadd.f32 %v5544_v47, %v5543_v6 }
0x14a4   : > { %7616 = vset.pattern.permute.xlu1 %v11452_v10  ;;  %5546 = vadd.xlane.f32.xlu2 %v5545_v13  ;;  %v10661_v62 = vpop.permute.xlu1 %5269 }
0x14a5   : > { %5889 = vperm.xlu1 %7616, %v10658_v15  }
0x14ac   : > { %v10664_v25 = vpop.permute.xlu1 %5274 }
0x14ad   : > { %7619 = vset.pattern.permute.xlu1 %v11454_v5 }
0x14ae   : > { %5961 = vperm.xlu1 %7619, %v10618_v41  }
0x14b4   : > { %v10670_v54 = vpop.permute.xlu1 %5293 }
0x14b6   : > { %5788 = vrot.lane.b32.xlu0 %v3436_v16, %s11441_s8  ;;  %5965 = vperm.xlu1 %7619, %v10608_v12  }
0x14bc   : > { %5303 = vperm.xlu2 %7605, %v7217_v63   ;;  %v10675_v32 = vpop.permute.xlu1 %5298 }
0x14be   : > { %5841 = vperm.xlu0 %7608, %v10618_v41   ;;  %7621 = vset.pattern.permute.xlu1 %v11455_v59 }
0x14bf   : > { %5815 = vperm.xlu1 %7621, %v10618_v41  }
0x14c0   : > { %s7325_s19 = spop %7324 }
0x14c1   : > { %s10682_s29 = smul.f32 0.0078125, %s7325_s19 }
0x14c2   : > { %s7327_s24 = spop %7326 }
0x14c3   : > { %s5241_s30 = smul.f32 %s10682_s29, %s10682_s29  ;;  %v10728_v35 = vstv %s10682_s29 }
0x14c4   : > { %s5240_s21 = smul.f32 0.0078125, %s7327_s24  ;;  %5613 = vperm.xlu2 %7605, %v7228_v23   ;;  %v10687_v51 = vpop.permute.xlu1 %5279  ;;  %v5245_v22 = vsub.f32 %v10559_v0, %v10728_v35  ;;  %v5246_v46 = vsub.f32 %v10555_v19, %v10728_v35 }
0x14c6   : > { %s5242_s17 = ssub.f32 %s5240_s21, %s5241_s30  ;;  %7613 = vset.pattern.permute.xlu0 %v11452_v10 }
0x14c7   : > { %5885 = vperm.xlu0 %7613, %v10608_v12   ;;  %7623 = vset.pattern.permute.xlu1 %v11450_v2 }
0x14c8   : > { %s5243_s23 = smax.f32 %s11440_s5, %s5242_s17 }
0x14c9   : > { %s5249_s19 = sadd.f32 1e-08, %s5243_s23 }
0x14ca   : > { %s11518_s23 = sld [smem:[#allocation39_spill]] }
0x14cb   : > { %v5250_v8 = vstv %s5249_s19 }
0x14cc   : > { %7678 = vrsqrt.f32 %v5250_v8  ;;  %5618 = vperm.xlu2 %7605, %v7229_v52   ;;  %v10694_v28 = vpop.permute.xlu1 %5308  ;;  %vm5257_vm9 = vweird.f32 %v5250_v8 }
0x14cf   : > { %7617 = vset.pattern.permute.xlu0 %v11454_v5 }
0x14d0   : > { %5957 = vperm.xlu0 %7617, %v10639_v38   ;;  %v5630_v21 = vld [vmem:[%s11518_s23] sm:$0x3] }
0x14d1   : > { %v5716_v49 = vsel %vm2314_vm15, %v5630_v21, 0 }
0x14d2   : > { %v7679_v11 = vpop.eup %7678  ;;  %5725 = vmatpush.bf16.msra.mxu3 %v5716_v49  ;;  %5752 = vmatpush.bf16.msra.mxu0 %v5716_v49 }
0x14d3   : > { %v5252_v24 = vmul.f32 %v7679_v11, %v5250_v8  ;;  %vm5258_vm8 = vweird.f32 %v7679_v11 }
0x14d4   : > { %5786 = vrot.lane.b32.xlu2 %v3433_v7, %s11441_s8  ;;  %v10701_v3 = vpop.permute.xlu1 %5584  ;;  %vm5259_vm5 = vmor %vm5257_vm9, %vm5258_vm8 }
0x14d5   : > { %7607 = vset.pattern.permute.xlu2 %v11450_v2  ;;  %v5253_v17 = vmul.f32 %v7679_v11, %v5252_v24 }
0x14d7   : > { %v5254_v14 = vmul.f32 0.5, %v5253_v17 }
0x14d8   : > { %7618 = vset.pattern.permute.xlu0 %v11455_v59 }
0x14d9   : > { %5284 = vperm.xlu0 %7618, %v7214_v29   ;;  %v5255_v56 = vsub.f32 1.5, %v5254_v14 }
0x14db   : > { %v5256_v55 = vmul.f32 %v7679_v11, %v5255_v56 }
0x14dc   : > { %5837 = vperm.xlu2 %7607, %v10639_v38   ;;  %v10707_v53 = vpop.permute.xlu1 %5608 }
0x14dd   : > { %v5260_v33 = vsel %vm5259_vm5, %v7679_v11, %v5256_v55 }
0x14de   : > { %7328 = vpush %v5260_v33 }
0x14e1   : > { %5589 = vperm.xlu0 %7618, %v7224_v18  }
0x14e4   : > { %7610 = vset.pattern.permute.xlu2 %v11452_v10  ;;  %v10711_v40 = vpop.permute.xlu1 %5599 }
0x14e5   : > { %5877 = vperm.xlu2 %7610, %v10639_v38  }
0x14e9   : > { %5594 = vperm.xlu0 %7618, %v7225_v57  }
0x14ec   : > { %v5785_v31 = vpop.permute.xlu1 %5784 }
0x14ed   : > { %5796 = vst.msk [vmem:[#allocation2] sm:$0xff] %vm1253_vm10, %v5785_v31  ;;  %7612 = vset.pattern.permute.xlu2 %v11450_v2 }
0x14ee   : > { %5849 = vperm.xlu2 %7612, %v10658_v15  }
0x14f1   : > { %5623 = vperm.xlu0 %7618, %v7230_v60  }
0x14f4   : > { %v5791_v26 = vpop.permute.xlu1 %5790 }
0x14f5   : > { %5799 = vst.msk [vmem:[#allocation2 + $0x18] sm:$0xff] %vm1253_vm10, %v5791_v26 }
0x14f6   : > { %7615 = vset.pattern.permute.xlu2 %v11453_v45 }
0x14f7   : > { %5921 = vperm.xlu2 %7615, %v10618_v41  }
0x14f9   : > { %5810 = vperm.xlu0 %7618, %v10639_v38  }
0x14ff   : > { %5925 = vperm.xlu2 %7615, %v10608_v12  }
0x1501   : > { %5825 = vperm.xlu0 %7618, %v10658_v15  }
0x1507   : > { %5929 = vperm.xlu2 %7615, %v10658_v15  }
0x1509   : > { %7631 = vset.pattern.permute.xlu0 %v11450_v2 }
0x150f   : > { %s7329_s24 = spop %7328  ;;  %7620 = vset.pattern.permute.xlu2 %v11454_v5 }
0x1510   : > { %v10735_v41 = vstv %s7329_s24  ;;  %5969 = vperm.xlu2 %7620, %v10658_v15  }
0x1511   : > { %v5263_v38 = vmul.f32 %v10735_v41, %v5245_v22  ;;  %v5264_v61 = vmul.f32 %v10735_v41, %v5246_v46 }
0x1513   : > { %v5287_v58 = vmul.f32 %v10661_v62, %v5263_v38  ;;  %v5288_v0 = vmul.f32 %v10664_v25, %v5264_v61 }
0x1515   : > { %v5311_v19 = vadd.f32 %v10670_v54, %v5287_v58  ;;  %v5312_v37 = vadd.f32 %v10675_v32, %v5288_v0  ;;  %v5526_v6 = vpop.xlane.xlu0 %5525 }
0x1516   : > { %v5527_v47 = vrot.slane %v5526_v6, 4 }
0x1517   : > { %v7231_v13 = vmul.f32 -1.442695, %v5311_v19  ;;  %v7232_v15 = vmul.f32 -1.442695, %v5312_v37  ;;  %v5547_v43 = vpop.xlane.xlu2 %5546  ;;  %v5247_v37 = vsub.f32 %v10561_v4, %v10728_v35 }
0x1518   : > { %v5528_v16 = vadd.f32 %v5527_v47, %v5526_v6  ;;  %v5548_v63 = vrot.slane %v5547_v43, 4  ;;  %7622 = vset.pattern.permute.xlu2 %v11455_v59 }
0x1519   : > { %7680 = vpow2.f32 %v7231_v13  ;;  %5820 = vperm.xlu2 %7622, %v10608_v12   ;;  %v5846_v13 = vpop.permute.xlu1 %5845 }
0x151a   : > { %7682 = vpow2.f32 %v7232_v15  ;;  %v5529_v62 = vrot.slane %v5528_v16, 2  ;;  %v5549_v25 = vadd.f32 %v5548_v63, %v5547_v43 }
0x151c   : > { %v5530_v23 = vadd.f32 %v5529_v62, %v5528_v16  ;;  %v5550_v52 = vrot.slane %v5549_v25, 2  ;;  %v5265_v16 = vmul.f32 %v10735_v41, %v5247_v37 }
0x151e   : > { %v5531_v54 = vrot.slane %v5530_v23, 1  ;;  %v5551_v8 = vadd.f32 %v5550_v52, %v5549_v25  ;;  %v5289_v25 = vmul.f32 %v10687_v51, %v5265_v16 }
0x151f   : > { %v7681_v32 = vpop.eup %7680  ;;  %v5304_v11 = vpop.permute.xlu2 %5303 }
0x1520   : > { %v7683_v44 = vpop.eup %7682  ;;  %v5643_v27 = vadd.f32 1.0, %v7681_v32  ;;  %v5532_v7 = vadd.f32 %v5531_v54, %v5530_v23  ;;  %v5552_v24 = vrot.slane %v5551_v8, 1  ;;  %v5313_v4 = vadd.f32 %v5304_v11, %v5289_v25  ;;  %v10760_v32 = vld [vmem:[#allocation2] sm:$0xff] }
0x1521   : > { %v5644_v17 = vadd.f32 1.0, %v7683_v44  ;;  %7624 = vset.pattern.permute.xlu2 %v11450_v2  ;;  %v5882_v54 = vpop.permute.xlu1 %5881 }
0x1522   : > { %7684 = vrcp.f32 %v5643_v27  ;;  %7330 = vpush %v5532_v7  ;;  %v5553_v29 = vadd.f32 %v5552_v24, %v5551_v8  ;;  %v5658_v31 = vand.u32 2147483648, %v5643_v27  ;;  %v5656_v22 = vand.u32 2147483647, %v5643_v27 }
0x1523   : > { %7686 = vrcp.f32 %v5644_v17  ;;  %v5673_v46 = vand.u32 2147483648, %v5644_v17  ;;  %v5671_v61 = vand.u32 2147483647, %v5644_v17  ;;  %vm5652_vm4 = vweird.f32 %v5643_v27 }
0x1524   : > { %7332 = vpush %v5553_v29  ;;  %v5659_v0 = vor.u32 1.1754944e-38, %v5658_v31  ;;  %vm5667_vm3 = vweird.f32 %v5644_v17  ;;  %vm5657_vm13 = vcmp.eq.f32.partialorder %v5656_v22, 8.507059e+37  ;;  %v7233_v8 = vmul.f32 -1.442695, %v5313_v4 }
0x1525   : > { %v5674_v47 = vor.u32 1.1754944e-38, %v5673_v46  ;;  %vm5672_vm8 = vcmp.eq.f32.partialorder %v5671_v61, 8.507059e+37 }
0x1526   : > { %7688 = vpow2.f32 %v7233_v8 }
0x1527   : > { %v10749_v12 = vpop.permute.xlu2 %5613 }
0x1528   : > { %v7685_v14 = vpop.eup %7684  ;;  %v5789_v56 = vpop.permute.xlu0 %5788 }
0x1529   : > { %v7687_v55 = vpop.eup %7686  ;;  %v5648_v33 = vmul.f32 %v7685_v14, %v5643_v27  ;;  %5798 = vst.msk [vmem:[#allocation2 + $0x10] sm:$0xff] %vm1253_vm10, %v5789_v56  ;;  %vm5653_vm15 = vweird.f32 %v7685_v14  ;;  %v5918_v29 = vpop.permute.xlu1 %5917 }
0x152a   : > { %v5663_v18 = vmul.f32 %v7687_v55, %v5644_v17  ;;  %vm5668_vm6 = vweird.f32 %v7687_v55  ;;  %vm5654_vm7 = vmor %vm5652_vm4, %vm5653_vm15 }
0x152b   : > { %v5649_v57 = vsub.f32 1.0, %v5648_v33  ;;  %vm5669_vm2 = vmor %vm5667_vm3, %vm5668_vm6 }
0x152c   : > { %v5664_v60 = vsub.f32 1.0, %v5663_v18  ;;  %v5248_v18 = vsub.f32 %v10576_v20, %v10728_v35 }
0x152d   : > { %v5650_v26 = vmul.f32 %v7685_v14, %v5649_v57  ;;  %v5932_v57 = vmul.f32 %v5918_v29, %v10760_v32 }
0x152e   : > { %v5665_v38 = vmul.f32 %v7687_v55, %v5664_v60  ;;  %v5266_v60 = vmul.f32 %v10735_v41, %v5248_v18 }
0x152f   : > { %v10752_v21 = vpop.permute.xlu2 %5618  ;;  %v5651_v49 = vadd.f32 %v7685_v14, %v5650_v26 }
0x1530   : > { %v5842_v58 = vpop.permute.xlu0 %5841  ;;  %v5666_v19 = vadd.f32 %v7687_v55, %v5665_v38  ;;  %v10770_v11 = vld [vmem:[#allocation2 + $0x10] sm:$0xff]  ;;  %v10785_v38 = vld [vmem:[#allocation2 + $0x18] sm:$0xff] }
0x1531   : > { %v5655_v6 = vsel %vm5654_vm7, %v7685_v14, %v5651_v49  ;;  %v7689_v14 = vpop.eup %7688  ;;  %v5854_v33 = vmul.f32 %v5846_v13, %v10770_v11 }
0x1532   : > { %v5660_v15 = vsel %vm5657_vm13, %v5659_v0, %v5655_v6  ;;  %v5670_v43 = vsel %vm5669_vm2, %v7687_v55, %v5666_v19  ;;  %v10777_v31 = vadd.f32 1.0, %v7689_v14 }
0x1533   : > { %v5675_v63 = vsel %vm5672_vm8, %v5674_v47, %v5670_v43 }
0x1534   : > { %v5707_v62 = vpack.c.bf16 %v5675_v63, %v5660_v15  ;;  %7690 = vrcp.f32 %v10777_v31  ;;  %vm5682_vm9 = vweird.f32 %v10777_v31 }
0x1536   : > { %7235 = vmatmul.msk.bf16.vlgmr.msra.gmra.mxu3 %vm2307_vm1, %v5707_v62 }
0x1537   : > { %v5787_v23 = vpop.permute.xlu2 %5786 }
0x1538   : > { %5797 = vst.msk [vmem:[#allocation2 + $0x8] sm:$0xff] %vm1253_vm10, %v5787_v23 }
0x1539   : > { %v5886_v52 = vpop.permute.xlu0 %5885 }
0x153a   : > { %v5894_v35 = vmul.f32 %v5886_v52, %v10770_v11  ;;  %v10791_v41 = vpop.eup %7690 }
0x153b   : > { %v5678_v0 = vmul.f32 %v10791_v41, %v10777_v31  ;;  %vm5683_vm10 = vweird.f32 %v10791_v41 }
0x153c   : > { %vm10816_vm5 = vmor %vm5682_vm9, %vm5683_vm10 }
0x153d   : > { %v5679_v15 = vsub.f32 1.0, %v5678_v0 }
0x153f   : > { %v5838_v44 = vpop.permute.xlu2 %5837  ;;  %v10762_v27 = vld [vmem:[#allocation2 + $0x8] sm:$0xff]  ;;  %v5680_v63 = vmul.f32 %v10791_v41, %v5679_v15  ;;  %v10845_v15 = vld [vmem:[%s11449_s3 + $0x38] sm:$0xff] }
0x1540   : > { %v5852_v7 = vmul.f32 %v5838_v44, %v10760_v32  ;;  %v5853_v24 = vmul.f32 %v5842_v58, %v10762_v27  ;;  %v5893_v17 = vmul.f32 %v5882_v54, %v10762_v27  ;;  %v5890_v58 = vpop.permute.xlu1 %5889 }
0x1541   : > { %v5895_v37 = vmul.f32 %v5890_v58, %v10785_v38  ;;  %v5681_v54 = vadd.f32 %v10791_v41, %v5680_v63 }
0x1542   : > { %5862 = vrot.lane.b32.xlu2 %v5853_v24, %s11443_s11  ;;  %v5958_v51 = vpop.permute.xlu0 %5957  ;;  %5860 = vrot.lane.b32.xlu1 %v5852_v7, %s11443_s11  ;;  %v5686_v24 = vand.u32 2147483647, %v10777_v31 }
0x1543   : > { %5902 = vrot.lane.b32.xlu0 %v5893_v17, %s11444_s22  ;;  %v5972_v62 = vmul.f32 %v5958_v51, %v10760_v32  ;;  %v5688_v17 = vand.u32 2147483648, %v10777_v31 }
0x1544   : > { %vm5687_vm7 = vcmp.eq.f32.partialorder %v5686_v24, 8.507059e+37 }
0x1547   : > { %v5878_v56 = vpop.permute.xlu2 %5877 }
0x1548   : > { %v5892_v55 = vmul.f32 %v5878_v56, %v10760_v32  ;;  %v5962_v13 = vpop.permute.xlu1 %5961 }
0x1549   : > { %v5973_v4 = vmul.f32 %v5962_v13, %v10762_v27  ;;  %v10841_v13 = vld [vmem:[%s11449_s3 + $0x20] sm:$0xff] }
0x154a   : > { %5900 = vrot.lane.b32.xlu2 %v5892_v55, %s11444_s22  ;;  %5864 = vrot.lane.b32.xlu1 %v5854_v33, %s11443_s11 }
0x154b   : > { %5940 = vrot.lane.b32.xlu0 %v5932_v57, %s11445_s9  ;;  %v5285_v26 = vpop.permute.xlu0 %5284  ;;  %v5685_v57 = vsel %vm10816_vm5, %v10791_v41, %v5681_v54 }
0x154c   : > { %v5290_v22 = vmul.f32 %v5285_v26, %v5266_v60 }
0x154e   : > { %v5314_v46 = vadd.f32 %v10694_v28, %v5290_v22  ;;  %v5689_v22 = vor.u32 1.1754944e-38, %v5688_v17 }
0x154f   : > { %v5850_v20 = vpop.permute.xlu2 %5849 }
0x1550   : > { %v7234_v61 = vmul.f32 -1.442695, %v5314_v46  ;;  %v5855_v49 = vmul.f32 %v5850_v20, %v10785_v38  ;;  %v5966_v8 = vpop.permute.xlu1 %5965 }
0x1551   : > { %v5974_v33 = vmul.f32 %v5966_v8, %v10770_v11 }
0x1552   : > { %7692 = vpow2.f32 %v7234_v61  ;;  %5904 = vrot.lane.b32.xlu2 %v5894_v35, %s11444_s22  ;;  %5866 = vrot.lane.b32.xlu1 %v5855_v49, %s11443_s11  ;;  %v5690_v61 = vsel %vm5687_vm7, %v5689_v22, %v5685_v57 }
0x1553   : > { %s7331_s29 = spop %7330 }
0x1554   : > { %s10793_s30 = smul.f32 0.0078125, %s7331_s29 }
0x1555   : > { %s7333_s21 = spop %7332 }
0x1556   : > { %s5556_s17 = smul.f32 %s10793_s30, %s10793_s30  ;;  %v5559_v63 = vstv %s10793_s30 }
0x1557   : > { %s5555_s19 = smul.f32 0.0078125, %s7333_s21  ;;  %v5922_v28 = vpop.permute.xlu2 %5921 }
0x1558   : > { %v7693_v19 = vpop.eup %7692  ;;  %v5933_v6 = vmul.f32 %v5922_v28, %v10762_v27 }
0x1559   : > { %v5646_v47 = vadd.f32 1.0, %v7693_v19  ;;  %s5557_s23 = ssub.f32 %s5555_s19, %s5556_s17 }
0x155a   : > { %5942 = vrot.lane.b32.xlu1 %v5933_v6, %s11445_s9  ;;  %5906 = vrot.lane.b32.xlu2 %v5895_v37, %s11444_s22  ;;  %v10831_v6 = vld [vmem:[%s11449_s3 + $0x28] sm:$0xff] }
0x155b   : > { %7694 = vrcp.f32 %v5646_v47  ;;  %s5558_s24 = smax.f32 %s11440_s5, %s5557_s23  ;;  %v5703_v51 = vand.u32 2147483648, %v5646_v47  ;;  %v5701_v55 = vand.u32 2147483647, %v5646_v47  ;;  %vm5697_vm6 = vweird.f32 %v5646_v47 }
0x155c   : > { %s5564_s29 = sadd.f32 1e-08, %s5558_s24 }
0x155d   : > { %v5704_v46 = vor.u32 1.1754944e-38, %v5703_v51  ;;  %vm5702_vm3 = vcmp.eq.f32.partialorder %v5701_v55, 8.507059e+37  ;;  %v5562_v51 = vsub.f32 %v10628_v50, %v5559_v63 }
0x155e   : > { %v5565_v43 = vstv %s5564_s29 }
0x155f   : > { %7696 = vrsqrt.f32 %v5565_v43  ;;  %v5926_v16 = vpop.permute.xlu2 %5925  ;;  %vm5572_vm2 = vweird.f32 %v5565_v43 }
0x1560   : > { %v5934_v25 = vmul.f32 %v5926_v16, %v10770_v11 }
0x1561   : > { %v7695_v23 = vpop.eup %7694 }
0x1562   : > { %5980 = vrot.lane.b32.xlu1 %v5972_v62, %s11446_s13  ;;  %5944 = vrot.lane.b32.xlu0 %v5934_v25, %s11445_s9  ;;  %v5693_v52 = vmul.f32 %v7695_v23, %v5646_v47  ;;  %vm5698_vm15 = vweird.f32 %v7695_v23  ;;  %v10837_v47 = vld [vmem:[%s11449_s3 + $0x30] sm:$0xff]  ;;  %v5560_v62 = vsub.f32 %v10623_v39, %v5559_v63  ;;  %v5561_v25 = vsub.f32 %v10626_v48, %v5559_v63  ;;  %v5816_v48 = vpop.permute.xlu1 %5815 }
0x1563   : > { %5982 = vrot.lane.b32.xlu2 %v5973_v4, %s11446_s13  ;;  %vm5699_vm4 = vmor %vm5697_vm6, %vm5698_vm15 }
0x1564   : > { %v5694_v44 = vsub.f32 1.0, %v5693_v52 }
0x1565   : > { %v7697_v7 = vpop.eup %7696 }
0x1566   : > { %v5567_v29 = vmul.f32 %v7697_v7, %v5565_v43  ;;  %v5695_v56 = vmul.f32 %v7695_v23, %v5694_v44  ;;  %vm5573_vm13 = vweird.f32 %v7697_v7  ;;  %v5590_v43 = vpop.permute.xlu0 %5589 }
0x1567   : > { %v5930_v18 = vpop.permute.xlu2 %5929  ;;  %vm5574_vm8 = vmor %vm5572_vm2, %vm5573_vm13 }
0x1568   : > { %v5935_v60 = vmul.f32 %v5930_v18, %v10785_v38  ;;  %v5696_v26 = vadd.f32 %v7695_v23, %v5695_v56  ;;  %v5568_v31 = vmul.f32 %v7697_v7, %v5567_v29  ;;  %v5563_v29 = vsub.f32 %v10648_v9, %v5559_v63 }
0x156a   : > { %5946 = vrot.lane.b32.xlu0 %v5935_v60, %s11445_s9  ;;  %5984 = vrot.lane.b32.xlu1 %v5974_v33, %s11446_s13  ;;  %v5700_v20 = vsel %vm5699_vm4, %v7695_v23, %v5696_v26  ;;  %v5569_v35 = vmul.f32 0.5, %v5568_v31 }
0x156b   : > { %v5705_v49 = vsel %vm5702_vm3, %v5704_v46, %v5700_v20 }
0x156c   : > { %v5708_v58 = vpack.c.bf16 %v5705_v49, %v5690_v61  ;;  %v5570_v41 = vsub.f32 1.5, %v5569_v35  ;;  %v5829_v61 = vmul.f32 %v5816_v48, %v10762_v27 }
0x156e   : > { %7236 = vmatmul.msk.bf16.gmra.mxu3 %vm2307_vm1, %v5708_v58  ;;  %v5571_v28 = vmul.f32 %v7697_v7, %v5570_v41  ;;  %v5595_v16 = vpop.permute.xlu0 %5594 }
0x156f   : > { %v5970_v0 = vpop.permute.xlu2 %5969 }
0x1570   : > { %v5975_v19 = vmul.f32 %v5970_v0, %v10785_v38  ;;  %v5575_v37 = vsel %vm5574_vm8, %v7697_v7, %v5571_v28 }
0x1571   : > { %7334 = vpush %v5575_v37 }
0x1572   : > { %5986 = vrot.lane.b32.xlu2 %v5975_v19, %s11446_s13  ;;  %6182 = vperm.xlu1 %7623, %v10841_v13  }
0x1576   : > { %v5624_v8 = vpop.permute.xlu0 %5623 }
0x1577   : > { %v5821_v54 = vpop.permute.xlu2 %5820 }
0x1578   : > { %v5830_v0 = vmul.f32 %v5821_v54, %v10770_v11 }
0x157a   : > { %6186 = vperm.xlu2 %7624, %v10831_v6   ;;  %7625 = vset.pattern.permute.xlu1 %v11452_v10 }
0x157b   : > { %6222 = vperm.xlu1 %7625, %v10841_v13  }
0x157e   : > { %v5811_v55 = vpop.permute.xlu0 %5810 }
0x1582   : > { %7626 = vset.pattern.permute.xlu2 %v11452_v10 }
0x1583   : > { %6226 = vperm.xlu2 %7626, %v10831_v6   ;;  %7627 = vset.pattern.permute.xlu1 %v11450_v2 }
0x1584   : > { %6194 = vperm.xlu1 %7627, %v10845_v15  }
0x1586   : > { %v5826_v9 = vpop.permute.xlu0 %5825 }
0x1587   : > { %v5831_v63 = vmul.f32 %v5826_v9, %v10785_v38 }
0x158b   : > { %6230 = vperm.xlu2 %7626, %v10837_v47  }
0x158c   : > { %7628 = vset.pattern.permute.xlu1 %v11453_v45 }
0x158d   : > { %6266 = vperm.xlu1 %7628, %v10831_v6  }
0x1593   : > { %6234 = vperm.xlu2 %7626, %v10845_v15  }
0x1595   : > { %6270 = vperm.xlu1 %7628, %v10837_v47  }
0x159b   : > { %7629 = vset.pattern.permute.xlu2 %v11454_v5 }
0x159c   : > { %6302 = vperm.xlu2 %7629, %v10841_v13  }
0x159d   : > { %6274 = vperm.xlu1 %7628, %v10845_v15  }
0x15a2   : > { %s7335_s21 = spop %7334 }
0x15a3   : > { %v5577_v23 = vstv %s7335_s21 }
0x15a4   : > { %v5578_v4 = vmul.f32 %v5577_v23, %v5560_v62  ;;  %v5579_v52 = vmul.f32 %v5577_v23, %v5561_v25  ;;  %6310 = vperm.xlu2 %7629, %v10837_v47   ;;  %v5580_v14 = vmul.f32 %v5577_v23, %v5562_v51  ;;  %v5581_v56 = vmul.f32 %v5577_v23, %v5563_v29 }
0x15a5   : > { %7630 = vset.pattern.permute.xlu1 %v11454_v5 }
0x15a6   : > { %v5602_v44 = vmul.f32 %v10701_v3, %v5578_v4  ;;  %v5603_v7 = vmul.f32 %v5590_v43, %v5579_v52  ;;  %v5863_v3 = vpop.permute.xlu2 %5862  ;;  %6314 = vperm.xlu1 %7630, %v10845_v15  }
0x15a7   : > { %v5873_v58 = vadd.f32 %v5863_v3, %v5829_v61 }
0x15a8   : > { %v5626_v24 = vadd.f32 %v10707_v53, %v5602_v44  ;;  %v5627_v17 = vadd.f32 %v10749_v12, %v5603_v7  ;;  %v5604_v53 = vmul.f32 %v5595_v16, %v5580_v14  ;;  %v5605_v12 = vmul.f32 %v10711_v40, %v5581_v56 }
0x15a9   : > { %v5828_v40 = vmul.f32 %v5811_v55, %v10760_v32 }
0x15aa   : > { %v5737_v39 = vpack.c.bf16 %v5627_v17, %v5626_v24  ;;  %v5628_v18 = vadd.f32 %v10752_v21, %v5604_v53  ;;  %v5629_v57 = vadd.f32 %v5624_v8, %v5605_v12 }
0x15ac   : > { %7237 = vmatmul.msk.bf16.vlgmr.msra.gmra.mxu0 %vm2307_vm1, %v5737_v39  ;;  %7633 = vset.pattern.permute.xlu2 %v11455_v59  ;;  %v5738_v60 = vpack.c.bf16 %v5629_v57, %v5628_v18 }
0x15ae   : > { %v5901_v50 = vpop.permute.xlu2 %5900  ;;  %7632 = vset.pattern.permute.xlu1 %v11455_v59 }
0x15af   : > { %6155 = vperm.xlu1 %7632, %v10841_v13  }
0x15b4   : > { %v5861_v33 = vpop.permute.xlu1 %5860 }
0x15b5   : > { %v5903_v22 = vpop.permute.xlu0 %5902  ;;  %v5872_v49 = vadd.f32 %v5861_v33, %v5828_v40  ;;  %v10929_v40 = vld [vmem:[%s11449_s3 + $0x40] sm:$0xff] }
0x15b6   : > { %v5905_v31 = vpop.permute.xlu2 %5904  ;;  %v5913_v41 = vadd.f32 %v5903_v22, %v5873_v58  ;;  %v10918_v22 = vld [vmem:[%s11449_s3 + $0x50] sm:$0xff] }
0x15b7   : > { %v5912_v28 = vadd.f32 %v5901_v50, %v5872_v49  ;;  %6160 = vperm.xlu1 %7632, %v10831_v6  }
0x15bc   : > { %7238 = vmatmul.msk.bf16.gmra.mxu0 %vm2307_vm1, %v5738_v60  ;;  %v5865_v26 = vpop.permute.xlu1 %5864  ;;  %v10911_v60 = vld [vmem:[%s11449_s3 + $0x48] sm:$0xff] }
0x15bd   : > { %v5941_v20 = vpop.permute.xlu0 %5940  ;;  %v5874_v32 = vadd.f32 %v5865_v26, %v5830_v0 }
0x15be   : > { %v5907_v21 = vpop.permute.xlu2 %5906  ;;  %v5952_v19 = vadd.f32 %v5941_v20, %v5912_v28 }
0x15bf   : > { %v5914_v4 = vadd.f32 %v5905_v31, %v5874_v32  ;;  %6165 = vperm.xlu1 %7632, %v10837_v47  }
0x15c4   : > { %v5867_v46 = vpop.permute.xlu1 %5866 }
0x15c5   : > { %v5875_v23 = vadd.f32 %v5867_v46, %v5831_v63  ;;  %v10923_v46 = vld [vmem:[%s11449_s3 + $0x58] sm:$0xff] }
0x15c6   : > { %v5983_v25 = vpop.permute.xlu2 %5982 }
0x15c7   : > { %v5915_v8 = vadd.f32 %v5907_v21, %v5875_v23  ;;  %7635 = vset.pattern.permute.xlu1 %v11450_v2 }
0x15c8   : > { %6501 = vperm.xlu1 %7635, %v10911_v60  }
0x15cc   : > { %v5943_v35 = vpop.permute.xlu1 %5942 }
0x15cd   : > { %v5953_v37 = vadd.f32 %v5943_v35, %v5913_v41  ;;  %v5727_v35 = vpop.f32.mrf.mxu3  ;;  %v11522_v41 = vld [vmem:[#allocation52_spill] sm:$0xff] }
0x15ce   : > { %v5987_v51 = vpop.permute.xlu2 %5986 }
0x15cf   : > { %v10883_v27 = vadd.f32 %v5983_v25, %v5953_v37  ;;  %v11523_v37 = vld [vmem:[#allocation59_spill] sm:$0xff]  ;;  %v11524_v25 = vld [vmem:[#allocation48_spill] sm:$0xff] }
0x15d0   : > { %7638 = vset.pattern.permute.xlu1 %v11452_v10 }
0x15d1   : > { %v6022_v11 = vmul.f32 %v10883_v27, %v10883_v27  ;;  %v6005_v24 = vsel %vm1046_vm0, %v10883_v27, 0.0  ;;  %6541 = vperm.xlu1 %7638, %v10911_v60  }
0x15d3   : > { %v6026_v55 = vsel %vm1046_vm0, %v6022_v11, 0.0 }
0x15d4   : > { %v5945_v43 = vpop.permute.xlu0 %5944  ;;  %v5981_v16 = vpop.permute.xlu1 %5980 }
0x15d5   : > { %v10881_v62 = vadd.f32 %v5981_v16, %v5952_v19  ;;  %v5954_v54 = vadd.f32 %v5945_v43, %v5914_v4  ;;  %v5729_v16 = vpop.f32.mrf.mxu3 }
0x15d7   : > { %v6021_v52 = vmul.f32 %v10881_v62, %v10881_v62  ;;  %v6004_v38 = vsel %vm1046_vm0, %v10881_v62, 0.0 }
0x15d8   : > { %v6006_v29 = vadd.f32 %v6005_v24, %v6004_v38  ;;  %v11526_v24 = vld [vmem:[#allocation47_spill] sm:$0xff] }
0x15d9   : > { %v6025_v17 = vsel %vm1046_vm0, %v6021_v52, 0.0  ;;  %6545 = vperm.xlu1 %7638, %v10918_v22   ;;  %v11525_v52 = vld [vmem:[#allocation46_spill] sm:$0xff] }
0x15da   : > { %v6027_v12 = vadd.f32 %v6026_v55, %v6025_v17 }
0x15dc   : > { %v5947_v44 = vpop.permute.xlu0 %5946  ;;  %v5985_v7 = vpop.permute.xlu1 %5984 }
0x15dd   : > { %v5955_v39 = vadd.f32 %v5947_v44, %v5915_v8  ;;  %v10895_v48 = vadd.f32 %v5985_v7, %v5954_v54 }
0x15df   : > { %v10897_v3 = vadd.f32 %v5987_v51, %v5955_v39  ;;  %v6007_v14 = vsel %vm1046_vm0, %v10895_v48, 0.0  ;;  %v6023_v56 = vmul.f32 %v10895_v48, %v10895_v48 }
0x15e0   : > { %v6008_v53 = vadd.f32 %v6007_v14, %v6006_v29  ;;  %v11527_v29 = vld [vmem:[#allocation50_spill] sm:$0xff] }
0x15e1   : > { %v6009_v33 = vsel %vm1046_vm0, %v10897_v3, 0.0  ;;  %v6024_v18 = vmul.f32 %v10897_v3, %v10897_v3  ;;  %v6028_v57 = vsel %vm1046_vm0, %v6023_v56, 0.0  ;;  %6549 = vperm.xlu1 %7638, %v10923_v46  }
0x15e2   : > { %v6010_v50 = vadd.f32 %v6009_v33, %v6008_v53  ;;  %v6029_v9 = vadd.f32 %v6028_v57, %v6027_v12 }
0x15e3   : > { %v6030_v26 = vsel %vm1046_vm0, %v6024_v18, 0.0 }
0x15e4   : > { %6011 = vadd.xlane.f32.xlu2 %v6010_v50  ;;  %v6031_v31 = vadd.f32 %v6030_v26, %v6029_v9 }
0x15e6   : > { %6032 = vadd.xlane.f32.xlu0 %v6031_v31 }
0x15e9   : > { %7642 = vset.pattern.permute.xlu1 %v11454_v5 }
0x15f1   : > { %v5732_v54 = vpop.f32.mrf.mxu3 }
0x15f9   : > { %v5734_v55 = vpop.f32.mrf.mxu3 }
0x15fa   : > { %6190 = vperm.xlu0 %7631, %v10837_v47   ;;  %v4897_v47 = vstv %s10518_s18 }
0x15fb   : > { %v4898_v21 = vsub.f32 %v10344_v34, %v4897_v47  ;;  %v4899_v49 = vsub.f32 %v10348_v36, %v4897_v47  ;;  %v4900_v63 = vsub.f32 %v10374_v30, %v4897_v47  ;;  %v4901_v7 = vsub.f32 %v10361_v42, %v4897_v47 }
0x15fc   : > { %6170 = vperm.xlu2 %7633, %v10845_v15   ;;  %v4915_v15 = vstv %s10679_s14 }
0x15fd   : > { %v4916_v20 = vmul.f32 %v4915_v15, %v4898_v21  ;;  %v4917_v58 = vmul.f32 %v4915_v15, %v4899_v49  ;;  %v4918_v32 = vmul.f32 %v4915_v15, %v4900_v63  ;;  %v4919_v30 = vmul.f32 %v4915_v15, %v4901_v7 }
0x15ff   : > { %v4941_v43 = vmul.f32 %v11523_v37, %v4917_v58  ;;  %v4942_v11 = vmul.f32 %v11525_v52, %v4918_v32  ;;  %v4943_v14 = vmul.f32 %v11527_v29, %v4919_v30 }
0x1601   : > { %v4965_v36 = vadd.f32 %v11524_v25, %v4941_v43  ;;  %v4966_v17 = vadd.f32 %v11526_v24, %v4942_v11  ;;  %v4967_v12 = vadd.f32 %v10445_v1, %v4943_v14 }
0x1602   : > { %6505 = vperm.xlu0 %7631, %v10918_v22  }
0x1603   : > { %v5765_v23 = vmul.f32 %v5729_v16, %v4965_v36  ;;  %v5766_v39 = vmul.f32 %v5732_v54, %v4966_v17  ;;  %v5767_v33 = vmul.f32 %v5734_v55, %v4967_v12 }
0x1604   : > { %7634 = vset.pattern.permute.xlu2 %v11450_v2 }
0x1605   : > { %6497 = vperm.xlu2 %7634, %v10929_v40  }
0x160a   : > { %7636 = vset.pattern.permute.xlu0 %v11453_v45 }
0x160b   : > { %6262 = vperm.xlu0 %7636, %v10841_v13   ;;  %v10946_v13 = vpop.permute.xlu2 %6186 }
0x160d   : > { %7637 = vset.pattern.permute.xlu2 %v11452_v10  ;;  %v10948_v10 = vpop.permute.xlu1 %6182 }
0x160e   : > { %6537 = vperm.xlu2 %7637, %v10929_v40  }
0x1613   : > { %6577 = vperm.xlu0 %7636, %v10929_v40   ;;  %v10955_v0 = vpop.permute.xlu2 %6226 }
0x1615   : > { %v10957_v19 = vpop.permute.xlu1 %6222 }
0x1616   : > { %7639 = vset.pattern.permute.xlu2 %v11450_v2  ;;  %v11521_v2 = vld [vmem:[#allocation51_spill] sm:$0xff] }
0x1617   : > { %6509 = vperm.xlu2 %7639, %v10923_v46   ;;  %v4940_v61 = vmul.f32 %v11521_v2, %v4916_v20 }
0x1619   : > { %v4964_v28 = vadd.f32 %v11522_v41, %v4940_v61 }
0x161b   : > { %7640 = vset.pattern.permute.xlu0 %v11454_v5  ;;  %v5764_v34 = vmul.f32 %v5727_v35, %v4964_v28  ;;  %v10964_v8 = vpop.permute.xlu2 %6230 }
0x161c   : > { %6306 = vperm.xlu0 %7640, %v10831_v6  }
0x161d   : > { %v10966_v44 = vpop.permute.xlu1 %6194 }
0x161f   : > { %7641 = vset.pattern.permute.xlu2 %v11453_v45 }
0x1620   : > { %6581 = vperm.xlu2 %7641, %v10911_v60  }
0x1623   : > { %v10975_v53 = vpop.permute.xlu2 %6234 }
0x1625   : > { %v10977_v42 = vpop.permute.xlu1 %6266 }
0x1629   : > { %v5754_v6 = vpop.f32.mrf.mxu0 }
0x162a   : > { %v5768_v45 = vadd.f32 %v5764_v34, %v5754_v6 }
0x162b   : > { %v10983_v50 = vpop.permute.xlu2 %6302 }
0x162c   : > { %6128 = vrot.lane.b32.xlu0 %v5768_v45, %s11441_s8 }
0x162d   : > { %v10986_v9 = vpop.permute.xlu1 %6270 }
0x1631   : > { %v5756_v4 = vpop.f32.mrf.mxu0 }
0x1632   : > { %v5769_v38 = vadd.f32 %v5765_v23, %v5756_v4 }
0x1633   : > { %v10990_v26 = vpop.permute.xlu2 %6310 }
0x1634   : > { %6130 = vrot.lane.b32.xlu1 %v5769_v38, %s11441_s8  ;;  %6621 = vperm.xlu0 %7640, %v10911_v60  }
0x1635   : > { %v10992_v1 = vpop.permute.xlu1 %6274 }
0x1639   : > { %v5759_v51 = vpop.f32.mrf.mxu0 }
0x163a   : > { %v5770_v56 = vadd.f32 %v5766_v39, %v5759_v51 }
0x163c   : > { %6617 = vperm.xlu1 %7642, %v10929_v40   ;;  %6132 = vrot.lane.b32.xlu2 %v5770_v56, %s11441_s8 }
0x163d   : > { %7646 = vset.pattern.permute.xlu0 %v11455_v59  ;;  %v10996_v21 = vpop.permute.xlu1 %6314 }
0x1641   : > { %v5761_v18 = vpop.f32.mrf.mxu0 }
0x1642   : > { %v5771_v57 = vadd.f32 %v5767_v33, %v5761_v18 }
0x1644   : > { %6625 = vperm.xlu1 %7642, %v10918_v22   ;;  %6134 = vrot.lane.b32.xlu0 %v5771_v57, %s11441_s8 }
0x1645   : > { %6585 = vperm.xlu2 %7641, %v10918_v22   ;;  %v11000_v6 = vpop.permute.xlu1 %6155 }
0x164c   : > { %7645 = vset.pattern.permute.xlu1 %v11455_v59 }
0x164d   : > { %6589 = vperm.xlu2 %7641, %v10923_v46   ;;  %v11004_v16 = vpop.permute.xlu1 %6160 }
0x1655   : > { %7643 = vset.pattern.permute.xlu2 %v11454_v5 }
0x1656   : > { %6629 = vperm.xlu2 %7643, %v10923_v46  }
0x1657   : > { %v6012_v31 = vpop.xlane.xlu2 %6011 }
0x1658   : > { %v6013_v47 = vrot.slane %v6012_v31, 4 }
0x1659   : > { %v6033_v15 = vpop.xlane.xlu0 %6032 }
0x165a   : > { %v6014_v20 = vadd.f32 %v6013_v47, %v6012_v31  ;;  %v6034_v35 = vrot.slane %v6033_v15, 4 }
0x165c   : > { %v6015_v2 = vrot.slane %v6014_v20, 2  ;;  %v6035_v61 = vadd.f32 %v6034_v35, %v6033_v15 }
0x165e   : > { %v6036_v49 = vrot.slane %v6035_v61, 2  ;;  %7644 = vset.pattern.permute.xlu2 %v11455_v59  ;;  %v6016_v58 = vadd.f32 %v6015_v2, %v6014_v20  ;;  %v11010_v59 = vpop.permute.xlu1 %6165 }
0x165f   : > { %6470 = vperm.xlu2 %7644, %v10929_v40   ;;  %v11002_v43 = vpop.permute.xlu2 %6170 }
0x1660   : > { %v6017_v41 = vrot.slane %v6016_v58, 1  ;;  %v6037_v28 = vadd.f32 %v6036_v49, %v6035_v61 }
0x1662   : > { %v6018_v5 = vadd.f32 %v6017_v41, %v6016_v58  ;;  %v6038_v34 = vrot.slane %v6037_v28, 1 }
0x1664   : > { %7336 = vpush %v6018_v5  ;;  %v6039_v37 = vadd.f32 %v6038_v34, %v6037_v28 }
0x1666   : > { %7338 = vpush %v6039_v37  ;;  %v11014_v25 = vpop.permute.xlu1 %6501 }
0x1667   : > { %v11008_v63 = vpop.permute.xlu2 %6497 }
0x166c   : > { %v11006_v45 = vpop.permute.xlu0 %6190 }
0x166e   : > { %v11018_v4 = vpop.permute.xlu1 %6541 }
0x166f   : > { %v6538_v32 = vpop.permute.xlu2 %6537 }
0x1674   : > { %v11012_v40 = vpop.permute.xlu0 %6505 }
0x1676   : > { %v11022_v54 = vpop.permute.xlu1 %6545 }
0x1677   : > { %v11016_v23 = vpop.permute.xlu2 %6509 }
0x167d   : > { %v6263_v36 = vpop.permute.xlu0 %6262 }
0x167e   : > { %v11030_v30 = vpop.permute.xlu1 %6549 }
0x167f   : > { %v11020_v11 = vpop.permute.xlu2 %6581 }
0x1685   : > { %v6578_v52 = vpop.permute.xlu0 %6577 }
0x168e   : > { %v6307_v38 = vpop.permute.xlu0 %6306 }
0x1695   : > { %s7337_s8 = spop %7336 }
0x1696   : > { %s11024_s18 = smul.f32 0.001953125, %s7337_s8  ;;  %v6133_v7 = vpop.permute.xlu2 %6132 }
0x1697   : > { %6142 = vst.msk [vmem:[#allocation4 + $0x10] sm:$0xff] %vm1792_vm14, %v6133_v7  ;;  %s7339_s14 = spop %7338 }
0x1698   : > { %s6042_s30 = smul.f32 %s11024_s18, %s11024_s18 }
0x1699   : > { %s6041_s17 = smul.f32 0.001953125, %s7339_s14 }
0x169b   : > { %s6043_s19 = ssub.f32 %s6041_s17, %s6042_s30 }
0x169d   : > { %s6044_s23 = smax.f32 %s11440_s5, %s6043_s19 }
0x169e   : > { %s6050_s24 = sadd.f32 1e-08, %s6044_s23  ;;  %v6129_v24 = vpop.permute.xlu0 %6128  ;;  %v11046_v31 = vld [vmem:[#allocation4 + $0x10] sm:$0xff] }
0x169f   : > { %6140 = vst.msk [vmem:[#allocation4] sm:$0xff] %vm1792_vm14, %v6129_v24  ;;  %v6279_v35 = vmul.f32 %v10986_v9, %v11046_v31  ;;  %v6239_v9 = vmul.f32 %v10964_v8, %v11046_v31  ;;  %v6514_v8 = vmul.f32 %v11012_v40, %v11046_v31 }
0x16a0   : > { %v6051_v17 = vstv %s6050_s24 }
0x16a1   : > { %7698 = vrsqrt.f32 %v6051_v17  ;;  %vm6058_vm10 = vweird.f32 %v6051_v17 }
0x16a6   : > { %v6131_v39 = vpop.permute.xlu1 %6130  ;;  %v11033_v51 = vld [vmem:[#allocation4] sm:$0xff]  ;;  %v6622_v15 = vpop.permute.xlu0 %6621 }
0x16a7   : > { %v7699_v29 = vpop.eup %7698  ;;  %6141 = vst.msk [vmem:[#allocation4 + $0x8] sm:$0xff] %vm1792_vm14, %v6131_v39  ;;  %v6277_v14 = vmul.f32 %v6263_v36, %v11033_v51  ;;  %v6197_v56 = vmul.f32 %v10948_v10, %v11033_v51  ;;  %v6237_v55 = vmul.f32 %v10957_v19, %v11033_v51  ;;  %v6552_v33 = vmul.f32 %v6538_v32, %v11033_v51 }
0x16a8   : > { %v6053_v12 = vmul.f32 %v7699_v29, %v6051_v17  ;;  %v6592_v18 = vmul.f32 %v6578_v52, %v11033_v51  ;;  %vm6059_vm1 = vweird.f32 %v7699_v29  ;;  %v6317_v19 = vmul.f32 %v10983_v50, %v11033_v51 }
0x16a9   : > { %6285 = vrot.lane.b32.xlu2 %v6277_v14, %s11445_s9  ;;  %6205 = vrot.lane.b32.xlu1 %v6197_v56, %s11443_s11  ;;  %vm6060_vm9 = vmor %vm6058_vm10, %vm6059_vm1 }
0x16aa   : > { %6245 = vrot.lane.b32.xlu0 %v6237_v55, %s11444_s22  ;;  %v6054_v57 = vmul.f32 %v7699_v29, %v6053_v12 }
0x16ac   : > { %v6055_v47 = vmul.f32 0.5, %v6054_v57 }
0x16ae   : > { %v11048_v10 = vld [vmem:[#allocation4 + $0x8] sm:$0xff]  ;;  %v6056_v20 = vsub.f32 1.5, %v6055_v47  ;;  %v6618_v32 = vpop.permute.xlu1 %6617 }
0x16af   : > { %v6318_v2 = vmul.f32 %v6307_v38, %v11048_v10  ;;  %v6198_v50 = vmul.f32 %v10946_v13, %v11048_v10  ;;  %v6238_v34 = vmul.f32 %v10955_v0, %v11048_v10  ;;  %v6278_v13 = vmul.f32 %v10977_v42, %v11048_v10 }
0x16b0   : > { %v6057_v61 = vmul.f32 %v7699_v29, %v6056_v20  ;;  %v6199_v0 = vmul.f32 %v11006_v45, %v11046_v31  ;;  %v6512_v42 = vmul.f32 %v11008_v63, %v11033_v51  ;;  %v6633_v45 = vmul.f32 %v6622_v15, %v11048_v10 }
0x16b1   : > { %6325 = vrot.lane.b32.xlu1 %v6317_v19, %s11446_s13  ;;  %6289 = vrot.lane.b32.xlu2 %v6279_v35, %s11445_s9  ;;  %v6593_v40 = vmul.f32 %v11020_v11, %v11048_v10 }
0x16b2   : > { %6327 = vrot.lane.b32.xlu0 %v6318_v2, %s11446_s13  ;;  %v6061_v49 = vsel %vm6060_vm9, %v7699_v29, %v6057_v61  ;;  %v6173_v2 = vmul.f32 %v11000_v6, %v11033_v51  ;;  %v6174_v61 = vmul.f32 %v11004_v16, %v11048_v10 }
0x16b3   : > { %7340 = vpush %v6061_v49  ;;  %v6175_v49 = vmul.f32 %v11010_v59, %v11046_v31 }
0x16b6   : > { %v6135_v58 = vpop.permute.xlu0 %6134  ;;  %v6626_v52 = vpop.permute.xlu1 %6625 }
0x16b7   : > { %6143 = vst.msk [vmem:[#allocation4 + $0x18] sm:$0xff] %vm1792_vm14, %v6135_v58  ;;  %v6634_v11 = vmul.f32 %v6626_v52, %v11046_v31 }
0x16b9   : > { %6207 = vrot.lane.b32.xlu1 %v6198_v50, %s11443_s11 }
0x16ba   : > { %6249 = vrot.lane.b32.xlu0 %v6239_v9, %s11444_s22 }
0x16be   : > { %v11065_v41 = vld [vmem:[#allocation4 + $0x18] sm:$0xff] }
0x16bf   : > { %v6280_v28 = vmul.f32 %v10992_v1, %v11065_v41  ;;  %v6240_v5 = vmul.f32 %v10975_v53, %v11065_v41  ;;  %v6554_v53 = vmul.f32 %v11022_v54, %v11046_v31  ;;  %v6320_v1 = vmul.f32 %v10996_v21, %v11065_v41  ;;  %v6586_v21 = vpop.permute.xlu2 %6585 }
0x16c0   : > { %v6200_v37 = vmul.f32 %v10966_v44, %v11065_v41  ;;  %v6553_v44 = vmul.f32 %v11018_v4, %v11048_v10  ;;  %v6594_v63 = vmul.f32 %v6586_v21, %v11046_v31  ;;  %v6515_v4 = vmul.f32 %v11016_v23, %v11065_v41 }
0x16c1   : > { %6291 = vrot.lane.b32.xlu2 %v6280_v28, %s11445_s9  ;;  %6247 = vrot.lane.b32.xlu1 %v6238_v34, %s11444_s22  ;;  %v6176_v16 = vmul.f32 %v11002_v43, %v11065_v41 }
0x16c2   : > { %6251 = vrot.lane.b32.xlu0 %v6240_v5, %s11444_s22 }
0x16c9   : > { %6475 = vperm.xlu2 %7644, %v10911_v60   ;;  %6287 = vrot.lane.b32.xlu1 %v6278_v13, %s11445_s9  ;;  %v6319_v60 = vmul.f32 %v10990_v26, %v11046_v31  ;;  %v6555_v26 = vmul.f32 %v11030_v30, %v11065_v41 }
0x16ca   : > { %6524 = vrot.lane.b32.xlu0 %v6514_v8, %s11443_s11 }
0x16d1   : > { %6480 = vperm.xlu2 %7644, %v10918_v22   ;;  %6209 = vrot.lane.b32.xlu1 %v6199_v0, %s11443_s11  ;;  %v6513_v22 = vmul.f32 %v11014_v25, %v11048_v10  ;;  %v6632_v25 = vmul.f32 %v6618_v32, %v11033_v51 }
0x16d2   : > { %6564 = vrot.lane.b32.xlu0 %v6554_v53, %s11444_s22 }
0x16d9   : > { %6520 = vrot.lane.b32.xlu2 %v6512_v42, %s11443_s11  ;;  %6329 = vrot.lane.b32.xlu1 %v6319_v60, %s11446_s13 }
0x16da   : > { %6331 = vrot.lane.b32.xlu0 %v6320_v1, %s11446_s13 }
0x16e1   : > { %6522 = vrot.lane.b32.xlu2 %v6513_v22, %s11443_s11  ;;  %6211 = vrot.lane.b32.xlu1 %v6200_v37, %s11443_s11 }
0x16e2   : > { %6642 = vrot.lane.b32.xlu0 %v6633_v45, %s11446_s13 }
0x16e9   : > { %6560 = vrot.lane.b32.xlu2 %v6552_v33, %s11444_s22  ;;  %6485 = vperm.xlu1 %7645, %v10923_v46   ;;  %v11121_v46 = vpop.permute.xlu2 %6589 }
0x16ea   : > { %6566 = vrot.lane.b32.xlu0 %v6555_v26, %s11444_s22 }
0x16f1   : > { %6562 = vrot.lane.b32.xlu2 %v6553_v44, %s11444_s22  ;;  %6600 = vrot.lane.b32.xlu1 %v6592_v18, %s11445_s9  ;;  %v11125_v36 = vpop.permute.xlu2 %6629 }
0x16f9   : > { %6602 = vrot.lane.b32.xlu2 %v6593_v40, %s11445_s9  ;;  %6604 = vrot.lane.b32.xlu1 %v6594_v63, %s11445_s9  ;;  %v11131_v54 = vpop.permute.xlu2 %6470 }
0x1701   : > { %6640 = vrot.lane.b32.xlu2 %v6632_v25, %s11446_s13 }
0x1703   : > { %v6286_v38 = vpop.permute.xlu2 %6285 }
0x1709   : > { %6526 = vrot.lane.b32.xlu2 %v6515_v4, %s11443_s11  ;;  %s11228_s11 = spop %7340 }
0x170b   : > { %v6290_v24 = vpop.permute.xlu2 %6289 }
0x1711   : > { %6644 = vrot.lane.b32.xlu2 %v6634_v11, %s11446_s13 }
0x171b   : > { %v6206_v7 = vpop.permute.xlu1 %6205  ;;  %v6292_v29 = vpop.permute.xlu2 %6291 }
0x171c   : > { %v6246_v30 = vpop.permute.xlu0 %6245  ;;  %v6217_v58 = vadd.f32 %v6206_v7, %v6173_v2 }
0x171e   : > { %v6257_v34 = vadd.f32 %v6246_v30, %v6217_v58 }
0x1720   : > { %v6297_v0 = vadd.f32 %v6286_v38, %v6257_v34  ;;  %v6002_v34 = vld [vmem:[%s11457_s15 + $0x10] sm:$0xff] }
0x1723   : > { %v6326_v17 = vpop.permute.xlu1 %6325  ;;  %v11134_v23 = vpop.permute.xlu2 %6475 }
0x1724   : > { %v6328_v39 = vpop.permute.xlu0 %6327  ;;  %v11147_v60 = vadd.f32 %v6326_v17, %v6297_v0 }
0x1726   : > { %v6368_v22 = vmul.f32 %v11147_v60, %v11147_v60  ;;  %v6351_v44 = vsel %vm2022_vm12, %v11147_v60, 0.0 }
0x1728   : > { %v6372_v25 = vsel %vm2022_vm12, %v6368_v22, 0.0 }
0x172b   : > { %v6208_v14 = vpop.permute.xlu1 %6207  ;;  %v6481_v57 = vpop.permute.xlu2 %6480 }
0x172c   : > { %v6250_v56 = vpop.permute.xlu0 %6249  ;;  %v6490_v47 = vmul.f32 %v6481_v57, %v11046_v31  ;;  %v6218_v50 = vadd.f32 %v6208_v14, %v6174_v61  ;;  %v6635_v14 = vmul.f32 %v11125_v36, %v11065_v41  ;;  %v7249_v57 = vld [vmem:[%s11457_s15 + $0x30] sm:$0xff] }
0x172d   : > { %v7261_v61 = vld [vmem:[%s11457_s15 + $0x50] sm:$0xff] }
0x1733   : > { %v6248_v55 = vpop.permute.xlu1 %6247  ;;  %v6521_v36 = vpop.permute.xlu2 %6520 }
0x1734   : > { %v6252_v12 = vpop.permute.xlu0 %6251  ;;  %v6258_v28 = vadd.f32 %v6248_v55, %v6218_v50  ;;  %v7243_v55 = vld [vmem:[%s11456_s1 + $0x20] sm:$0xff] }
0x173b   : > { %v6288_v33 = vpop.permute.xlu1 %6287 }
0x173c   : > { %v6525_v18 = vpop.permute.xlu0 %6524  ;;  %v6298_v13 = vadd.f32 %v6288_v33, %v6258_v28  ;;  %v7247_v33 = vld [vmem:[%s11457_s15 + $0x20] sm:$0xff] }
0x173d   : > { %v6534_v15 = vadd.f32 %v6525_v18, %v6490_v47  ;;  %v7248_v18 = vld [vmem:[%s11457_s15 + $0x28] sm:$0xff]  ;;  %v7250_v47 = vld [vmem:[%s11457_s15 + $0x38] sm:$0xff] }
0x173e   : > { %v11145_v53 = vadd.f32 %v6328_v39, %v6298_v13 }
0x1740   : > { %v6369_v31 = vmul.f32 %v11145_v53, %v11145_v53  ;;  %v6352_v37 = vsel %vm2022_vm12, %v11145_v53, 0.0 }
0x1741   : > { %v6353_v32 = vadd.f32 %v6352_v37, %v6351_v44  ;;  %v6488_v37 = vmul.f32 %v11131_v54, %v11033_v51 }
0x1742   : > { %v6373_v63 = vsel %vm2022_vm12, %v6369_v31, 0.0 }
0x1743   : > { %v6210_v20 = vpop.permute.xlu1 %6209  ;;  %v6374_v38 = vadd.f32 %v6373_v63, %v6372_v25 }
0x1744   : > { %v6565_v19 = vpop.permute.xlu0 %6564  ;;  %v6219_v9 = vadd.f32 %v6210_v20, %v6175_v49 }
0x1745   : > { %v11137_v35 = vadd.f32 %v6565_v19, %v6534_v15  ;;  %v7255_v15 = vld [vmem:[%s11456_s1 + $0x40] sm:$0xff]  ;;  %v7260_v19 = vld [vmem:[%s11457_s15 + $0x48] sm:$0xff] }
0x1746   : > { %v6259_v8 = vadd.f32 %v6250_v56, %v6219_v9  ;;  %v6595_v56 = vmul.f32 %v11121_v46, %v11065_v41  ;;  %v6523_v46 = vpop.permute.xlu2 %6522  ;;  %v5998_v9 = vld [vmem:[%s11456_s1 + $0x10] sm:$0xff] }
0x1748   : > { %v6299_v42 = vadd.f32 %v6290_v24, %v6259_v8 }
0x174b   : > { %v6330_v5 = vpop.permute.xlu1 %6329 }
0x174c   : > { %v11149_v6 = vadd.f32 %v6330_v5, %v6299_v42  ;;  %v6332_v40 = vpop.permute.xlu0 %6331 }
0x174e   : > { %v6370_v45 = vmul.f32 %v11149_v6, %v11149_v6  ;;  %v6354_v43 = vsel %vm2022_vm12, %v11149_v6, 0.0  ;;  %v6561_v20 = vpop.permute.xlu2 %6560 }
0x174f   : > { %v6355_v11 = vadd.f32 %v6354_v43, %v6353_v32  ;;  %v6489_v43 = vmul.f32 %v11134_v23, %v11048_v10 }
0x1750   : > { %v6375_v52 = vsel %vm2022_vm12, %v6370_v45, 0.0 }
0x1751   : > { %v6376_v17 = vadd.f32 %v6375_v52, %v6374_v38  ;;  %v6533_v32 = vadd.f32 %v6523_v46, %v6489_v43  ;;  %v6003_v43 = vld [vmem:[%s11457_s15 + $0x18] sm:$0xff] }
0x1753   : > { %v6212_v59 = vpop.permute.xlu1 %6211 }
0x1754   : > { %v6220_v1 = vadd.f32 %v6212_v59, %v6176_v16  ;;  %v6643_v50 = vpop.permute.xlu0 %6642 }
0x1756   : > { %v6260_v26 = vadd.f32 %v6252_v12, %v6220_v1  ;;  %v7244_v12 = vld [vmem:[%s11456_s1 + $0x28] sm:$0xff]  ;;  %v6563_v49 = vpop.permute.xlu2 %6562 }
0x1757   : > { %v6573_v38 = vadd.f32 %v6563_v49, %v6533_v32 }
0x1758   : > { %v6300_v21 = vadd.f32 %v6292_v29, %v6260_v26 }
0x175a   : > { %v11167_v4 = vadd.f32 %v6332_v40, %v6300_v21  ;;  %v6532_v21 = vadd.f32 %v6521_v36, %v6488_v37 }
0x175b   : > { %v6486_v2 = vpop.permute.xlu1 %6485 }
0x175c   : > { %v6356_v7 = vsel %vm2022_vm12, %v11167_v4, 0.0  ;;  %v6371_v30 = vmul.f32 %v11167_v4, %v11167_v4  ;;  %v6567_v13 = vpop.permute.xlu0 %6566  ;;  %v6572_v25 = vadd.f32 %v6561_v20, %v6532_v21  ;;  %v6491_v54 = vmul.f32 %v6486_v2, %v11065_v41  ;;  %v5997_v21 = vld [vmem:[%s11456_s1 + $0x8] sm:$0xff] }
0x175d   : > { %v6357_v24 = vadd.f32 %v6356_v7, %v6355_v11 }
0x175e   : > { %v6377_v39 = vsel %vm2022_vm12, %v6371_v30, 0.0  ;;  %v6603_v28 = vpop.permute.xlu2 %6602 }
0x175f   : > { %6358 = vadd.xlane.f32.xlu1 %v6357_v24  ;;  %v6378_v29 = vadd.f32 %v6377_v39, %v6376_v17  ;;  %v6613_v24 = vadd.f32 %v6603_v28, %v6573_v38  ;;  %v6923_v38 = vld [vmem:[%s7999_s12 + $0x8] sm:$0xff] }
0x1761   : > { %6379 = vadd.xlane.f32.xlu0 %v6378_v29  ;;  %v11200_v23 = vadd.f32 %v6643_v50, %v6613_v24 }
0x1763   : > { %v6601_v58 = vpop.permute.xlu1 %6600 }
0x1764   : > { %v6612_v7 = vadd.f32 %v6601_v58, %v6572_v25  ;;  %v5996_v25 = vld [vmem:[%s11456_s1] sm:$0xff] }
0x1766   : > { %v6641_v8 = vpop.permute.xlu2 %6640 }
0x1767   : > { %v11198_v17 = vadd.f32 %v6641_v8, %v6612_v7  ;;  %v7256_v8 = vld [vmem:[%s11456_s1 + $0x48] sm:$0xff] }
0x176b   : > { %v6605_v5 = vpop.permute.xlu1 %6604 }
0x176c   : > { %v6614_v51 = vadd.f32 %v6605_v5, %v11137_v35  ;;  %v6666_v35 = vsel %vm2022_vm12, %v11198_v17, 0.0 }
0x176e   : > { %v6527_v44 = vpop.permute.xlu2 %6526 }
0x176f   : > { %v6535_v39 = vadd.f32 %v6527_v44, %v6491_v54 }
0x1775   : > { %6646 = vrot.lane.b32.xlu0 %v6635_v14, %s11446_s13  ;;  %v6683_v14 = vmul.f32 %v11198_v17, %v11198_v17 }
0x1776   : > { %v6645_v10 = vpop.permute.xlu2 %6644 }
0x1777   : > { %v11202_v29 = vadd.f32 %v6645_v10, %v6614_v51  ;;  %v6687_v36 = vsel %vm2022_vm12, %v6683_v14, 0.0 }
0x1778   : > { %6606 = vrot.lane.b32.xlu1 %v6595_v56, %s11445_s9  ;;  %v6684_v56 = vmul.f32 %v11200_v23, %v11200_v23 }
0x1779   : > { %v6685_v41 = vmul.f32 %v11202_v29, %v11202_v29 }
0x177d   : > { %6417 = vperm.xlu0 %7646, %v7243_v55   ;;  %v6575_v55 = vadd.f32 %v6567_v13, %v6535_v39  ;;  %v7246_v13 = vld [vmem:[%s11456_s1 + $0x38] sm:$0xff] }
0x1785   : > { %6422 = vperm.xlu0 %7646, %v7244_v12  }
0x178d   : > { %6441 = vperm.xlu0 %7646, %v7247_v33   ;;  %v6667_v33 = vsel %vm2022_vm12, %v11200_v23, 0.0 }
0x178e   : > { %v6668_v46 = vadd.f32 %v6667_v33, %v6666_v35 }
0x1795   : > { %6446 = vperm.xlu0 %7646, %v7248_v18  }
0x179d   : > { %6451 = vperm.xlu0 %7646, %v7249_v57   ;;  %v6669_v57 = vsel %vm2022_vm12, %v11202_v29, 0.0 }
0x179e   : > { %v6670_v2 = vadd.f32 %v6669_v57, %v6668_v46 }
0x17a5   : > { %6456 = vperm.xlu0 %7646, %v7250_v47  }
0x17ad   : > { %6732 = vperm.xlu0 %7646, %v7255_v15   ;;  %v6688_v15 = vsel %vm2022_vm12, %v6684_v56, 0.0 }
0x17b5   : > { %6761 = vperm.xlu0 %7646, %v7260_v19   ;;  %v6690_v19 = vsel %vm2022_vm12, %v6685_v41, 0.0 }
0x17bd   : > { %6766 = vperm.xlu0 %7646, %v7261_v61   ;;  %v6689_v61 = vadd.f32 %v6688_v15, %v6687_v36 }
0x17c5   : > { %6080 = vperm.xlu0 %7646, %v5998_v9   ;;  %v6691_v9 = vadd.f32 %v6690_v19, %v6689_v61 }
0x17cd   : > { %6104 = vperm.xlu0 %7646, %v6002_v34   ;;  %v7245_v34 = vld [vmem:[%s11456_s1 + $0x30] sm:$0xff] }
0x17d2   : > { %v6359_v0 = vpop.xlane.xlu1 %6358 }
0x17d3   : > { %v6360_v42 = vrot.slane %v6359_v0, 4 }
0x17d4   : > { %v6380_v16 = vpop.xlane.xlu0 %6379 }
0x17d5   : > { %v6361_v59 = vadd.f32 %v6360_v42, %v6359_v0  ;;  %v6381_v31 = vrot.slane %v6380_v16, 4  ;;  %v7259_v0 = vld [vmem:[%s11457_s15 + $0x40] sm:$0xff] }
0x17d6   : > { %v6000_v42 = vld [vmem:[%s11457_s15] sm:$0xff] }
0x17d7   : > { %v6362_v1 = vrot.slane %v6361_v59, 2  ;;  %v6382_v22 = vadd.f32 %v6381_v31, %v6380_v16  ;;  %6094 = vperm.xlu0 %7646, %v6000_v42   ;;  %v7257_v16 = vld [vmem:[%s11456_s1 + $0x50] sm:$0xff] }
0x17d9   : > { %v6383_v45 = vrot.slane %v6382_v22, 2  ;;  %v6363_v26 = vadd.f32 %v6362_v1, %v6361_v59  ;;  %v7258_v59 = vld [vmem:[%s11456_s1 + $0x58] sm:$0xff] }
0x17da   : > { %v7262_v1 = vld [vmem:[%s11457_s15 + $0x58] sm:$0xff] }
0x17db   : > { %v6364_v63 = vrot.slane %v6363_v26, 1  ;;  %v6384_v40 = vadd.f32 %v6383_v45, %v6382_v22  ;;  %v5999_v22 = vld [vmem:[%s11456_s1 + $0x18] sm:$0xff] }
0x17dd   : > { %v6365_v52 = vadd.f32 %v6364_v63, %v6363_v26  ;;  %v6385_v11 = vrot.slane %v6384_v40, 1 }
0x17df   : > { %7342 = vpush %v6365_v52  ;;  %v6386_v30 = vadd.f32 %v6385_v11, %v6384_v40  ;;  %v6001_v52 = vld [vmem:[%s11457_s15 + $0x8] sm:$0xff]  ;;  %v6922_v11 = vld [vmem:[%s7999_s12] sm:$0xff] }
0x17e1   : > { %7344 = vpush %v6386_v30 }
0x17e7   : > { %v6647_v47 = vpop.permute.xlu0 %6646 }
0x17ea   : > { %v6607_v12 = vpop.permute.xlu1 %6606 }
0x17eb   : > { %v6615_v18 = vadd.f32 %v6607_v12, %v6575_v55  ;;  %v6778_v12 = vld [vmem:[%s7989_s2] sm:$0xf] }
0x17ec   : > { %v6864_v36 = vsel %vm2029_vm11, %v6778_v12, 0 }
0x17ed   : > { %v11218_v20 = vadd.f32 %v6647_v47, %v6615_v18  ;;  %6873 = vmatpush.bf16.msra.mxu1 %v6864_v36  ;;  %6900 = vmatpush.bf16.msra.mxu2 %v6864_v36 }
0x17ef   : > { %v6671_v49 = vsel %vm2022_vm12, %v11218_v20, 0.0  ;;  %v6686_v58 = vmul.f32 %v11218_v20, %v11218_v20  ;;  %v6418_v7 = vpop.permute.xlu0 %6417 }
0x17f0   : > { %v6672_v50 = vadd.f32 %v6671_v49, %v6670_v2 }
0x17f1   : > { %v6692_v28 = vsel %vm2022_vm12, %v6686_v58, 0.0 }
0x17f2   : > { %6673 = vadd.xlane.f32.xlu1 %v6672_v50  ;;  %v6693_v5 = vadd.f32 %v6692_v28, %v6691_v9 }
0x17f4   : > { %6694 = vadd.xlane.f32.xlu2 %v6693_v5 }
0x17f7   : > { %v6423_v30 = vpop.permute.xlu0 %6422 }
0x17ff   : > { %v6442_v24 = vpop.permute.xlu0 %6441 }
0x1807   : > { %v6447_v54 = vpop.permute.xlu0 %6446 }
0x180b   : > { %6427 = vperm.xlu1 %7645, %v7245_v34  }
0x180c   : > { %6432 = vperm.xlu2 %7644, %v7246_v13  }
0x180f   : > { %v6452_v46 = vpop.permute.xlu0 %6451 }
0x1810   : > { %s7343_s22 = spop %7342 }
0x1811   : > { %s11231_s9 = smul.f32 0.00390625, %s7343_s22 }
0x1812   : > { %s7345_s13 = spop %7344 }
0x1813   : > { %s6389_s29 = smul.f32 %s11231_s9, %s11231_s9  ;;  %6737 = vperm.xlu1 %7645, %v7256_v8   ;;  %v6392_v51 = vstv %s11231_s9 }
0x1814   : > { %s6388_s21 = smul.f32 0.00390625, %s7345_s13  ;;  %6756 = vperm.xlu2 %7644, %v7259_v0   ;;  %v6393_v10 = vsub.f32 %v11147_v60, %v6392_v51  ;;  %v6394_v39 = vsub.f32 %v11145_v53, %v6392_v51  ;;  %v6396_v50 = vsub.f32 %v11167_v4, %v6392_v51 }
0x1816   : > { %s6390_s8 = ssub.f32 %s6388_s21, %s6389_s29 }
0x1818   : > { %s6391_s14 = smax.f32 %s11440_s5, %s6390_s8  ;;  %s7281_s8 = sshll.u32 %s8027_s0, 4 }
0x1819   : > { %s6397_s30 = sadd.f32 1e-08, %s6391_s14 }
0x181b   : > { %v6398_v31 = vstv %s6397_s30  ;;  %6742 = vperm.xlu1 %7645, %v7257_v16   ;;  %s6979_s30 = scalar_lea.hbm %s8004_s26, %s7281_s8 }
0x181c   : > { %7700 = vrsqrt.f32 %v6398_v31  ;;  %6747 = vperm.xlu2 %7644, %v7258_v59   ;;  %vm6405_vm5 = vweird.f32 %v6398_v31 }
0x1822   : > { %v7701_v37 = vpop.eup %7700 }
0x1823   : > { %v6400_v45 = vmul.f32 %v7701_v37, %v6398_v31  ;;  %6771 = vperm.xlu1 %7645, %v7262_v1   ;;  %vm6406_vm14 = vweird.f32 %v7701_v37  ;;  %v6457_v1 = vpop.permute.xlu0 %6456 }
0x1824   : > { %6085 = vperm.xlu2 %7644, %v5999_v22   ;;  %vm6407_vm15 = vmor %vm6405_vm5, %vm6406_vm14 }
0x1825   : > { %v6401_v26 = vmul.f32 %v7701_v37, %v6400_v45 }
0x1827   : > { %v6402_v44 = vmul.f32 0.5, %v6401_v26 }
0x1829   : > { %v6403_v63 = vsub.f32 1.5, %v6402_v44 }
0x182b   : > { %6109 = vperm.xlu1 %7645, %v6003_v43   ;;  %v6404_v40 = vmul.f32 %v7701_v37, %v6403_v63  ;;  %v6395_v63 = vsub.f32 %v11149_v6, %v6392_v51 }
0x182c   : > { %6075 = vperm.xlu2 %7644, %v5997_v21  }
0x182d   : > { %v6408_v32 = vsel %vm6407_vm15, %v7701_v37, %v6404_v40 }
0x182e   : > { %7346 = vpush %v6408_v32 }
0x1833   : > { %6070 = vperm.xlu1 %7645, %v5996_v25  }
0x1834   : > { %6099 = vperm.xlu2 %7644, %v6001_v52  }
0x183b   : > { %6926 = vperm.xlu1 %7645, %v6922_v11  }
0x183c   : > { %6931 = vperm.xlu2 %7644, %v6923_v38  }
0x185f   : > { %s7347_s17 = spop %7346 }
0x1860   : > { %v6410_v14 = vstv %s7347_s17 }
0x1861   : > { %v6411_v56 = vmul.f32 %v6410_v14, %v6393_v10  ;;  %v6412_v35 = vmul.f32 %v6410_v14, %v6394_v39  ;;  %v6414_v28 = vmul.f32 %v6410_v14, %v6396_v50  ;;  %v6413_v25 = vmul.f32 %v6410_v14, %v6395_v63  ;;  %v6733_v63 = vpop.permute.xlu0 %6732 }
0x1863   : > { %v6435_v41 = vmul.f32 %v6418_v7, %v6411_v56  ;;  %v6436_v55 = vmul.f32 %v6423_v30, %v6412_v35 }
0x1865   : > { %v6459_v33 = vadd.f32 %v6442_v24, %v6435_v41  ;;  %v6460_v18 = vadd.f32 %v6447_v54, %v6436_v55  ;;  %v6674_v57 = vpop.xlane.xlu1 %6673 }
0x1866   : > { %v6675_v47 = vrot.slane %v6674_v57, 4 }
0x1867   : > { %v7263_v15 = vmul.f32 -1.442695, %v6459_v33  ;;  %v7264_v60 = vmul.f32 -1.442695, %v6460_v18  ;;  %v6695_v19 = vpop.xlane.xlu2 %6694 }
0x1868   : > { %v6676_v53 = vadd.f32 %v6675_v47, %v6674_v57  ;;  %v6696_v2 = vrot.slane %v6695_v19, 4 }
0x1869   : > { %7702 = vpow2.f32 %v7263_v15 }
0x186a   : > { %7704 = vpow2.f32 %v7264_v60  ;;  %v6677_v61 = vrot.slane %v6676_v53, 2  ;;  %v6697_v49 = vadd.f32 %v6696_v2, %v6695_v19 }
0x186c   : > { %v6698_v58 = vrot.slane %v6697_v49, 2  ;;  %v6678_v9 = vadd.f32 %v6677_v61, %v6676_v53 }
0x186e   : > { %v6679_v5 = vrot.slane %v6678_v9, 1  ;;  %v6699_v34 = vadd.f32 %v6698_v58, %v6697_v49 }
0x186f   : > { %v7703_v13 = vpop.eup %7702  ;;  %v6433_v8 = vpop.permute.xlu2 %6432 }
0x1870   : > { %v7705_v0 = vpop.eup %7704  ;;  %v6791_v42 = vadd.f32 1.0, %v7703_v13  ;;  %v6438_v16 = vmul.f32 %v6433_v8, %v6414_v28  ;;  %v6680_v59 = vadd.f32 %v6679_v5, %v6678_v9  ;;  %v6700_v31 = vrot.slane %v6699_v34, 1 }
0x1871   : > { %v6792_v22 = vadd.f32 1.0, %v7705_v0 }
0x1872   : > { %7706 = vrcp.f32 %v6791_v42  ;;  %v6462_v37 = vadd.f32 %v6457_v1, %v6438_v16  ;;  %7348 = vpush %v6680_v59  ;;  %v6701_v45 = vadd.f32 %v6700_v31, %v6699_v34  ;;  %v6804_v52 = vand.u32 2147483647, %v6791_v42 }
0x1873   : > { %7708 = vrcp.f32 %v6792_v22  ;;  %v6806_v11 = vand.u32 2147483648, %v6791_v42  ;;  %v6821_v54 = vand.u32 2147483648, %v6792_v22  ;;  %v6819_v56 = vand.u32 2147483647, %v6792_v22 }
0x1874   : > { %v7266_v26 = vmul.f32 -1.442695, %v6462_v37  ;;  %7350 = vpush %v6701_v45  ;;  %vm6800_vm4 = vweird.f32 %v6791_v42  ;;  %vm6815_vm3 = vweird.f32 %v6792_v22  ;;  %vm6805_vm13 = vcmp.eq.f32.partialorder %v6804_v52, 8.507059e+37 }
0x1875   : > { %v6807_v6 = vor.u32 1.1754944e-38, %v6806_v11  ;;  %v6822_v55 = vor.u32 1.1754944e-38, %v6821_v54  ;;  %vm6820_vm8 = vcmp.eq.f32.partialorder %v6819_v56, 8.507059e+37  ;;  %v6762_v54 = vpop.permute.xlu0 %6761 }
0x1876   : > { %7710 = vpow2.f32 %v7266_v26 }
0x1878   : > { %v7707_v4 = vpop.eup %7706 }
0x1879   : > { %v7709_v44 = vpop.eup %7708  ;;  %v6796_v43 = vmul.f32 %v7707_v4, %v6791_v42  ;;  %vm6801_vm11 = vweird.f32 %v7707_v4 }
0x187a   : > { %v6811_v21 = vmul.f32 %v7709_v44, %v6792_v22  ;;  %vm6816_vm6 = vweird.f32 %v7709_v44  ;;  %vm6802_vm7 = vmor %vm6800_vm4, %vm6801_vm11 }
0x187b   : > { %v6797_v40 = vsub.f32 1.0, %v6796_v43  ;;  %vm6817_vm2 = vmor %vm6815_vm3, %vm6816_vm6 }
0x187c   : > { %v7711_v32 = vpop.eup %7710  ;;  %v6812_v38 = vsub.f32 1.0, %v6811_v21 }
0x187d   : > { %v6794_v7 = vadd.f32 1.0, %v7711_v32  ;;  %v6428_v30 = vpop.permute.xlu1 %6427  ;;  %v6798_v24 = vmul.f32 %v7707_v4, %v6797_v40 }
0x187e   : > { %v6437_v10 = vmul.f32 %v6428_v30, %v6413_v25  ;;  %v6813_v39 = vmul.f32 %v7709_v44, %v6812_v38 }
0x187f   : > { %v6799_v35 = vadd.f32 %v7707_v4, %v6798_v24  ;;  %7712 = vrcp.f32 %v6794_v7  ;;  %vm6845_vm10 = vweird.f32 %v6794_v7  ;;  %v6851_v9 = vand.u32 2147483648, %v6794_v7 }
0x1880   : > { %v6461_v41 = vadd.f32 %v6452_v46, %v6437_v10  ;;  %v6814_v51 = vadd.f32 %v7709_v44, %v6813_v39  ;;  %v6849_v34 = vand.u32 2147483647, %v6794_v7  ;;  %v6757_v10 = vpop.permute.xlu2 %6756 }
0x1881   : > { %v6803_v14 = vsel %vm6802_vm7, %v7707_v4, %v6799_v35  ;;  %v6852_v42 = vor.u32 1.1754944e-38, %v6851_v9 }
0x1882   : > { %v7265_v12 = vmul.f32 -1.442695, %v6461_v41  ;;  %v6808_v33 = vsel %vm6805_vm13, %v6807_v6, %v6803_v14  ;;  %v6818_v18 = vsel %vm6817_vm2, %v7709_v44, %v6814_v51  ;;  %vm6850_vm6 = vcmp.eq.f32.partialorder %v6849_v34, 8.507059e+37 }
0x1883   : > { %v6823_v57 = vsel %vm6820_vm8, %v6822_v55, %v6818_v18 }
0x1884   : > { %7714 = vpow2.f32 %v7265_v12  ;;  %v6855_v36 = vpack.c.bf16 %v6823_v57, %v6808_v33  ;;  %v6767_v33 = vpop.permute.xlu0 %6766 }
0x1885   : > { %v7713_v47 = vpop.eup %7712  ;;  %v6738_v32 = vpop.permute.xlu1 %6737 }
0x1886   : > { %7267 = vmatmul.msk.bf16.vlgmr.msra.gmra.mxu1 %vm2022_vm12, %v6855_v36  ;;  %v6841_v15 = vmul.f32 %v7713_v47, %v6794_v7  ;;  %vm6846_vm1 = vweird.f32 %v7713_v47 }
0x1887   : > { %vm6847_vm14 = vmor %vm6845_vm10, %vm6846_vm1 }
0x1888   : > { %v6842_v19 = vsub.f32 1.0, %v6841_v15  ;;  %v6748_v14 = vpop.permute.xlu2 %6747 }
0x188a   : > { %v7715_v46 = vpop.eup %7714  ;;  %v6843_v53 = vmul.f32 %v7713_v47, %v6842_v19 }
0x188b   : > { %v6793_v60 = vadd.f32 1.0, %v7715_v46 }
0x188c   : > { %v6844_v58 = vadd.f32 %v7713_v47, %v6843_v53 }
0x188d   : > { %7716 = vrcp.f32 %v6793_v60  ;;  %v6836_v50 = vand.u32 2147483648, %v6793_v60  ;;  %v6834_v5 = vand.u32 2147483647, %v6793_v60  ;;  %vm6830_vm5 = vweird.f32 %v6793_v60  ;;  %v6743_v41 = vpop.permute.xlu1 %6742 }
0x188e   : > { %v6848_v8 = vsel %vm6847_vm14, %v7713_v47, %v6844_v58  ;;  %v6063_v58 = vstv %s11228_s11 }
0x188f   : > { %v6837_v0 = vor.u32 1.1754944e-38, %v6836_v50  ;;  %vm6835_vm11 = vcmp.eq.f32.partialorder %v6834_v5, 8.507059e+37  ;;  %v6853_v31 = vsel %vm6850_vm6, %v6852_v42, %v6848_v8 }
0x1890   : > { %v6086_v15 = vpop.permute.xlu2 %6085 }
0x1893   : > { %v7717_v2 = vpop.eup %7716 }
0x1894   : > { %v6826_v61 = vmul.f32 %v7717_v2, %v6793_v60  ;;  %vm6831_vm9 = vweird.f32 %v7717_v2  ;;  %v6081_v60 = vpop.permute.xlu0 %6080 }
0x1895   : > { %vm6832_vm15 = vmor %vm6830_vm5, %vm6831_vm9  ;;  %v6772_v18 = vpop.permute.xlu1 %6771 }
0x1896   : > { %v6827_v49 = vsub.f32 1.0, %v6826_v61  ;;  %v6045_v61 = vstv %s11024_s18  ;;  %s1007_s18 = sand.u32 1, %s7776_s7  }
0x1897   : > { %v6049_v50 = vsub.f32 %v10897_v3, %v6045_v61  ;;  %v6048_v5 = vsub.f32 %v10895_v48, %v6045_v61  ;;  %v6046_v42 = vsub.f32 %v10881_v62, %v6045_v61  ;;  %s7082_s11 = sshll.u32 %s1007_s18, 4  ;;  %s6968_s0 = scalar_lea.sflag [#allocation9], %s1007_s18 }
0x1898   : > { %v6828_v28 = vmul.f32 %v7717_v2, %v6827_v49  ;;  %v6076_v49 = vpop.permute.xlu2 %6075  ;;  %s1009_s14 = scalar_lea.vmem [#allocation8], %s7082_s11 }
0x1899   : > { %v6067_v34 = vmul.f32 %v6063_v58, %v6049_v50  ;;  %s6980_s17 = sshll.u32 %s1009_s14, 4  ;;  %s6981_s17 = int_to_ptr.vmem [resolvable:$true] %s6980_s17 }
0x189a   : > { %v6829_v13 = vadd.f32 %v7717_v2, %v6828_v28 }
0x189b   : > { %v6091_v8 = vmul.f32 %v6086_v15, %v6067_v34 }
0x189c   : > { %v6833_v16 = vsel %vm6832_vm15, %v7717_v2, %v6829_v13  ;;  %v6105_v9 = vpop.permute.xlu0 %6104  ;;  %v6066_v13 = vmul.f32 %v6063_v58, %v6048_v5 }
0x189d   : > { %v6838_v59 = vsel %vm6835_vm11, %v6837_v0, %v6833_v16  ;;  %v6110_v53 = vpop.permute.xlu1 %6109  ;;  %v6047_v0 = vsub.f32 %v10883_v27, %v6045_v61 }
0x189e   : > { %v6856_v1 = vpack.c.bf16 %v6853_v31, %v6838_v59  ;;  %v6090_v31 = vmul.f32 %v6081_v60, %v6066_v13 }
0x18a0   : > { %7268 = vmatmul.msk.bf16.gmra.mxu1 %vm2022_vm12, %v6856_v1  ;;  %v6065_v1 = vmul.f32 %v6063_v58, %v6047_v0 }
0x18a2   : > { %v6089_v3 = vmul.f32 %v6076_v49, %v6065_v1 }
0x18a3   : > { %s7349_s19 = spop %7348 }
0x18a4   : > { %s6682_s23 = smul.f32 0.00390625, %s7349_s19  ;;  %v6095_v48 = vpop.permute.xlu0 %6094  ;;  %s6982_s19 = sshll.u32 %s6979_s30, 4  ;;  %s6983_s19 = int_to_ptr.hbm [resolvable:$true] %s6982_s19 }
0x18a5   : > { %s7351_s24 = spop %7350  ;;  %v6071_v16 = vpop.permute.xlu1 %6070 }
0x18a6   : > { %s6704_s22 = smul.f32 %s6682_s23, %s6682_s23  ;;  %v6707_v40 = vstv %s6682_s23  ;;  %s7736_s23 = sshra.s32 %s6983_s19, 4  ;;  %s7737_s23 = int_to_ptr.hbm [resolvable:$true] %s7736_s23 }
0x18a7   : > { %s6703_s9 = smul.f32 0.00390625, %s7351_s24  ;;  %v6708_v25 = vsub.f32 %v11198_v17, %v6707_v40  ;;  %v6709_v52 = vsub.f32 %v11200_v23, %v6707_v40  ;;  %v6710_v6 = vsub.f32 %v11202_v29, %v6707_v40  ;;  %v6711_v51 = vsub.f32 %v11218_v20, %v6707_v40  ;;  %s7738_s24 = scalar_lea.hbm %s7737_s23, 16 }
0x18a8   : > { %p7739_p11 = scmp.ne.s32.totalorder %s7737_s23, %s7738_s24  ;;  %p7743_p0 = scmp.lt.s32.totalorder %s7737_s23, %s8004_s26 }
0x18a9   : > { %s6705_s13 = ssub.f32 %s6703_s9, %s6704_s22  ;;  %s7742_s22 = scalar_lea.hbm %s8004_s26, 32 }
0x18aa   : > { %p7740_p12 = pnand %p7739_p11, %p8044_p5  ;;  %p7744_p1 = scmp.lt.s32.totalorder %s7742_s22, %s7738_s24 }
0x18ab   : > { %s6706_s29 = smax.f32 %s11440_s5, %s6705_s13 }
0x18ac   : > { %s6712_s21 = sadd.f32 1e-08, %s6706_s29  ;;  %p7741_p13 = pneg %p7740_p12 }
0x18ad   : > { %p7745_p2 = por %p7744_p1, %p7743_p0 }
0x18ae   : > { %v6713_v22 = vstv %s6712_s21 }
0x18af   : > { %7718 = vrsqrt.f32 %v6713_v22  ;;  %vm6720_vm7 = vweird.f32 %v6713_v22  ;;  %p7746_p3 = pnand %p7745_p2, %p7741_p13 }
0x18b5   : > { %v7719_v37 = vpop.eup %7718 }
0x18b6   : > { %v6715_v45 = vmul.f32 %v7719_v37, %v6713_v22  ;;  %vm6721_vm4 = vweird.f32 %v7719_v37  ;;  %v6115_v22 = vadd.f32 %v6110_v53, %v6091_v8 }
0x18b7   : > { %vm6722_vm3 = vmor %vm6720_vm7, %vm6721_vm4 }
0x18b8   : > { %v6716_v26 = vmul.f32 %v7719_v37, %v6715_v45  ;;  %v6100_v45 = vpop.permute.xlu2 %6099 }
0x18ba   : > { %v6717_v4 = vmul.f32 0.5, %v6716_v26  ;;  %v6114_v26 = vadd.f32 %v6105_v9, %v6090_v31 }
0x18bc   : > { %v6718_v44 = vsub.f32 1.5, %v6717_v4 }
0x18be   : > { %v6719_v43 = vmul.f32 %v7719_v37, %v6718_v44 }
0x18c0   : > { %v6723_v21 = vsel %vm6722_vm3, %v7719_v37, %v6719_v43  ;;  %v6064_v37 = vmul.f32 %v6063_v58, %v6046_v42 }
0x18c1   : > { %7352 = vpush %v6723_v21  ;;  %v6113_v21 = vadd.f32 %v6100_v45, %v6089_v3 }
0x18c2   : > { %v6088_v4 = vmul.f32 %v6071_v16, %v6064_v37 }
0x18c4   : > { %v6112_v62 = vadd.f32 %v6095_v48, %v6088_v4 }
0x18f2   : > { %s7353_s5 = spop %7352 }
0x18f3   : > { %v6725_v11 = vstv %s7353_s5 }
0x18f4   : > { %v6726_v38 = vmul.f32 %v6725_v11, %v6708_v25  ;;  %v6727_v7 = vmul.f32 %v6725_v11, %v6709_v52  ;;  %v6728_v17 = vmul.f32 %v6725_v11, %v6710_v6  ;;  %v6729_v23 = vmul.f32 %v6725_v11, %v6711_v51  ;;  %v7721_v6 = vld [vmem:[%s8062_s20 + $0x8] sm:$0xff] }
0x18f6   : > { %v6750_v30 = vmul.f32 %v6733_v63, %v6726_v38  ;;  %v6751_v24 = vmul.f32 %v6738_v32, %v6727_v7  ;;  %v6752_v55 = vmul.f32 %v6743_v41, %v6728_v17  ;;  %v6753_v12 = vmul.f32 %v6748_v14, %v6729_v23  ;;  %v6920_v38 = vld [vmem:[%s7994_s6] sm:$0xff]  ;;  %v6921_v7 = vld [vmem:[%s7994_s6 + $0x8] sm:$0xff] }
0x18f8   : > { %v6774_v39 = vadd.f32 %v6757_v10, %v6750_v30  ;;  %v6775_v56 = vadd.f32 %v6762_v54, %v6751_v24  ;;  %v6776_v57 = vadd.f32 %v6767_v33, %v6752_v55  ;;  %v6777_v36 = vadd.f32 %v6772_v18, %v6753_v12  ;;  %v6927_v30 = vpop.permute.xlu1 %6926  ;;  %v7720_v10 = vld [vmem:[%s8062_s20] sm:$0xff] }
0x18fa   : > { %v6885_v35 = vpack.c.bf16 %v6775_v56, %v6774_v39  ;;  %v6886_v47 = vpack.c.bf16 %v6777_v36, %v6776_v57  ;;  %v6932_v56 = vpop.permute.xlu2 %6931 }
0x18fc   : > { %7269 = vmatmul.msk.bf16.vlgmr.msra.gmra.mxu2 %vm2022_vm12, %v6885_v35 }
0x1903   : > { %v6875_v46 = vpop.f32.mrf.mxu1 }
0x1904   : > { %v6912_v25 = vmul.f32 %v6875_v46, %v6112_v62 }
0x190b   : > { %v6877_v20 = vpop.f32.mrf.mxu1 }
0x190c   : > { %7270 = vmatmul.msk.bf16.gmra.mxu2 %vm2022_vm12, %v6886_v47  ;;  %v6913_v40 = vmul.f32 %v6877_v20, %v6113_v21  ;;  %vm11528_vm12 = vcmask 261120  }
0x190d   : > { %vm11529_vm13 = vmmov %vm11528_vm12 }
0x191d   : > { %v6880_v2 = vpop.f32.mrf.mxu1 }
0x191e   : > { %v6914_v63 = vmul.f32 %v6880_v2, %v6114_v26 }
0x1925   : > { %v6882_v59 = vpop.f32.mrf.mxu1 }
0x1926   : > { %v6915_v44 = vmul.f32 %v6882_v59, %v6115_v22 }
0x197f   : > { %v6902_v29 = vpop.f32.mrf.mxu2 }
0x1980   : > { %v6916_v11 = vadd.f32 %v6912_v25, %v6902_v29 }
0x1987   : > { %v6904_v19 = vpop.f32.mrf.mxu2 }
0x1988   : > { %v6917_v52 = vadd.f32 %v6913_v40, %v6904_v19 }
0x198f   : > { %v6907_v28 = vpop.f32.mrf.mxu2 }
0x1990   : > { %v6918_v32 = vadd.f32 %v6914_v63, %v6907_v28 }
0x1997   : > { %v6909_v43 = vpop.f32.mrf.mxu2 }
0x1998   : > { %v6919_v27 = vadd.f32 %v6915_v44, %v6909_v43 }
0x199a   : > { %6952 = vmatpush.msrb.mxu3 %v6919_v27 }
0x199c   : > { %6953 = vmatpush.msrb.mxu3 %v6918_v32 }
0x199e   : > { %6954 = vmatpush.msrb.mxu3 %v6917_v52 }
0x19a0   : > { %6955 = vmatpush.msrb.mxu3 %v6916_v11 }
0x19a1   : > { %7271 = vmatmul.msk.f32.vlgmr.msrb.gmra.mxu3 %vm11528_vm12, %v6920_v38 }
0x19a9   : > { %7272 = vmatmul.msk.f32.gmra.mxu3 %vm11529_vm13, %v6921_v7 }
0x1a24   : > { %v6957_v24 = vpop.f32.mrf.mxu3 }
0x1a25   : > { %v6958_v54 = vadd.f32 %v6957_v24, %v6927_v30 }
0x1a27   : > { %v6963_v39 = vadd.f32 %v7720_v10, %v6958_v54 }
0x1a29   : > { %6965 = vst.msk [vmem:[%s1009_s14] sm:$0xff] %vm1046_vm0, %v6963_v39 }
0x1a2c   : > { %v6960_v35 = vpop.f32.mrf.mxu3 }
0x1a2d   : > { %v6961_v41 = vadd.f32 %v6960_v35, %v6932_v56 }
0x1a2f   : > { %v6964_v51 = vadd.f32 %v7721_v6, %v6961_v41 }
0x1a31   : > { %6966 = vst.msk [vmem:[%s1009_s14 + $0x8] sm:$0xff] %vm1046_vm0, %v6964_v51 }
0x1a32   : > { %7749 = shalt.err (!%p7746_p3)
}
0x1a33   : > { %s7831_s9 = smov 128   ;;  %s7832_s20 = smov 8  }
0x1a34   : > { %7354 = dma.vmem_to_hbm [thread:$0]  (%p8044_p5), %s6981_s17, 256, %s6983_s19, %s6968_s0, %s7831_s9, %s7831_s9, %s7832_s20  }
0x1a35 PF: > { %p7360_p4 = scmp.ge.s32.totalorder %s7784_s25, 2  ;;  %s6997_s13 = sand.u32 1, %s7772_s4  }
0x1a36   : > { %s6998_s29 = scalar_lea.sflag [#allocation9], %s6997_s13 }
0x1a37   : > { %p7357_p7 = pnand %p7360_p4, %p8048_p6 }
0x1a39   : > { %p7358_p8 = pneg %p7357_p7 }
0x1a3b   : > { %7767 = dma.done.wait (%p7358_p8), %s6998_s29, 256  }
0x1a3c   : > { %7769 = vsyncadd (%p7358_p8), %s6998_s29, 4294967040  ;;  %s11530_s21 = sld [smem:[#allocation40_spill]]  ;;  %p79_p9 = scmp.ge.s32.totalorder %s8031_s16, 4  }
0x1a3d   : > { %s11531_s4 = smov %s7776_s7  ;;  %s11532_s7 = smov %s7780_s10 }
0x1a3e   : > { %s11534_s25 = smov %s8031_s16  ;;  %81 = sbr.rel (!%p79_p9) target bundleno = 71 (0x47), region = 250 }
0x1a42   : > { %s11533_s10 = smov %s11530_s21 }
0x1a43   :  { %7004 = vsyncpa [#allocation9], 1 }
0x1a44   :  { %7006 = vsyncpa [#allocation9 + $0x1], 1 }

</bundles_post_ra>
